<compile_context>
chip_gen: v7x
topology: tpu7x:2x2x1
jax: 0.10.0
libtpu: 0.0.40
codegen_flags: <defaults>
</compile_context>

<pallas_src>
import functools  # noqa: F401
import numpy as np

import jax
import jax.numpy as jnp
from jax import lax
from jax.experimental import pallas as pl
from jax.experimental.pallas import tpu as pltpu

# ----------------------------------------------------------------------------
# Static model configuration
# ----------------------------------------------------------------------------
SEQ = 15                      # number of token columns
EMB = 21                      # embedding dim / vocab size
FILTERS = (32, 64, 128)       # inception filters per block
SEQ_LENS = (15, 7, 3)         # sequence length entering block 1/2/3
_NEG_INF = float("-inf")


def _leaky(v):                # PyTorch LeakyReLU default slope 0.01
    return jnp.where(v > 0, v, 0.01 * v)


# ----------------------------------------------------------------------------
# In-kernel helpers (pure functions of VMEM-resident values)
# ----------------------------------------------------------------------------
def _shift_rows(v, d, fill, l_idx, L):
    """Row (b, l) of result = v row (b, l + d) if 0 <= l + d < L else `fill`.

    `v` is a per-sample-flattened (bt*L, C) slab, `l_idx` the (bt*L, 1) int32
    within-sample position.  Out-of-range (including cross-sample) rows are
    masked to `fill`, so samples never leak into each other.
    """
    if d == 0:
        return v
    M, C = v.shape
    pad = jnp.full((abs(d), C), fill, v.dtype)
    if d > 0:
        sh = jnp.concatenate([v[d:, :], pad], axis=0)
        valid = l_idx < (L - d)
    else:
        sh = jnp.concatenate([pad, v[:d, :]], axis=0)
        valid = l_idx >= (-d)
    return jnp.where(valid, sh, fill)


def _inception_block(h, L, f, l_idx, wf, bf, w3, b3, w5, b5, bn_s, bn_t):
    # MaxPool1d(k=3, stride=1, pad=1) for the pool-proj path (pad value = -inf).
    pooled = jnp.maximum(
        jnp.maximum(_shift_rows(h, -1, _NEG_INF, l_idx, L), h),
        _shift_rows(h, 1, _NEG_INF, l_idx, L))
    # All four 1x1 convs as ONE lane-dense matmul on [x | maxpool(x)].
    z = jnp.concatenate([h, pooled], axis=1)                       # (M, 2*Cin)
    y = jnp.dot(z, wf, preferred_element_type=jnp.float32) + bf    # (M, 4f)
    y = jnp.maximum(y, 0.0)                                        # ReLU
    p1 = y[:, 0 * f:1 * f]
    h2 = y[:, 1 * f:2 * f]
    h3 = y[:, 2 * f:3 * f]
    p4 = y[:, 3 * f:4 * f]
    # k=3 conv, padding=1: taps kk=0,1,2 -> input positions l-1, l, l+1.
    h2c = jnp.concatenate([_shift_rows(h2, -1, 0.0, l_idx, L), h2,
                           _shift_rows(h2, 1, 0.0, l_idx, L)], axis=1)
    p2 = jnp.maximum(jnp.dot(h2c, w3, preferred_element_type=jnp.float32) + b3, 0.0)
    # k=5 conv, padding=2: taps kk=0..4 -> input positions l-2 .. l+2.
    h3c = jnp.concatenate([_shift_rows(h3, -2, 0.0, l_idx, L),
                           _shift_rows(h3, -1, 0.0, l_idx, L), h3,
                           _shift_rows(h3, 1, 0.0, l_idx, L),
                           _shift_rows(h3, 2, 0.0, l_idx, L)], axis=1)
    p3 = jnp.maximum(jnp.dot(h3c, w5, preferred_element_type=jnp.float32) + b5, 0.0)
    out = jnp.concatenate([p1, p2, p3, p4], axis=1)                # (M, 4f) lane-dense
    return out * bn_s + bn_t                                       # BatchNorm (eval affine)


def _pool_stride2(h, L, l_idx, sel):
    # MaxPool1d(k=3, stride=2, no pad): windowed max, then pick rows 2*l via a
    # constant 0/1 selection matrix on the MXU (no gather).
    m = jnp.maximum(jnp.maximum(h, _shift_rows(h, 1, _NEG_INF, l_idx, L)),
                    _shift_rows(h, 2, _NEG_INF, l_idx, L))
    return jnp.dot(sel, m, preferred_element_type=jnp.float32)


# ----------------------------------------------------------------------------
# The single fused forward kernel
# ----------------------------------------------------------------------------
def _forward_kernel(
    tok_ref, feat_ref,
    l1_ref, l2_ref, l3_ref,
    sel1_ref, sel2_ref, sel3_ref,
    emb_ref,
    i1_wf, i1_bf, i1_w3, i1_b3, i1_w5, i1_b5, i1_s, i1_t,
    i2_wf, i2_bf, i2_w3, i2_b3, i2_w5, i2_b5, i2_s, i2_t,
    i3_wf, i3_bf, i3_w3, i3_b3, i3_w5, i3_b5, i3_s, i3_t,
    ifc_w, ifc_b,
    ffc1_w, ffc1_b, ffc2_w, ffc2_b,
    fc1_w, fc1_b, fc2_w, fc2_b, fc3_w, fc3_b,
    o_ref,
):
    L1, L2, L3 = SEQ_LENS
    f1, f2, f3 = FILTERS
    l1 = l1_ref[...]
    l2 = l2_ref[...]
    l3 = l3_ref[...]

    # --- embedding: one-hot @ table (MXU, stays in VMEM; no gather) ---
    tok = tok_ref[...]                                             # (bt*15, 1) int32
    lane = lax.broadcasted_iota(jnp.int32, (tok.shape[0], EMB), 1)
    onehot = (lane == tok).astype(jnp.float32)
    h = jnp.dot(onehot, emb_ref[...], preferred_element_type=jnp.float32)  # (bt*15, 21)

    # --- inception stack with fused stride-2 max pools ---
    h = _inception_block(h, L1, f1, l1, i1_wf[...], i1_bf[...], i1_w3[...],
                         i1_b3[...], i1_w5[...], i1_b5[...], i1_s[...], i1_t[...])
    h = _pool_stride2(h, L1, l1, sel1_ref[...])                    # (bt*7, 128)
    h = _inception_block(h, L2, f2, l2, i2_wf[...], i2_bf[...], i2_w3[...],
                         i2_b3[...], i2_w5[...], i2_b5[...], i2_s[...], i2_t[...])
    h = _pool_stride2(h, L2, l2, sel2_ref[...])                    # (bt*3, 256)
    h = _inception_block(h, L3, f3, l3, i3_wf[...], i3_bf[...], i3_w3[...],
                         i3_b3[...], i3_w5[...], i3_b5[...], i3_s[...], i3_t[...])
    h = _pool_stride2(h, L3, l3, sel3_ref[...])                    # (bt, 512)  (== flatten)

    # --- inception FC (Linear+BN folded) -> ReLU.  Dropout = identity (eval). ---
    hi = jnp.maximum(
        jnp.dot(h, ifc_w[...], preferred_element_type=jnp.float32) + ifc_b[...], 0.0)

    # --- FNN branch (Linear+BN folded) -> LeakyReLU ---
    fx = feat_ref[...]
    fx = _leaky(jnp.dot(fx, ffc1_w[...], preferred_element_type=jnp.float32) + ffc1_b[...])
    fx = _leaky(jnp.dot(fx, ffc2_w[...], preferred_element_type=jnp.float32) + ffc2_b[...])

    # --- fused head ---
    z = jnp.concatenate([hi, fx], axis=1)                          # (bt, 506)
    z = _leaky(jnp.dot(z, fc1_w[...], preferred_element_type=jnp.float32) + fc1_b[...])
    z = _leaky(jnp.dot(z, fc2_w[...], preferred_element_type=jnp.float32) + fc2_b[...])
    z = jnp.dot(z, fc3_w[...], preferred_element_type=jnp.float32) + fc3_b[...]
    o_ref[...] = 1.0 / (1.0 + jnp.exp(-z))                         # sigmoid


# ----------------------------------------------------------------------------
# Wrapper: batch tiling, helper constants, pallas_call
# ----------------------------------------------------------------------------
def final_model_forward(x, P):
    """x: (B, input_size); columns [:-15] = FNN features, [-15:] = token indices."""
    B = x.shape[0]
    feat_dim = x.shape[1] - SEQ
    tok = x[:, -SEQ:].astype(jnp.int32)
    feat = x[:, :feat_dim].astype(jnp.float32)

    # One grid step per `bt` samples; axis marked "parallel" (two-TC sharding on v7x).
    bt = B if B <= 8 else 8
    n_tiles = (B + bt - 1) // bt
    b_pad = n_tiles * bt
    if b_pad != B:
        tok = jnp.pad(tok, ((0, b_pad - B), (0, 0)))
        feat = jnp.pad(feat, ((0, b_pad - B), (0, 0)))
    tok_flat = tok.reshape(b_pad * SEQ, 1)

    # Tiny per-tile constants: within-sample position index + stride-2 row selectors.
    def l_index(L):
        return jnp.asarray(np.tile(np.arange(L, dtype=np.int32), bt)[:, None])

    def sel_matrix(L_in, L_out):
        S = np.zeros((bt * L_out, bt * L_in), np.float32)
        for b in range(bt):
            for lo in range(L_out):
                S[b * L_out + lo, b * L_in + 2 * lo] = 1.0
        return jnp.asarray(S)

    consts = [l_index(15), l_index(7), l_index(3),
              sel_matrix(15, 7), sel_matrix(7, 3), sel_matrix(3, 1),
              P["emb"]]
    for name in ("inc1", "inc2", "inc3"):
        q = P[name]
        consts += [q["wf"], q["bf"], q["w3"], q["b3"], q["w5"], q["b5"],
                   q["bns"], q["bnt"]]
    consts += [P["ifc1_w"], P["ifc1_b"],
               P["ffc1_w"], P["ffc1_b"], P["ffc2_w"], P["ffc2_b"],
               P["fc1_w"], P["fc1_b"], P["fc2_w"], P["fc2_b"],
               P["fc3_w"], P["fc3_b"]]

    in_specs = ([pl.BlockSpec((bt * SEQ, 1), lambda i: (i, 0)),     # tokens (batch-tiled)
                 pl.BlockSpec((bt, feat_dim), lambda i: (i, 0))]    # FNN features
                + [pl.BlockSpec(c.shape, lambda i: (0, 0)) for c in consts])

    out = pl.pallas_call(
        _forward_kernel,
        out_shape=jax.ShapeDtypeStruct((b_pad, 1), jnp.float32),
        grid=(n_tiles,),
        in_specs=in_specs,
        out_specs=pl.BlockSpec((bt, 1), lambda i: (i, 0)),
        compiler_params=pltpu.CompilerParams(dimension_semantics=("parallel",)),
    )(tok_flat, feat, *consts)
    return out[:B]


# ----------------------------------------------------------------------------
# Deterministic parameter construction (PyTorch-style init, BN folded for FC)
# ----------------------------------------------------------------------------
class KeyGen:
    def __init__(self, seed):
        self.key = jax.random.PRNGKey(seed)

    def __call__(self):
        self.key, sub = jax.random.split(self.key)
        return sub


def _uniform(kg, shape, fan_in):
    bound = 1.0 / float(np.sqrt(fan_in))
    return jax.random.uniform(kg(), shape, jnp.float32, -bound, bound)


def bn_affine(n, eps=1e-5):
    gamma = jnp.ones((n,), jnp.float32)
    beta = jnp.zeros((n,), jnp.float32)
    mean = jnp.zeros((n,), jnp.float32)
    var = jnp.ones((n,), jnp.float32)
    scale = gamma / jnp.sqrt(var + eps)
    shift = beta - mean * scale
    return scale, shift


def make_inception_params(kg, cin, f):
    w1, b1 = _uniform(kg, (cin, f), cin), _uniform(kg, (f,), cin)
    w13, b13 = _uniform(kg, (cin, f), cin), _uniform(kg, (f,), cin)
    w3, b3 = _uniform(kg, (3 * f, f), 3 * f), _uniform(kg, (f,), 3 * f)
    w15, b15 = _uniform(kg, (cin, f), cin), _uniform(kg, (f,), cin)
    w5, b5 = _uniform(kg, (5 * f, f), 5 * f), _uniform(kg, (f,), 5 * f)
    wp, bp = _uniform(kg, (cin, f), cin), _uniform(kg, (f,), cin)
    s, t = bn_affine(4 * f)
    zero = jnp.zeros((cin, f), jnp.float32)
    # Merged first matmul: [x | maxpool(x)] (2*cin) -> [p1 | h2 | h3 | p4] (4f).
    wf = jnp.concatenate(
        [jnp.concatenate([w1, w13, w15, zero], axis=1),
         jnp.concatenate([zero, zero, zero, wp], axis=1)], axis=0)   # (2*cin, 4f)
    bf = jnp.concatenate([b1, b13, b15, bp]).reshape(1, 4 * f)
    return dict(wf=wf, bf=bf, w3=w3, b3=b3.reshape(1, f), w5=w5, b5=b5.reshape(1, f),
                bns=s.reshape(1, 4 * f), bnt=t.reshape(1, 4 * f))


def _folded_linear(kg, din, dout, with_bn):
    # Linear -> BN -> act  ==  act(x @ (W*s) + (b*s + t));  fold at build time.
    w, b = _uniform(kg, (din, dout), din), _uniform(kg, (dout,), din)
    if with_bn:
        s, t = bn_affine(dout)
        w = w * s[None, :]
        b = b * s + t
    return w, b.reshape(1, dout)


def make_params(kg, input_size):
    P = {}
    P["emb"] = jax.random.normal(kg(), (EMB, EMB), jnp.float32)  # nn.Embedding ~ N(0,1)
    P["inc1"] = make_inception_params(kg, 21, 32)
    P["inc2"] = make_inception_params(kg, 128, 64)
    P["inc3"] = make_inception_params(kg, 256, 128)
    P["ifc1_w"], P["ifc1_b"] = _folded_linear(kg, 512, 256, True)
    P["ffc1_w"], P["ffc1_b"] = _folded_linear(kg, input_size - SEQ, 500, True)
    P["ffc2_w"], P["ffc2_b"] = _folded_linear(kg, 500, 250, True)
    P["fc1_w"], P["fc1_b"] = _folded_linear(kg, 506, 500, True)
    P["fc2_w"], P["fc2_b"] = _folded_linear(kg, 500, 250, True)
    P["fc3_w"], P["fc3_b"] = _folded_linear(kg, 250, 1, False)
    return P


# ----------------------------------------------------------------------------
# Pure-JAX reference (gather/im2col based) used to cross-check the kernel
# ----------------------------------------------------------------------------
def _reference_forward(x, P):
    B = x.shape[0]
    feat_dim = x.shape[1] - SEQ
    idx = x[:, -SEQ:].astype(jnp.int32)
    h = jnp.take(P["emb"], idx, axis=0)                            # (B, 15, 21)

    def maxpool(v, k, stride, pad):
        if pad:
            v = jnp.pad(v, ((0, 0), (pad, pad), (0, 0)), constant_values=-jnp.inf)
        L = v.shape[1]
        Lo = (L - k) // stride + 1
        w = stride * jnp.arange(Lo)[:, None] + jnp.arange(k)[None, :]
        return v[:, w, :].max(axis=2)

    def convk(v, w, b, k, pad):
        Bv, L, C = v.shape
        vp = jnp.pad(v, ((0, 0), (pad, pad), (0, 0)))
        iw = jnp.arange(L)[:, None] + jnp.arange(k)[None, :]
        win = vp[:, iw, :]
        return (win.reshape(Bv * L, k * C) @ w + b).reshape(Bv, L, -1)

    def block(v, q, f):
        cin = v.shape[-1]
        wf, bf = q["wf"], q["bf"][0]
        w1, w13, w15 = wf[:cin, :f], wf[:cin, f:2 * f], wf[:cin, 2 * f:3 * f]
        wp = wf[cin:, 3 * f:4 * f]
        b1, b13, b15, bp = bf[:f], bf[f:2 * f], bf[2 * f:3 * f], bf[3 * f:]
        relu = lambda u: jnp.maximum(u, 0.0)
        p1 = relu(v @ w1 + b1)
        p2 = relu(convk(relu(v @ w13 + b13), q["w3"], q["b3"][0], 3, 1))
        p3 = relu(convk(relu(v @ w15 + b15), q["w5"], q["b5"][0], 5, 2))
        p4 = relu(maxpool(v, 3, 1, 1) @ wp + bp)
        out = jnp.concatenate([p1, p2, p3, p4], axis=-1)
        return out * q["bns"][0] + q["bnt"][0]

    h = block(h, P["inc1"], 32); h = maxpool(h, 3, 2, 0)
    h = block(h, P["inc2"], 64); h = maxpool(h, 3, 2, 0)
    h = block(h, P["inc3"], 128); h = maxpool(h, 3, 2, 0)
    h = h.reshape(B, -1)
    hi = jnp.maximum(h @ P["ifc1_w"] + P["ifc1_b"][0], 0.0)
    leaky = lambda u: jnp.where(u > 0, u, 0.01 * u)
    fx = x[:, :feat_dim]
    fx = leaky(fx @ P["ffc1_w"] + P["ffc1_b"][0])
    fx = leaky(fx @ P["ffc2_w"] + P["ffc2_b"][0])
    z = jnp.concatenate([hi, fx], axis=1)
    z = leaky(z @ P["fc1_w"] + P["fc1_b"][0])
    z = leaky(z @ P["fc2_w"] + P["fc2_b"][0])
    z = z @ P["fc3_w"] + P["fc3_b"][0]
    return 1.0 / (1.0 + jnp.exp(-z))


# ----------------------------------------------------------------------------
if __name__ == "__main__":
    input_size = 25            # FNN branch sees input_size - 15 = 10 features
    batch = 4

    kg = KeyGen(0)
    P = make_params(kg, input_size)

    feat = jax.random.normal(kg(), (batch, input_size - SEQ), jnp.float32)
    tok = jax.random.randint(kg(), (batch, SEQ), 0, 21).astype(jnp.float32)
    x = jnp.concatenate([feat, tok], axis=1)                       # (B, input_size)

    fwd = jax.jit(final_model_forward)
    out = jax.block_until_ready(fwd(x, P))
    ref = jax.block_until_ready(_reference_forward(x, P))

    assert out.shape == (batch, 1)
    assert bool(jnp.all(jnp.isfinite(out)))
    assert bool(jnp.all((out >= 0.0) & (out <= 1.0)))
    np.testing.assert_allclose(np.asarray(out), np.asarray(ref), rtol=5e-3, atol=5e-3)
    print("KERNEL_OK")
</pallas_src>

<mosaic_0001>
module attributes {stable_mosaic.version = 11 : i64} {
  func.func @_forward_kernel(%arg0: i32, %arg1: memref<60x1xi32, #tpu.memory_space<vmem>>, %arg2: memref<4x10xf32, #tpu.memory_space<vmem>>, %arg3: memref<60x1xi32, #tpu.memory_space<vmem>>, %arg4: memref<28x1xi32, #tpu.memory_space<vmem>>, %arg5: memref<12x1xi32, #tpu.memory_space<vmem>>, %arg6: memref<28x60xf32, #tpu.memory_space<vmem>>, %arg7: memref<12x28xf32, #tpu.memory_space<vmem>>, %arg8: memref<4x12xf32, #tpu.memory_space<vmem>>, %arg9: memref<21x21xf32, #tpu.memory_space<vmem>>, %arg10: memref<42x128xf32, #tpu.memory_space<vmem>>, %arg11: memref<1x128xf32, #tpu.memory_space<vmem>>, %arg12: memref<96x32xf32, #tpu.memory_space<vmem>>, %arg13: memref<1x32xf32, #tpu.memory_space<vmem>>, %arg14: memref<160x32xf32, #tpu.memory_space<vmem>>, %arg15: memref<1x32xf32, #tpu.memory_space<vmem>>, %arg16: memref<1x128xf32, #tpu.memory_space<vmem>>, %arg17: memref<1x128xf32, #tpu.memory_space<vmem>>, %arg18: memref<256x256xf32, #tpu.memory_space<vmem>>, %arg19: memref<1x256xf32, #tpu.memory_space<vmem>>, %arg20: memref<192x64xf32, #tpu.memory_space<vmem>>, %arg21: memref<1x64xf32, #tpu.memory_space<vmem>>, %arg22: memref<320x64xf32, #tpu.memory_space<vmem>>, %arg23: memref<1x64xf32, #tpu.memory_space<vmem>>, %arg24: memref<1x256xf32, #tpu.memory_space<vmem>>, %arg25: memref<1x256xf32, #tpu.memory_space<vmem>>, %arg26: memref<512x512xf32, #tpu.memory_space<vmem>>, %arg27: memref<1x512xf32, #tpu.memory_space<vmem>>, %arg28: memref<384x128xf32, #tpu.memory_space<vmem>>, %arg29: memref<1x128xf32, #tpu.memory_space<vmem>>, %arg30: memref<640x128xf32, #tpu.memory_space<vmem>>, %arg31: memref<1x128xf32, #tpu.memory_space<vmem>>, %arg32: memref<1x512xf32, #tpu.memory_space<vmem>>, %arg33: memref<1x512xf32, #tpu.memory_space<vmem>>, %arg34: memref<512x256xf32, #tpu.memory_space<vmem>>, %arg35: memref<1x256xf32, #tpu.memory_space<vmem>>, %arg36: memref<10x500xf32, #tpu.memory_space<vmem>>, %arg37: memref<1x500xf32, #tpu.memory_space<vmem>>, %arg38: memref<500x250xf32, #tpu.memory_space<vmem>>, %arg39: memref<1x250xf32, #tpu.memory_space<vmem>>, %arg40: memref<506x500xf32, #tpu.memory_space<vmem>>, %arg41: memref<1x500xf32, #tpu.memory_space<vmem>>, %arg42: memref<500x250xf32, #tpu.memory_space<vmem>>, %arg43: memref<1x250xf32, #tpu.memory_space<vmem>>, %arg44: memref<250x1xf32, #tpu.memory_space<vmem>>, %arg45: memref<1x1xf32, #tpu.memory_space<vmem>>, %arg46: memref<4x1xf32, #tpu.memory_space<vmem>>) attributes {dimension_semantics = [#tpu.dimension_semantics<parallel>], iteration_bounds = array<i64: 1>, scalar_prefetch = 0 : i64, scratch_operands = 0 : i64, tpu.core_type = #tpu.core_type<tc>, window_params = [{transform_indices = @transform_0, window_bounds = array<i64: 60, 1>}, {transform_indices = @transform_1, window_bounds = array<i64: 4, 10>}, {pipeline_mode = #tpu.pipeline_mode<synchronous>, transform_indices = @transform_2, window_bounds = array<i64: 60, 1>}, {pipeline_mode = #tpu.pipeline_mode<synchronous>, transform_indices = @transform_3, window_bounds = array<i64: 28, 1>}, {pipeline_mode = #tpu.pipeline_mode<synchronous>, transform_indices = @transform_4, window_bounds = array<i64: 12, 1>}, {pipeline_mode = #tpu.pipeline_mode<synchronous>, transform_indices = @transform_5, window_bounds = array<i64: 28, 60>}, {pipeline_mode = #tpu.pipeline_mode<synchronous>, transform_indices = @transform_6, window_bounds = array<i64: 12, 28>}, {pipeline_mode = #tpu.pipeline_mode<synchronous>, transform_indices = @transform_7, window_bounds = array<i64: 4, 12>}, {pipeline_mode = #tpu.pipeline_mode<synchronous>, transform_indices = @transform_8, window_bounds = array<i64: 21, 21>}, {pipeline_mode = #tpu.pipeline_mode<synchronous>, transform_indices = @transform_9, window_bounds = array<i64: 42, 128>}, {pipeline_mode = #tpu.pipeline_mode<synchronous>, transform_indices = @transform_10, window_bounds = array<i64: 1, 128>}, {pipeline_mode = #tpu.pipeline_mode<synchronous>, transform_indices = @transform_11, window_bounds = array<i64: 96, 32>}, {pipeline_mode = #tpu.pipeline_mode<synchronous>, transform_indices = @transform_12, window_bounds = array<i64: 1, 32>}, {pipeline_mode = #tpu.pipeline_mode<synchronous>, transform_indices = @transform_13, window_bounds = array<i64: 160, 32>}, {pipeline_mode = #tpu.pipeline_mode<synchronous>, transform_indices = @transform_14, window_bounds = array<i64: 1, 32>}, {pipeline_mode = #tpu.pipeline_mode<synchronous>, transform_indices = @transform_15, window_bounds = array<i64: 1, 128>}, {pipeline_mode = #tpu.pipeline_mode<synchronous>, transform_indices = @transform_16, window_bounds = array<i64: 1, 128>}, {pipeline_mode = #tpu.pipeline_mode<synchronous>, transform_indices = @transform_17, window_bounds = array<i64: 256, 256>}, {pipeline_mode = #tpu.pipeline_mode<synchronous>, transform_indices = @transform_18, window_bounds = array<i64: 1, 256>}, {pipeline_mode = #tpu.pipeline_mode<synchronous>, transform_indices = @transform_19, window_bounds = array<i64: 192, 64>}, {pipeline_mode = #tpu.pipeline_mode<synchronous>, transform_indices = @transform_20, window_bounds = array<i64: 1, 64>}, {pipeline_mode = #tpu.pipeline_mode<synchronous>, transform_indices = @transform_21, window_bounds = array<i64: 320, 64>}, {pipeline_mode = #tpu.pipeline_mode<synchronous>, transform_indices = @transform_22, window_bounds = array<i64: 1, 64>}, {pipeline_mode = #tpu.pipeline_mode<synchronous>, transform_indices = @transform_23, window_bounds = array<i64: 1, 256>}, {pipeline_mode = #tpu.pipeline_mode<synchronous>, transform_indices = @transform_24, window_bounds = array<i64: 1, 256>}, {pipeline_mode = #tpu.pipeline_mode<synchronous>, transform_indices = @transform_25, window_bounds = array<i64: 512, 512>}, {pipeline_mode = #tpu.pipeline_mode<synchronous>, transform_indices = @transform_26, window_bounds = array<i64: 1, 512>}, {pipeline_mode = #tpu.pipeline_mode<synchronous>, transform_indices = @transform_27, window_bounds = array<i64: 384, 128>}, {pipeline_mode = #tpu.pipeline_mode<synchronous>, transform_indices = @transform_28, window_bounds = array<i64: 1, 128>}, {pipeline_mode = #tpu.pipeline_mode<synchronous>, transform_indices = @transform_29, window_bounds = array<i64: 640, 128>}, {pipeline_mode = #tpu.pipeline_mode<synchronous>, transform_indices = @transform_30, window_bounds = array<i64: 1, 128>}, {pipeline_mode = #tpu.pipeline_mode<synchronous>, transform_indices = @transform_31, window_bounds = array<i64: 1, 512>}, {pipeline_mode = #tpu.pipeline_mode<synchronous>, transform_indices = @transform_32, window_bounds = array<i64: 1, 512>}, {pipeline_mode = #tpu.pipeline_mode<synchronous>, transform_indices = @transform_33, window_bounds = array<i64: 512, 256>}, {pipeline_mode = #tpu.pipeline_mode<synchronous>, transform_indices = @transform_34, window_bounds = array<i64: 1, 256>}, {pipeline_mode = #tpu.pipeline_mode<synchronous>, transform_indices = @transform_35, window_bounds = array<i64: 10, 500>}, {pipeline_mode = #tpu.pipeline_mode<synchronous>, transform_indices = @transform_36, window_bounds = array<i64: 1, 500>}, {pipeline_mode = #tpu.pipeline_mode<synchronous>, transform_indices = @transform_37, window_bounds = array<i64: 500, 250>}, {pipeline_mode = #tpu.pipeline_mode<synchronous>, transform_indices = @transform_38, window_bounds = array<i64: 1, 250>}, {pipeline_mode = #tpu.pipeline_mode<synchronous>, transform_indices = @transform_39, window_bounds = array<i64: 506, 500>}, {pipeline_mode = #tpu.pipeline_mode<synchronous>, transform_indices = @transform_40, window_bounds = array<i64: 1, 500>}, {pipeline_mode = #tpu.pipeline_mode<synchronous>, transform_indices = @transform_41, window_bounds = array<i64: 500, 250>}, {pipeline_mode = #tpu.pipeline_mode<synchronous>, transform_indices = @transform_42, window_bounds = array<i64: 1, 250>}, {pipeline_mode = #tpu.pipeline_mode<synchronous>, transform_indices = @transform_43, window_bounds = array<i64: 250, 1>}, {pipeline_mode = #tpu.pipeline_mode<synchronous>, transform_indices = @transform_44, window_bounds = array<i64: 1, 1>}, {transform_indices = @transform_45, window_bounds = array<i64: 4, 1>}]} {
    %c0 = arith.constant 0 : index
    %c0_0 = arith.constant 0 : index
    %0 = vector.load %arg3[%c0, %c0_0] : memref<60x1xi32, #tpu.memory_space<vmem>>, vector<60x1xi32>
    %c0_1 = arith.constant 0 : index
    %c0_2 = arith.constant 0 : index
    %1 = vector.load %arg4[%c0_1, %c0_2] : memref<28x1xi32, #tpu.memory_space<vmem>>, vector<28x1xi32>
    %c0_3 = arith.constant 0 : index
    %c0_4 = arith.constant 0 : index
    %2 = vector.load %arg5[%c0_3, %c0_4] : memref<12x1xi32, #tpu.memory_space<vmem>>, vector<12x1xi32>
    %c0_5 = arith.constant 0 : index
    %c0_6 = arith.constant 0 : index
    %3 = vector.load %arg1[%c0_5, %c0_6] : memref<60x1xi32, #tpu.memory_space<vmem>>, vector<60x1xi32>
    %4 = tpu.iota {dimensions = array<i32: 1>} : vector<60x21xi32>
    %5 = vector.broadcast %3 : vector<60x1xi32> to vector<60x21xi32>
    %6 = arith.cmpi eq, %4, %5 : vector<60x21xi32>
    %7 = arith.extui %6 : vector<60x21xi1> to vector<60x21xi32>
    %8 = arith.sitofp %7 : vector<60x21xi32> to vector<60x21xf32>
    %c0_7 = arith.constant 0 : index
    %c0_8 = arith.constant 0 : index
    %9 = vector.load %arg9[%c0_7, %c0_8] : memref<21x21xf32, #tpu.memory_space<vmem>>, vector<21x21xf32>
    %cst = arith.constant dense<0.000000e+00> : vector<60x21xf32>
    %10 = tpu.matmul %8, %9, %cst {dimension_numbers = #tpu.dot_dimension_numbers<[1], [0], [0], [1], [0, 0, 1, 1], [], []>} : vector<60x21xf32>, vector<21x21xf32>, vector<60x21xf32> -> vector<60x21xf32>
    %c0_9 = arith.constant 0 : index
    %c0_10 = arith.constant 0 : index
    %11 = vector.load %arg10[%c0_9, %c0_10] : memref<42x128xf32, #tpu.memory_space<vmem>>, vector<42x128xf32>
    %c0_11 = arith.constant 0 : index
    %c0_12 = arith.constant 0 : index
    %12 = vector.load %arg11[%c0_11, %c0_12] : memref<1x128xf32, #tpu.memory_space<vmem>>, vector<1x128xf32>
    %c0_13 = arith.constant 0 : index
    %c0_14 = arith.constant 0 : index
    %13 = vector.load %arg12[%c0_13, %c0_14] : memref<96x32xf32, #tpu.memory_space<vmem>>, vector<96x32xf32>
    %c0_15 = arith.constant 0 : index
    %c0_16 = arith.constant 0 : index
    %14 = vector.load %arg13[%c0_15, %c0_16] : memref<1x32xf32, #tpu.memory_space<vmem>>, vector<1x32xf32>
    %c0_17 = arith.constant 0 : index
    %c0_18 = arith.constant 0 : index
    %15 = vector.load %arg14[%c0_17, %c0_18] : memref<160x32xf32, #tpu.memory_space<vmem>>, vector<160x32xf32>
    %c0_19 = arith.constant 0 : index
    %c0_20 = arith.constant 0 : index
    %16 = vector.load %arg15[%c0_19, %c0_20] : memref<1x32xf32, #tpu.memory_space<vmem>>, vector<1x32xf32>
    %c0_21 = arith.constant 0 : index
    %c0_22 = arith.constant 0 : index
    %17 = vector.load %arg16[%c0_21, %c0_22] : memref<1x128xf32, #tpu.memory_space<vmem>>, vector<1x128xf32>
    %c0_23 = arith.constant 0 : index
    %c0_24 = arith.constant 0 : index
    %18 = vector.load %arg17[%c0_23, %c0_24] : memref<1x128xf32, #tpu.memory_space<vmem>>, vector<1x128xf32>
    %cst_25 = arith.constant 0xFF800000 : f32
    %19 = vector.broadcast %cst_25 : f32 to vector<1x21xf32>
    %20 = vector.extract_strided_slice %10 {offsets = [0, 0], sizes = [59, 21], strides = [1, 1]} : vector<60x21xf32> to vector<59x21xf32>
    %21 = tpu.concatenate %19, %20 in 0 : vector<1x21xf32>, vector<59x21xf32> -> vector<60x21xf32>
    %c1_i32 = arith.constant 1 : i32
    %22 = vector.broadcast %c1_i32 : i32 to vector<60x1xi32>
    %23 = arith.cmpi sge, %0, %22 : vector<60x1xi32>
    %cst_26 = arith.constant 0xFF800000 : f32
    %24 = vector.shape_cast %23 : vector<60x1xi1> to vector<60x1xi1>
    %25 = vector.broadcast %24 : vector<60x1xi1> to vector<60x21xi1>
    %26 = vector.broadcast %cst_26 : f32 to vector<60x21xf32>
    %27 = arith.select %25, %21, %26 : vector<60x21xi1>, vector<60x21xf32>
    %28 = arith.maximumf %27, %10 : vector<60x21xf32>
    %cst_27 = arith.constant 0xFF800000 : f32
    %29 = vector.broadcast %cst_27 : f32 to vector<1x21xf32>
    %30 = vector.extract_strided_slice %10 {offsets = [1, 0], sizes = [59, 21], strides = [1, 1]} : vector<60x21xf32> to vector<59x21xf32>
    %31 = tpu.concatenate %30, %29 in 0 : vector<59x21xf32>, vector<1x21xf32> -> vector<60x21xf32>
    %c14_i32 = arith.constant 14 : i32
    %32 = vector.broadcast %c14_i32 : i32 to vector<60x1xi32>
    %33 = arith.cmpi slt, %0, %32 : vector<60x1xi32>
    %cst_28 = arith.constant 0xFF800000 : f32
    %34 = vector.shape_cast %33 : vector<60x1xi1> to vector<60x1xi1>
    %35 = vector.broadcast %34 : vector<60x1xi1> to vector<60x21xi1>
    %36 = vector.broadcast %cst_28 : f32 to vector<60x21xf32>
    %37 = arith.select %35, %31, %36 : vector<60x21xi1>, vector<60x21xf32>
    %38 = arith.maximumf %28, %37 : vector<60x21xf32>
    %39 = tpu.concatenate %10, %38 in 1 : vector<60x21xf32>, vector<60x21xf32> -> vector<60x42xf32>
    %cst_29 = arith.constant dense<0.000000e+00> : vector<60x128xf32>
    %40 = tpu.matmul %39, %11, %cst_29 {dimension_numbers = #tpu.dot_dimension_numbers<[1], [0], [0], [1], [0, 0, 1, 1], [], []>} : vector<60x42xf32>, vector<42x128xf32>, vector<60x128xf32> -> vector<60x128xf32>
    %41 = vector.broadcast %12 : vector<1x128xf32> to vector<60x128xf32>
    %42 = arith.addf %40, %41 : vector<60x128xf32>
    %cst_30 = arith.constant 0.000000e+00 : f32
    %43 = vector.broadcast %cst_30 : f32 to vector<60x128xf32>
    %44 = arith.maximumf %42, %43 : vector<60x128xf32>
    %45 = vector.extract_strided_slice %44 {offsets = [0, 0], sizes = [60, 32], strides = [1, 1]} : vector<60x128xf32> to vector<60x32xf32>
    %46 = vector.extract_strided_slice %44 {offsets = [0, 32], sizes = [60, 32], strides = [1, 1]} : vector<60x128xf32> to vector<60x32xf32>
    %47 = vector.extract_strided_slice %44 {offsets = [0, 64], sizes = [60, 32], strides = [1, 1]} : vector<60x128xf32> to vector<60x32xf32>
    %48 = vector.extract_strided_slice %44 {offsets = [0, 96], sizes = [60, 32], strides = [1, 1]} : vector<60x128xf32> to vector<60x32xf32>
    %cst_31 = arith.constant 0.000000e+00 : f32
    %49 = vector.broadcast %cst_31 : f32 to vector<1x32xf32>
    %50 = vector.extract_strided_slice %46 {offsets = [0, 0], sizes = [59, 32], strides = [1, 1]} : vector<60x32xf32> to vector<59x32xf32>
    %51 = tpu.concatenate %49, %50 in 0 : vector<1x32xf32>, vector<59x32xf32> -> vector<60x32xf32>
    %c1_i32_32 = arith.constant 1 : i32
    %52 = vector.broadcast %c1_i32_32 : i32 to vector<60x1xi32>
    %53 = arith.cmpi sge, %0, %52 : vector<60x1xi32>
    %cst_33 = arith.constant 0.000000e+00 : f32
    %54 = vector.shape_cast %53 : vector<60x1xi1> to vector<60x1xi1>
    %55 = vector.broadcast %54 : vector<60x1xi1> to vector<60x32xi1>
    %56 = vector.broadcast %cst_33 : f32 to vector<60x32xf32>
    %57 = arith.select %55, %51, %56 : vector<60x32xi1>, vector<60x32xf32>
    %cst_34 = arith.constant 0.000000e+00 : f32
    %58 = vector.broadcast %cst_34 : f32 to vector<1x32xf32>
    %59 = vector.extract_strided_slice %46 {offsets = [1, 0], sizes = [59, 32], strides = [1, 1]} : vector<60x32xf32> to vector<59x32xf32>
    %60 = tpu.concatenate %59, %58 in 0 : vector<59x32xf32>, vector<1x32xf32> -> vector<60x32xf32>
    %c14_i32_35 = arith.constant 14 : i32
    %61 = vector.broadcast %c14_i32_35 : i32 to vector<60x1xi32>
    %62 = arith.cmpi slt, %0, %61 : vector<60x1xi32>
    %cst_36 = arith.constant 0.000000e+00 : f32
    %63 = vector.shape_cast %62 : vector<60x1xi1> to vector<60x1xi1>
    %64 = vector.broadcast %63 : vector<60x1xi1> to vector<60x32xi1>
    %65 = vector.broadcast %cst_36 : f32 to vector<60x32xf32>
    %66 = arith.select %64, %60, %65 : vector<60x32xi1>, vector<60x32xf32>
    %67 = tpu.concatenate %57, %46, %66 in 1 : vector<60x32xf32>, vector<60x32xf32>, vector<60x32xf32> -> vector<60x96xf32>
    %cst_37 = arith.constant dense<0.000000e+00> : vector<60x32xf32>
    %68 = tpu.matmul %67, %13, %cst_37 {dimension_numbers = #tpu.dot_dimension_numbers<[1], [0], [0], [1], [0, 0, 1, 1], [], []>} : vector<60x96xf32>, vector<96x32xf32>, vector<60x32xf32> -> vector<60x32xf32>
    %69 = vector.broadcast %14 : vector<1x32xf32> to vector<60x32xf32>
    %70 = arith.addf %68, %69 : vector<60x32xf32>
    %cst_38 = arith.constant 0.000000e+00 : f32
    %71 = vector.broadcast %cst_38 : f32 to vector<60x32xf32>
    %72 = arith.maximumf %70, %71 : vector<60x32xf32>
    %cst_39 = arith.constant 0.000000e+00 : f32
    %73 = vector.broadcast %cst_39 : f32 to vector<2x32xf32>
    %74 = vector.extract_strided_slice %47 {offsets = [0, 0], sizes = [58, 32], strides = [1, 1]} : vector<60x32xf32> to vector<58x32xf32>
    %75 = tpu.concatenate %73, %74 in 0 : vector<2x32xf32>, vector<58x32xf32> -> vector<60x32xf32>
    %c2_i32 = arith.constant 2 : i32
    %76 = vector.broadcast %c2_i32 : i32 to vector<60x1xi32>
    %77 = arith.cmpi sge, %0, %76 : vector<60x1xi32>
    %cst_40 = arith.constant 0.000000e+00 : f32
    %78 = vector.shape_cast %77 : vector<60x1xi1> to vector<60x1xi1>
    %79 = vector.broadcast %78 : vector<60x1xi1> to vector<60x32xi1>
    %80 = vector.broadcast %cst_40 : f32 to vector<60x32xf32>
    %81 = arith.select %79, %75, %80 : vector<60x32xi1>, vector<60x32xf32>
    %cst_41 = arith.constant 0.000000e+00 : f32
    %82 = vector.broadcast %cst_41 : f32 to vector<1x32xf32>
    %83 = vector.extract_strided_slice %47 {offsets = [0, 0], sizes = [59, 32], strides = [1, 1]} : vector<60x32xf32> to vector<59x32xf32>
    %84 = tpu.concatenate %82, %83 in 0 : vector<1x32xf32>, vector<59x32xf32> -> vector<60x32xf32>
    %c1_i32_42 = arith.constant 1 : i32
    %85 = vector.broadcast %c1_i32_42 : i32 to vector<60x1xi32>
    %86 = arith.cmpi sge, %0, %85 : vector<60x1xi32>
    %cst_43 = arith.constant 0.000000e+00 : f32
    %87 = vector.shape_cast %86 : vector<60x1xi1> to vector<60x1xi1>
    %88 = vector.broadcast %87 : vector<60x1xi1> to vector<60x32xi1>
    %89 = vector.broadcast %cst_43 : f32 to vector<60x32xf32>
    %90 = arith.select %88, %84, %89 : vector<60x32xi1>, vector<60x32xf32>
    %cst_44 = arith.constant 0.000000e+00 : f32
    %91 = vector.broadcast %cst_44 : f32 to vector<1x32xf32>
    %92 = vector.extract_strided_slice %47 {offsets = [1, 0], sizes = [59, 32], strides = [1, 1]} : vector<60x32xf32> to vector<59x32xf32>
    %93 = tpu.concatenate %92, %91 in 0 : vector<59x32xf32>, vector<1x32xf32> -> vector<60x32xf32>
    %c14_i32_45 = arith.constant 14 : i32
    %94 = vector.broadcast %c14_i32_45 : i32 to vector<60x1xi32>
    %95 = arith.cmpi slt, %0, %94 : vector<60x1xi32>
    %cst_46 = arith.constant 0.000000e+00 : f32
    %96 = vector.shape_cast %95 : vector<60x1xi1> to vector<60x1xi1>
    %97 = vector.broadcast %96 : vector<60x1xi1> to vector<60x32xi1>
    %98 = vector.broadcast %cst_46 : f32 to vector<60x32xf32>
    %99 = arith.select %97, %93, %98 : vector<60x32xi1>, vector<60x32xf32>
    %cst_47 = arith.constant 0.000000e+00 : f32
    %100 = vector.broadcast %cst_47 : f32 to vector<2x32xf32>
    %101 = vector.extract_strided_slice %47 {offsets = [2, 0], sizes = [58, 32], strides = [1, 1]} : vector<60x32xf32> to vector<58x32xf32>
    %102 = tpu.concatenate %101, %100 in 0 : vector<58x32xf32>, vector<2x32xf32> -> vector<60x32xf32>
    %c13_i32 = arith.constant 13 : i32
    %103 = vector.broadcast %c13_i32 : i32 to vector<60x1xi32>
    %104 = arith.cmpi slt, %0, %103 : vector<60x1xi32>
    %cst_48 = arith.constant 0.000000e+00 : f32
    %105 = vector.shape_cast %104 : vector<60x1xi1> to vector<60x1xi1>
    %106 = vector.broadcast %105 : vector<60x1xi1> to vector<60x32xi1>
    %107 = vector.broadcast %cst_48 : f32 to vector<60x32xf32>
    %108 = arith.select %106, %102, %107 : vector<60x32xi1>, vector<60x32xf32>
    %109 = tpu.concatenate %81, %90, %47, %99, %108 in 1 : vector<60x32xf32>, vector<60x32xf32>, vector<60x32xf32>, vector<60x32xf32>, vector<60x32xf32> -> vector<60x160xf32>
    %cst_49 = arith.constant dense<0.000000e+00> : vector<60x32xf32>
    %110 = tpu.matmul %109, %15, %cst_49 {dimension_numbers = #tpu.dot_dimension_numbers<[1], [0], [0], [1], [0, 0, 1, 1], [], []>} : vector<60x160xf32>, vector<160x32xf32>, vector<60x32xf32> -> vector<60x32xf32>
    %111 = vector.broadcast %16 : vector<1x32xf32> to vector<60x32xf32>
    %112 = arith.addf %110, %111 : vector<60x32xf32>
    %cst_50 = arith.constant 0.000000e+00 : f32
    %113 = vector.broadcast %cst_50 : f32 to vector<60x32xf32>
    %114 = arith.maximumf %112, %113 : vector<60x32xf32>
    %115 = tpu.concatenate %45, %72, %114, %48 in 1 : vector<60x32xf32>, vector<60x32xf32>, vector<60x32xf32>, vector<60x32xf32> -> vector<60x128xf32>
    %116 = vector.broadcast %17 : vector<1x128xf32> to vector<60x128xf32>
    %117 = arith.mulf %115, %116 : vector<60x128xf32>
    %118 = vector.broadcast %18 : vector<1x128xf32> to vector<60x128xf32>
    %119 = arith.addf %117, %118 : vector<60x128xf32>
    %c0_51 = arith.constant 0 : index
    %c0_52 = arith.constant 0 : index
    %120 = vector.load %arg6[%c0_51, %c0_52] : memref<28x60xf32, #tpu.memory_space<vmem>>, vector<28x60xf32>
    %cst_53 = arith.constant 0xFF800000 : f32
    %121 = vector.broadcast %cst_53 : f32 to vector<1x128xf32>
    %122 = vector.extract_strided_slice %119 {offsets = [1, 0], sizes = [59, 128], strides = [1, 1]} : vector<60x128xf32> to vector<59x128xf32>
    %123 = tpu.concatenate %122, %121 in 0 : vector<59x128xf32>, vector<1x128xf32> -> vector<60x128xf32>
    %c14_i32_54 = arith.constant 14 : i32
    %124 = vector.broadcast %c14_i32_54 : i32 to vector<60x1xi32>
    %125 = arith.cmpi slt, %0, %124 : vector<60x1xi32>
    %cst_55 = arith.constant 0xFF800000 : f32
    %126 = vector.shape_cast %125 : vector<60x1xi1> to vector<60x1xi1>
    %127 = vector.broadcast %126 : vector<60x1xi1> to vector<60x128xi1>
    %128 = vector.broadcast %cst_55 : f32 to vector<60x128xf32>
    %129 = arith.select %127, %123, %128 : vector<60x128xi1>, vector<60x128xf32>
    %130 = arith.maximumf %119, %129 : vector<60x128xf32>
    %cst_56 = arith.constant 0xFF800000 : f32
    %131 = vector.broadcast %cst_56 : f32 to vector<2x128xf32>
    %132 = vector.extract_strided_slice %119 {offsets = [2, 0], sizes = [58, 128], strides = [1, 1]} : vector<60x128xf32> to vector<58x128xf32>
    %133 = tpu.concatenate %132, %131 in 0 : vector<58x128xf32>, vector<2x128xf32> -> vector<60x128xf32>
    %c13_i32_57 = arith.constant 13 : i32
    %134 = vector.broadcast %c13_i32_57 : i32 to vector<60x1xi32>
    %135 = arith.cmpi slt, %0, %134 : vector<60x1xi32>
    %cst_58 = arith.constant 0xFF800000 : f32
    %136 = vector.shape_cast %135 : vector<60x1xi1> to vector<60x1xi1>
    %137 = vector.broadcast %136 : vector<60x1xi1> to vector<60x128xi1>
    %138 = vector.broadcast %cst_58 : f32 to vector<60x128xf32>
    %139 = arith.select %137, %133, %138 : vector<60x128xi1>, vector<60x128xf32>
    %140 = arith.maximumf %130, %139 : vector<60x128xf32>
    %cst_59 = arith.constant dense<0.000000e+00> : vector<28x128xf32>
    %141 = tpu.matmul %120, %140, %cst_59 {dimension_numbers = #tpu.dot_dimension_numbers<[1], [0], [0], [1], [0, 0, 1, 1], [], []>} : vector<28x60xf32>, vector<60x128xf32>, vector<28x128xf32> -> vector<28x128xf32>
    %c0_60 = arith.constant 0 : index
    %c0_61 = arith.constant 0 : index
    %142 = vector.load %arg18[%c0_60, %c0_61] : memref<256x256xf32, #tpu.memory_space<vmem>>, vector<256x256xf32>
    %c0_62 = arith.constant 0 : index
    %c0_63 = arith.constant 0 : index
    %143 = vector.load %arg19[%c0_62, %c0_63] : memref<1x256xf32, #tpu.memory_space<vmem>>, vector<1x256xf32>
    %c0_64 = arith.constant 0 : index
    %c0_65 = arith.constant 0 : index
    %144 = vector.load %arg20[%c0_64, %c0_65] : memref<192x64xf32, #tpu.memory_space<vmem>>, vector<192x64xf32>
    %c0_66 = arith.constant 0 : index
    %c0_67 = arith.constant 0 : index
    %145 = vector.load %arg21[%c0_66, %c0_67] : memref<1x64xf32, #tpu.memory_space<vmem>>, vector<1x64xf32>
    %c0_68 = arith.constant 0 : index
    %c0_69 = arith.constant 0 : index
    %146 = vector.load %arg22[%c0_68, %c0_69] : memref<320x64xf32, #tpu.memory_space<vmem>>, vector<320x64xf32>
    %c0_70 = arith.constant 0 : index
    %c0_71 = arith.constant 0 : index
    %147 = vector.load %arg23[%c0_70, %c0_71] : memref<1x64xf32, #tpu.memory_space<vmem>>, vector<1x64xf32>
    %c0_72 = arith.constant 0 : index
    %c0_73 = arith.constant 0 : index
    %148 = vector.load %arg24[%c0_72, %c0_73] : memref<1x256xf32, #tpu.memory_space<vmem>>, vector<1x256xf32>
    %c0_74 = arith.constant 0 : index
    %c0_75 = arith.constant 0 : index
    %149 = vector.load %arg25[%c0_74, %c0_75] : memref<1x256xf32, #tpu.memory_space<vmem>>, vector<1x256xf32>
    %cst_76 = arith.constant 0xFF800000 : f32
    %150 = vector.broadcast %cst_76 : f32 to vector<1x128xf32>
    %151 = vector.extract_strided_slice %141 {offsets = [0, 0], sizes = [27, 128], strides = [1, 1]} : vector<28x128xf32> to vector<27x128xf32>
    %152 = tpu.concatenate %150, %151 in 0 : vector<1x128xf32>, vector<27x128xf32> -> vector<28x128xf32>
    %c1_i32_77 = arith.constant 1 : i32
    %153 = vector.broadcast %c1_i32_77 : i32 to vector<28x1xi32>
    %154 = arith.cmpi sge, %1, %153 : vector<28x1xi32>
    %cst_78 = arith.constant 0xFF800000 : f32
    %155 = vector.shape_cast %154 : vector<28x1xi1> to vector<28x1xi1>
    %156 = vector.broadcast %155 : vector<28x1xi1> to vector<28x128xi1>
    %157 = vector.broadcast %cst_78 : f32 to vector<28x128xf32>
    %158 = arith.select %156, %152, %157 : vector<28x128xi1>, vector<28x128xf32>
    %159 = arith.maximumf %158, %141 : vector<28x128xf32>
    %cst_79 = arith.constant 0xFF800000 : f32
    %160 = vector.broadcast %cst_79 : f32 to vector<1x128xf32>
    %161 = vector.extract_strided_slice %141 {offsets = [1, 0], sizes = [27, 128], strides = [1, 1]} : vector<28x128xf32> to vector<27x128xf32>
    %162 = tpu.concatenate %161, %160 in 0 : vector<27x128xf32>, vector<1x128xf32> -> vector<28x128xf32>
    %c6_i32 = arith.constant 6 : i32
    %163 = vector.broadcast %c6_i32 : i32 to vector<28x1xi32>
    %164 = arith.cmpi slt, %1, %163 : vector<28x1xi32>
    %cst_80 = arith.constant 0xFF800000 : f32
    %165 = vector.shape_cast %164 : vector<28x1xi1> to vector<28x1xi1>
    %166 = vector.broadcast %165 : vector<28x1xi1> to vector<28x128xi1>
    %167 = vector.broadcast %cst_80 : f32 to vector<28x128xf32>
    %168 = arith.select %166, %162, %167 : vector<28x128xi1>, vector<28x128xf32>
    %169 = arith.maximumf %159, %168 : vector<28x128xf32>
    %170 = tpu.concatenate %141, %169 in 1 : vector<28x128xf32>, vector<28x128xf32> -> vector<28x256xf32>
    %cst_81 = arith.constant dense<0.000000e+00> : vector<28x256xf32>
    %171 = tpu.matmul %170, %142, %cst_81 {dimension_numbers = #tpu.dot_dimension_numbers<[1], [0], [0], [1], [0, 0, 1, 1], [], []>} : vector<28x256xf32>, vector<256x256xf32>, vector<28x256xf32> -> vector<28x256xf32>
    %172 = vector.broadcast %143 : vector<1x256xf32> to vector<28x256xf32>
    %173 = arith.addf %171, %172 : vector<28x256xf32>
    %cst_82 = arith.constant 0.000000e+00 : f32
    %174 = vector.broadcast %cst_82 : f32 to vector<28x256xf32>
    %175 = arith.maximumf %173, %174 : vector<28x256xf32>
    %176 = vector.extract_strided_slice %175 {offsets = [0, 0], sizes = [28, 64], strides = [1, 1]} : vector<28x256xf32> to vector<28x64xf32>
    %177 = vector.extract_strided_slice %175 {offsets = [0, 64], sizes = [28, 64], strides = [1, 1]} : vector<28x256xf32> to vector<28x64xf32>
    %178 = vector.extract_strided_slice %175 {offsets = [0, 128], sizes = [28, 64], strides = [1, 1]} : vector<28x256xf32> to vector<28x64xf32>
    %179 = vector.extract_strided_slice %175 {offsets = [0, 192], sizes = [28, 64], strides = [1, 1]} : vector<28x256xf32> to vector<28x64xf32>
    %cst_83 = arith.constant 0.000000e+00 : f32
    %180 = vector.broadcast %cst_83 : f32 to vector<1x64xf32>
    %181 = vector.extract_strided_slice %177 {offsets = [0, 0], sizes = [27, 64], strides = [1, 1]} : vector<28x64xf32> to vector<27x64xf32>
    %182 = tpu.concatenate %180, %181 in 0 : vector<1x64xf32>, vector<27x64xf32> -> vector<28x64xf32>
    %c1_i32_84 = arith.constant 1 : i32
    %183 = vector.broadcast %c1_i32_84 : i32 to vector<28x1xi32>
    %184 = arith.cmpi sge, %1, %183 : vector<28x1xi32>
    %cst_85 = arith.constant 0.000000e+00 : f32
    %185 = vector.shape_cast %184 : vector<28x1xi1> to vector<28x1xi1>
    %186 = vector.broadcast %185 : vector<28x1xi1> to vector<28x64xi1>
    %187 = vector.broadcast %cst_85 : f32 to vector<28x64xf32>
    %188 = arith.select %186, %182, %187 : vector<28x64xi1>, vector<28x64xf32>
    %cst_86 = arith.constant 0.000000e+00 : f32
    %189 = vector.broadcast %cst_86 : f32 to vector<1x64xf32>
    %190 = vector.extract_strided_slice %177 {offsets = [1, 0], sizes = [27, 64], strides = [1, 1]} : vector<28x64xf32> to vector<27x64xf32>
    %191 = tpu.concatenate %190, %189 in 0 : vector<27x64xf32>, vector<1x64xf32> -> vector<28x64xf32>
    %c6_i32_87 = arith.constant 6 : i32
    %192 = vector.broadcast %c6_i32_87 : i32 to vector<28x1xi32>
    %193 = arith.cmpi slt, %1, %192 : vector<28x1xi32>
    %cst_88 = arith.constant 0.000000e+00 : f32
    %194 = vector.shape_cast %193 : vector<28x1xi1> to vector<28x1xi1>
    %195 = vector.broadcast %194 : vector<28x1xi1> to vector<28x64xi1>
    %196 = vector.broadcast %cst_88 : f32 to vector<28x64xf32>
    %197 = arith.select %195, %191, %196 : vector<28x64xi1>, vector<28x64xf32>
    %198 = tpu.concatenate %188, %177, %197 in 1 : vector<28x64xf32>, vector<28x64xf32>, vector<28x64xf32> -> vector<28x192xf32>
    %cst_89 = arith.constant dense<0.000000e+00> : vector<28x64xf32>
    %199 = tpu.matmul %198, %144, %cst_89 {dimension_numbers = #tpu.dot_dimension_numbers<[1], [0], [0], [1], [0, 0, 1, 1], [], []>} : vector<28x192xf32>, vector<192x64xf32>, vector<28x64xf32> -> vector<28x64xf32>
    %200 = vector.broadcast %145 : vector<1x64xf32> to vector<28x64xf32>
    %201 = arith.addf %199, %200 : vector<28x64xf32>
    %cst_90 = arith.constant 0.000000e+00 : f32
    %202 = vector.broadcast %cst_90 : f32 to vector<28x64xf32>
    %203 = arith.maximumf %201, %202 : vector<28x64xf32>
    %cst_91 = arith.constant 0.000000e+00 : f32
    %204 = vector.broadcast %cst_91 : f32 to vector<2x64xf32>
    %205 = vector.extract_strided_slice %178 {offsets = [0, 0], sizes = [26, 64], strides = [1, 1]} : vector<28x64xf32> to vector<26x64xf32>
    %206 = tpu.concatenate %204, %205 in 0 : vector<2x64xf32>, vector<26x64xf32> -> vector<28x64xf32>
    %c2_i32_92 = arith.constant 2 : i32
    %207 = vector.broadcast %c2_i32_92 : i32 to vector<28x1xi32>
    %208 = arith.cmpi sge, %1, %207 : vector<28x1xi32>
    %cst_93 = arith.constant 0.000000e+00 : f32
    %209 = vector.shape_cast %208 : vector<28x1xi1> to vector<28x1xi1>
    %210 = vector.broadcast %209 : vector<28x1xi1> to vector<28x64xi1>
    %211 = vector.broadcast %cst_93 : f32 to vector<28x64xf32>
    %212 = arith.select %210, %206, %211 : vector<28x64xi1>, vector<28x64xf32>
    %cst_94 = arith.constant 0.000000e+00 : f32
    %213 = vector.broadcast %cst_94 : f32 to vector<1x64xf32>
    %214 = vector.extract_strided_slice %178 {offsets = [0, 0], sizes = [27, 64], strides = [1, 1]} : vector<28x64xf32> to vector<27x64xf32>
    %215 = tpu.concatenate %213, %214 in 0 : vector<1x64xf32>, vector<27x64xf32> -> vector<28x64xf32>
    %c1_i32_95 = arith.constant 1 : i32
    %216 = vector.broadcast %c1_i32_95 : i32 to vector<28x1xi32>
    %217 = arith.cmpi sge, %1, %216 : vector<28x1xi32>
    %cst_96 = arith.constant 0.000000e+00 : f32
    %218 = vector.shape_cast %217 : vector<28x1xi1> to vector<28x1xi1>
    %219 = vector.broadcast %218 : vector<28x1xi1> to vector<28x64xi1>
    %220 = vector.broadcast %cst_96 : f32 to vector<28x64xf32>
    %221 = arith.select %219, %215, %220 : vector<28x64xi1>, vector<28x64xf32>
    %cst_97 = arith.constant 0.000000e+00 : f32
    %222 = vector.broadcast %cst_97 : f32 to vector<1x64xf32>
    %223 = vector.extract_strided_slice %178 {offsets = [1, 0], sizes = [27, 64], strides = [1, 1]} : vector<28x64xf32> to vector<27x64xf32>
    %224 = tpu.concatenate %223, %222 in 0 : vector<27x64xf32>, vector<1x64xf32> -> vector<28x64xf32>
    %c6_i32_98 = arith.constant 6 : i32
    %225 = vector.broadcast %c6_i32_98 : i32 to vector<28x1xi32>
    %226 = arith.cmpi slt, %1, %225 : vector<28x1xi32>
    %cst_99 = arith.constant 0.000000e+00 : f32
    %227 = vector.shape_cast %226 : vector<28x1xi1> to vector<28x1xi1>
    %228 = vector.broadcast %227 : vector<28x1xi1> to vector<28x64xi1>
    %229 = vector.broadcast %cst_99 : f32 to vector<28x64xf32>
    %230 = arith.select %228, %224, %229 : vector<28x64xi1>, vector<28x64xf32>
    %cst_100 = arith.constant 0.000000e+00 : f32
    %231 = vector.broadcast %cst_100 : f32 to vector<2x64xf32>
    %232 = vector.extract_strided_slice %178 {offsets = [2, 0], sizes = [26, 64], strides = [1, 1]} : vector<28x64xf32> to vector<26x64xf32>
    %233 = tpu.concatenate %232, %231 in 0 : vector<26x64xf32>, vector<2x64xf32> -> vector<28x64xf32>
    %c5_i32 = arith.constant 5 : i32
    %234 = vector.broadcast %c5_i32 : i32 to vector<28x1xi32>
    %235 = arith.cmpi slt, %1, %234 : vector<28x1xi32>
    %cst_101 = arith.constant 0.000000e+00 : f32
    %236 = vector.shape_cast %235 : vector<28x1xi1> to vector<28x1xi1>
    %237 = vector.broadcast %236 : vector<28x1xi1> to vector<28x64xi1>
    %238 = vector.broadcast %cst_101 : f32 to vector<28x64xf32>
    %239 = arith.select %237, %233, %238 : vector<28x64xi1>, vector<28x64xf32>
    %240 = tpu.concatenate %212, %221, %178, %230, %239 in 1 : vector<28x64xf32>, vector<28x64xf32>, vector<28x64xf32>, vector<28x64xf32>, vector<28x64xf32> -> vector<28x320xf32>
    %cst_102 = arith.constant dense<0.000000e+00> : vector<28x64xf32>
    %241 = tpu.matmul %240, %146, %cst_102 {dimension_numbers = #tpu.dot_dimension_numbers<[1], [0], [0], [1], [0, 0, 1, 1], [], []>} : vector<28x320xf32>, vector<320x64xf32>, vector<28x64xf32> -> vector<28x64xf32>
    %242 = vector.broadcast %147 : vector<1x64xf32> to vector<28x64xf32>
    %243 = arith.addf %241, %242 : vector<28x64xf32>
    %cst_103 = arith.constant 0.000000e+00 : f32
    %244 = vector.broadcast %cst_103 : f32 to vector<28x64xf32>
    %245 = arith.maximumf %243, %244 : vector<28x64xf32>
    %246 = tpu.concatenate %176, %203, %245, %179 in 1 : vector<28x64xf32>, vector<28x64xf32>, vector<28x64xf32>, vector<28x64xf32> -> vector<28x256xf32>
    %247 = vector.broadcast %148 : vector<1x256xf32> to vector<28x256xf32>
    %248 = arith.mulf %246, %247 : vector<28x256xf32>
    %249 = vector.broadcast %149 : vector<1x256xf32> to vector<28x256xf32>
    %250 = arith.addf %248, %249 : vector<28x256xf32>
    %c0_104 = arith.constant 0 : index
    %c0_105 = arith.constant 0 : index
    %251 = vector.load %arg7[%c0_104, %c0_105] : memref<12x28xf32, #tpu.memory_space<vmem>>, vector<12x28xf32>
    %cst_106 = arith.constant 0xFF800000 : f32
    %252 = vector.broadcast %cst_106 : f32 to vector<1x256xf32>
    %253 = vector.extract_strided_slice %250 {offsets = [1, 0], sizes = [27, 256], strides = [1, 1]} : vector<28x256xf32> to vector<27x256xf32>
    %254 = tpu.concatenate %253, %252 in 0 : vector<27x256xf32>, vector<1x256xf32> -> vector<28x256xf32>
    %c6_i32_107 = arith.constant 6 : i32
    %255 = vector.broadcast %c6_i32_107 : i32 to vector<28x1xi32>
    %256 = arith.cmpi slt, %1, %255 : vector<28x1xi32>
    %cst_108 = arith.constant 0xFF800000 : f32
    %257 = vector.shape_cast %256 : vector<28x1xi1> to vector<28x1xi1>
    %258 = vector.broadcast %257 : vector<28x1xi1> to vector<28x256xi1>
    %259 = vector.broadcast %cst_108 : f32 to vector<28x256xf32>
    %260 = arith.select %258, %254, %259 : vector<28x256xi1>, vector<28x256xf32>
    %261 = arith.maximumf %250, %260 : vector<28x256xf32>
    %cst_109 = arith.constant 0xFF800000 : f32
    %262 = vector.broadcast %cst_109 : f32 to vector<2x256xf32>
    %263 = vector.extract_strided_slice %250 {offsets = [2, 0], sizes = [26, 256], strides = [1, 1]} : vector<28x256xf32> to vector<26x256xf32>
    %264 = tpu.concatenate %263, %262 in 0 : vector<26x256xf32>, vector<2x256xf32> -> vector<28x256xf32>
    %c5_i32_110 = arith.constant 5 : i32
    %265 = vector.broadcast %c5_i32_110 : i32 to vector<28x1xi32>
    %266 = arith.cmpi slt, %1, %265 : vector<28x1xi32>
    %cst_111 = arith.constant 0xFF800000 : f32
    %267 = vector.shape_cast %266 : vector<28x1xi1> to vector<28x1xi1>
    %268 = vector.broadcast %267 : vector<28x1xi1> to vector<28x256xi1>
    %269 = vector.broadcast %cst_111 : f32 to vector<28x256xf32>
    %270 = arith.select %268, %264, %269 : vector<28x256xi1>, vector<28x256xf32>
    %271 = arith.maximumf %261, %270 : vector<28x256xf32>
    %cst_112 = arith.constant dense<0.000000e+00> : vector<12x256xf32>
    %272 = tpu.matmul %251, %271, %cst_112 {dimension_numbers = #tpu.dot_dimension_numbers<[1], [0], [0], [1], [0, 0, 1, 1], [], []>} : vector<12x28xf32>, vector<28x256xf32>, vector<12x256xf32> -> vector<12x256xf32>
    %c0_113 = arith.constant 0 : index
    %c0_114 = arith.constant 0 : index
    %273 = vector.load %arg26[%c0_113, %c0_114] : memref<512x512xf32, #tpu.memory_space<vmem>>, vector<512x512xf32>
    %c0_115 = arith.constant 0 : index
    %c0_116 = arith.constant 0 : index
    %274 = vector.load %arg27[%c0_115, %c0_116] : memref<1x512xf32, #tpu.memory_space<vmem>>, vector<1x512xf32>
    %c0_117 = arith.constant 0 : index
    %c0_118 = arith.constant 0 : index
    %275 = vector.load %arg28[%c0_117, %c0_118] : memref<384x128xf32, #tpu.memory_space<vmem>>, vector<384x128xf32>
    %c0_119 = arith.constant 0 : index
    %c0_120 = arith.constant 0 : index
    %276 = vector.load %arg29[%c0_119, %c0_120] : memref<1x128xf32, #tpu.memory_space<vmem>>, vector<1x128xf32>
    %c0_121 = arith.constant 0 : index
    %c0_122 = arith.constant 0 : index
    %277 = vector.load %arg30[%c0_121, %c0_122] : memref<640x128xf32, #tpu.memory_space<vmem>>, vector<640x128xf32>
    %c0_123 = arith.constant 0 : index
    %c0_124 = arith.constant 0 : index
    %278 = vector.load %arg31[%c0_123, %c0_124] : memref<1x128xf32, #tpu.memory_space<vmem>>, vector<1x128xf32>
    %c0_125 = arith.constant 0 : index
    %c0_126 = arith.constant 0 : index
    %279 = vector.load %arg32[%c0_125, %c0_126] : memref<1x512xf32, #tpu.memory_space<vmem>>, vector<1x512xf32>
    %c0_127 = arith.constant 0 : index
    %c0_128 = arith.constant 0 : index
    %280 = vector.load %arg33[%c0_127, %c0_128] : memref<1x512xf32, #tpu.memory_space<vmem>>, vector<1x512xf32>
    %cst_129 = arith.constant 0xFF800000 : f32
    %281 = vector.broadcast %cst_129 : f32 to vector<1x256xf32>
    %282 = vector.extract_strided_slice %272 {offsets = [0, 0], sizes = [11, 256], strides = [1, 1]} : vector<12x256xf32> to vector<11x256xf32>
    %283 = tpu.concatenate %281, %282 in 0 : vector<1x256xf32>, vector<11x256xf32> -> vector<12x256xf32>
    %c1_i32_130 = arith.constant 1 : i32
    %284 = vector.broadcast %c1_i32_130 : i32 to vector<12x1xi32>
    %285 = arith.cmpi sge, %2, %284 : vector<12x1xi32>
    %cst_131 = arith.constant 0xFF800000 : f32
    %286 = vector.shape_cast %285 : vector<12x1xi1> to vector<12x1xi1>
    %287 = vector.broadcast %286 : vector<12x1xi1> to vector<12x256xi1>
    %288 = vector.broadcast %cst_131 : f32 to vector<12x256xf32>
    %289 = arith.select %287, %283, %288 : vector<12x256xi1>, vector<12x256xf32>
    %290 = arith.maximumf %289, %272 : vector<12x256xf32>
    %cst_132 = arith.constant 0xFF800000 : f32
    %291 = vector.broadcast %cst_132 : f32 to vector<1x256xf32>
    %292 = vector.extract_strided_slice %272 {offsets = [1, 0], sizes = [11, 256], strides = [1, 1]} : vector<12x256xf32> to vector<11x256xf32>
    %293 = tpu.concatenate %292, %291 in 0 : vector<11x256xf32>, vector<1x256xf32> -> vector<12x256xf32>
    %c2_i32_133 = arith.constant 2 : i32
    %294 = vector.broadcast %c2_i32_133 : i32 to vector<12x1xi32>
    %295 = arith.cmpi slt, %2, %294 : vector<12x1xi32>
    %cst_134 = arith.constant 0xFF800000 : f32
    %296 = vector.shape_cast %295 : vector<12x1xi1> to vector<12x1xi1>
    %297 = vector.broadcast %296 : vector<12x1xi1> to vector<12x256xi1>
    %298 = vector.broadcast %cst_134 : f32 to vector<12x256xf32>
    %299 = arith.select %297, %293, %298 : vector<12x256xi1>, vector<12x256xf32>
    %300 = arith.maximumf %290, %299 : vector<12x256xf32>
    %301 = tpu.concatenate %272, %300 in 1 : vector<12x256xf32>, vector<12x256xf32> -> vector<12x512xf32>
    %cst_135 = arith.constant dense<0.000000e+00> : vector<12x512xf32>
    %302 = tpu.matmul %301, %273, %cst_135 {dimension_numbers = #tpu.dot_dimension_numbers<[1], [0], [0], [1], [0, 0, 1, 1], [], []>} : vector<12x512xf32>, vector<512x512xf32>, vector<12x512xf32> -> vector<12x512xf32>
    %303 = vector.broadcast %274 : vector<1x512xf32> to vector<12x512xf32>
    %304 = arith.addf %302, %303 : vector<12x512xf32>
    %cst_136 = arith.constant 0.000000e+00 : f32
    %305 = vector.broadcast %cst_136 : f32 to vector<12x512xf32>
    %306 = arith.maximumf %304, %305 : vector<12x512xf32>
    %307 = vector.extract_strided_slice %306 {offsets = [0, 0], sizes = [12, 128], strides = [1, 1]} : vector<12x512xf32> to vector<12x128xf32>
    %308 = vector.extract_strided_slice %306 {offsets = [0, 128], sizes = [12, 128], strides = [1, 1]} : vector<12x512xf32> to vector<12x128xf32>
    %309 = vector.extract_strided_slice %306 {offsets = [0, 256], sizes = [12, 128], strides = [1, 1]} : vector<12x512xf32> to vector<12x128xf32>
    %310 = vector.extract_strided_slice %306 {offsets = [0, 384], sizes = [12, 128], strides = [1, 1]} : vector<12x512xf32> to vector<12x128xf32>
    %cst_137 = arith.constant 0.000000e+00 : f32
    %311 = vector.broadcast %cst_137 : f32 to vector<1x128xf32>
    %312 = vector.extract_strided_slice %308 {offsets = [0, 0], sizes = [11, 128], strides = [1, 1]} : vector<12x128xf32> to vector<11x128xf32>
    %313 = tpu.concatenate %311, %312 in 0 : vector<1x128xf32>, vector<11x128xf32> -> vector<12x128xf32>
    %c1_i32_138 = arith.constant 1 : i32
    %314 = vector.broadcast %c1_i32_138 : i32 to vector<12x1xi32>
    %315 = arith.cmpi sge, %2, %314 : vector<12x1xi32>
    %cst_139 = arith.constant 0.000000e+00 : f32
    %316 = vector.shape_cast %315 : vector<12x1xi1> to vector<12x1xi1>
    %317 = vector.broadcast %316 : vector<12x1xi1> to vector<12x128xi1>
    %318 = vector.broadcast %cst_139 : f32 to vector<12x128xf32>
    %319 = arith.select %317, %313, %318 : vector<12x128xi1>, vector<12x128xf32>
    %cst_140 = arith.constant 0.000000e+00 : f32
    %320 = vector.broadcast %cst_140 : f32 to vector<1x128xf32>
    %321 = vector.extract_strided_slice %308 {offsets = [1, 0], sizes = [11, 128], strides = [1, 1]} : vector<12x128xf32> to vector<11x128xf32>
    %322 = tpu.concatenate %321, %320 in 0 : vector<11x128xf32>, vector<1x128xf32> -> vector<12x128xf32>
    %c2_i32_141 = arith.constant 2 : i32
    %323 = vector.broadcast %c2_i32_141 : i32 to vector<12x1xi32>
    %324 = arith.cmpi slt, %2, %323 : vector<12x1xi32>
    %cst_142 = arith.constant 0.000000e+00 : f32
    %325 = vector.shape_cast %324 : vector<12x1xi1> to vector<12x1xi1>
    %326 = vector.broadcast %325 : vector<12x1xi1> to vector<12x128xi1>
    %327 = vector.broadcast %cst_142 : f32 to vector<12x128xf32>
    %328 = arith.select %326, %322, %327 : vector<12x128xi1>, vector<12x128xf32>
    %329 = tpu.concatenate %319, %308, %328 in 1 : vector<12x128xf32>, vector<12x128xf32>, vector<12x128xf32> -> vector<12x384xf32>
    %cst_143 = arith.constant dense<0.000000e+00> : vector<12x128xf32>
    %330 = tpu.matmul %329, %275, %cst_143 {dimension_numbers = #tpu.dot_dimension_numbers<[1], [0], [0], [1], [0, 0, 1, 1], [], []>} : vector<12x384xf32>, vector<384x128xf32>, vector<12x128xf32> -> vector<12x128xf32>
    %331 = vector.broadcast %276 : vector<1x128xf32> to vector<12x128xf32>
    %332 = arith.addf %330, %331 : vector<12x128xf32>
    %cst_144 = arith.constant 0.000000e+00 : f32
    %333 = vector.broadcast %cst_144 : f32 to vector<12x128xf32>
    %334 = arith.maximumf %332, %333 : vector<12x128xf32>
    %cst_145 = arith.constant 0.000000e+00 : f32
    %335 = vector.broadcast %cst_145 : f32 to vector<2x128xf32>
    %336 = vector.extract_strided_slice %309 {offsets = [0, 0], sizes = [10, 128], strides = [1, 1]} : vector<12x128xf32> to vector<10x128xf32>
    %337 = tpu.concatenate %335, %336 in 0 : vector<2x128xf32>, vector<10x128xf32> -> vector<12x128xf32>
    %c2_i32_146 = arith.constant 2 : i32
    %338 = vector.broadcast %c2_i32_146 : i32 to vector<12x1xi32>
    %339 = arith.cmpi sge, %2, %338 : vector<12x1xi32>
    %cst_147 = arith.constant 0.000000e+00 : f32
    %340 = vector.shape_cast %339 : vector<12x1xi1> to vector<12x1xi1>
    %341 = vector.broadcast %340 : vector<12x1xi1> to vector<12x128xi1>
    %342 = vector.broadcast %cst_147 : f32 to vector<12x128xf32>
    %343 = arith.select %341, %337, %342 : vector<12x128xi1>, vector<12x128xf32>
    %cst_148 = arith.constant 0.000000e+00 : f32
    %344 = vector.broadcast %cst_148 : f32 to vector<1x128xf32>
    %345 = vector.extract_strided_slice %309 {offsets = [0, 0], sizes = [11, 128], strides = [1, 1]} : vector<12x128xf32> to vector<11x128xf32>
    %346 = tpu.concatenate %344, %345 in 0 : vector<1x128xf32>, vector<11x128xf32> -> vector<12x128xf32>
    %c1_i32_149 = arith.constant 1 : i32
    %347 = vector.broadcast %c1_i32_149 : i32 to vector<12x1xi32>
    %348 = arith.cmpi sge, %2, %347 : vector<12x1xi32>
    %cst_150 = arith.constant 0.000000e+00 : f32
    %349 = vector.shape_cast %348 : vector<12x1xi1> to vector<12x1xi1>
    %350 = vector.broadcast %349 : vector<12x1xi1> to vector<12x128xi1>
    %351 = vector.broadcast %cst_150 : f32 to vector<12x128xf32>
    %352 = arith.select %350, %346, %351 : vector<12x128xi1>, vector<12x128xf32>
    %cst_151 = arith.constant 0.000000e+00 : f32
    %353 = vector.broadcast %cst_151 : f32 to vector<1x128xf32>
    %354 = vector.extract_strided_slice %309 {offsets = [1, 0], sizes = [11, 128], strides = [1, 1]} : vector<12x128xf32> to vector<11x128xf32>
    %355 = tpu.concatenate %354, %353 in 0 : vector<11x128xf32>, vector<1x128xf32> -> vector<12x128xf32>
    %c2_i32_152 = arith.constant 2 : i32
    %356 = vector.broadcast %c2_i32_152 : i32 to vector<12x1xi32>
    %357 = arith.cmpi slt, %2, %356 : vector<12x1xi32>
    %cst_153 = arith.constant 0.000000e+00 : f32
    %358 = vector.shape_cast %357 : vector<12x1xi1> to vector<12x1xi1>
    %359 = vector.broadcast %358 : vector<12x1xi1> to vector<12x128xi1>
    %360 = vector.broadcast %cst_153 : f32 to vector<12x128xf32>
    %361 = arith.select %359, %355, %360 : vector<12x128xi1>, vector<12x128xf32>
    %cst_154 = arith.constant 0.000000e+00 : f32
    %362 = vector.broadcast %cst_154 : f32 to vector<2x128xf32>
    %363 = vector.extract_strided_slice %309 {offsets = [2, 0], sizes = [10, 128], strides = [1, 1]} : vector<12x128xf32> to vector<10x128xf32>
    %364 = tpu.concatenate %363, %362 in 0 : vector<10x128xf32>, vector<2x128xf32> -> vector<12x128xf32>
    %c1_i32_155 = arith.constant 1 : i32
    %365 = vector.broadcast %c1_i32_155 : i32 to vector<12x1xi32>
    %366 = arith.cmpi slt, %2, %365 : vector<12x1xi32>
    %cst_156 = arith.constant 0.000000e+00 : f32
    %367 = vector.shape_cast %366 : vector<12x1xi1> to vector<12x1xi1>
    %368 = vector.broadcast %367 : vector<12x1xi1> to vector<12x128xi1>
    %369 = vector.broadcast %cst_156 : f32 to vector<12x128xf32>
    %370 = arith.select %368, %364, %369 : vector<12x128xi1>, vector<12x128xf32>
    %371 = tpu.concatenate %343, %352, %309, %361, %370 in 1 : vector<12x128xf32>, vector<12x128xf32>, vector<12x128xf32>, vector<12x128xf32>, vector<12x128xf32> -> vector<12x640xf32>
    %cst_157 = arith.constant dense<0.000000e+00> : vector<12x128xf32>
    %372 = tpu.matmul %371, %277, %cst_157 {dimension_numbers = #tpu.dot_dimension_numbers<[1], [0], [0], [1], [0, 0, 1, 1], [], []>} : vector<12x640xf32>, vector<640x128xf32>, vector<12x128xf32> -> vector<12x128xf32>
    %373 = vector.broadcast %278 : vector<1x128xf32> to vector<12x128xf32>
    %374 = arith.addf %372, %373 : vector<12x128xf32>
    %cst_158 = arith.constant 0.000000e+00 : f32
    %375 = vector.broadcast %cst_158 : f32 to vector<12x128xf32>
    %376 = arith.maximumf %374, %375 : vector<12x128xf32>
    %377 = tpu.concatenate %307, %334, %376, %310 in 1 : vector<12x128xf32>, vector<12x128xf32>, vector<12x128xf32>, vector<12x128xf32> -> vector<12x512xf32>
    %378 = vector.broadcast %279 : vector<1x512xf32> to vector<12x512xf32>
    %379 = arith.mulf %377, %378 : vector<12x512xf32>
    %380 = vector.broadcast %280 : vector<1x512xf32> to vector<12x512xf32>
    %381 = arith.addf %379, %380 : vector<12x512xf32>
    %c0_159 = arith.constant 0 : index
    %c0_160 = arith.constant 0 : index
    %382 = vector.load %arg8[%c0_159, %c0_160] : memref<4x12xf32, #tpu.memory_space<vmem>>, vector<4x12xf32>
    %cst_161 = arith.constant 0xFF800000 : f32
    %383 = vector.broadcast %cst_161 : f32 to vector<1x512xf32>
    %384 = vector.extract_strided_slice %381 {offsets = [1, 0], sizes = [11, 512], strides = [1, 1]} : vector<12x512xf32> to vector<11x512xf32>
    %385 = tpu.concatenate %384, %383 in 0 : vector<11x512xf32>, vector<1x512xf32> -> vector<12x512xf32>
    %c2_i32_162 = arith.constant 2 : i32
    %386 = vector.broadcast %c2_i32_162 : i32 to vector<12x1xi32>
    %387 = arith.cmpi slt, %2, %386 : vector<12x1xi32>
    %cst_163 = arith.constant 0xFF800000 : f32
    %388 = vector.shape_cast %387 : vector<12x1xi1> to vector<12x1xi1>
    %389 = vector.broadcast %388 : vector<12x1xi1> to vector<12x512xi1>
    %390 = vector.broadcast %cst_163 : f32 to vector<12x512xf32>
    %391 = arith.select %389, %385, %390 : vector<12x512xi1>, vector<12x512xf32>
    %392 = arith.maximumf %381, %391 : vector<12x512xf32>
    %cst_164 = arith.constant 0xFF800000 : f32
    %393 = vector.broadcast %cst_164 : f32 to vector<2x512xf32>
    %394 = vector.extract_strided_slice %381 {offsets = [2, 0], sizes = [10, 512], strides = [1, 1]} : vector<12x512xf32> to vector<10x512xf32>
    %395 = tpu.concatenate %394, %393 in 0 : vector<10x512xf32>, vector<2x512xf32> -> vector<12x512xf32>
    %c1_i32_165 = arith.constant 1 : i32
    %396 = vector.broadcast %c1_i32_165 : i32 to vector<12x1xi32>
    %397 = arith.cmpi slt, %2, %396 : vector<12x1xi32>
    %cst_166 = arith.constant 0xFF800000 : f32
    %398 = vector.shape_cast %397 : vector<12x1xi1> to vector<12x1xi1>
    %399 = vector.broadcast %398 : vector<12x1xi1> to vector<12x512xi1>
    %400 = vector.broadcast %cst_166 : f32 to vector<12x512xf32>
    %401 = arith.select %399, %395, %400 : vector<12x512xi1>, vector<12x512xf32>
    %402 = arith.maximumf %392, %401 : vector<12x512xf32>
    %cst_167 = arith.constant dense<0.000000e+00> : vector<4x512xf32>
    %403 = tpu.matmul %382, %402, %cst_167 {dimension_numbers = #tpu.dot_dimension_numbers<[1], [0], [0], [1], [0, 0, 1, 1], [], []>} : vector<4x12xf32>, vector<12x512xf32>, vector<4x512xf32> -> vector<4x512xf32>
    %c0_168 = arith.constant 0 : index
    %c0_169 = arith.constant 0 : index
    %404 = vector.load %arg34[%c0_168, %c0_169] : memref<512x256xf32, #tpu.memory_space<vmem>>, vector<512x256xf32>
    %cst_170 = arith.constant dense<0.000000e+00> : vector<4x256xf32>
    %405 = tpu.matmul %403, %404, %cst_170 {dimension_numbers = #tpu.dot_dimension_numbers<[1], [0], [0], [1], [0, 0, 1, 1], [], []>} : vector<4x512xf32>, vector<512x256xf32>, vector<4x256xf32> -> vector<4x256xf32>
    %c0_171 = arith.constant 0 : index
    %c0_172 = arith.constant 0 : index
    %406 = vector.load %arg35[%c0_171, %c0_172] : memref<1x256xf32, #tpu.memory_space<vmem>>, vector<1x256xf32>
    %407 = vector.broadcast %406 : vector<1x256xf32> to vector<4x256xf32>
    %408 = arith.addf %405, %407 : vector<4x256xf32>
    %cst_173 = arith.constant 0.000000e+00 : f32
    %409 = vector.broadcast %cst_173 : f32 to vector<4x256xf32>
    %410 = arith.maximumf %408, %409 : vector<4x256xf32>
    %c0_174 = arith.constant 0 : index
    %c0_175 = arith.constant 0 : index
    %411 = vector.load %arg2[%c0_174, %c0_175] : memref<4x10xf32, #tpu.memory_space<vmem>>, vector<4x10xf32>
    %c0_176 = arith.constant 0 : index
    %c0_177 = arith.constant 0 : index
    %412 = vector.load %arg36[%c0_176, %c0_177] : memref<10x500xf32, #tpu.memory_space<vmem>>, vector<10x500xf32>
    %cst_178 = arith.constant dense<0.000000e+00> : vector<4x500xf32>
    %413 = tpu.matmul %411, %412, %cst_178 {dimension_numbers = #tpu.dot_dimension_numbers<[1], [0], [0], [1], [0, 0, 1, 1], [], []>} : vector<4x10xf32>, vector<10x500xf32>, vector<4x500xf32> -> vector<4x500xf32>
    %c0_179 = arith.constant 0 : index
    %c0_180 = arith.constant 0 : index
    %414 = vector.load %arg37[%c0_179, %c0_180] : memref<1x500xf32, #tpu.memory_space<vmem>>, vector<1x500xf32>
    %415 = vector.broadcast %414 : vector<1x500xf32> to vector<4x500xf32>
    %416 = arith.addf %413, %415 : vector<4x500xf32>
    %cst_181 = arith.constant 0.000000e+00 : f32
    %417 = vector.broadcast %cst_181 : f32 to vector<4x500xf32>
    %418 = arith.cmpf ogt, %416, %417 : vector<4x500xf32>
    %cst_182 = arith.constant 0.00999999977 : f32
    %419 = vector.broadcast %cst_182 : f32 to vector<4x500xf32>
    %420 = arith.mulf %419, %416 : vector<4x500xf32>
    %421 = arith.select %418, %416, %420 : vector<4x500xi1>, vector<4x500xf32>
    %c0_183 = arith.constant 0 : index
    %c0_184 = arith.constant 0 : index
    %422 = vector.load %arg38[%c0_183, %c0_184] : memref<500x250xf32, #tpu.memory_space<vmem>>, vector<500x250xf32>
    %cst_185 = arith.constant dense<0.000000e+00> : vector<4x250xf32>
    %423 = tpu.matmul %421, %422, %cst_185 {dimension_numbers = #tpu.dot_dimension_numbers<[1], [0], [0], [1], [0, 0, 1, 1], [], []>} : vector<4x500xf32>, vector<500x250xf32>, vector<4x250xf32> -> vector<4x250xf32>
    %c0_186 = arith.constant 0 : index
    %c0_187 = arith.constant 0 : index
    %424 = vector.load %arg39[%c0_186, %c0_187] : memref<1x250xf32, #tpu.memory_space<vmem>>, vector<1x250xf32>
    %425 = vector.broadcast %424 : vector<1x250xf32> to vector<4x250xf32>
    %426 = arith.addf %423, %425 : vector<4x250xf32>
    %cst_188 = arith.constant 0.000000e+00 : f32
    %427 = vector.broadcast %cst_188 : f32 to vector<4x250xf32>
    %428 = arith.cmpf ogt, %426, %427 : vector<4x250xf32>
    %cst_189 = arith.constant 0.00999999977 : f32
    %429 = vector.broadcast %cst_189 : f32 to vector<4x250xf32>
    %430 = arith.mulf %429, %426 : vector<4x250xf32>
    %431 = arith.select %428, %426, %430 : vector<4x250xi1>, vector<4x250xf32>
    %432 = tpu.concatenate %410, %431 in 1 : vector<4x256xf32>, vector<4x250xf32> -> vector<4x506xf32>
    %c0_190 = arith.constant 0 : index
    %c0_191 = arith.constant 0 : index
    %433 = vector.load %arg40[%c0_190, %c0_191] : memref<506x500xf32, #tpu.memory_space<vmem>>, vector<506x500xf32>
    %cst_192 = arith.constant dense<0.000000e+00> : vector<4x500xf32>
    %434 = tpu.matmul %432, %433, %cst_192 {dimension_numbers = #tpu.dot_dimension_numbers<[1], [0], [0], [1], [0, 0, 1, 1], [], []>} : vector<4x506xf32>, vector<506x500xf32>, vector<4x500xf32> -> vector<4x500xf32>
    %c0_193 = arith.constant 0 : index
    %c0_194 = arith.constant 0 : index
    %435 = vector.load %arg41[%c0_193, %c0_194] : memref<1x500xf32, #tpu.memory_space<vmem>>, vector<1x500xf32>
    %436 = vector.broadcast %435 : vector<1x500xf32> to vector<4x500xf32>
    %437 = arith.addf %434, %436 : vector<4x500xf32>
    %cst_195 = arith.constant 0.000000e+00 : f32
    %438 = vector.broadcast %cst_195 : f32 to vector<4x500xf32>
    %439 = arith.cmpf ogt, %437, %438 : vector<4x500xf32>
    %cst_196 = arith.constant 0.00999999977 : f32
    %440 = vector.broadcast %cst_196 : f32 to vector<4x500xf32>
    %441 = arith.mulf %440, %437 : vector<4x500xf32>
    %442 = arith.select %439, %437, %441 : vector<4x500xi1>, vector<4x500xf32>
    %c0_197 = arith.constant 0 : index
    %c0_198 = arith.constant 0 : index
    %443 = vector.load %arg42[%c0_197, %c0_198] : memref<500x250xf32, #tpu.memory_space<vmem>>, vector<500x250xf32>
    %cst_199 = arith.constant dense<0.000000e+00> : vector<4x250xf32>
    %444 = tpu.matmul %442, %443, %cst_199 {dimension_numbers = #tpu.dot_dimension_numbers<[1], [0], [0], [1], [0, 0, 1, 1], [], []>} : vector<4x500xf32>, vector<500x250xf32>, vector<4x250xf32> -> vector<4x250xf32>
    %c0_200 = arith.constant 0 : index
    %c0_201 = arith.constant 0 : index
    %445 = vector.load %arg43[%c0_200, %c0_201] : memref<1x250xf32, #tpu.memory_space<vmem>>, vector<1x250xf32>
    %446 = vector.broadcast %445 : vector<1x250xf32> to vector<4x250xf32>
    %447 = arith.addf %444, %446 : vector<4x250xf32>
    %cst_202 = arith.constant 0.000000e+00 : f32
    %448 = vector.broadcast %cst_202 : f32 to vector<4x250xf32>
    %449 = arith.cmpf ogt, %447, %448 : vector<4x250xf32>
    %cst_203 = arith.constant 0.00999999977 : f32
    %450 = vector.broadcast %cst_203 : f32 to vector<4x250xf32>
    %451 = arith.mulf %450, %447 : vector<4x250xf32>
    %452 = arith.select %449, %447, %451 : vector<4x250xi1>, vector<4x250xf32>
    %c0_204 = arith.constant 0 : index
    %c0_205 = arith.constant 0 : index
    %453 = vector.load %arg44[%c0_204, %c0_205] : memref<250x1xf32, #tpu.memory_space<vmem>>, vector<250x1xf32>
    %cst_206 = arith.constant dense<0.000000e+00> : vector<4x1xf32>
    %454 = tpu.matmul %452, %453, %cst_206 {dimension_numbers = #tpu.dot_dimension_numbers<[1], [0], [0], [1], [0, 0, 1, 1], [], []>} : vector<4x250xf32>, vector<250x1xf32>, vector<4x1xf32> -> vector<4x1xf32>
    %c0_207 = arith.constant 0 : index
    %c0_208 = arith.constant 0 : index
    %455 = vector.load %arg45[%c0_207, %c0_208] : memref<1x1xf32, #tpu.memory_space<vmem>>, vector<1x1xf32>
    %456 = vector.broadcast %455 : vector<1x1xf32> to vector<4x1xf32>
    %457 = arith.addf %454, %456 : vector<4x1xf32>
    %cst_209 = arith.constant 0.000000e+00 : f32
    %458 = vector.broadcast %cst_209 : f32 to vector<4x1xf32>
    %459 = arith.subf %458, %457 : vector<4x1xf32>
    %460 = math.exp %459 : vector<4x1xf32>
    %cst_210 = arith.constant 1.000000e+00 : f32
    %461 = vector.broadcast %cst_210 : f32 to vector<4x1xf32>
    %462 = arith.addf %461, %460 : vector<4x1xf32>
    %cst_211 = arith.constant 1.000000e+00 : f32
    %463 = vector.broadcast %cst_211 : f32 to vector<4x1xf32>
    %464 = arith.divf %463, %462 : vector<4x1xf32>
    %c0_212 = arith.constant 0 : index
    %c0_213 = arith.constant 0 : index
    %465 = vector.load %arg46[%c0_212, %c0_213] : memref<4x1xf32, #tpu.memory_space<vmem>>, vector<4x1xf32>
    tpu.vector_store %arg46[%c0_212, %c0_213], %464 {strides = array<i32>} : memref<4x1xf32, #tpu.memory_space<vmem>>, vector<4x1xf32>,
    return
  }
  func.func @transform_0(%arg0: i32) -> (i32, i32) {
    %c0_i32 = arith.constant 0 : i32
    %c0_i32_0 = arith.constant 0 : i32
    return %arg0, %c0_i32 : i32, i32
  }
  func.func @transform_1(%arg0: i32) -> (i32, i32) {
    %c0_i32 = arith.constant 0 : i32
    %c0_i32_0 = arith.constant 0 : i32
    return %arg0, %c0_i32 : i32, i32
  }
  func.func @transform_2(%arg0: i32) -> (i32, i32) {
    %c0_i32 = arith.constant 0 : i32
    %c0_i32_0 = arith.constant 0 : i32
    %c0_i32_1 = arith.constant 0 : i32
    return %c0_i32, %c0_i32_0 : i32, i32
  }
  func.func @transform_3(%arg0: i32) -> (i32, i32) {
    %c0_i32 = arith.constant 0 : i32
    %c0_i32_0 = arith.constant 0 : i32
    %c0_i32_1 = arith.constant 0 : i32
    return %c0_i32, %c0_i32_0 : i32, i32
  }
  func.func @transform_4(%arg0: i32) -> (i32, i32) {
    %c0_i32 = arith.constant 0 : i32
    %c0_i32_0 = arith.constant 0 : i32
    %c0_i32_1 = arith.constant 0 : i32
    return %c0_i32, %c0_i32_0 : i32, i32
  }
  func.func @transform_5(%arg0: i32) -> (i32, i32) {
    %c0_i32 = arith.constant 0 : i32
    %c0_i32_0 = arith.constant 0 : i32
    %c0_i32_1 = arith.constant 0 : i32
    return %c0_i32, %c0_i32_0 : i32, i32
  }
  func.func @transform_6(%arg0: i32) -> (i32, i32) {
    %c0_i32 = arith.constant 0 : i32
    %c0_i32_0 = arith.constant 0 : i32
    %c0_i32_1 = arith.constant 0 : i32
    return %c0_i32, %c0_i32_0 : i32, i32
  }
  func.func @transform_7(%arg0: i32) -> (i32, i32) {
    %c0_i32 = arith.constant 0 : i32
    %c0_i32_0 = arith.constant 0 : i32
    %c0_i32_1 = arith.constant 0 : i32
    return %c0_i32, %c0_i32_0 : i32, i32
  }
  func.func @transform_8(%arg0: i32) -> (i32, i32) {
    %c0_i32 = arith.constant 0 : i32
    %c0_i32_0 = arith.constant 0 : i32
    %c0_i32_1 = arith.constant 0 : i32
    return %c0_i32, %c0_i32_0 : i32, i32
  }
  func.func @transform_9(%arg0: i32) -> (i32, i32) {
    %c0_i32 = arith.constant 0 : i32
    %c0_i32_0 = arith.constant 0 : i32
    %c0_i32_1 = arith.constant 0 : i32
    return %c0_i32, %c0_i32_0 : i32, i32
  }
  func.func @transform_10(%arg0: i32) -> (i32, i32) {
    %c0_i32 = arith.constant 0 : i32
    %c0_i32_0 = arith.constant 0 : i32
    %c0_i32_1 = arith.constant 0 : i32
    return %c0_i32, %c0_i32_0 : i32, i32
  }
  func.func @transform_11(%arg0: i32) -> (i32, i32) {
    %c0_i32 = arith.constant 0 : i32
    %c0_i32_0 = arith.constant 0 : i32
    %c0_i32_1 = arith.constant 0 : i32
    return %c0_i32, %c0_i32_0 : i32, i32
  }
  func.func @transform_12(%arg0: i32) -> (i32, i32) {
    %c0_i32 = arith.constant 0 : i32
    %c0_i32_0 = arith.constant 0 : i32
    %c0_i32_1 = arith.constant 0 : i32
    return %c0_i32, %c0_i32_0 : i32, i32
  }
  func.func @transform_13(%arg0: i32) -> (i32, i32) {
    %c0_i32 = arith.constant 0 : i32
    %c0_i32_0 = arith.constant 0 : i32
    %c0_i32_1 = arith.constant 0 : i32
    return %c0_i32, %c0_i32_0 : i32, i32
  }
  func.func @transform_14(%arg0: i32) -> (i32, i32) {
    %c0_i32 = arith.constant 0 : i32
    %c0_i32_0 = arith.constant 0 : i32
    %c0_i32_1 = arith.constant 0 : i32
    return %c0_i32, %c0_i32_0 : i32, i32
  }
  func.func @transform_15(%arg0: i32) -> (i32, i32) {
    %c0_i32 = arith.constant 0 : i32
    %c0_i32_0 = arith.constant 0 : i32
    %c0_i32_1 = arith.constant 0 : i32
    return %c0_i32, %c0_i32_0 : i32, i32
  }
  func.func @transform_16(%arg0: i32) -> (i32, i32) {
    %c0_i32 = arith.constant 0 : i32
    %c0_i32_0 = arith.constant 0 : i32
    %c0_i32_1 = arith.constant 0 : i32
    return %c0_i32, %c0_i32_0 : i32, i32
  }
  func.func @transform_17(%arg0: i32) -> (i32, i32) {
    %c0_i32 = arith.constant 0 : i32
    %c0_i32_0 = arith.constant 0 : i32
    %c0_i32_1 = arith.constant 0 : i32
    return %c0_i32, %c0_i32_0 : i32, i32
  }
  func.func @transform_18(%arg0: i32) -> (i32, i32) {
    %c0_i32 = arith.constant 0 : i32
    %c0_i32_0 = arith.constant 0 : i32
    %c0_i32_1 = arith.constant 0 : i32
    return %c0_i32, %c0_i32_0 : i32, i32
  }
  func.func @transform_19(%arg0: i32) -> (i32, i32) {
    %c0_i32 = arith.constant 0 : i32
    %c0_i32_0 = arith.constant 0 : i32
    %c0_i32_1 = arith.constant 0 : i32
    return %c0_i32, %c0_i32_0 : i32, i32
  }
  func.func @transform_20(%arg0: i32) -> (i32, i32) {
    %c0_i32 = arith.constant 0 : i32
    %c0_i32_0 = arith.constant 0 : i32
    %c0_i32_1 = arith.constant 0 : i32
    return %c0_i32, %c0_i32_0 : i32, i32
  }
  func.func @transform_21(%arg0: i32) -> (i32, i32) {
    %c0_i32 = arith.constant 0 : i32
    %c0_i32_0 = arith.constant 0 : i32
    %c0_i32_1 = arith.constant 0 : i32
    return %c0_i32, %c0_i32_0 : i32, i32
  }
  func.func @transform_22(%arg0: i32) -> (i32, i32) {
    %c0_i32 = arith.constant 0 : i32
    %c0_i32_0 = arith.constant 0 : i32
    %c0_i32_1 = arith.constant 0 : i32
    return %c0_i32, %c0_i32_0 : i32, i32
  }
  func.func @transform_23(%arg0: i32) -> (i32, i32) {
    %c0_i32 = arith.constant 0 : i32
    %c0_i32_0 = arith.constant 0 : i32
    %c0_i32_1 = arith.constant 0 : i32
    return %c0_i32, %c0_i32_0 : i32, i32
  }
  func.func @transform_24(%arg0: i32) -> (i32, i32) {
    %c0_i32 = arith.constant 0 : i32
    %c0_i32_0 = arith.constant 0 : i32
    %c0_i32_1 = arith.constant 0 : i32
    return %c0_i32, %c0_i32_0 : i32, i32
  }
  func.func @transform_25(%arg0: i32) -> (i32, i32) {
    %c0_i32 = arith.constant 0 : i32
    %c0_i32_0 = arith.constant 0 : i32
    %c0_i32_1 = arith.constant 0 : i32
    return %c0_i32, %c0_i32_0 : i32, i32
  }
  func.func @transform_26(%arg0: i32) -> (i32, i32) {
    %c0_i32 = arith.constant 0 : i32
    %c0_i32_0 = arith.constant 0 : i32
    %c0_i32_1 = arith.constant 0 : i32
    return %c0_i32, %c0_i32_0 : i32, i32
  }
  func.func @transform_27(%arg0: i32) -> (i32, i32) {
    %c0_i32 = arith.constant 0 : i32
    %c0_i32_0 = arith.constant 0 : i32
    %c0_i32_1 = arith.constant 0 : i32
    return %c0_i32, %c0_i32_0 : i32, i32
  }
  func.func @transform_28(%arg0: i32) -> (i32, i32) {
    %c0_i32 = arith.constant 0 : i32
    %c0_i32_0 = arith.constant 0 : i32
    %c0_i32_1 = arith.constant 0 : i32
    return %c0_i32, %c0_i32_0 : i32, i32
  }
  func.func @transform_29(%arg0: i32) -> (i32, i32) {
    %c0_i32 = arith.constant 0 : i32
    %c0_i32_0 = arith.constant 0 : i32
    %c0_i32_1 = arith.constant 0 : i32
    return %c0_i32, %c0_i32_0 : i32, i32
  }
  func.func @transform_30(%arg0: i32) -> (i32, i32) {
    %c0_i32 = arith.constant 0 : i32
    %c0_i32_0 = arith.constant 0 : i32
    %c0_i32_1 = arith.constant 0 : i32
    return %c0_i32, %c0_i32_0 : i32, i32
  }
  func.func @transform_31(%arg0: i32) -> (i32, i32) {
    %c0_i32 = arith.constant 0 : i32
    %c0_i32_0 = arith.constant 0 : i32
    %c0_i32_1 = arith.constant 0 : i32
    return %c0_i32, %c0_i32_0 : i32, i32
  }
  func.func @transform_32(%arg0: i32) -> (i32, i32) {
    %c0_i32 = arith.constant 0 : i32
    %c0_i32_0 = arith.constant 0 : i32
    %c0_i32_1 = arith.constant 0 : i32
    return %c0_i32, %c0_i32_0 : i32, i32
  }
  func.func @transform_33(%arg0: i32) -> (i32, i32) {
    %c0_i32 = arith.constant 0 : i32
    %c0_i32_0 = arith.constant 0 : i32
    %c0_i32_1 = arith.constant 0 : i32
    return %c0_i32, %c0_i32_0 : i32, i32
  }
  func.func @transform_34(%arg0: i32) -> (i32, i32) {
    %c0_i32 = arith.constant 0 : i32
    %c0_i32_0 = arith.constant 0 : i32
    %c0_i32_1 = arith.constant 0 : i32
    return %c0_i32, %c0_i32_0 : i32, i32
  }
  func.func @transform_35(%arg0: i32) -> (i32, i32) {
    %c0_i32 = arith.constant 0 : i32
    %c0_i32_0 = arith.constant 0 : i32
    %c0_i32_1 = arith.constant 0 : i32
    return %c0_i32, %c0_i32_0 : i32, i32
  }
  func.func @transform_36(%arg0: i32) -> (i32, i32) {
    %c0_i32 = arith.constant 0 : i32
    %c0_i32_0 = arith.constant 0 : i32
    %c0_i32_1 = arith.constant 0 : i32
    return %c0_i32, %c0_i32_0 : i32, i32
  }
  func.func @transform_37(%arg0: i32) -> (i32, i32) {
    %c0_i32 = arith.constant 0 : i32
    %c0_i32_0 = arith.constant 0 : i32
    %c0_i32_1 = arith.constant 0 : i32
    return %c0_i32, %c0_i32_0 : i32, i32
  }
  func.func @transform_38(%arg0: i32) -> (i32, i32) {
    %c0_i32 = arith.constant 0 : i32
    %c0_i32_0 = arith.constant 0 : i32
    %c0_i32_1 = arith.constant 0 : i32
    return %c0_i32, %c0_i32_0 : i32, i32
  }
  func.func @transform_39(%arg0: i32) -> (i32, i32) {
    %c0_i32 = arith.constant 0 : i32
    %c0_i32_0 = arith.constant 0 : i32
    %c0_i32_1 = arith.constant 0 : i32
    return %c0_i32, %c0_i32_0 : i32, i32
  }
  func.func @transform_40(%arg0: i32) -> (i32, i32) {
    %c0_i32 = arith.constant 0 : i32
    %c0_i32_0 = arith.constant 0 : i32
    %c0_i32_1 = arith.constant 0 : i32
    return %c0_i32, %c0_i32_0 : i32, i32
  }
  func.func @transform_41(%arg0: i32) -> (i32, i32) {
    %c0_i32 = arith.constant 0 : i32
    %c0_i32_0 = arith.constant 0 : i32
    %c0_i32_1 = arith.constant 0 : i32
    return %c0_i32, %c0_i32_0 : i32, i32
  }
  func.func @transform_42(%arg0: i32) -> (i32, i32) {
    %c0_i32 = arith.constant 0 : i32
    %c0_i32_0 = arith.constant 0 : i32
    %c0_i32_1 = arith.constant 0 : i32
    return %c0_i32, %c0_i32_0 : i32, i32
  }
  func.func @transform_43(%arg0: i32) -> (i32, i32) {
    %c0_i32 = arith.constant 0 : i32
    %c0_i32_0 = arith.constant 0 : i32
    %c0_i32_1 = arith.constant 0 : i32
    return %c0_i32, %c0_i32_0 : i32, i32
  }
  func.func @transform_44(%arg0: i32) -> (i32, i32) {
    %c0_i32 = arith.constant 0 : i32
    %c0_i32_0 = arith.constant 0 : i32
    %c0_i32_1 = arith.constant 0 : i32
    return %c0_i32, %c0_i32_0 : i32, i32
  }
  func.func @transform_45(%arg0: i32) -> (i32, i32) {
    %c0_i32 = arith.constant 0 : i32
    %c0_i32_0 = arith.constant 0 : i32
    return %arg0, %c0_i32 : i32, i32
  }
}

</mosaic_0001>

<bundles_post_ra>
// kernel: final_model_forward.1
= control target key start
LH: loop header
LB: loop body
LE: loop exit
PB: predicated region body
PF: predicated region fallthrough
CT: control target
= control target key end

     0   :  { %s9476_s6 = smov 1   ;;  %s9477_s10 = smov 2   ;;  %s12717_s0 = inlined_call_operand.smem [shape: u32[46], index: -1, kind: input, shape index: {}] }
   0x1   :  { %s9568_s5 = sld [smem:[%s12717_s0]]   ;;  %s9478_s14 = smov 3  }
   0x2   :  { %s9573_s9 = sld [smem:[%s12717_s0 + %s9476_s6]]   ;;  %s9479_s18 = smov 4  }
   0x3   :  { %s9578_s13 = sld [smem:[%s12717_s0 + %s9477_s10]]   ;;  %s9480_s22 = smov 5  }
   0x4   :  { %s9583_s17 = sld [smem:[%s12717_s0 + %s9478_s14]]   ;;  %s9481_s26 = smov 6  }
   0x5   :  { %s9588_s21 = sld [smem:[%s12717_s0 + %s9479_s18]]   ;;  %s9482_s30 = smov 7  }
   0x6   :  { %s9593_s25 = sld [smem:[%s12717_s0 + %s9480_s22]]   ;;  %s9483_s4 = smov 8  }
   0x7   :  { %12770 = sst [smem:[#allocation61_spill]] %s9568_s5  ;;  %s9484_s10 = smov 9  }
   0x8   :  { %12771 = sst [smem:[#allocation62_spill]] %s9573_s9  ;;  %s9485_s15 = smov 10  }
   0x9   :  { %12772 = sst [smem:[#allocation63_spill]] %s9578_s13  ;;  %s9486_s20 = smov 11  }
   0xa   :  { %s9598_s29 = sld [smem:[%s12717_s0 + %s9481_s26]]   ;;  %s9487_s26 = smov 12  }
   0xb   :  { %s9603_s3 = sld [smem:[%s12717_s0 + %s9482_s30]]   ;;  %s9488_s1 = smov 13  }
   0xc   :  { %12773 = sst [smem:[#allocation64_spill]] %s9593_s25  ;;  %s9489_s7 = smov 14  }
   0xd   :  { %s9608_s8 = sld [smem:[%s12717_s0 + %s9483_s4]]   ;;  %s9491_s22 = smov 16  }
   0xe   :  { %s9613_s14 = sld [smem:[%s12717_s0 + %s9484_s10]]   ;;  %s9492_s28 = smov 17  }
   0xf   :  { %s9618_s19 = sld [smem:[%s12717_s0 + %s9485_s15]]   ;;  %s9490_s15 = smov 15  }
  0x10   :  { %s9623_s24 = sld [smem:[%s12717_s0 + %s9486_s20]]  }
  0x11   :  { %12774 = sst [smem:[#allocation65_spill]] %s9603_s3 }
  0x12   :  { %s9628_s30 = sld [smem:[%s12717_s0 + %s9487_s26]]  }
  0x13   :  { %12775 = sst [smem:[#allocation66_spill]] %s9608_s8 }
  0x14   :  { %s9633_s6 = sld [smem:[%s12717_s0 + %s9488_s1]]   ;;  %s9520_s1 = smov 45  }
  0x15   :  { %12776 = sst [smem:[#allocation67_spill]] %s9618_s19 }
  0x16   :  { %12777 = sst [smem:[#allocation68_spill]] %s9623_s24 }
  0x17   :  { %s9638_s12 = sld [smem:[%s12717_s0 + %s9489_s7]]   ;;  %s9493_s7 = smov 18  }
  0x18   :  { %12778 = sst [smem:[#allocation69_spill]] %s9628_s30 }
  0x19   :  { %s9643_s20 = sld [smem:[%s12717_s0 + %s9490_s15]]   ;;  %s9494_s15 = smov 19  }
  0x1a   :  { %12779 = sst [smem:[#allocation70_spill]] %s9633_s6 }
  0x1b   :  { %s9648_s27 = sld [smem:[%s12717_s0 + %s9491_s22]]   ;;  %s9495_s22 = smov 20  }
  0x1c   :  { %s9653_s4 = sld [smem:[%s12717_s0 + %s9492_s28]]   ;;  %s9496_s28 = smov 21  }
  0x1d   :  { %s9658_s9 = sld [smem:[%s12717_s0 + %s9493_s7]]   ;;  %s9497_s7 = smov 22  }
  0x1e   :  { %s9663_s6 = sld [smem:[%s12717_s0 + %s9494_s15]]   ;;  %s9498_s15 = smov 23  }
  0x1f   :  { %12780 = sst [smem:[#allocation71_spill]] %s9643_s20 }
  0x20   :  { %s9668_s24 = sld [smem:[%s12717_s0 + %s9495_s22]]   ;;  %s9499_s22 = smov 24  }
  0x21   :  { %s9678_s19 = sld [smem:[%s12717_s0 + %s9497_s7]]   ;;  %s9501_s7 = smov 26  }
  0x22   :  { %12781 = sst [smem:[#allocation72_spill]] %s9653_s4 }
  0x23   :  { %12782 = sst [smem:[#allocation73_spill]] %s9658_s9 }
  0x24   :  { %12783 = sst [smem:[#allocation74_spill]] %s9663_s6 }
  0x25   :  { %s9673_s4 = sld [smem:[%s12717_s0 + %s9496_s28]]   ;;  %s9500_s28 = smov 25  }
  0x26   :  { %s9683_s6 = sld [smem:[%s12717_s0 + %s9498_s15]]   ;;  %s9502_s15 = smov 27  }
  0x27   :  { %12785 = sst [smem:[#allocation76_spill]] %s9678_s19 }
  0x28   :  { %s9688_s8 = sld [smem:[%s12717_s0 + %s9499_s22]]   ;;  %s9503_s22 = smov 28  }
  0x29   :  { %s9698_s13 = sld [smem:[%s12717_s0 + %s9501_s7]]   ;;  %s9505_s7 = smov 30  }
  0x2a   :  { %s9703_s5 = sld [smem:[%s12717_s0 + %s9502_s15]]   ;;  %s9506_s15 = smov 31  }
  0x2b   :  { %12784 = sst [smem:[#allocation75_spill]] %s9673_s4 }
  0x2c   :  { %s9693_s4 = sld [smem:[%s12717_s0 + %s9500_s28]]   ;;  %s9504_s28 = smov 29  }
  0x2d   :  { %s9718_s19 = sld [smem:[%s12717_s0 + %s9505_s7]]   ;;  %s9509_s7 = smov 34  }
  0x2e   :  { %12786 = sst [smem:[#allocation77_spill]] %s9688_s8 }
  0x2f   :  { %s9708_s8 = sld [smem:[%s12717_s0 + %s9503_s22]]   ;;  %s9507_s22 = smov 32  }
  0x30   :  { %12788 = sst [smem:[#allocation79_spill]] %s9703_s5 }
  0x31   :  { %s9723_s5 = sld [smem:[%s12717_s0 + %s9506_s15]]   ;;  %s9510_s15 = smov 35  }
  0x32   :  { %12787 = sst [smem:[#allocation78_spill]] %s9693_s4 }
  0x33   :  { %s9713_s4 = sld [smem:[%s12717_s0 + %s9504_s28]]   ;;  %s9508_s28 = smov 33  }
  0x34   :  { %s9728_s9 = sld [smem:[%s12717_s0 + %s9507_s22]]   ;;  %s9511_s22 = smov 36  }
  0x35   :  { %s9738_s20 = sld [smem:[%s12717_s0 + %s9509_s7]]   ;;  %s9513_s7 = smov 38  }
  0x36   :  { %s9748_s30 = sld [smem:[%s12717_s0 + %s9511_s22]]   ;;  %s9515_s22 = smov 40  }
  0x37   :  { %12790 = sst [smem:[#allocation81_spill]] %s9723_s5 }
  0x38   :  { %s9743_s5 = sld [smem:[%s12717_s0 + %s9510_s15]]   ;;  %s9514_s15 = smov 39  }
  0x39   :  { %12789 = sst [smem:[#allocation80_spill]] %s9713_s4 }
  0x3a   :  { %s9733_s4 = sld [smem:[%s12717_s0 + %s9508_s28]]   ;;  %s9512_s28 = smov 37  }
  0x3b   :  { %12792 = sst [smem:[#allocation83_spill]] %s9738_s20 }
  0x3c   :  { %12793 = sst [smem:[#allocation84_spill]] %s9748_s30 }
  0x3d   :  { %s9758_s20 = sld [smem:[%s12717_s0 + %s9513_s7]]   ;;  %s9517_s7 = smov 42  }
  0x3e   :  { %s9763_s3 = sld [smem:[%s12717_s0 + %s9514_s15]]   ;;  %s9518_s15 = smov 43  }
  0x3f   :  { %s9768_s30 = sld [smem:[%s12717_s0 + %s9515_s22]]   ;;  %s9519_s22 = smov 44  }
  0x40   :  { %12791 = sst [smem:[#allocation82_spill]] %s9733_s4 }
  0x41   :  { %s9753_s4 = sld [smem:[%s12717_s0 + %s9512_s28]]   ;;  %s9516_s28 = smov 41  }
  0x42   :  { %s9778_s25 = sld [smem:[%s12717_s0 + %s9517_s7]]  }
  0x44   :  { %12795 = sst [smem:[#allocation86_spill]] %s9763_s3 }
  0x45   :  { %12796 = sst [smem:[#allocation87_spill]] %s9768_s30 }
  0x46   :  { %s9783_s3 = sld [smem:[%s12717_s0 + %s9518_s15]]  }
  0x47   :  { %12794 = sst [smem:[#allocation85_spill]] %s9753_s4 }
  0x48   :  { %s9773_s4 = sld [smem:[%s12717_s0 + %s9516_s28]]  }
  0x49   :  { %s6674_s30 = sld [smem:[%s12717_s0 + %s9519_s22]]  }
  0x4e   :  { %12797 = sst [smem:[#allocation88_spill]] %s9773_s4 }
  0x4f   :  { %s9791_s4 = sld [smem:[%s12717_s0 + %s9520_s1]]   ;;  %v96_v0 = vstv %s6674_s30 }
  0x50   :  { %97 = vst [vmem:[#allocation2] sm:$0x1] %v96_v0 }
  0x51   :  { %98 = vsyncpa [#allocation4], 0 }
  0x52   :  { %99 = vsyncpa [#allocation6], 0 }
  0x53   :  { %100 = vsyncpa [#allocation9], 0 }
  0x54   :  { %101 = vsyncpa [#allocation12], 0 }
  0x55   :  { %102 = vsyncpa [#allocation15], 0 }
  0x56   :  { %103 = vsyncpa [#allocation18], 0 }
  0x57   :  { %104 = vsyncpa [#allocation21], 0 }
  0x58   :  { %105 = vsyncpa [#allocation24], 0 }
  0x59   :  { %106 = vsyncpa [#allocation27], 0 }
  0x5a   :  { %107 = vsyncpa [#allocation30], 0 }
  0x5b   :  { %108 = vsyncpa [#allocation33], 0 }
  0x5c   :  { %109 = vsyncpa [#allocation36], 0 }
  0x5d   :  { %110 = vsyncpa [#allocation39], 0 }
  0x5e   :  { %111 = vsyncpa [#allocation42], 0 }
  0x5f   :  { %112 = vsyncpa [#allocation45], 0  ;;  %s9521_s0 = smov [#allocation5]   ;;  %s9522_s7 = smov [#allocation8]  }
  0x60   :  { %s136_s30 = sshll.u32 %s9521_s0, 4  ;;  %s160_s10 = sshll.u32 %s9522_s7, 4  ;;  %s137_s30 = int_to_ptr.vmem [resolvable:$true] %s136_s30  ;;  %s9793_s10 = int_to_ptr.vmem [resolvable:$true] %s160_s10 }
  0x61   :  { %s8830_s11 = scalar_lea.hbm %s9588_s21, 256 }
  0x62   :  { %p8831_p0 = scmp.ne.s32.totalorder %s9588_s21, %s8830_s11  ;;  %p8834_p1 = scmp.lt.u32.totalorder %s8830_s11, %s9588_s21 }
  0x64   :  { %p8836_p2 = pnand %p8834_p1, %p8831_p0 }
  0x66   :  { %8839 = shalt.err (!%p8836_p2)
}
  0x67   :  { %s8840_s15 = scalar_lea.vmem %s137_s30, 256  ;;  %p8845_p4 = scmp.lt.s32.totalorder %s137_s30, %s137_s30 }
  0x68   :  { %p8841_p3 = scmp.ne.s32.totalorder %s137_s30, %s8840_s15  ;;  %p8846_p5 = scmp.lt.s32.totalorder %s8840_s15, %s8840_s15 }
  0x6a   :  { %p8847_p6 = por %p8846_p5, %p8845_p4 }
  0x6c   :  { %p8848_p7 = pnand %p8847_p6, %p8841_p3 }
  0x6e   :  { %8851 = shalt.err (!%p8848_p7)
}
  0x6f   :  { %s9523_s16 = smov 128   ;;  %s9524_s18 = smov 8  }
  0x70   :  { %142 = dma.hbm_to_vmem [thread:$0]  %s9588_s21, 256, %s137_s30, [#allocation6], %s9523_s16, %s9523_s16, %s9524_s18  }
  0x71   :  { %s8852_s22 = scalar_lea.hbm %s9598_s29, 256 }
  0x72   :  { %p8853_p8 = scmp.ne.s32.totalorder %s9598_s29, %s8852_s22  ;;  %p8856_p9 = scmp.lt.u32.totalorder %s8852_s22, %s9598_s29 }
  0x74   :  { %p8858_p10 = pnand %p8856_p9, %p8853_p8 }
  0x76   :  { %8861 = shalt.err (!%p8858_p10)
}
  0x77   :  { %s8862_s23 = scalar_lea.vmem %s9793_s10, 256  ;;  %p8867_p12 = scmp.lt.s32.totalorder %s9793_s10, %s9793_s10 }
  0x78   :  { %p8863_p11 = scmp.ne.s32.totalorder %s9793_s10, %s8862_s23  ;;  %p8868_p13 = scmp.lt.s32.totalorder %s8862_s23, %s8862_s23 }
  0x7a   :  { %p8869_p0 = por %p8868_p13, %p8867_p12 }
  0x7c   :  { %p8870_p1 = pnand %p8869_p0, %p8863_p11 }
  0x7e   :  { %8873 = shalt.err (!%p8870_p1)
}
  0x7f   :  { %166 = dma.hbm_to_vmem [thread:$0]  %s9598_s29, 256, %s9793_s10, [#allocation9], %s9523_s16, %s9523_s16, %s9524_s18  }
  0x80   :  { %s9525_s21 = smov [#allocation11]   ;;  %s9526_s1 = smov [#allocation14]  }
  0x81   :  { %s184_s26 = sshll.u32 %s9525_s21, 4  ;;  %s213_s28 = sshll.u32 %s9526_s1, 4  ;;  %s185_s26 = int_to_ptr.vmem [resolvable:$true] %s184_s26  ;;  %s214_s28 = int_to_ptr.vmem [resolvable:$true] %s213_s28 }
  0x82   :  { %s8874_s2 = scalar_lea.hbm %s9613_s14, 768 }
  0x83   :  { %p8875_p2 = scmp.ne.s32.totalorder %s9613_s14, %s8874_s2  ;;  %p8878_p3 = scmp.lt.u32.totalorder %s8874_s2, %s9613_s14 }
  0x85   :  { %p8880_p4 = pnand %p8878_p3, %p8875_p2 }
  0x87   :  { %8883 = shalt.err (!%p8880_p4)
}
  0x88   :  { %s8884_s0 = scalar_lea.vmem %s185_s26, 768  ;;  %p8889_p6 = scmp.lt.s32.totalorder %s185_s26, %s185_s26 }
  0x89   :  { %p8885_p5 = scmp.ne.s32.totalorder %s185_s26, %s8884_s0  ;;  %p8890_p7 = scmp.lt.s32.totalorder %s8884_s0, %s8884_s0 }
  0x8b   :  { %p8891_p8 = por %p8890_p7, %p8889_p6 }
  0x8d   :  { %p8892_p9 = pnand %p8891_p8, %p8885_p5 }
  0x8f   :  { %8895 = shalt.err (!%p8892_p9)
}
  0x90   :  { %190 = dma.hbm_to_vmem [thread:$0]  %s9613_s14, 768, %s185_s26, [#allocation12], %s9523_s16, %s9523_s16, %s9524_s18  }
  0x91   :  { %s8896_s29 = scalar_lea.hbm %s9638_s12, 16 }
  0x92   :  { %p8897_p10 = scmp.ne.s32.totalorder %s9638_s12, %s8896_s29  ;;  %p8900_p11 = scmp.lt.u32.totalorder %s8896_s29, %s9638_s12 }
  0x94   :  { %p8902_p12 = pnand %p8900_p11, %p8897_p10 }
  0x96   :  { %8905 = shalt.err (!%p8902_p12)
}
  0x97   :  { %s8906_s30 = scalar_lea.vmem %s214_s28, 16  ;;  %s8910_s7 = scalar_lea.vmem %s214_s28, 32 }
  0x98   :  { %p8907_p13 = scmp.ne.s32.totalorder %s214_s28, %s8906_s30  ;;  %p8911_p0 = scmp.lt.s32.totalorder %s214_s28, %s214_s28 }
  0x99   :  { %p8912_p1 = scmp.lt.s32.totalorder %s8910_s7, %s8906_s30 }
  0x9b   :  { %p8913_p2 = por %p8912_p1, %p8911_p0 }
  0x9d   :  { %p8914_p3 = pnand %p8913_p2, %p8907_p13 }
  0x9f   :  { %8917 = shalt.err (!%p8914_p3)
}
  0xa0   :  { %216 = dma.hbm_to_vmem [thread:$0]  %s9638_s12, 16, %s214_s28, [#allocation15]  }
  0xa1   :  { %s9527_s10 = smov [#allocation17]   ;;  %s9528_s11 = smov [#allocation20]  }
  0xa2   :  { %s233_s14 = sshll.u32 %s9527_s10, 4  ;;  %s257_s15 = sshll.u32 %s9528_s11, 4  ;;  %s234_s14 = int_to_ptr.vmem [resolvable:$true] %s233_s14  ;;  %s258_s15 = int_to_ptr.vmem [resolvable:$true] %s257_s15 }
  0xa3   :  { %s8918_s22 = scalar_lea.hbm %s9648_s27, 16 }
  0xa4   :  { %p8919_p4 = scmp.ne.s32.totalorder %s9648_s27, %s8918_s22  ;;  %p8922_p5 = scmp.lt.u32.totalorder %s8918_s22, %s9648_s27 }
  0xa6   :  { %p8924_p6 = pnand %p8922_p5, %p8919_p4 }
  0xa8   :  { %8927 = shalt.err (!%p8924_p6)
}
  0xa9   :  { %s8928_s23 = scalar_lea.vmem %s234_s14, 16  ;;  %s8932_s21 = scalar_lea.vmem %s234_s14, 32 }
  0xaa   :  { %p8929_p7 = scmp.ne.s32.totalorder %s234_s14, %s8928_s23  ;;  %p8933_p8 = scmp.lt.s32.totalorder %s234_s14, %s234_s14 }
  0xab   :  { %p8934_p9 = scmp.lt.s32.totalorder %s8932_s21, %s8928_s23 }
  0xad   :  { %p8935_p10 = por %p8934_p9, %p8933_p8 }
  0xaf   :  { %p8936_p11 = pnand %p8935_p10, %p8929_p7 }
  0xb1   :  { %8939 = shalt.err (!%p8936_p11)
}
  0xb2   :  { %236 = dma.hbm_to_vmem [thread:$0]  %s9648_s27, 16, %s234_s14, [#allocation18]  }
  0xb3   :  { %s8940_s12 = scalar_lea.hbm %s9668_s24, 16 }
  0xb4   :  { %p8941_p12 = scmp.ne.s32.totalorder %s9668_s24, %s8940_s12  ;;  %p8944_p13 = scmp.lt.u32.totalorder %s8940_s12, %s9668_s24 }
  0xb6   :  { %p8946_p0 = pnand %p8944_p13, %p8941_p12 }
  0xb8   :  { %8949 = shalt.err (!%p8946_p0)
}
  0xb9   :  { %s8950_s26 = scalar_lea.vmem %s258_s15, 16  ;;  %s8954_s1 = scalar_lea.vmem %s258_s15, 32 }
  0xba   :  { %p8951_p1 = scmp.ne.s32.totalorder %s258_s15, %s8950_s26  ;;  %p8955_p2 = scmp.lt.s32.totalorder %s258_s15, %s258_s15 }
  0xbb   :  { %p8956_p3 = scmp.lt.s32.totalorder %s8954_s1, %s8950_s26 }
  0xbd   :  { %p8957_p4 = por %p8956_p3, %p8955_p2 }
  0xbf   :  { %p8958_p5 = pnand %p8957_p4, %p8951_p1 }
  0xc1   :  { %8961 = shalt.err (!%p8958_p5)
}
  0xc2   :  { %260 = dma.hbm_to_vmem [thread:$0]  %s9668_s24, 16, %s258_s15, [#allocation21]  }
  0xc3   :  { %s9529_s28 = smov [#allocation23]   ;;  %s9530_s2 = smov [#allocation26]  }
  0xc4   :  { %s279_s27 = sshll.u32 %s9529_s28, 4  ;;  %s301_s0 = sshll.u32 %s9530_s2, 4  ;;  %s280_s27 = int_to_ptr.vmem [resolvable:$true] %s279_s27  ;;  %s302_s0 = int_to_ptr.vmem [resolvable:$true] %s301_s0 }
  0xc5   :  { %s8962_s29 = scalar_lea.hbm %s9683_s6, 32 }
  0xc6   :  { %p8963_p6 = scmp.ne.s32.totalorder %s9683_s6, %s8962_s29  ;;  %p8966_p7 = scmp.lt.u32.totalorder %s8962_s29, %s9683_s6 }
  0xc8   :  { %p8968_p8 = pnand %p8966_p7, %p8963_p6 }
  0xca   :  { %8971 = shalt.err (!%p8968_p8)
}
  0xcb   :  { %s8972_s30 = scalar_lea.vmem %s280_s27, 32  ;;  %p8977_p10 = scmp.lt.s32.totalorder %s280_s27, %s280_s27 }
  0xcc   :  { %p8973_p9 = scmp.ne.s32.totalorder %s280_s27, %s8972_s30  ;;  %p8978_p11 = scmp.lt.s32.totalorder %s8972_s30, %s8972_s30 }
  0xce   :  { %p8979_p12 = por %p8978_p11, %p8977_p10 }
  0xd0   :  { %p8980_p13 = pnand %p8979_p12, %p8973_p9 }
  0xd2   :  { %8983 = shalt.err (!%p8980_p13)
}
  0xd3   :  { %282 = dma.hbm_to_vmem [thread:$0]  %s9683_s6, 32, %s280_s27, [#allocation24]  }
  0xd4   :  { %s8984_s24 = scalar_lea.hbm %s9698_s13, 64 }
  0xd5   :  { %p8985_p0 = scmp.ne.s32.totalorder %s9698_s13, %s8984_s24  ;;  %p8988_p1 = scmp.lt.u32.totalorder %s8984_s24, %s9698_s13 }
  0xd7   :  { %p8990_p2 = pnand %p8988_p1, %p8985_p0 }
  0xd9   :  { %8993 = shalt.err (!%p8990_p2)
}
  0xda   :  { %s8994_s7 = scalar_lea.vmem %s302_s0, 64  ;;  %p8999_p4 = scmp.lt.s32.totalorder %s302_s0, %s302_s0 }
  0xdb   :  { %p8995_p3 = scmp.ne.s32.totalorder %s302_s0, %s8994_s7  ;;  %p9000_p5 = scmp.lt.s32.totalorder %s8994_s7, %s8994_s7 }
  0xdd   :  { %p9001_p6 = por %p9000_p5, %p8999_p4 }
  0xdf   :  { %p9002_p7 = pnand %p9001_p6, %p8995_p3 }
  0xe1   :  { %9005 = shalt.err (!%p9002_p7)
}
  0xe2   :  { %304 = dma.hbm_to_vmem [thread:$0]  %s9698_s13, 64, %s302_s0, [#allocation27]  }
  0xe3   :  { %s9531_s10 = smov [#allocation29]   ;;  %s9532_s6 = smov [#allocation32]  }
  0xe4   :  { %s323_s14 = sshll.u32 %s9531_s10, 4  ;;  %s345_s11 = sshll.u32 %s9532_s6, 4  ;;  %s324_s14 = int_to_ptr.vmem [resolvable:$true] %s323_s14  ;;  %s346_s11 = int_to_ptr.vmem [resolvable:$true] %s345_s11 }
  0xe5   :  { %s9006_s15 = scalar_lea.hbm %s9708_s8, 16 }
  0xe6   :  { %p9007_p8 = scmp.ne.s32.totalorder %s9708_s8, %s9006_s15  ;;  %p9010_p9 = scmp.lt.u32.totalorder %s9006_s15, %s9708_s8 }
  0xe8   :  { %p9012_p10 = pnand %p9010_p9, %p9007_p8 }
  0xea   :  { %9015 = shalt.err (!%p9012_p10)
}
  0xeb   :  { %s9016_s22 = scalar_lea.vmem %s324_s14, 16  ;;  %s9020_s23 = scalar_lea.vmem %s324_s14, 32 }
  0xec   :  { %p9017_p11 = scmp.ne.s32.totalorder %s324_s14, %s9016_s22  ;;  %p9021_p12 = scmp.lt.s32.totalorder %s324_s14, %s324_s14 }
  0xed   :  { %p9022_p13 = scmp.lt.s32.totalorder %s9020_s23, %s9016_s22 }
  0xef   :  { %p9023_p0 = por %p9022_p13, %p9021_p12 }
  0xf1   :  { %p9024_p1 = pnand %p9023_p0, %p9017_p11 }
  0xf3   :  { %9027 = shalt.err (!%p9024_p1)
}
  0xf4   :  { %326 = dma.hbm_to_vmem [thread:$0]  %s9708_s8, 16, %s324_s14, [#allocation30]  }
  0xf5   :  { %s9028_s13 = scalar_lea.hbm %s9718_s19, 16 }
  0xf6   :  { %p9029_p2 = scmp.ne.s32.totalorder %s9718_s19, %s9028_s13  ;;  %p9032_p3 = scmp.lt.u32.totalorder %s9028_s13, %s9718_s19 }
  0xf8   :  { %p9034_p4 = pnand %p9032_p3, %p9029_p2 }
  0xfa   :  { %9037 = shalt.err (!%p9034_p4)
}
  0xfb   :  { %s9038_s21 = scalar_lea.vmem %s346_s11, 16  ;;  %s9042_s12 = scalar_lea.vmem %s346_s11, 32 }
  0xfc   :  { %p9039_p5 = scmp.ne.s32.totalorder %s346_s11, %s9038_s21  ;;  %p9043_p6 = scmp.lt.s32.totalorder %s346_s11, %s346_s11 }
  0xfd   :  { %p9044_p7 = scmp.lt.s32.totalorder %s9042_s12, %s9038_s21 }
  0xff   :  { %p9045_p8 = por %p9044_p7, %p9043_p6 }
 0x101   :  { %p9046_p9 = pnand %p9045_p8, %p9039_p5 }
 0x103   :  { %9049 = shalt.err (!%p9046_p9)
}
 0x104   :  { %348 = dma.hbm_to_vmem [thread:$0]  %s9718_s19, 16, %s346_s11, [#allocation33]  }
 0x105   :  { %s9533_s26 = smov [#allocation35]   ;;  %s9534_s1 = smov [#allocation38]  }
 0x106   :  { %s365_s8 = sshll.u32 %s9533_s26, 4  ;;  %s386_s28 = sshll.u32 %s9534_s1, 4  ;;  %s366_s8 = int_to_ptr.vmem [resolvable:$true] %s365_s8  ;;  %s9849_s28 = int_to_ptr.vmem [resolvable:$true] %s386_s28 }
 0x107   :  { %s9050_s27 = scalar_lea.hbm %s9728_s9, 64 }
 0x108   :  { %p9051_p10 = scmp.ne.s32.totalorder %s9728_s9, %s9050_s27  ;;  %p9054_p11 = scmp.lt.u32.totalorder %s9050_s27, %s9728_s9 }
 0x10a   :  { %p9056_p12 = pnand %p9054_p11, %p9051_p10 }
 0x10c   :  { %9059 = shalt.err (!%p9056_p12)
}
 0x10d   :  { %s9060_s2 = scalar_lea.vmem %s366_s8, 64  ;;  %p9065_p0 = scmp.lt.s32.totalorder %s366_s8, %s366_s8 }
 0x10e   :  { %p9061_p13 = scmp.ne.s32.totalorder %s366_s8, %s9060_s2  ;;  %p9066_p1 = scmp.lt.s32.totalorder %s9060_s2, %s9060_s2 }
 0x110   :  { %p9067_p2 = por %p9066_p1, %p9065_p0 }
 0x112   :  { %p9068_p3 = pnand %p9067_p2, %p9061_p13 }
 0x114   :  { %9071 = shalt.err (!%p9068_p3)
}
 0x115   :  { %368 = dma.hbm_to_vmem [thread:$0]  %s9728_s9, 64, %s366_s8, [#allocation36]  }
 0x116   :  { %s9072_s19 = scalar_lea.hbm %s9743_s5, 1024 }
 0x117   :  { %p9073_p4 = scmp.ne.s32.totalorder %s9743_s5, %s9072_s19  ;;  %p9076_p5 = scmp.lt.u32.totalorder %s9072_s19, %s9743_s5 }
 0x119   :  { %p9078_p6 = pnand %p9076_p5, %p9073_p4 }
 0x11b   :  { %9081 = shalt.err (!%p9078_p6)
}
 0x11c   :  { %s9082_s0 = scalar_lea.vmem %s9849_s28, 1024  ;;  %p9087_p8 = scmp.lt.s32.totalorder %s9849_s28, %s9849_s28 }
 0x11d   :  { %p9083_p7 = scmp.ne.s32.totalorder %s9849_s28, %s9082_s0  ;;  %p9088_p9 = scmp.lt.s32.totalorder %s9082_s0, %s9082_s0 }
 0x11f   :  { %p9089_p10 = por %p9088_p9, %p9087_p8 }
 0x121   :  { %p9090_p11 = pnand %p9089_p10, %p9083_p7 }
 0x123   :  { %9093 = shalt.err (!%p9090_p11)
}
 0x124   :  { %s9535_s29 = smov 512   ;;  %s9536_s9 = smov 32  }
 0x125   :  { %392 = dma.hbm_to_vmem [thread:$0]  %s9743_s5, 1024, %s9849_s28, [#allocation39], %s9535_s29, %s9535_s29, %s9536_s9  }
 0x126   :  { %s9537_s30 = smov [#allocation41]   ;;  %s9538_s7 = smov [#allocation3]  }
 0x127   :  { %s411_s24 = sshll.u32 %s9537_s30, 4  ;;  %s124_s10 = sshll.u32 %s9538_s7, 4  ;;  %s412_s24 = int_to_ptr.vmem [resolvable:$true] %s411_s24  ;;  %s9865_s10 = int_to_ptr.vmem [resolvable:$true] %s124_s10 }
 0x128   :  { %s9094_s14 = scalar_lea.hbm %s9758_s20, 32 }
 0x129   :  { %p9095_p12 = scmp.ne.s32.totalorder %s9758_s20, %s9094_s14  ;;  %p9098_p13 = scmp.lt.u32.totalorder %s9094_s14, %s9758_s20 }
 0x12b   :  { %p9100_p0 = pnand %p9098_p13, %p9095_p12 }
 0x12d   :  { %9103 = shalt.err (!%p9100_p0)
}
 0x12e   :  { %s9104_s6 = scalar_lea.vmem %s412_s24, 32  ;;  %p9109_p2 = scmp.lt.s32.totalorder %s412_s24, %s412_s24 }
 0x12f   :  { %p9105_p1 = scmp.ne.s32.totalorder %s412_s24, %s9104_s6  ;;  %p9110_p3 = scmp.lt.s32.totalorder %s9104_s6, %s9104_s6 }
 0x131   :  { %p9111_p4 = por %p9110_p3, %p9109_p2 }
 0x133   :  { %p9112_p5 = pnand %p9111_p4, %p9105_p1 }
 0x135   :  { %9115 = shalt.err (!%p9112_p5)
}
 0x136   :  { %414 = dma.hbm_to_vmem [thread:$0]  %s9758_s20, 32, %s412_s24, [#allocation42]  }
 0x137   :  { %s9116_s5 = scalar_lea.hbm %s9583_s17, 512 }
 0x138   :  { %p9117_p6 = scmp.ne.s32.totalorder %s9583_s17, %s9116_s5  ;;  %p9120_p7 = scmp.lt.u32.totalorder %s9116_s5, %s9583_s17 }
 0x13a   :  { %p9122_p8 = pnand %p9120_p7, %p9117_p6 }
 0x13c   :  { %9125 = shalt.err (!%p9122_p8)
}
 0x13d   :  { %s9126_s11 = scalar_lea.vmem %s9865_s10, 512  ;;  %p9131_p10 = scmp.lt.s32.totalorder %s9865_s10, %s9865_s10 }
 0x13e   :  { %p9127_p9 = scmp.ne.s32.totalorder %s9865_s10, %s9126_s11  ;;  %p9132_p11 = scmp.lt.s32.totalorder %s9126_s11, %s9126_s11 }
 0x140   :  { %p9133_p12 = por %p9132_p11, %p9131_p10 }
 0x142   :  { %p9134_p13 = pnand %p9133_p12, %p9127_p9 }
 0x144   :  { %9137 = shalt.err (!%p9134_p13)
}
 0x145   :  { %s12798_s20 = sld [smem:[#allocation64_spill]]  ;;  %s9539_s15 = smov [#allocation7]  }
 0x146   :  { %130 = dma.hbm_to_vmem [thread:$0]  %s9583_s17, 512, %s9865_s10, [#allocation4], %s9523_s16, %s9523_s16, %s9524_s18  }
 0x147   :  { %s148_s22 = sshll.u32 %s9539_s15, 4  ;;  %s9540_s23 = smov [#allocation10]   ;;  %s149_s22 = int_to_ptr.vmem [resolvable:$true] %s148_s22 }
 0x148   :  { %s173_s13 = sshll.u32 %s9540_s23, 4  ;;  %s174_s13 = int_to_ptr.vmem [resolvable:$true] %s173_s13 }
 0x14b   :  { %s9138_s21 = scalar_lea.hbm %s12798_s20, 512 }
 0x14c   :  { %p9139_p0 = scmp.ne.s32.totalorder %s12798_s20, %s9138_s21  ;;  %p9142_p1 = scmp.lt.u32.totalorder %s9138_s21, %s12798_s20 }
 0x14e   :  { %p9144_p2 = pnand %p9142_p1, %p9139_p0 }
 0x150   :  { %9147 = shalt.err (!%p9144_p2)
}
 0x151   :  { %s9148_s12 = scalar_lea.vmem %s149_s22, 512  ;;  %p9153_p4 = scmp.lt.s32.totalorder %s149_s22, %s149_s22 }
 0x152   :  { %p9149_p3 = scmp.ne.s32.totalorder %s149_s22, %s9148_s12  ;;  %p9154_p5 = scmp.lt.s32.totalorder %s9148_s12, %s9148_s12 }
 0x154   :  { %p9155_p6 = por %p9154_p5, %p9153_p4 }
 0x156   :  { %p9156_p7 = pnand %p9155_p6, %p9149_p3 }
 0x158   :  { %9159 = shalt.err (!%p9156_p7)
}
 0x159   :  { %s12799_s17 = sld [smem:[#allocation65_spill]] }
 0x15a   :  { %154 = dma.hbm_to_vmem [thread:$0]  %s12798_s20, 512, %s149_s22, [#allocation6], %s9523_s16, %s9523_s16, %s9524_s18  }
 0x15f   :  { %s9160_s26 = scalar_lea.hbm %s12799_s17, 64 }
 0x160   :  { %p9161_p8 = scmp.ne.s32.totalorder %s12799_s17, %s9160_s26  ;;  %p9164_p9 = scmp.lt.u32.totalorder %s9160_s26, %s12799_s17 }
 0x162   :  { %p9166_p10 = pnand %p9164_p9, %p9161_p8 }
 0x164   :  { %9169 = shalt.err (!%p9166_p10)
}
 0x165   :  { %s9170_s8 = scalar_lea.vmem %s174_s13, 64  ;;  %p9175_p12 = scmp.lt.s32.totalorder %s174_s13, %s174_s13 }
 0x166   :  { %p9171_p11 = scmp.ne.s32.totalorder %s174_s13, %s9170_s8  ;;  %p9176_p13 = scmp.lt.s32.totalorder %s9170_s8, %s9170_s8 }
 0x168   :  { %p9177_p0 = por %p9176_p13, %p9175_p12 }
 0x16a   :  { %p9178_p1 = pnand %p9177_p0, %p9171_p11 }
 0x16c   :  { %9181 = shalt.err (!%p9178_p1)
}
 0x16d   :  { %s12800_s1 = sld [smem:[#allocation69_spill]]  ;;  %s9541_s28 = smov [#allocation13]  }
 0x16e   :  { %176 = dma.hbm_to_vmem [thread:$0]  %s12799_s17, 64, %s174_s13, [#allocation9]  }
 0x16f   :  { %s201_s27 = sshll.u32 %s9541_s28, 4  ;;  %s9542_s2 = smov [#allocation16]   ;;  %s202_s27 = int_to_ptr.vmem [resolvable:$true] %s201_s27 }
 0x170   :  { %s223_s19 = sshll.u32 %s9542_s2, 4  ;;  %s224_s19 = int_to_ptr.vmem [resolvable:$true] %s223_s19 }
 0x173   :  { %s9182_s0 = scalar_lea.hbm %s12800_s1, 16 }
 0x174   :  { %p9183_p2 = scmp.ne.s32.totalorder %s12800_s1, %s9182_s0  ;;  %p9186_p3 = scmp.lt.u32.totalorder %s9182_s0, %s12800_s1 }
 0x176   :  { %p9188_p4 = pnand %p9186_p3, %p9183_p2 }
 0x178   :  { %9191 = shalt.err (!%p9188_p4)
}
 0x179   :  { %s9192_s29 = scalar_lea.vmem %s202_s27, 16  ;;  %s9196_s30 = scalar_lea.vmem %s202_s27, 32 }
 0x17a   :  { %p9193_p5 = scmp.ne.s32.totalorder %s202_s27, %s9192_s29  ;;  %p9197_p6 = scmp.lt.s32.totalorder %s202_s27, %s202_s27 }
 0x17b   :  { %p9198_p7 = scmp.lt.s32.totalorder %s9196_s30, %s9192_s29 }
 0x17d   :  { %p9199_p8 = por %p9198_p7, %p9197_p6 }
 0x17f   :  { %p9200_p9 = pnand %p9199_p8, %p9193_p5 }
 0x181   :  { %9203 = shalt.err (!%p9200_p9)
}
 0x182   :  { %s12801_s24 = sld [smem:[#allocation71_spill]] }
 0x183   :  { %204 = dma.hbm_to_vmem [thread:$0]  %s12800_s1, 16, %s202_s27, [#allocation12]  }
 0x188   :  { %s9204_s7 = scalar_lea.hbm %s12801_s24, 16 }
 0x189   :  { %p9205_p10 = scmp.ne.s32.totalorder %s12801_s24, %s9204_s7  ;;  %p9208_p11 = scmp.lt.u32.totalorder %s9204_s7, %s12801_s24 }
 0x18b   :  { %p9210_p12 = pnand %p9208_p11, %p9205_p10 }
 0x18d   :  { %9213 = shalt.err (!%p9210_p12)
}
 0x18e   :  { %s9214_s10 = scalar_lea.vmem %s224_s19, 16  ;;  %s9218_s14 = scalar_lea.vmem %s224_s19, 32 }
 0x18f   :  { %p9215_p13 = scmp.ne.s32.totalorder %s224_s19, %s9214_s10  ;;  %p9219_p0 = scmp.lt.s32.totalorder %s224_s19, %s224_s19 }
 0x190   :  { %p9220_p1 = scmp.lt.s32.totalorder %s9218_s14, %s9214_s10 }
 0x192   :  { %p9221_p2 = por %p9220_p1, %p9219_p0 }
 0x194   :  { %p9222_p3 = pnand %p9221_p2, %p9215_p13 }
 0x196   :  { %9225 = shalt.err (!%p9222_p3)
}
 0x197   :  { %s12802_s6 = sld [smem:[#allocation73_spill]]  ;;  %s9543_s5 = smov [#allocation19]  }
 0x198   :  { %226 = dma.hbm_to_vmem [thread:$0]  %s12801_s24, 16, %s224_s19, [#allocation15]  }
 0x199   :  { %s245_s11 = sshll.u32 %s9543_s5, 4  ;;  %s9544_s20 = smov [#allocation22]   ;;  %s246_s11 = int_to_ptr.vmem [resolvable:$true] %s245_s11 }
 0x19a   :  { %s269_s15 = sshll.u32 %s9544_s20, 4  ;;  %s270_s15 = int_to_ptr.vmem [resolvable:$true] %s269_s15 }
 0x19d   :  { %s9226_s22 = scalar_lea.hbm %s12802_s6, 32 }
 0x19e   :  { %p9227_p4 = scmp.ne.s32.totalorder %s12802_s6, %s9226_s22  ;;  %p9230_p5 = scmp.lt.u32.totalorder %s9226_s22, %s12802_s6 }
 0x1a0   :  { %p9232_p6 = pnand %p9230_p5, %p9227_p4 }
 0x1a2   :  { %9235 = shalt.err (!%p9232_p6)
}
 0x1a3   :  { %s9236_s23 = scalar_lea.vmem %s246_s11, 32  ;;  %p9241_p8 = scmp.lt.s32.totalorder %s246_s11, %s246_s11 }
 0x1a4   :  { %p9237_p7 = scmp.ne.s32.totalorder %s246_s11, %s9236_s23  ;;  %p9242_p9 = scmp.lt.s32.totalorder %s9236_s23, %s9236_s23 }
 0x1a6   :  { %p9243_p10 = por %p9242_p9, %p9241_p8 }
 0x1a8   :  { %p9244_p11 = pnand %p9243_p10, %p9237_p7 }
 0x1aa   :  { %9247 = shalt.err (!%p9244_p11)
}
 0x1ab   :  { %s12803_s13 = sld [smem:[#allocation76_spill]] }
 0x1ac   :  { %248 = dma.hbm_to_vmem [thread:$0]  %s12802_s6, 32, %s246_s11, [#allocation18]  }
 0x1b1   :  { %s9248_s21 = scalar_lea.hbm %s12803_s13, 16 }
 0x1b2   :  { %p9249_p12 = scmp.ne.s32.totalorder %s12803_s13, %s9248_s21  ;;  %p9252_p13 = scmp.lt.u32.totalorder %s9248_s21, %s12803_s13 }
 0x1b4   :  { %p9254_p0 = pnand %p9252_p13, %p9249_p12 }
 0x1b6   :  { %9257 = shalt.err (!%p9254_p0)
}
 0x1b7   :  { %s9258_s12 = scalar_lea.vmem %s270_s15, 16  ;;  %s9262_s17 = scalar_lea.vmem %s270_s15, 32 }
 0x1b8   :  { %p9259_p1 = scmp.ne.s32.totalorder %s270_s15, %s9258_s12  ;;  %p9263_p2 = scmp.lt.s32.totalorder %s270_s15, %s270_s15 }
 0x1b9   :  { %p9264_p3 = scmp.lt.s32.totalorder %s9262_s17, %s9258_s12 }
 0x1bb   :  { %p9265_p4 = por %p9264_p3, %p9263_p2 }
 0x1bd   :  { %p9266_p5 = pnand %p9265_p4, %p9259_p1 }
 0x1bf   :  { %9269 = shalt.err (!%p9266_p5)
}
 0x1c0   :  { %s12804_s26 = sld [smem:[#allocation77_spill]]  ;;  %s9545_s8 = smov [#allocation25]  }
 0x1c1   :  { %272 = dma.hbm_to_vmem [thread:$0]  %s12803_s13, 16, %s270_s15, [#allocation21]  }
 0x1c2   :  { %s289_s1 = sshll.u32 %s9545_s8, 4  ;;  %s9546_s28 = smov [#allocation28]   ;;  %s290_s1 = int_to_ptr.vmem [resolvable:$true] %s289_s1 }
 0x1c3   :  { %s310_s27 = sshll.u32 %s9546_s28, 4  ;;  %s9910_s27 = int_to_ptr.vmem [resolvable:$true] %s310_s27 }
 0x1c6   :  { %s9270_s2 = scalar_lea.hbm %s12804_s26, 32 }
 0x1c7   :  { %p9271_p6 = scmp.ne.s32.totalorder %s12804_s26, %s9270_s2  ;;  %p9274_p7 = scmp.lt.u32.totalorder %s9270_s2, %s12804_s26 }
 0x1c9   :  { %p9276_p8 = pnand %p9274_p7, %p9271_p6 }
 0x1cb   :  { %9279 = shalt.err (!%p9276_p8)
}
 0x1cc   :  { %s9280_s19 = scalar_lea.vmem %s290_s1, 32  ;;  %p9285_p10 = scmp.lt.s32.totalorder %s290_s1, %s290_s1 }
 0x1cd   :  { %p9281_p9 = scmp.ne.s32.totalorder %s290_s1, %s9280_s19  ;;  %p9286_p11 = scmp.lt.s32.totalorder %s9280_s19, %s9280_s19 }
 0x1cf   :  { %p9287_p12 = por %p9286_p11, %p9285_p10 }
 0x1d1   :  { %p9288_p13 = pnand %p9287_p12, %p9281_p9 }
 0x1d3   :  { %9291 = shalt.err (!%p9288_p13)
}
 0x1d4   :  { %s12805_s0 = sld [smem:[#allocation79_spill]] }
 0x1d5   :  { %292 = dma.hbm_to_vmem [thread:$0]  %s12804_s26, 32, %s290_s1, [#allocation24]  }
 0x1da   :  { %s9292_s29 = scalar_lea.hbm %s12805_s0, 6144 }
 0x1db   :  { %p9293_p0 = scmp.ne.s32.totalorder %s12805_s0, %s9292_s29  ;;  %p9296_p1 = scmp.lt.u32.totalorder %s9292_s29, %s12805_s0 }
 0x1dd   :  { %p9298_p2 = pnand %p9296_p1, %p9293_p0 }
 0x1df   :  { %9301 = shalt.err (!%p9298_p2)
}
 0x1e0   :  { %s9302_s30 = scalar_lea.vmem %s9910_s27, 6144  ;;  %p9307_p4 = scmp.lt.s32.totalorder %s9910_s27, %s9910_s27 }
 0x1e1   :  { %p9303_p3 = scmp.ne.s32.totalorder %s9910_s27, %s9302_s30  ;;  %p9308_p5 = scmp.lt.s32.totalorder %s9302_s30, %s9302_s30 }
 0x1e3   :  { %p9309_p6 = por %p9308_p5, %p9307_p4 }
 0x1e5   :  { %p9310_p7 = pnand %p9309_p6, %p9303_p3 }
 0x1e7   :  { %9313 = shalt.err (!%p9310_p7)
}
 0x1e8   :  { %s12806_s24 = sld [smem:[#allocation80_spill]]  ;;  %s9547_s7 = smov [#allocation31]  }
 0x1e9   :  { %316 = dma.hbm_to_vmem [thread:$0]  %s12805_s0, 6144, %s9910_s27, [#allocation27], %s9523_s16, %s9523_s16, %s9524_s18  }
 0x1ea   :  { %s332_s10 = sshll.u32 %s9547_s7, 4  ;;  %s9548_s14 = smov [#allocation34]   ;;  %s333_s10 = int_to_ptr.vmem [resolvable:$true] %s332_s10 }
 0x1eb   :  { %s355_s6 = sshll.u32 %s9548_s14, 4  ;;  %s356_s6 = int_to_ptr.vmem [resolvable:$true] %s355_s6 }
 0x1ee   :  { %s9314_s5 = scalar_lea.hbm %s12806_s24, 10240 }
 0x1ef   :  { %p9315_p8 = scmp.ne.s32.totalorder %s12806_s24, %s9314_s5  ;;  %p9318_p9 = scmp.lt.u32.totalorder %s9314_s5, %s12806_s24 }
 0x1f1   :  { %p9320_p10 = pnand %p9318_p9, %p9315_p8 }
 0x1f3   :  { %9323 = shalt.err (!%p9320_p10)
}
 0x1f4   :  { %s9324_s11 = scalar_lea.vmem %s333_s10, 10240  ;;  %p9329_p12 = scmp.lt.s32.totalorder %s333_s10, %s333_s10 }
 0x1f5   :  { %p9325_p11 = scmp.ne.s32.totalorder %s333_s10, %s9324_s11  ;;  %p9330_p13 = scmp.lt.s32.totalorder %s9324_s11, %s9324_s11 }
 0x1f7   :  { %p9331_p0 = por %p9330_p13, %p9329_p12 }
 0x1f9   :  { %p9332_p1 = pnand %p9331_p0, %p9325_p11 }
 0x1fb   :  { %9335 = shalt.err (!%p9332_p1)
}
 0x1fc   :  { %s12807_s20 = sld [smem:[#allocation81_spill]] }
 0x1fd   :  { %338 = dma.hbm_to_vmem [thread:$0]  %s12806_s24, 10240, %s333_s10, [#allocation30], %s9523_s16, %s9523_s16, %s9524_s18  }
 0x202   :  { %s9336_s15 = scalar_lea.hbm %s12807_s20, 64 }
 0x203   :  { %p9337_p2 = scmp.ne.s32.totalorder %s12807_s20, %s9336_s15  ;;  %p9340_p3 = scmp.lt.u32.totalorder %s9336_s15, %s12807_s20 }
 0x205   :  { %p9342_p4 = pnand %p9340_p3, %p9337_p2 }
 0x207   :  { %9345 = shalt.err (!%p9342_p4)
}
 0x208   :  { %s9346_s22 = scalar_lea.vmem %s356_s6, 64  ;;  %p9351_p6 = scmp.lt.s32.totalorder %s356_s6, %s356_s6 }
 0x209   :  { %p9347_p5 = scmp.ne.s32.totalorder %s356_s6, %s9346_s22  ;;  %p9352_p7 = scmp.lt.s32.totalorder %s9346_s22, %s9346_s22 }
 0x20b   :  { %p9353_p8 = por %p9352_p7, %p9351_p6 }
 0x20d   :  { %p9354_p9 = pnand %p9353_p8, %p9347_p5 }
 0x20f   :  { %9357 = shalt.err (!%p9354_p9)
}
 0x210   :  { %s12808_s23 = sld [smem:[#allocation83_spill]]  ;;  %s9549_s13 = smov [#allocation37]  }
 0x211   :  { %358 = dma.hbm_to_vmem [thread:$0]  %s12807_s20, 64, %s356_s6, [#allocation33]  }
 0x212   :  { %s377_s21 = sshll.u32 %s9549_s13, 4  ;;  %s9550_s16 = smov [#allocation40]   ;;  %s378_s21 = int_to_ptr.vmem [resolvable:$true] %s377_s21 }
 0x213   :  { %s399_s18 = sshll.u32 %s9550_s16, 4  ;;  %s400_s18 = int_to_ptr.vmem [resolvable:$true] %s399_s18 }
 0x216   :  { %s9358_s12 = scalar_lea.hbm %s12808_s23, 32 }
 0x217   :  { %p9359_p10 = scmp.ne.s32.totalorder %s12808_s23, %s9358_s12  ;;  %p9362_p11 = scmp.lt.u32.totalorder %s9358_s12, %s12808_s23 }
 0x219   :  { %p9364_p12 = pnand %p9362_p11, %p9359_p10 }
 0x21b   :  { %9367 = shalt.err (!%p9364_p12)
}
 0x21c   :  { %s9368_s17 = scalar_lea.vmem %s378_s21, 32  ;;  %p9373_p0 = scmp.lt.s32.totalorder %s378_s21, %s378_s21 }
 0x21d   :  { %p9369_p13 = scmp.ne.s32.totalorder %s378_s21, %s9368_s17  ;;  %p9374_p1 = scmp.lt.s32.totalorder %s9368_s17, %s9368_s17 }
 0x21f   :  { %p9375_p2 = por %p9374_p1, %p9373_p0 }
 0x221   :  { %p9376_p3 = pnand %p9375_p2, %p9369_p13 }
 0x223   :  { %9379 = shalt.err (!%p9376_p3)
}
 0x224   :  { %s12809_s26 = sld [smem:[#allocation84_spill]] }
 0x225   :  { %380 = dma.hbm_to_vmem [thread:$0]  %s12808_s23, 32, %s378_s21, [#allocation36]  }
 0x22a   :  { %s9380_s8 = scalar_lea.hbm %s12809_s26, 64 }
 0x22b   :  { %p9381_p4 = scmp.ne.s32.totalorder %s12809_s26, %s9380_s8  ;;  %p9384_p5 = scmp.lt.u32.totalorder %s9380_s8, %s12809_s26 }
 0x22d   :  { %p9386_p6 = pnand %p9384_p5, %p9381_p4 }
 0x22f   :  { %9389 = shalt.err (!%p9386_p6)
}
 0x230   :  { %s9390_s1 = scalar_lea.vmem %s400_s18, 64  ;;  %p9395_p8 = scmp.lt.s32.totalorder %s400_s18, %s400_s18 }
 0x231   :  { %p9391_p7 = scmp.ne.s32.totalorder %s400_s18, %s9390_s1  ;;  %p9396_p9 = scmp.lt.s32.totalorder %s9390_s1, %s9390_s1 }
 0x233   :  { %p9397_p10 = por %p9396_p9, %p9395_p8 }
 0x235   :  { %p9398_p11 = pnand %p9397_p10, %p9391_p7 }
 0x237   :  { %9401 = shalt.err (!%p9398_p11)
}
 0x238   :  { %s12810_s28 = sld [smem:[#allocation87_spill]]  ;;  %s9551_s27 = smov [#allocation43]  }
 0x239   :  { %402 = dma.hbm_to_vmem [thread:$0]  %s12809_s26, 64, %s400_s18, [#allocation39]  }
 0x23a   :  { %s423_s2 = sshll.u32 %s9551_s27, 4  ;;  %s9552_s19 = smov [#allocation44]   ;;  %s424_s2 = int_to_ptr.vmem [resolvable:$true] %s423_s2 }
 0x23b   :  { %s435_s0 = sshll.u32 %s9552_s19, 4  ;;  %s436_s0 = int_to_ptr.vmem [resolvable:$true] %s435_s0 }
 0x23e   :  { %s9402_s29 = scalar_lea.hbm %s12810_s28, 64 }
 0x23f   :  { %p9403_p12 = scmp.ne.s32.totalorder %s12810_s28, %s9402_s29  ;;  %p9406_p13 = scmp.lt.u32.totalorder %s9402_s29, %s12810_s28 }
 0x241   :  { %p9408_p0 = pnand %p9406_p13, %p9403_p12 }
 0x243   :  { %9411 = shalt.err (!%p9408_p0)
}
 0x244   :  { %s9412_s30 = scalar_lea.vmem %s424_s2, 64  ;;  %p9417_p2 = scmp.lt.s32.totalorder %s424_s2, %s424_s2 }
 0x245   :  { %p9413_p1 = scmp.ne.s32.totalorder %s424_s2, %s9412_s30  ;;  %p9418_p3 = scmp.lt.s32.totalorder %s9412_s30, %s9412_s30 }
 0x247   :  { %p9419_p4 = por %p9418_p3, %p9417_p2 }
 0x249   :  { %p9420_p5 = pnand %p9419_p4, %p9413_p1 }
 0x24b   :  { %9423 = shalt.err (!%p9420_p5)
}
 0x24c   :  { %426 = dma.hbm_to_vmem [thread:$0]  %s12810_s28, 64, %s424_s2, [#allocation42]  }
 0x24d   :  { %s9424_s24 = scalar_lea.hbm %s9778_s25, 32 }
 0x24e   :  { %p9425_p6 = scmp.ne.s32.totalorder %s9778_s25, %s9424_s24  ;;  %p9428_p7 = scmp.lt.u32.totalorder %s9424_s24, %s9778_s25 }
 0x250   :  { %p9430_p8 = pnand %p9428_p7, %p9425_p6 }
 0x252   :  { %9433 = shalt.err (!%p9430_p8)
}
 0x253   :  { %s9434_s7 = scalar_lea.vmem %s436_s0, 32  ;;  %p9439_p10 = scmp.lt.s32.totalorder %s436_s0, %s436_s0 }
 0x254   :  { %p9435_p9 = scmp.ne.s32.totalorder %s436_s0, %s9434_s7  ;;  %p9440_p11 = scmp.lt.s32.totalorder %s9434_s7, %s9434_s7 }
 0x256   :  { %p9441_p12 = por %p9440_p11, %p9439_p10 }
 0x258   :  { %p9442_p13 = pnand %p9441_p12, %p9435_p9 }
 0x25a   :  { %9445 = shalt.err (!%p9442_p13)
}
 0x25b   :  { %438 = dma.hbm_to_vmem [thread:$0]  %s9778_s25, 32, %s436_s0, [#allocation45]  }
 0x25c   :  { %9446 = dma.done.wait [#allocation4], 512  }
 0x25d   :  { %9447 = vsyncadd [#allocation4], 4294966784 }
 0x25e   :  { %9448 = dma.done.wait [#allocation6], 768  }
 0x25f   :  { %9449 = vsyncadd [#allocation6], 4294966528 }
 0x260   :  { %9450 = dma.done.wait [#allocation9], 320  }
 0x261   :  { %9451 = vsyncadd [#allocation9], 4294966976 }
 0x262   :  { %9452 = dma.done.wait [#allocation12], 784  }
 0x263   :  { %9453 = vsyncadd [#allocation12], 4294966512 }
 0x264   :  { %9454 = dma.done.wait [#allocation15], 32  }
 0x265   :  { %9455 = vsyncadd [#allocation15], 4294967264 }
 0x266   :  { %9456 = dma.done.wait [#allocation18], 48  }
 0x267   :  { %9457 = vsyncadd [#allocation18], 4294967248 }
 0x268   :  { %9458 = dma.done.wait [#allocation21], 32  }
 0x269   :  { %9459 = vsyncadd [#allocation21], 4294967264 }
 0x26a   :  { %9460 = dma.done.wait [#allocation24], 64  }
 0x26b   :  { %9461 = vsyncadd [#allocation24], 4294967232 }
 0x26c   :  { %9462 = dma.done.wait [#allocation27], 6208  }
 0x26d   :  { %9463 = vsyncadd [#allocation27], 4294961088 }
 0x26e   :  { %9464 = dma.done.wait [#allocation30], 10256  }
 0x26f   :  { %9465 = vsyncadd [#allocation30], 4294957040 }
 0x270   :  { %9466 = dma.done.wait [#allocation33], 80  }
 0x271   :  { %9467 = vsyncadd [#allocation33], 4294967216 }
 0x272   :  { %9468 = dma.done.wait [#allocation36], 96  }
 0x273   :  { %9469 = vsyncadd [#allocation36], 4294967200 }
 0x274   :  { %9470 = dma.done.wait [#allocation39], 1088  }
 0x275   :  { %9471 = vsyncadd [#allocation39], 4294966208 }
 0x276   :  { %9472 = dma.done.wait [#allocation42], 96  }
 0x277   :  { %9473 = vsyncadd [#allocation42], 4294967200 }
 0x278   :  { %9474 = dma.done.wait [#allocation45], 32  }
 0x279   :  { %9475 = vsyncadd [#allocation45], 4294967264  ;;  %s12811_s25 = sld [smem:[#allocation61_spill]]  ;;  %s12812_s10 = sld [smem:[#allocation63_spill]]  ;;  %v9553_v1 = vmov 0   ;;  %vm627_vm2 = vcmask 1044480   ;;  %v549_v38 = vlaneseq }
 0x27a   :  { %s12813_s14 = sld [smem:[#allocation66_spill]]  ;;  %8751 = vset.pattern.permute.xlu1 %v9553_v1  ;;  %8750 = vset.pattern.permute.xlu0 %v9553_v1  ;;  %v9554_v42 = vmov 0.0   ;;  %v736_v57 = vld [vmem:[#allocation11] sm:$0xff]  ;;  %v737_v58 = vld [vmem:[#allocation11 + $0x8] sm:$0xff]  ;;  %v738_v59 = vld [vmem:[#allocation11 + $0x10] sm:$0xff]  ;;  %s9556_s6 = smov 21  }
 0x27b   :  { %v550_v39 = vand.u32 127, %v549_v38  ;;  %v7277_v60 = vpack.c.bf16 %v737_v58, %v736_v57  ;;  %v739_v61 = vld [vmem:[#allocation11 + $0x18] sm:$0xff]  ;;  %v740_v63 = vld [vmem:[#allocation11 + $0x20] sm:$0xff]  ;;  %v741_v0 = vld [vmem:[#allocation11 + $0x28] sm:$0x3]  ;;  %s12816_s5 = sld [smem:[#allocation67_spill]] }
 0x27c   :  { %v7281_v62 = vpack.c.bf16 %v739_v61, %v738_v59  ;;  %s9557_s11 = smov 64   ;;  %s12818_s20 = sld [smem:[#allocation68_spill]] }
 0x27d   :  { %7278 = vmatprep.subr.bf16.mxu1 %v7277_v60  ;;  %s9558_s15 = smov 96   ;;  %s12824_s22 = sld [smem:[#allocation70_spill]] }
 0x27e   :  { %7280 = vmatpush3.bf16.msra.mxu1 %v7277_v60  ;;  %s12868_s23 = sld [smem:[#allocation74_spill]]  ;;  %s12869_s13 = sld [smem:[#allocation75_spill]] }
 0x27f   :  { %v543_v2 = vld [vmem:[%s12811_s25 + $0x10] sm:$0xff]  ;;  %v541_v3 = vld [vmem:[%s12811_s25] sm:$0xff]  ;;  %v544_v4 = vld [vmem:[%s12811_s25 + $0x18] sm:$0xff]  ;;  %7282 = vmatprep.subr.bf16.mxu1 %v7281_v62  ;;  %s12884_s21 = sld [smem:[#allocation78_spill]]  ;;  %s12921_s18 = sld [smem:[#allocation85_spill]] }
 0x280   :  { %558 = vperm.xlu1 %8751, %v543_v2   ;;  %552 = vperm.xlu0 %8750, %v541_v3   ;;  %v542_v5 = vld [vmem:[%s12811_s25 + $0x8] sm:$0xff]  ;;  %v545_v7 = vld [vmem:[%s12811_s25 + $0x20] sm:$0xff]  ;;  %v548_v12 = vld [vmem:[%s12811_s25 + $0x38] sm:$0xf]  ;;  %v7285_v2 = vpack.c.bf16 %v741_v0, %v740_v63  ;;  %s12919_s16 = sld [smem:[#allocation62_spill]]  ;;  %s12924_s12 = sld [smem:[#allocation82_spill]] }
 0x281   :  { %v546_v6 = vld [vmem:[%s12811_s25 + $0x28] sm:$0xff]  ;;  %v9967_v9 = vld [vmem:[%s12812_s10] sm:$0xff]  ;;  %v547_v13 = vld [vmem:[%s12811_s25 + $0x30] sm:$0xff]  ;;  %s12928_s17 = sld [smem:[#allocation86_spill]]  ;;  %s12931_s26 = sld [smem:[#allocation88_spill]] }
 0x282   :  { %v9964_v8 = vld [vmem:[%s12812_s10 + $0x8] sm:$0xff]  ;;  %v599_v10 = vld [vmem:[%s12813_s14] sm:$0xff]  ;;  %vm812_vm1 = vcmp.ge.s32.totalorder %v9967_v9, 1  ;;  %v601_v15 = vld [vmem:[%s12813_s14 + $0x10] sm:$0x1f]  ;;  %vm902_vm4 = vcmp.lt.s32.totalorder %v9967_v9, 14  ;;  %7284 = vmatpush3.bf16.msra.mxu1 %v7281_v62 }
 0x283   :  { %v600_v11 = vld [vmem:[%s12813_s14 + $0x8] sm:$0xff]  ;;  %vm813_vm0 = vcmp.ge.s32.totalorder %v9964_v8, 1  ;;  %v820_v17 = vsel %vm812_vm1, 1, %v9553_v1  ;;  %vm903_vm3 = vcmp.lt.s32.totalorder %v9964_v8, 14  ;;  %v9981_v18 = vld [vmem:[%s12812_s10 + $0x18] sm:$0xff]  ;;  %v9984_v19 = vld [vmem:[%s12812_s10 + $0x10] sm:$0xff] }
 0x284   :  { %561 = vperm.xlu1 %8751, %v544_v4   ;;  %555 = vperm.xlu0 %8750, %v542_v5   ;;  %v7273_v14 = vpack.c.bf16 %v600_v11, %v599_v10  ;;  %v821_v16 = vsel %vm813_vm0, 1, %v9553_v1  ;;  %v911_v20 = vsel %vm903_vm3, 1, %v9553_v1  ;;  %v910_v21 = vsel %vm902_vm4, 1, %v9553_v1  ;;  %v9997_v24 = vld [vmem:[%s12812_s10 + $0x28] sm:$0xff]  ;;  %v10000_v25 = vld [vmem:[%s12812_s10 + $0x20] sm:$0xff]  ;;  %v10014_v31 = vld [vmem:[%s12812_s10 + $0x30] sm:$0xff] }
 0x285   :  { %vm815_vm5 = vcmp.ge.s32.totalorder %v9981_v18, 1  ;;  %vm814_vm6 = vcmp.ge.s32.totalorder %v9984_v19, 1  ;;  %vm905_vm7 = vcmp.lt.s32.totalorder %v9981_v18, 14  ;;  %vm904_vm8 = vcmp.lt.s32.totalorder %v9984_v19, 14  ;;  %v10011_v30 = vld [vmem:[%s12812_s10 + $0x38] sm:$0xf] }
 0x286   :  { %7274 = vmatprep.subr.bf16.mxu0 %v7273_v14  ;;  %v823_v22 = vsel %vm815_vm5, 1, %v9553_v1  ;;  %v822_v23 = vsel %vm814_vm6, 1, %v9553_v1  ;;  %v913_v26 = vsel %vm905_vm7, 1, %v9553_v1  ;;  %v912_v27 = vsel %vm904_vm8, 1, %v9553_v1 }
 0x287   :  { %7276 = vmatpush3.bf16.msra.mxu0 %v7273_v14  ;;  %vm817_vm9 = vcmp.ge.s32.totalorder %v9997_v24, 1  ;;  %vm816_vm10 = vcmp.ge.s32.totalorder %v10000_v25, 1  ;;  %vm907_vm11 = vcmp.lt.s32.totalorder %v9997_v24, 14  ;;  %vm906_vm12 = vcmp.lt.s32.totalorder %v10000_v25, 14 }
 0x288   :  { %567 = vperm.xlu1 %8751, %v546_v6   ;;  %564 = vperm.xlu0 %8750, %v545_v7   ;;  %v825_v28 = vsel %vm817_vm9, 1, %v9553_v1  ;;  %v824_v29 = vsel %vm816_vm10, 1, %v9553_v1  ;;  %v915_v32 = vsel %vm907_vm11, 1, %v9553_v1  ;;  %v914_v33 = vsel %vm906_vm12, 1, %v9553_v1 }
 0x289   :  { %7085 = vmatprep.subr.msk.mxu0 %vm627_vm2, %v601_v15  ;;  %vm819_vm13 = vcmp.ge.s32.totalorder %v10011_v30, 1  ;;  %vm818_vm14 = vcmp.ge.s32.totalorder %v10014_v31, 1  ;;  %vm909_vm15 = vcmp.lt.s32.totalorder %v10011_v30, 14  ;;  %vm908_vm0 = vcmp.lt.s32.totalorder %v10014_v31, 14 }
 0x28a   :  { %v827_v34 = vsel %vm819_vm13, 1, %v9553_v1  ;;  %v826_v35 = vsel %vm818_vm14, 1, %v9553_v1  ;;  %v917_v36 = vsel %vm909_vm15, 1, %v9553_v1  ;;  %v916_v37 = vsel %vm908_vm0, 1, %v9553_v1 }
 0x28b   :  { %7086 = vmatpush3.msk.msra.mxu0 %vm627_vm2, %v601_v15  ;;  %vm602_vm1 = vcmask 171008   ;;  %vm12748_vm10 = vcmask 1041408   ;;  %vm12744_vm11 = vmmov 1   ;;  %vm12764_vm13 = vcmask 1040384  }
 0x28c   :  { %573 = vperm.xlu1 %8751, %v548_v12   ;;  %570 = vperm.xlu0 %8750, %v547_v13   ;;  %vm10045_vm12 = vmpackc.low %vm12748_vm10, %vm12744_vm11  ;;  %vm876_vm14 = vcmask 1046528  }
 0x28d   :  { %7287 = vmatprep.subr.msk.bf16.mxu1 %vm10045_vm12, %v7285_v2 }
 0x28e   :  { %7290 = vmatpush3.bf16.msk.msra.mxu1 %vm10045_vm12, %v7285_v2 }
 0x290   :  { %832 = vperm.xlu1 %8751, %v821_v16   ;;  %829 = vperm.xlu0 %8750, %v820_v17  }
 0x294   :  { %922 = vperm.xlu1 %8751, %v911_v20   ;;  %919 = vperm.xlu0 %8750, %v910_v21  }
 0x298   :  { %838 = vperm.xlu1 %8751, %v823_v22   ;;  %835 = vperm.xlu0 %8750, %v822_v23  }
 0x29c   :  { %928 = vperm.xlu1 %8751, %v913_v26   ;;  %925 = vperm.xlu0 %8750, %v912_v27  }
 0x2a0   :  { %844 = vperm.xlu1 %8751, %v825_v28   ;;  %841 = vperm.xlu0 %8750, %v824_v29  }
 0x2a4   :  { %934 = vperm.xlu1 %8751, %v915_v32   ;;  %931 = vperm.xlu0 %8750, %v914_v33  }
 0x2a8   :  { %850 = vperm.xlu1 %8751, %v827_v34   ;;  %847 = vperm.xlu0 %8750, %v826_v35  }
 0x2ac   :  { %940 = vperm.xlu1 %8751, %v917_v36   ;;  %937 = vperm.xlu0 %8750, %v916_v37  }
 0x2ff   :  { %v559_v40 = vpop.permute.xlu1 %558  ;;  %v553_v41 = vpop.permute.xlu0 %552 }
 0x300   :  { %vm575_vm2 = vcmp.eq.s32.totalorder %v550_v39, %v553_v41  ;;  %vm577_vm3 = vcmp.eq.s32.totalorder %v550_v39, %v559_v40 }
 0x301   :  { %v6676_v43 = vsel %vm575_vm2, 1.0, %v9554_v42  ;;  %v6678_v46 = vsel %vm577_vm3, 1.0, %v9554_v42 }
 0x302   :  { %7087 = vmatprep.mubr.msk.f32.mxu0 %vm602_vm1, %v6676_v43 }
 0x303   :  { %v562_v44 = vpop.permute.xlu1 %561  ;;  %v556_v45 = vpop.permute.xlu0 %555 }
 0x304   :  { %vm576_vm4 = vcmp.eq.s32.totalorder %v550_v39, %v556_v45  ;;  %vm578_vm5 = vcmp.eq.s32.totalorder %v550_v39, %v562_v44 }
 0x305   :  { %v6677_v47 = vsel %vm576_vm4, 1.0, %v9554_v42  ;;  %v6679_v50 = vsel %vm578_vm5, 1.0, %v9554_v42 }
 0x306   :  { %7088 = vmatmul.mubr.msk.f32.vlgmr.msra.gmra.mrb[0].mxu0 %vm602_vm1, %v6677_v47 }
 0x307   :  { %v568_v48 = vpop.permute.xlu1 %567  ;;  %7090 = vmatprep.mubr.msk.f32.mxu0 %vm602_vm1, %v6678_v46  ;;  %v565_v49 = vpop.permute.xlu0 %564 }
 0x308   :  { %vm579_vm6 = vcmp.eq.s32.totalorder %v550_v39, %v565_v49  ;;  %vm580_vm7 = vcmp.eq.s32.totalorder %v550_v39, %v568_v48 }
 0x309   :  { %v6680_v51 = vsel %vm579_vm6, 1.0, %v9554_v42  ;;  %v6681_v54 = vsel %vm580_vm7, 1.0, %v9554_v42 }
 0x30a   :  { %7091 = vmatmul.mubr.msk.f32.gmra.mrb[2].mxu0 %vm602_vm1, %v6679_v50 }
 0x30b   :  { %v574_v52 = vpop.permute.xlu1 %573  ;;  %7093 = vmatprep.mubr.msk.f32.mxu0 %vm602_vm1, %v6680_v51  ;;  %v571_v53 = vpop.permute.xlu0 %570 }
 0x30c   :  { %vm581_vm8 = vcmp.eq.s32.totalorder %v550_v39, %v571_v53  ;;  %vm582_vm9 = vcmp.eq.s32.totalorder %v550_v39, %v574_v52 }
 0x30d   :  { %v6682_v55 = vsel %vm581_vm8, 1.0, %v9554_v42  ;;  %v6683_v56 = vsel %vm582_vm9, 1.0, %v9554_v42 }
 0x30e   :  { %7094 = vmatmul.mubr.msk.f32.gmra.mrb[4].mxu0 %vm602_vm1, %v6681_v54 }
 0x30f   :  { %7096 = vmatprep.mubr.msk.f32.mxu0 %vm602_vm1, %v6682_v55  ;;  %v10053_v4 = vpop.permute.xlu0 %829  ;;  %v10055_v5 = vpop.permute.xlu1 %832 }
 0x310   :  { %vm12746_vm15 = vcmp.eq.s32.totalorder %v10055_v5, 1  ;;  %vm12745_vm0 = vcmp.eq.s32.totalorder %v10053_v4, 1 }
 0x312   :  { %7097 = vmatmul.mubr.msk.f32.gmra.mrb[6].mxu0 %vm602_vm1, %v6683_v56 }
 0x313   :  { %v10057_v6 = vpop.permute.xlu0 %919  ;;  %v10059_v7 = vpop.permute.xlu1 %922 }
 0x314   :  { %vm943_vm2 = vcmp.eq.s32.totalorder %v10059_v7, 1  ;;  %vm12747_vm3 = vcmp.eq.s32.totalorder %v10057_v6, 1 }
 0x317   :  { %v10061_v10 = vpop.permute.xlu0 %835  ;;  %v10063_v11 = vpop.permute.xlu1 %838 }
 0x318   :  { %vm855_vm4 = vcmp.eq.s32.totalorder %v10063_v11, 1  ;;  %vm854_vm5 = vcmp.eq.s32.totalorder %v10061_v10, 1 }
 0x31b   :  { %v10065_v12 = vpop.permute.xlu0 %925  ;;  %v10067_v13 = vpop.permute.xlu1 %928 }
 0x31c   :  { %vm12762_vm6 = vcmp.eq.s32.totalorder %v10067_v13, 1  ;;  %vm12763_vm7 = vcmp.eq.s32.totalorder %v10065_v12, 1 }
 0x31f   :  { %v10069_v14 = vpop.permute.xlu0 %841  ;;  %v10071_v15 = vpop.permute.xlu1 %844 }
 0x320   :  { %vm12752_vm8 = vcmp.eq.s32.totalorder %v10071_v15, 1  ;;  %vm12749_vm9 = vcmp.eq.s32.totalorder %v10069_v14, 1 }
 0x323   :  { %v10073_v16 = vpop.permute.xlu0 %931  ;;  %v10075_v17 = vpop.permute.xlu1 %934 }
 0x324   :  { %vm12756_vm11 = vcmp.eq.s32.totalorder %v10075_v17, 1 }
 0x327   :  { %v10079_v21 = vpop.permute.xlu0 %847  ;;  %v10112_v44 = vpop.permute.xlu1 %850 }
 0x32b   :  { %v10114_v45 = vpop.permute.xlu0 %937 }
 0x32c   :  { %vm12754_vm10 = vcmp.eq.s32.totalorder %v10114_v45, 1 }
 0x3d9   :  { %v10077_v20 = vpop.f32.mrb[0].mxu0 }
 0x3da   :  { %v789_v22 = vrot.slane %v10077_v20, 7  ;;  %v878_v23 = vrot.slane %v10077_v20, 1  ;;  %v10083_v26 = vpop.f32.mrb[1].mxu0 }
 0x3db   :  { %v788_v27 = vrot.slane %v10083_v26, 7  ;;  %v877_v28 = vrot.slane %v10083_v26, 1 }
 0x3dd   :  { %v811_v29 = vsel %vm12764_vm13, -inf, %v788_v27  ;;  %v10094_v32 = vpop.f32.mrb[2].mxu0  ;;  %v879_v33 = vsel %vm876_vm14, %v877_v28, %v878_v23  ;;  %v790_v34 = vsel %vm12764_vm13, %v788_v27, %v789_v22 }
 0x3de   :  { %v860_v35 = vsel %vm12745_vm0, %v811_v29, -inf  ;;  %v882_v36 = vrot.slane %v10094_v32, 1  ;;  %v10103_v37 = vpop.f32.mrb[3].mxu0  ;;  %v861_v43 = vsel %vm12746_vm15, %v790_v34, -inf  ;;  %v793_v46 = vrot.slane %v10094_v32, 7 }
 0x3df   :  { %v868_v39 = vmax.f32 %v860_v35, %v10083_v26  ;;  %v791_v40 = vrot.slane %v10103_v37, 7  ;;  %v880_v41 = vrot.slane %v10103_v37, 1  ;;  %v950_v47 = vsel %vm12747_vm3, %v879_v33, -inf }
 0x3e0   :  { %v869_v48 = vmax.f32 %v861_v43, %v10077_v20  ;;  %vm12759_vm0 = vcmp.eq.s32.totalorder %v10073_v16, 1  ;;  %vm12750_vm15 = vcmp.eq.s32.totalorder %v10079_v21, 1  ;;  %vm12753_vm3 = vcmp.eq.s32.totalorder %v10112_v44, 1 }
 0x3e1   :  { %v792_v49 = vsel %vm12764_vm13, %v789_v22, %v791_v40  ;;  %v10122_v50 = vpop.f32.mrb[4].mxu0  ;;  %v958_v51 = vmax.f32 %v868_v39, %v950_v47  ;;  %v881_v52 = vsel %vm876_vm14, %v878_v23, %v880_v41  ;;  %v883_v53 = vsel %vm876_vm14, %v880_v41, %v882_v36 }
 0x3e2   :  { %v862_v54 = vsel %vm854_vm5, %v792_v49, -inf  ;;  %v10130_v55 = vpop.f32.mrb[5].mxu0  ;;  %v951_v56 = vsel %vm943_vm2, %v881_v52, -inf  ;;  %v797_v61 = vrot.slane %v10122_v50, 7  ;;  %v886_v62 = vrot.slane %v10122_v50, 1 }
 0x3e3   :  { %v870_v57 = vmax.f32 %v862_v54, %v10103_v37  ;;  %v795_v58 = vrot.slane %v10130_v55, 7  ;;  %v884_v59 = vrot.slane %v10130_v55, 1  ;;  %974 = vrot.lane.b32.xlu0 %v958_v51, %s9556_s6  ;;  %v959_v60 = vmax.f32 %v869_v48, %v951_v56  ;;  %v10173_v54 = vpop.permute.xlu1 %940 }
 0x3e4   :  { %v952_v63 = vsel %vm12763_vm7, %v883_v53, -inf  ;;  %v794_v0 = vsel %vm12764_vm13, %v791_v40, %v793_v46 }
 0x3e5   :  { %v796_v2 = vsel %vm12764_vm13, %v793_v46, %v795_v58  ;;  %v10146_v22 = vpop.f32.mrb[6].mxu0  ;;  %976 = vrot.lane.b32.xlu1 %v959_v60, %s9556_s6  ;;  %v960_v23 = vmax.f32 %v870_v57, %v952_v63  ;;  %v863_v27 = vsel %vm855_vm4, %v794_v0, -inf  ;;  %v885_v28 = vsel %vm876_vm14, %v882_v36, %v884_v59 }
 0x3e6   :  { %v864_v29 = vsel %vm12749_vm9, %v796_v2, -inf  ;;  %v801_v33 = vrot.slane %v10146_v22, 7  ;;  %v890_v34 = vrot.slane %v10146_v22, 1  ;;  %v10156_v35 = vpop.f32.mrb[7].mxu0  ;;  %v871_v39 = vmax.f32 %v863_v27, %v10094_v32 }
 0x3e7   :  { %v872_v40 = vmax.f32 %v864_v29, %v10130_v55  ;;  %v799_v41 = vrot.slane %v10156_v35, 7  ;;  %v888_v43 = vrot.slane %v10156_v35, 1  ;;  %978 = vrot.lane.b32.xlu0 %v960_v23, %s9556_s6  ;;  %v953_v36 = vsel %vm12762_vm6, %v885_v28, -inf }
 0x3e8   :  { %v961_v46 = vmax.f32 %v871_v39, %v953_v36  ;;  %v887_v47 = vsel %vm876_vm14, %v884_v59, %v886_v62  ;;  %v798_v48 = vsel %vm12764_vm13, %v795_v58, %v797_v61  ;;  %vm12751_vm9 = vcmask 1042432  }
 0x3e9   :  { %v800_v49 = vsel %vm12764_vm13, %v797_v61, %v799_v41  ;;  %v954_v51 = vsel %vm12759_vm0, %v887_v47, -inf  ;;  %v865_v52 = vsel %vm12752_vm8, %v798_v48, -inf  ;;  %v889_v53 = vsel %vm876_vm14, %v886_v62, %v888_v43 }
 0x3ea   :  { %v866_v56 = vsel %vm12750_vm15, %v800_v49, -inf  ;;  %980 = vrot.lane.b32.xlu1 %v961_v46, %s9556_s6  ;;  %v962_v57 = vmax.f32 %v872_v40, %v954_v51  ;;  %v873_v58 = vmax.f32 %v865_v52, %v10122_v50  ;;  %v955_v59 = vsel %vm12756_vm11, %v889_v53, -inf }
 0x3eb   :  { %v874_v60 = vmax.f32 %v866_v56, %v10156_v35  ;;  %v891_v61 = vsel %vm876_vm14, %v888_v43, %v890_v34  ;;  %v802_v63 = vsel %vm12764_vm13, %v799_v41, %v801_v33  ;;  %v901_v62 = vsel %vm12751_vm9, %v890_v34, -inf }
 0x3ec   :  { %982 = vrot.lane.b32.xlu0 %v962_v57, %s9556_s6  ;;  %v963_v0 = vmax.f32 %v873_v58, %v955_v59  ;;  %v956_v2 = vsel %vm12754_vm10, %v891_v61, -inf  ;;  %v867_v23 = vsel %vm12753_vm3, %v802_v63, -inf  ;;  %vm12755_vm15 = vcmp.eq.s32.totalorder %v10173_v54, 1 }
 0x3ed   :  { %v964_v27 = vmax.f32 %v874_v60, %v956_v2  ;;  %v875_v28 = vmax.f32 %v867_v23, %v10146_v22  ;;  %v957_v29 = vsel %vm12755_vm15, %v901_v62, -inf  ;;  %vm1590_vm9 = vcmp.lt.s32.totalorder %v9967_v9, 13 }
 0x3ee   :  { %984 = vrot.lane.b32.xlu1 %v963_v0, %s9556_s6  ;;  %vm1591_vm8 = vcmp.lt.s32.totalorder %v9964_v8, 13  ;;  %v1598_v34 = vsel %vm1590_vm9, 1, %v9553_v1  ;;  %vm1593_vm3 = vcmp.lt.s32.totalorder %v9981_v18, 13  ;;  %vm1592_vm10 = vcmp.lt.s32.totalorder %v9984_v19, 13 }
 0x3ef   :  { %v965_v33 = vmax.f32 %v875_v28, %v957_v29  ;;  %v1599_v39 = vsel %vm1591_vm8, 1, %v9553_v1  ;;  %v1601_v40 = vsel %vm1593_vm3, 1, %v9553_v1  ;;  %vm1594_vm15 = vcmp.lt.s32.totalorder %v10000_v25, 13 }
 0x3f0   :  { %986 = vrot.lane.b32.xlu0 %v964_v27, %s9556_s6  ;;  %v1600_v41 = vsel %vm1592_vm10, 1, %v9553_v1  ;;  %vm1595_vm11 = vcmp.lt.s32.totalorder %v9997_v24, 13  ;;  %v1602_v43 = vsel %vm1594_vm15, 1, %v9553_v1  ;;  %vm1597_vm9 = vcmp.lt.s32.totalorder %v10011_v30, 13 }
 0x3f1   :  { %v1603_v36 = vsel %vm1595_vm11, 1, %v9553_v1  ;;  %vm1596_vm8 = vcmp.lt.s32.totalorder %v10014_v31, 13  ;;  %v1605_v46 = vsel %vm1597_vm9, 1, %v9553_v1  ;;  %vm1477_vm10 = vcmp.ge.s32.totalorder %v9964_v8, 2 }
 0x3f2   :  { %988 = vrot.lane.b32.xlu1 %v965_v33, %s9556_s6  ;;  %v1604_v47 = vsel %vm1596_vm8, 1, %v9553_v1  ;;  %v1485_v48 = vsel %vm1477_vm10, 1, %v9553_v1  ;;  %vm1012_vm15 = vcmask 343040   ;;  %vm1478_vm11 = vcmp.ge.s32.totalorder %v9984_v19, 2 }
 0x3f3   :  { %vm12817_vm3 = vcmask 1041408   ;;  %vm12767_vm9 = vcmask 1045504   ;;  %vm1479_vm10 = vcmp.ge.s32.totalorder %v9981_v18, 2  ;;  %v745_v18 = vld [vmem:[%s12818_s20 + $0x10] sm:$0xff] }
 0x3f4   :  { %1607 = vperm.xlu0 %8750, %v1598_v34  }
 0x3f6   :  { %1610 = vperm.xlu1 %8751, %v1599_v39  }
 0x3f8   :  { %1616 = vperm.xlu0 %8750, %v1601_v40  }
 0x3fa   :  { %1613 = vperm.xlu1 %8751, %v1600_v41  }
 0x3fc   :  { %1619 = vperm.xlu0 %8750, %v1602_v43  }
 0x3fe   :  { %1622 = vperm.xlu1 %8751, %v1603_v36  }
 0x400   :  { %1628 = vperm.xlu0 %8750, %v1605_v46  }
 0x402   :  { %1625 = vperm.xlu1 %8751, %v1604_v47  }
 0x406   :  { %1496 = vperm.xlu1 %8751, %v1485_v48  }
 0x455   :  { %v975_v49 = vpop.permute.xlu0 %974 }
 0x456   :  { %v998_v51 = vsel %vm602_vm1, %v10083_v26, %v975_v49 }
 0x457   :  { %v977_v52 = vpop.permute.xlu1 %976  ;;  %7111 = vmatprep.mubr.msk.f32.mxu1 %vm1012_vm15, %v998_v51 }
 0x458   :  { %v999_v53 = vsel %vm602_vm1, %v10077_v20, %v977_v52 }
 0x459   :  { %7112 = vmatmul.mubr.msk.f32.vlgmr.msra.gmra.mrb[0].mxu1 %vm1012_vm15, %v999_v53  ;;  %v979_v56 = vpop.permute.xlu0 %978 }
 0x45a   :  { %v1000_v8 = vsel %vm602_vm1, %v10103_v37, %v979_v56 }
 0x45b   :  { %7114 = vmatprep.mubr.msk.f32.mxu1 %vm1012_vm15, %v1000_v8 }
 0x45c   :  { %v981_v57 = vpop.permute.xlu1 %980 }
 0x45d   :  { %v1001_v58 = vsel %vm602_vm1, %v10094_v32, %v981_v57 }
 0x45e   :  { %7115 = vmatmul.mubr.msk.f32.gmra.mrb[2].mxu1 %vm1012_vm15, %v1001_v58  ;;  %v983_v26 = vpop.permute.xlu0 %982 }
 0x45f   :  { %v1002_v59 = vsel %vm602_vm1, %v10130_v55, %v983_v26  ;;  %v6693_v55 = vld [vmem:[%s12816_s5] ss:$0 sm:$0xff] }
 0x460   :  { %v985_v20 = vpop.permute.xlu1 %984  ;;  %7117 = vmatprep.mubr.msk.f32.mxu1 %vm1012_vm15, %v1002_v59 }
 0x461   :  { %v1003_v60 = vsel %vm602_vm1, %v10122_v50, %v985_v20 }
 0x462   :  { %7118 = vmatmul.mubr.msk.f32.gmra.mrb[4].mxu1 %vm1012_vm15, %v1003_v60  ;;  %v987_v37 = vpop.permute.xlu0 %986 }
 0x463   :  { %v1004_v61 = vsel %vm602_vm1, %v10156_v35, %v987_v37 }
 0x464   :  { %v989_v63 = vpop.permute.xlu1 %988  ;;  %7120 = vmatprep.mubr.msk.f32.mxu1 %vm1012_vm15, %v1004_v61 }
 0x465   :  { %v1005_v32 = vsel %vm602_vm1, %v10146_v22, %v989_v63  ;;  %vm1476_vm1 = vcmp.ge.s32.totalorder %v9967_v9, 2 }
 0x466   :  { %7121 = vmatmul.mubr.msk.f32.gmra.mrb[6].mxu1 %vm1012_vm15, %v1005_v32  ;;  %v1484_v56 = vsel %vm1476_vm1, 1, %v9553_v1  ;;  %vm12819_vm15 = vcmp.eq.s32.totalorder %v10057_v6, 1  ;;  %vm12820_vm1 = vmmov %vm12817_vm3 }
 0x52c   :  { %v7113_v62 = vpop.f32.mrb[0].mxu1 }
 0x52d   :  { %v1113_v0 = vadd.f32 %v7113_v62, %v6693_v55  ;;  %v1107_v2 = vpop.f32.mrb[1].mxu1 }
 0x52e   :  { %v1108_v23 = vadd.f32 %v6693_v55, %v1107_v2 }
 0x52f   :  { %v10240_v50 = vmax.f32 %v1113_v0, 0.0 }
 0x530   :  { %v10242_v27 = vmax.f32 %v1108_v23, 0.0  ;;  %v1486_v23 = vsel %vm1478_vm11, 1, %v9553_v1  ;;  %vm12821_vm11 = vmmov %vm12820_vm1 }
 0x531   :  { %v7116_v28 = vpop.f32.mrb[2].mxu1  ;;  %v1163_v35 = vrot.slane %v10240_v50, 7  ;;  %v1437_v51 = vrot.slane %v10240_v50, 6  ;;  %v1567_v32 = vrot.slane %v10240_v50, 2  ;;  %v1211_v0 = vrot.slane %v10240_v50, 1 }
 0x532   :  { %v1123_v29 = vadd.f32 %v7116_v28, %v6693_v55  ;;  %v1117_v33 = vpop.f32.mrb[3].mxu1  ;;  %v10246_v34 = vrot.slane %v10242_v27, 7  ;;  %v1436_v49 = vrot.slane %v10242_v27, 6  ;;  %v1566_v63 = vrot.slane %v10242_v27, 2 }
 0x533   :  { %v1118_v22 = vadd.f32 %v6693_v55, %v1117_v33  ;;  %v1210_v62 = vrot.slane %v10242_v27, 1 }
 0x534   :  { %v10248_v39 = vmax.f32 %v1123_v29, 0.0  ;;  %v10252_v40 = vsel %vm12764_vm13, %v10246_v34, %v1163_v35  ;;  %v1438_v60 = vsel %vm12817_vm3, %v1436_v49, %v1437_v51 }
 0x535   :  { %v10254_v41 = vmax.f32 %v1118_v22, 0.0  ;;  %v7119_v43 = vpop.f32.mrb[4].mxu1  ;;  %v8752_v36 = vpack.i.bf16 %v10252_v40, %v10246_v34  ;;  %v8757_v2 = vpack.i.bf16 %v1438_v60, %v1436_v49  ;;  %v1568_v22 = vsel %vm12767_vm9, %v1566_v63, %v1567_v32  ;;  %v744_v49 = vld [vmem:[%s12818_s20 + $0x8] sm:$0xff] }
 0x536   :  { %v1133_v46 = vadd.f32 %v7119_v43, %v6693_v55  ;;  %v1127_v47 = vpop.f32.mrb[5].mxu1  ;;  %v1167_v48 = vrot.slane %v10248_v39, 7  ;;  %v1212_v19 = vsel %vm876_vm14, %v1210_v62, %v1211_v0 }
 0x537   :  { %v1128_v52 = vadd.f32 %v6693_v55, %v1127_v47  ;;  %8753 = vrot.lane.b32.xlu0 %v8752_v36, %s9557_s11  ;;  %v1165_v53 = vrot.slane %v10254_v41, 7  ;;  %v743_v47 = vld [vmem:[%s12818_s20] sm:$0xff] }
 0x538   :  { %v10272_v58 = vmax.f32 %v1133_v46, 0.0  ;;  %v7291_v60 = vpack.c.bf16 %v744_v49, %v743_v47 }
 0x539   :  { %v7122_v8 = vpop.f32.mrb[6].mxu1  ;;  %v10266_v57 = vsel %vm12764_vm13, %v1163_v35, %v1165_v53  ;;  %v10269_v9 = vsel %vm12764_vm13, %v1165_v53, %v1167_v48  ;;  %v10274_v26 = vmax.f32 %v1128_v52, 0.0  ;;  %v1234_v52 = vsel %vm12819_vm15, %v1212_v19, 0.0  ;;  %v748_v19 = vld [vmem:[%s12818_s20 + $0x28] sm:$0xff] }
 0x53a   :  { %v1137_v59 = vpop.f32.mrb[7].mxu1  ;;  %v8762_v20 = vpack.i.bf16 %v10269_v9, %v10266_v57  ;;  %v1143_v37 = vadd.f32 %v7122_v8, %v6693_v55  ;;  %v1171_v35 = vrot.slane %v10272_v58, 7  ;;  %v1213_v8 = vrot.slane %v10254_v41, 1  ;;  %7292 = vmatprep.subr.bf16.mxu0 %v7291_v60 }
 0x53b   :  { %v1138_v61 = vadd.f32 %v6693_v55, %v1137_v59  ;;  %1493 = vperm.xlu0 %8750, %v1484_v56   ;;  %v10289_v55 = vpop.permute.xlu0 %1607  ;;  %v1169_v28 = vrot.slane %v10274_v26, 7  ;;  %v746_v59 = vld [vmem:[%s12818_s20 + $0x18] sm:$0xff]  ;;  %7294 = vmatpush3.bf16.msra.mxu0 %v7291_v60  ;;  %v751_v60 = vld [vmem:[%s12818_s20 + $0x40] sm:$0xff]  ;;  %vm1481_vm15 = vcmp.ge.s32.totalorder %v9997_v24, 2 }
 0x53c   :  { %8763 = vrot.lane.b32.xlu1 %v8762_v20, %s9557_s11  ;;  %v10293_v29 = vmax.f32 %v1143_v37, 0.0  ;;  %vm1630_vm8 = vcmp.eq.s32.totalorder %v10289_v55, 1  ;;  %v1439_v37 = vrot.slane %v10254_v41, 6  ;;  %v7295_v63 = vpack.c.bf16 %v746_v59, %v745_v18  ;;  %v750_v18 = vld [vmem:[%s12818_s20 + $0x38] sm:$0xff] }
 0x53d   :  { %v10295_v33 = vmax.f32 %v1138_v61, 0.0  ;;  %v1638_v43 = vsel %vm1630_vm8, %v1568_v22, 0.0  ;;  %v10305_v36 = vsel %vm12764_vm13, %v1167_v48, %v1169_v28  ;;  %v10308_v46 = vsel %vm12764_vm13, %v1169_v28, %v1171_v35  ;;  %v747_v22 = vld [vmem:[%s12818_s20 + $0x20] sm:$0xff] }
 0x53e   :  { %v1175_v56 = vrot.slane %v10293_v29, 7  ;;  %v1487_v48 = vsel %vm1479_vm10, 1, %v9553_v1  ;;  %v8767_v20 = vpack.i.bf16 %v10308_v46, %v10305_v36  ;;  %v1441_v61 = vrot.slane %v10248_v39, 6  ;;  %7296 = vmatprep.subr.bf16.mxu0 %v7295_v63 }
 0x53f   :  { %8758 = vrot.lane.b32.xlu0 %v8757_v2, %s9557_s11  ;;  %v1173_v53 = vrot.slane %v10295_v33, 7  ;;  %v1569_v28 = vrot.slane %v10254_v41, 2  ;;  %7298 = vmatpush3.bf16.msra.mxu0 %v7295_v63  ;;  %vm1480_vm10 = vcmp.ge.s32.totalorder %v10000_v25, 2  ;;  %v1571_v25 = vrot.slane %v10248_v39, 2 }
 0x540   :  { %1499 = vperm.xlu1 %8751, %v1486_v23   ;;  %v1214_v23 = vsel %vm876_vm14, %v1211_v0, %v1213_v8  ;;  %v1440_v0 = vsel %vm12820_vm1, %v1437_v51, %v1439_v37  ;;  %v1442_v49 = vsel %vm12821_vm11, %v1439_v37, %v1441_v61  ;;  %v752_v37 = vld [vmem:[%s12818_s20 + $0x48] sm:$0xff] }
 0x541   :  { %v10328_v62 = vsel %vm12764_vm13, %v1171_v35, %v1173_v53  ;;  %v10331_v2 = vsel %vm12764_vm13, %v1173_v53, %v1175_v56  ;;  %v1235_v47 = vsel %vm943_vm2, %v1214_v23, 0.0  ;;  %v1570_v53 = vsel %vm12767_vm9, %v1567_v32, %v1569_v28  ;;  %v749_v56 = vld [vmem:[%s12818_s20 + $0x30] sm:$0xff] }
 0x542   :  { %v8772_v35 = vpack.i.bf16 %v10331_v2, %v10328_v62  ;;  %v8777_v59 = vpack.i.bf16 %v1442_v49, %v1440_v0  ;;  %v7303_v51 = vpack.c.bf16 %v750_v18, %v749_v56  ;;  %v1215_v32 = vrot.slane %v10248_v39, 1 }
 0x543   :  { %1686 = vrot.lane.b32.xlu0 %v1638_v43, %s9557_s11  ;;  %v7299_v43 = vpack.c.bf16 %v748_v19, %v747_v22  ;;  %v7307_v63 = vpack.c.bf16 %v752_v37, %v751_v60  ;;  %v753_v22 = vld [vmem:[%s12818_s20 + $0x50] sm:$0xff]  ;;  %v754_v19 = vld [vmem:[%s12818_s20 + $0x58] sm:$0xff]  ;;  %v1217_v0 = vrot.slane %v10274_v26, 1  ;;  %v1443_v49 = vrot.slane %v10274_v26, 6 }
 0x544   :  { %1250 = vrot.lane.b32.xlu1 %v1234_v52, %s9536_s9  ;;  %v10347_v52 = vpop.permute.xlu1 %1610  ;;  %v1216_v23 = vsel %vm876_vm14, %v1213_v8, %v1215_v32  ;;  %v1489_v8 = vsel %vm1481_vm15, 1, %v9553_v1 }
 0x545   :  { %7300 = vmatprep.subr.bf16.mxu0 %v7299_v43  ;;  %vm1631_vm3 = vcmp.eq.s32.totalorder %v10347_v52, 1  ;;  %v1218_v56 = vsel %vm876_vm14, %v1215_v32, %v1217_v0 }
 0x546   :  { %7302 = vmatpush3.bf16.msra.mxu0 %v7299_v43 }
 0x547   :  { %8768 = vrot.lane.b32.xlu0 %v8767_v20, %s9557_s11  ;;  %v1488_v20 = vsel %vm1480_vm10, 1, %v9553_v1  ;;  %7304 = vmatprep.subr.bf16.mxu0 %v7303_v51  ;;  %vm12822_vm10 = vcmask 1041408  }
 0x548   :  { %1502 = vperm.xlu1 %8751, %v1487_v48   ;;  %v1639_v48 = vsel %vm1631_vm3, %v1570_v53, 0.0  ;;  %v10370_v43 = vpop.permute.xlu1 %1613  ;;  %v1445_v53 = vrot.slane %v10272_v58, 6  ;;  %vm12823_vm15 = vmmov %vm12822_vm10 }
 0x549   :  { %vm12757_vm1 = vcmp.eq.s32.totalorder %v10370_v43, 1 }
 0x54a   :  { %7306 = vmatpush3.bf16.msra.mxu0 %v7303_v51  ;;  %v1444_v51 = vsel %vm12822_vm10, %v1441_v61, %v1443_v49  ;;  %v1575_v61 = vrot.slane %v10272_v58, 2  ;;  %vm1483_vm10 = vcmp.ge.s32.totalorder %v10011_v30, 2 }
 0x54b   :  { %1252 = vrot.lane.b32.xlu0 %v1235_v47, %s9536_s9  ;;  %7308 = vmatprep.subr.bf16.mxu0 %v7307_v63  ;;  %v1236_v47 = vsel %vm12763_vm7, %v1216_v23, 0.0  ;;  %v757_v23 = vld [vmem:[%s12824_s22 + $0x8] sm:$0xff] }
 0x54c   :  { %8773 = vrot.lane.b32.xlu1 %v8772_v35, %s9557_s11  ;;  %v7311_v35 = vpack.c.bf16 %v754_v19, %v753_v22  ;;  %v758_v22 = vld [vmem:[%s12824_s22 + $0x10] sm:$0xff]  ;;  %v9559_v19 = vmov 0.0|0.0  }
 0x54d   :  { %7315 = vmatprep.subr.bf16.mxu1 %v9559_v19 }
 0x54e   :  { %7310 = vmatpush3.bf16.msra.mxu0 %v7307_v63 }
 0x54f   :  { %8778 = vrot.lane.b32.xlu0 %v8777_v59, %s9557_s11  ;;  %7312 = vmatprep.subr.bf16.mxu0 %v7311_v35  ;;  %v1237_v59 = vsel %vm12762_vm6, %v1218_v56, 0.0  ;;  %v764_v56 = vld [vmem:[%s12824_s22 + $0x40] sm:$0xff] }
 0x550   :  { %1688 = vrot.lane.b32.xlu1 %v1639_v48, %s9557_s11 }
 0x552   :  { %7314 = vmatpush3.bf16.msra.mxu0 %v7311_v35  ;;  %v759_v35 = vld [vmem:[%s12824_s22 + $0x18] sm:$0xff] }
 0x553   :  { %1177 = vrot.lane.b32.xlu0 %v10246_v34, %s9558_s15  ;;  %v1572_v34 = vsel %vm12767_vm9, %v1569_v28, %v1571_v25  ;;  %v10386_v28 = vpop.permute.xlu0 %1616 }
 0x554   :  { %1505 = vperm.xlu1 %8751, %v1488_v20   ;;  %v1640_v24 = vsel %vm12757_vm1, %v1572_v34, 0.0  ;;  %vm12761_vm11 = vcmp.eq.s32.totalorder %v10386_v28, 1  ;;  %vm1482_vm1 = vcmp.ge.s32.totalorder %v10014_v31, 2  ;;  %v1219_v20 = vrot.slane %v10272_v58, 1  ;;  %v760_v34 = vld [vmem:[%s12824_s22 + $0x20] sm:$0xff] }
 0x555   :  { %v1490_v32 = vsel %vm1482_vm1, 1, %v9553_v1 }
 0x556   :  { %v1220_v37 = vsel %vm876_vm14, %v1217_v0, %v1219_v20  ;;  %v762_v0 = vld [vmem:[%s12824_s22 + $0x30] sm:$0xff] }
 0x557   :  { %1179 = vrot.lane.b32.xlu0 %v10252_v40, %s9558_s15  ;;  %v1573_v40 = vrot.slane %v10274_v26, 2  ;;  %v10414_v31 = vpop.permute.xlu0 %1619 }
 0x558   :  { %1254 = vrot.lane.b32.xlu1 %v1236_v47, %s9536_s9  ;;  %vm12758_vm1 = vcmp.eq.s32.totalorder %v10414_v31, 1  ;;  %v7319_v47 = vpack.c.bf16 %v759_v35, %v758_v22  ;;  %v10463_v22 = vpop.permute.xlu1 %1622 }
 0x559   :  { %v1574_v18 = vsel %vm12767_vm9, %v1571_v25, %v1573_v40  ;;  %v1576_v60 = vsel %vm12767_vm9, %v1573_v40, %v1575_v61  ;;  %v756_v25 = vld [vmem:[%s12824_s22] sm:$0xff]  ;;  %v763_v40 = vld [vmem:[%s12824_s22 + $0x38] sm:$0xff] }
 0x55a   :  { %v1642_v63 = vsel %vm12758_vm1, %v1576_v60, 0.0  ;;  %v7316_v30 = vpack.c.bf16 %v757_v23, %v756_v25  ;;  %v773_v25 = vld [vmem:[%s12824_s22 + $0x88] sm:$0xff]  ;;  %vm12829_vm1 = vcmask 1041408  }
 0x55b   :  { %1690 = vrot.lane.b32.xlu0 %v1640_v24, %s9557_s11  ;;  %v10467_v35 = vpop.permute.xlu0 %1628 }
 0x55c   :  { %1508 = vperm.xlu1 %8751, %v1489_v8   ;;  %7317 = vmatpush1.bf16.msra.mxu1 %v7316_v30  ;;  %v761_v8 = vld [vmem:[%s12824_s22 + $0x28] sm:$0xff]  ;;  %v10465_v30 = vpop.permute.xlu1 %1625 }
 0x55d   :  { %7318 = vmatprep.subr.bf16.mxu1 %v9559_v19  ;;  %v7322_v24 = vpack.c.bf16 %v761_v8, %v760_v34  ;;  %v775_v34 = vld [vmem:[%s12824_s22 + $0x98] sm:$0xff] }
 0x55f   :  { %1181 = vrot.lane.b32.xlu0 %v10266_v57, %s9558_s15  ;;  %v1446_v57 = vsel %vm12823_vm15, %v1443_v49, %v1445_v53  ;;  %v7325_v49 = vpack.c.bf16 %v763_v40, %v762_v0  ;;  %vm12825_vm15 = vcmp.eq.s32.totalorder %v10055_v5, 1 }
 0x560   :  { %1183 = vrot.lane.b32.xlu1 %v10269_v9, %s9558_s15  ;;  %v1641_v9 = vsel %vm12761_vm11, %v1574_v18, 0.0  ;;  %v8782_v48 = vpack.i.bf16 %v1446_v57, %v1444_v51  ;;  %7320 = vmatpush1.bf16.msra.mxu1 %v7319_v47  ;;  %v765_v18 = vld [vmem:[%s12824_s22 + $0x48] sm:$0xff]  ;;  %v766_v51 = vld [vmem:[%s12824_s22 + $0x50] sm:$0xff]  ;;  %v767_v57 = vld [vmem:[%s12824_s22 + $0x58] sm:$0xff]  ;;  %v10472_v0 = vpop.permute.xlu1 %1496  ;;  %vm12833_vm11 = vcmp.eq.s32.totalorder %v10079_v21, 1 }
 0x561   :  { %7321 = vmatprep.subr.bf16.mxu1 %v9559_v19  ;;  %v774_v47 = vld [vmem:[%s12824_s22 + $0x90] sm:$0xff] }
 0x562   :  { %v7343_v8 = vpack.c.bf16 %v775_v34, %v774_v47 }
 0x563   :  { %1256 = vrot.lane.b32.xlu0 %v1237_v59, %s9536_s9  ;;  %v7328_v59 = vpack.c.bf16 %v765_v18, %v764_v56 }
 0x564   :  { %1692 = vrot.lane.b32.xlu1 %v1641_v9, %s9557_s11  ;;  %7323 = vmatpush1.bf16.msra.mxu1 %v7322_v24  ;;  %v7331_v9 = vpack.c.bf16 %v767_v57, %v766_v51 }
 0x565   :  { %7324 = vmatprep.subr.bf16.mxu1 %v9559_v19 }
 0x567   :  { %8783 = vrot.lane.b32.xlu0 %v8782_v48, %s9557_s11  ;;  %v768_v48 = vld [vmem:[%s12824_s22 + $0x60] sm:$0xff] }
 0x568   :  { %1511 = vperm.xlu1 %8751, %v1490_v32   ;;  %7326 = vmatpush1.bf16.msra.mxu1 %v7325_v49  ;;  %v769_v32 = vld [vmem:[%s12824_s22 + $0x68] sm:$0xff] }
 0x569   :  { %7327 = vmatprep.subr.bf16.mxu1 %v9559_v19  ;;  %v7334_v60 = vpack.c.bf16 %v769_v32, %v768_v48 }
 0x56b   :  { %1187 = vrot.lane.b32.xlu0 %v10308_v46, %s9558_s15  ;;  %v1238_v46 = vsel %vm12759_vm0, %v1220_v37, 0.0  ;;  %v770_v37 = vld [vmem:[%s12824_s22 + $0x70] sm:$0xff]  ;;  %vm1274_vm0 = vcmask 261120  }
 0x56c   :  { %1185 = vrot.lane.b32.xlu1 %v10305_v36, %s9558_s15  ;;  %v1491_v36 = vsel %vm1483_vm10, 1, %v9553_v1  ;;  %7329 = vmatpush1.bf16.msra.mxu1 %v7328_v59  ;;  %v1221_v59 = vrot.slane %v10295_v33, 1  ;;  %vm12826_vm10 = vcmp.eq.s32.totalorder %v10053_v4, 1 }
 0x56d   :  { %7330 = vmatprep.subr.bf16.mxu1 %v9559_v19 }
 0x56f   :  { %1694 = vrot.lane.b32.xlu0 %v1642_v63, %s9557_s11  ;;  %v771_v63 = vld [vmem:[%s12824_s22 + $0x78] sm:$0xff] }
 0x570   :  { %1258 = vrot.lane.b32.xlu1 %v1238_v46, %s9536_s9  ;;  %7332 = vmatpush1.bf16.msra.mxu1 %v7331_v9  ;;  %v7337_v46 = vpack.c.bf16 %v771_v63, %v770_v37 }
 0x571   :  { %7333 = vmatprep.subr.bf16.mxu1 %v9559_v19 }
 0x574   :  { %1514 = vperm.xlu1 %8751, %v1491_v36   ;;  %7335 = vmatpush1.bf16.msra.mxu1 %v7334_v60  ;;  %v772_v36 = vld [vmem:[%s12824_s22 + $0x80] sm:$0xff]  ;;  %v1222_v60 = vsel %vm876_vm14, %v1219_v20, %v1221_v59 }
 0x575   :  { %7336 = vmatprep.subr.bf16.mxu1 %v9559_v19  ;;  %v7340_v23 = vpack.c.bf16 %v773_v25, %v772_v36  ;;  %v1577_v25 = vrot.slane %v10295_v33, 2 }
 0x577   :  { %v1578_v20 = vsel %vm12767_vm9, %v1575_v61, %v1577_v25 }
 0x578   :  { %7338 = vmatpush1.bf16.msra.mxu1 %v7337_v46 }
 0x579   :  { %7339 = vmatprep.subr.bf16.mxu1 %v9559_v19 }
 0x57c   :  { %7341 = vmatpush1.bf16.msra.mxu1 %v7340_v23  ;;  %v1223_v23 = vrot.slane %v10293_v29, 1 }
 0x57d   :  { %7342 = vmatprep.subr.bf16.mxu1 %v9559_v19 }
 0x57e   :  { %v1224_v47 = vsel %vm876_vm14, %v1221_v59, %v1223_v23 }
 0x580   :  { %7344 = vmatpush1.bf16.msra.mxu1 %v7343_v8 }
 0x581   :  { %7427 = vmatprep.subr.bf16.mxu1 %v9559_v19 }
 0x5a9   :  { %v8754_v24 = vpop.permute.xlu0 %8753 }
 0x5aa   :  { %v8756_v40 = vunpack.i.h.bf16 %v8754_v24  ;;  %v8755_v49 = vunpack.i.l.bf16 %v8754_v24 }
 0x5ac   :  { %v1556_v56 = vsel %vm12764_vm13, 0.0, %v8755_v49  ;;  %v1558_v18 = vsel %vm12825_vm15, %v8756_v40, 0.0  ;;  %vm12827_vm15 = vcmp.eq.s32.totalorder %v10075_v17, 1 }
 0x5ad   :  { %v1557_v51 = vsel %vm12826_vm10, %v1556_v56, 0.0  ;;  %v1239_v36 = vsel %vm12827_vm15, %v1222_v60, 0.0  ;;  %vm12760_vm10 = vcmp.eq.s32.totalorder %v10463_v22, 1  ;;  %vm12828_vm15 = vcmp.eq.s32.totalorder %v10114_v45, 1 }
 0x5ae   :  { %v8764_v57 = vpop.permute.xlu1 %8763  ;;  %v8787_v9 = vpack.i.bf16 %v1558_v18, %v1557_v51  ;;  %v1643_v8 = vsel %vm12760_vm10, %v1578_v20, 0.0  ;;  %v1240_v24 = vsel %vm12828_vm15, %v1224_v47, 0.0  ;;  %vm12830_vm15 = vcmp.eq.s32.totalorder %v10069_v14, 1 }
 0x5af   :  { %v8766_v48 = vunpack.i.h.bf16 %v8764_v57  ;;  %v8765_v32 = vunpack.i.l.bf16 %v8764_v57  ;;  %vm12831_vm10 = vcmp.eq.s32.totalorder %v10071_v15, 1  ;;  %v1449_v47 = vrot.slane %v10293_v29, 6 }
 0x5b0   :  { %8788 = vrot.lane.b32.xlu0 %v8787_v9, %s9536_s9 }
 0x5b1   :  { %v1559_v37 = vsel %vm854_vm5, %v8765_v32, 0.0  ;;  %v1560_v63 = vsel %vm855_vm4, %v8766_v48, 0.0 }
 0x5b2   :  { %v8792_v46 = vpack.i.bf16 %v1560_v63, %v1559_v37 }
 0x5b4   :  { %8793 = vrot.lane.b32.xlu1 %v8792_v46, %s9536_s9  ;;  %1260 = vrot.lane.b32.xlu0 %v1239_v36, %s9536_s9  ;;  %v1579_v46 = vrot.slane %v10293_v29, 2 }
 0x5b8   :  { %1189 = vrot.lane.b32.xlu1 %v10328_v62, %s9558_s15  ;;  %1191 = vrot.lane.b32.xlu0 %v10331_v2, %s9558_s15  ;;  %v1447_v62 = vrot.slane %v10295_v33, 6 }
 0x5ba   :  { %v10503_v34 = vpop.permute.xlu0 %1493  ;;  %v1448_v40 = vsel %vm12829_vm1, %v1445_v53, %v1447_v62  ;;  %vm12832_vm1 = vcmask 1042432  }
 0x5bb   :  { %v1233_v63 = vsel %vm12832_vm1, %v1223_v23, 0.0  ;;  %v1580_v23 = vsel %vm12767_vm9, %v1577_v25, %v1579_v46  ;;  %vm12835_vm1 = vcmask 1041408  }
 0x5bc   :  { %1696 = vrot.lane.b32.xlu1 %v1643_v8, %s9557_s11  ;;  %1262 = vrot.lane.b32.xlu0 %v1240_v24, %s9536_s9  ;;  %vm12836_vm7 = vmmov %vm12835_vm1 }
 0x5be   :  { %v10512_v2 = vpop.permute.xlu0 %8758 }
 0x5bf   :  { %v1500_v61 = vpop.permute.xlu1 %1499 }
 0x5c0   :  { %1463 = vrot.lane.b32.xlu1 %v1448_v40, %s9557_s11 }
 0x5c2   :  { %v1687_v49 = vpop.permute.xlu0 %1686 }
 0x5c3   :  { %v10518_v56 = vpop.permute.xlu1 %1250  ;;  %6713 = vmatprep.mubr.msk.f32.mxu1 %vm1274_vm0, %v1687_v49 }
 0x5c6   :  { %v8769_v18 = vpop.permute.xlu0 %8768 }
 0x5c7   :  { %v1503_v59 = vpop.permute.xlu1 %1502  ;;  %v8771_v51 = vunpack.i.h.bf16 %v8769_v18  ;;  %v8770_v57 = vunpack.i.l.bf16 %v8769_v18 }
 0x5c8   :  { %vm1519_vm6 = vcmp.eq.s32.totalorder %v1503_v59, 1 }
 0x5c9   :  { %v1561_v9 = vsel %vm12830_vm15, %v8770_v57, 0.0  ;;  %v1562_v48 = vsel %vm12831_vm10, %v8771_v51, 0.0  ;;  %vm12834_vm10 = vcmp.eq.s32.totalorder %v10173_v54, 1  ;;  %vm1518_vm15 = vcmp.eq.s32.totalorder %v1500_v61, 1 }
 0x5ca   :  { %v10525_v32 = vpop.permute.xlu0 %1252  ;;  %v8797_v53 = vpack.i.bf16 %v1562_v48, %v1561_v9  ;;  %v1241_v49 = vsel %vm12834_vm10, %v1233_v63, 0.0  ;;  %v1450_v57 = vsel %vm12835_vm1, %v1447_v62, %v1449_v47  ;;  %v1589_v48 = vsel %vm12836_vm7, %v1579_v46, 0.0 }
 0x5cb   :  { %v8774_v60 = vpop.permute.xlu1 %8773  ;;  %vm12837_vm10 = vcmp.eq.s32.totalorder %v10053_v4, 1  ;;  %vm12765_vm1 = vcmp.eq.s32.totalorder %v10467_v35, 1  ;;  %vm12838_vm7 = vcmp.eq.s32.totalorder %v10055_v5, 1 }
 0x5cc   :  { %v8775_v37 = vunpack.i.l.bf16 %v8774_v60  ;;  %8798 = vrot.lane.b32.xlu0 %v8797_v53, %s9536_s9  ;;  %v8776_v53 = vunpack.i.h.bf16 %v8774_v60  ;;  %v1645_v60 = vsel %vm12765_vm1, %v1589_v48, 0.0 }
 0x5ce   :  { %v1563_v36 = vsel %vm12833_vm11, %v8775_v37, 0.0  ;;  %v8779_v20 = vpop.permute.xlu0 %8778  ;;  %vm1636_vm11 = vcmp.eq.s32.totalorder %v10465_v30, 1 }
 0x5cf   :  { %v10533_v8 = vpop.permute.xlu1 %1688  ;;  %1666 = vrot.lane.b32.xlu1 %v1563_v36, %s9536_s9  ;;  %v8781_v24 = vunpack.i.h.bf16 %v8779_v20  ;;  %v8780_v40 = vunpack.i.l.bf16 %v8779_v20  ;;  %v1644_v25 = vsel %vm1636_vm11, %v1580_v23, 0.0 }
 0x5d0   :  { %1264 = vrot.lane.b32.xlu0 %v1241_v49, %s9536_s9 }
 0x5d1   :  { %v10540_v18 = vsel %vm1519_vm6, %v8781_v24, 0.0  ;;  %v10542_v51 = vsel %vm1518_vm15, %v8780_v40, 0.0  ;;  %vm1283_vm6 = vcmask 523264   ;;  %vm1298_vm15 = vcmask 785408  }
 0x5d2   :  { %v1178_v9 = vpop.permute.xlu0 %1177 }
 0x5d3   :  { %v10547_v37 = vpop.permute.xlu1 %1505  ;;  %1465 = vrot.lane.b32.xlu1 %v1450_v57, %s9557_s11  ;;  %v1201_v61 = vsel %vm12764_vm13, 0.0, %v1178_v9 }
 0x5d4   :  { %v1202_v59 = vsel %vm12837_vm10, %v1201_v61, 0.0  ;;  %1698 = vrot.lane.b32.xlu0 %v1644_v25, %s9557_s11  ;;  %vm12839_vm10 = vcmp.eq.s32.totalorder %v10112_v44, 1 }
 0x5d5   :  { %v1275_v62 = vsel %vm1274_vm0, %v1202_v59, %v10242_v27  ;;  %v1564_v20 = vsel %vm12839_vm10, %v8776_v53, 0.0  ;;  %vm1516_vm10 = vcmp.eq.s32.totalorder %v10503_v34, 1 }
 0x5d6   :  { %v1180_v63 = vpop.permute.xlu0 %1179  ;;  %v1284_v46 = vsel %vm1283_vm6, %v1275_v62, %v10518_v56 }
 0x5d7   :  { %v10563_v36 = vpop.permute.xlu1 %1254  ;;  %1700 = vrot.lane.b32.xlu1 %v1645_v60, %s9557_s11  ;;  %v1203_v4 = vsel %vm12838_vm7, %v1180_v63, 0.0  ;;  %7147 = vmatprep.mubr.msk.f32.mxu0 %vm1298_vm15, %v1284_v46  ;;  %vm1517_vm7 = vcmp.eq.s32.totalorder %v10472_v0, 1 }
 0x5d8   :  { %v1276_v47 = vsel %vm1274_vm0, %v1203_v4, %v10240_v50  ;;  %1668 = vrot.lane.b32.xlu0 %v1564_v20, %s9536_s9 }
 0x5d9   :  { %v1285_v24 = vsel %vm1283_vm6, %v1276_v47, %v10525_v32 }
 0x5da   :  { %7148 = vmatmul.mubr.msk.f32.vlgmr.msra.gmra.mrb[8].mxu0 %vm1298_vm15, %v1285_v24  ;;  %v1691_v40 = vpop.permute.xlu0 %1690  ;;  %v8760_v24 = vunpack.i.l.bf16 %v10512_v2 }
 0x5db   :  { %v10577_v49 = vpop.permute.xlu1 %1508 }
 0x5de   :  { %v1182_v5 = vpop.permute.xlu0 %1181 }
 0x5df   :  { %v1184_v23 = vpop.permute.xlu1 %1183  ;;  %v1204_v57 = vsel %vm854_vm5, %v1182_v5, 0.0  ;;  %vm12841_vm5 = vcmask 1041408  }
 0x5e0   :  { %v1205_v9 = vsel %vm855_vm4, %v1184_v23, 0.0  ;;  %v1277_v48 = vsel %vm1274_vm0, %v1204_v57, %v10254_v41  ;;  %vm12840_vm4 = vcmp.eq.s32.totalorder %v10069_v14, 1  ;;  %v8761_v23 = vunpack.i.h.bf16 %v10512_v2 }
 0x5e1   :  { %v1286_v53 = vsel %vm1283_vm6, %v1277_v48, %v10563_v36  ;;  %v1278_v61 = vsel %vm1274_vm0, %v1205_v9, %v10248_v39  ;;  %v1475_v14 = vsel %vm12841_vm5, 0.0, %v8760_v24  ;;  %vm12843_vm5 = vcmp.eq.s32.totalorder %v10079_v21, 1 }
 0x5e2   :  { %7150 = vmatprep.mubr.msk.f32.mxu0 %vm1298_vm15, %v1286_v53  ;;  %v1257_v25 = vpop.permute.xlu0 %1256 }
 0x5e3   :  { %v1693_v59 = vpop.permute.xlu1 %1692  ;;  %v1287_v62 = vsel %vm1283_vm6, %v1278_v61, %v1257_v25 }
 0x5e4   :  { %7151 = vmatmul.mubr.msk.f32.gmra.mrb[10].mxu0 %vm1298_vm15, %v1287_v62  ;;  %v1525_v62 = vsel %vm1517_vm7, %v8761_v23, 0.0  ;;  %vm1520_vm7 = vcmp.eq.s32.totalorder %v10547_v37, 1 }
 0x5e6   :  { %v8784_v20 = vpop.permute.xlu0 %8783 }
 0x5e7   :  { %v10592_v10 = vpop.permute.xlu1 %1511 }
 0x5ea   :  { %v1188_v47 = vpop.permute.xlu0 %1187 }
 0x5eb   :  { %v1186_v11 = vpop.permute.xlu1 %1185 }
 0x5ec   :  { %v1206_v60 = vsel %vm12840_vm4, %v1186_v11, 0.0  ;;  %vm12842_vm4 = vcmp.eq.s32.totalorder %v10071_v15, 1  ;;  %v1524_v11 = vsel %vm1516_vm10, %v1475_v14, 0.0  ;;  %vm1521_vm10 = vcmp.eq.s32.totalorder %v10577_v49, 1 }
 0x5ed   :  { %v1279_v63 = vsel %vm1274_vm0, %v1206_v60, %v10274_v26  ;;  %v1207_v48 = vsel %vm12842_vm4, %v1188_v47, 0.0  ;;  %vm12844_vm4 = vcmp.eq.s32.totalorder %v10112_v44, 1 }
 0x5ee   :  { %v1695_v5 = vpop.permute.xlu0 %1694 }
 0x5ef   :  { %v10598_v46 = vpop.permute.xlu1 %1258 }
 0x5f0   :  { %v1288_v4 = vsel %vm1283_vm6, %v1279_v63, %v10598_v46  ;;  %v1280_v63 = vsel %vm1274_vm0, %v1207_v48, %v10272_v58 }
 0x5f1   :  { %7153 = vmatprep.mubr.msk.f32.mxu0 %vm1298_vm15, %v1288_v4 }
 0x5f3   :  { %v10607_v57 = vpop.permute.xlu1 %1514 }
 0x622   :  { %v8789_v9 = vpop.permute.xlu0 %8788 }
 0x623   :  { %v8791_v53 = vunpack.i.h.bf16 %v8789_v9  ;;  %v8790_v61 = vunpack.i.l.bf16 %v8789_v9 }
 0x625   :  { %v1702_v60 = vsel %vm1274_vm0, %v1524_v11, %v8790_v61  ;;  %v1703_v2 = vsel %vm1274_vm0, %v1525_v62, %v8791_v53 }
 0x626   :  { %v8794_v0 = vpop.permute.xlu1 %8793  ;;  %v1261_v4 = vpop.permute.xlu0 %1260  ;;  %v1710_v24 = vsel %vm1283_vm6, %v1702_v60, %v10242_v27  ;;  %v1711_v23 = vsel %vm1283_vm6, %v1703_v2, %v10240_v50  ;;  %v8786_v2 = vunpack.i.h.bf16 %v8784_v20 }
 0x627   :  { %v8795_v34 = vunpack.i.l.bf16 %v8794_v0  ;;  %v1289_v15 = vsel %vm1283_vm6, %v1280_v63, %v1261_v4  ;;  %v1718_v47 = vsel %vm1298_vm15, %v1710_v24, %v10518_v56  ;;  %v8796_v14 = vunpack.i.h.bf16 %v8794_v0 }
 0x628   :  { %7154 = vmatmul.mubr.msk.f32.gmra.mrb[12].mxu0 %vm1298_vm15, %v1289_v15  ;;  %1813 = vmatmul.mubr.f32.vlgmr.msra.gmra.mrb[8].mxu1 %v1718_v47  ;;  %v1719_v56 = vsel %vm1298_vm15, %v1711_v23, %v10525_v32  ;;  %v8785_v63 = vunpack.i.l.bf16 %v8784_v20 }
 0x629   :  { %6714 = vmatprep.mubr.msk.f32.mxu1 %vm1274_vm0, %v10533_v8  ;;  %v1704_v9 = vsel %vm1274_vm0, %v10542_v51, %v8795_v34  ;;  %v1705_v8 = vsel %vm1274_vm0, %v10540_v18, %v8796_v14 }
 0x62a   :  { %v1190_v48 = vpop.permute.xlu1 %1189  ;;  %v1192_v53 = vpop.permute.xlu0 %1191  ;;  %v1712_v62 = vsel %vm1283_vm6, %v1704_v9, %v10254_v41  ;;  %v1713_v32 = vsel %vm1283_vm6, %v1705_v8, %v10248_v39  ;;  %v1528_v47 = vsel %vm1520_vm7, %v8785_v63, 0.0  ;;  %vm1523_vm7 = vcmp.eq.s32.totalorder %v10607_v57, 1 }
 0x62b   :  { %v1208_v61 = vsel %vm12843_vm5, %v1190_v48, 0.0  ;;  %v1720_v21 = vsel %vm1298_vm15, %v1712_v62, %v10563_v36  ;;  %v1209_v24 = vsel %vm12844_vm4, %v1192_v53, 0.0  ;;  %vm1522_vm5 = vcmp.eq.s32.totalorder %v10592_v10, 1 }
 0x62c   :  { %1818 = vmatmul.mubr.f32.gmra.mrb[10].mxu1 %v1719_v56  ;;  %v1281_v51 = vsel %vm1274_vm0, %v1208_v61, %v10295_v33  ;;  %v1282_v20 = vsel %vm1274_vm0, %v1209_v24, %v10293_v29 }
 0x62d   :  { %6715 = vmatprep.mubr.msk.f32.mxu1 %vm1274_vm0, %v1691_v40  ;;  %v1721_v40 = vsel %vm1298_vm15, %v1713_v32, %v1257_v25 }
 0x62e   :  { %v1263_v11 = vpop.permute.xlu0 %1262  ;;  %v1697_v18 = vpop.permute.xlu1 %1696 }
 0x62f   :  { %v1290_v60 = vsel %vm1283_vm6, %v1281_v51, %v1263_v11 }
 0x630   :  { %7156 = vmatprep.mubr.msk.f32.mxu0 %vm1298_vm15, %v1290_v60  ;;  %1823 = vmatmul.mubr.f32.gmra.mrb[12].mxu1 %v1720_v21 }
 0x631   :  { %6716 = vmatprep.mubr.msk.f32.mxu1 %vm1274_vm0, %v1693_v59  ;;  %v1529_v59 = vsel %vm1521_vm10, %v8786_v2, 0.0 }
 0x632   :  { %v1464_v0 = vpop.permute.xlu1 %1463 }
 0x633   :  { %v1530_v9 = vsel %vm1522_vm5, %v1464_v0, 0.0 }
 0x634   :  { %1828 = vmatmul.mubr.f32.gmra.mrb[14].mxu1 %v1721_v40  ;;  %v6703_v40 = vld [vmem:[#allocation13] ss:$0 sm:$0xff] }
 0x635   :  { %6717 = vmatprep.mubr.msk.f32.mxu1 %vm1274_vm0, %v1695_v5 }
 0x63e   :  { %v8799_v36 = vpop.permute.xlu0 %8798 }
 0x63f   :  { %v8801_v34 = vunpack.i.h.bf16 %v8799_v36  ;;  %v8800_v15 = vunpack.i.l.bf16 %v8799_v36 }
 0x641   :  { %v1667_v25 = vpop.permute.xlu1 %1666  ;;  %v1706_v23 = vsel %vm1274_vm0, %v1528_v47, %v8800_v15  ;;  %v1707_v5 = vsel %vm1274_vm0, %v1529_v59, %v8801_v34 }
 0x642   :  { %v1265_v14 = vpop.permute.xlu0 %1264  ;;  %v1714_v37 = vsel %vm1283_vm6, %v1706_v23, %v10274_v26  ;;  %v1715_v48 = vsel %vm1283_vm6, %v1707_v5, %v10272_v58  ;;  %v1708_v53 = vsel %vm1274_vm0, %v1530_v9, %v1667_v25 }
 0x643   :  { %v1291_v44 = vsel %vm1283_vm6, %v1282_v20, %v1265_v14  ;;  %v1722_v49 = vsel %vm1298_vm15, %v1714_v37, %v10598_v46  ;;  %v1723_v10 = vsel %vm1298_vm15, %v1715_v48, %v1261_v4  ;;  %v1716_v62 = vsel %vm1283_vm6, %v1708_v53, %v10295_v33 }
 0x644   :  { %7157 = vmatmul.mubr.msk.f32.gmra.mrb[14].mxu0 %vm1298_vm15, %v1291_v44  ;;  %1833 = vmatmul.mubr.f32.gmra.mrb[16].mxu1 %v1722_v49  ;;  %v1724_v60 = vsel %vm1298_vm15, %v1716_v62, %v1263_v11  ;;  %v6712_v49 = vld [vmem:[#allocation14] ss:$0 sm:$0xff] }
 0x645   :  { %6718 = vmatprep.mubr.msk.f32.mxu1 %vm1274_vm0, %v1697_v18  ;;  %v1466_v61 = vpop.permute.xlu1 %1465 }
 0x646   :  { %v1699_v56 = vpop.permute.xlu0 %1698  ;;  %v1531_v46 = vsel %vm1523_vm7, %v1466_v61, 0.0 }
 0x648   :  { %1838 = vmatmul.mubr.f32.gmra.mrb[18].mxu1 %v1723_v10 }
 0x649   :  { %6719 = vmatprep.mubr.msk.f32.mxu1 %vm1274_vm0, %v1699_v56  ;;  %v1701_v21 = vpop.permute.xlu1 %1700 }
 0x64a   :  { %v1669_v8 = vpop.permute.xlu0 %1668 }
 0x64b   :  { %v1709_v51 = vsel %vm1274_vm0, %v1531_v46, %v1669_v8 }
 0x64c   :  { %1843 = vmatmul.mubr.f32.gmra.mrb[20].mxu1 %v1724_v60  ;;  %v1717_v32 = vsel %vm1283_vm6, %v1709_v51, %v10293_v29 }
 0x64d   :  { %6720 = vmatprep.mubr.msk.f32.mxu1 %vm1274_vm0, %v1701_v21  ;;  %v1725_v4 = vsel %vm1298_vm15, %v1717_v32, %v1265_v14 }
 0x650   :  { %1848 = vmatmul.mubr.f32.gmra.mrb[22].mxu1 %v1725_v4 }
 0x6ad   :  { %v7149_v57 = vpop.f32.mrb[8].mxu0 }
 0x6ae   :  { %v1395_v18 = vadd.f32 %v7149_v57, %v6703_v40  ;;  %v1389_v2 = vpop.f32.mrb[9].mxu0 }
 0x6af   :  { %v1390_v63 = vadd.f32 %v6703_v40, %v1389_v2 }
 0x6b0   :  { %v1429_v0 = vmax.f32 %v1395_v18, 0.0 }
 0x6b1   :  { %v1428_v36 = vmax.f32 %v1390_v63, 0.0 }
 0x6b2   :  { %1871 = vrot.lane.b32.xlu1 %v1429_v0, %s9536_s9 }
 0x6b3   :  { %1869 = vrot.lane.b32.xlu0 %v1428_v36, %s9536_s9 }
 0x6b7   :  { %v7152_v11 = vpop.f32.mrb[10].mxu0 }
 0x6b8   :  { %v1405_v24 = vadd.f32 %v7152_v11, %v6703_v40  ;;  %v1399_v34 = vpop.f32.mrb[11].mxu0 }
 0x6b9   :  { %v1400_v59 = vadd.f32 %v6703_v40, %v1399_v34 }
 0x6ba   :  { %v1431_v15 = vmax.f32 %v1405_v24, 0.0 }
 0x6bb   :  { %v1430_v47 = vmax.f32 %v1400_v59, 0.0 }
 0x6bc   :  { %1875 = vrot.lane.b32.xlu0 %v1431_v15, %s9536_s9 }
 0x6c0   :  { %1873 = vrot.lane.b32.xlu0 %v1430_v47, %s9536_s9 }
 0x6fb   :  { %v7155_v25 = vpop.f32.mrb[12].mxu0  ;;  %v1814_v23 = vpop.f32.mrb[8].mxu1 }
 0x6fc   :  { %v1415_v5 = vadd.f32 %v7155_v25, %v6703_v40  ;;  %v1409_v20 = vpop.f32.mrb[13].mxu0  ;;  %v1816_v14 = vpop.f32.mrb[9].mxu1  ;;  %v1815_v2 = vadd.f32 %v6712_v49, %v1814_v23  ;;  %v10687_v25 = vld [vmem:[#allocation3] sm:$0xff] }
 0x6fd   :  { %v1410_v37 = vadd.f32 %v6703_v40, %v1409_v20  ;;  %vm2320_vm10 = vcmp.ge.s32.totalorder %v10687_v25, 1 }
 0x6fe   :  { %v1433_v44 = vmax.f32 %v1415_v5, 0.0  ;;  %v1853_v15 = vmax.f32 %v1815_v2, 0.0 }
 0x6ff   :  { %v1432_v9 = vmax.f32 %v1410_v37, 0.0  ;;  %v1819_v48 = vpop.f32.mrb[10].mxu1 }
 0x700   :  { %v1820_v53 = vadd.f32 %v6712_v49, %v1819_v48  ;;  %1879 = vrot.lane.b32.xlu0 %v1433_v44, %s9536_s9  ;;  %v1821_v61 = vpop.f32.mrb[11].mxu1  ;;  %v10692_v44 = vld [vmem:[#allocation3 + $0x8] sm:$0xff] }
 0x701   :  { %1877 = vrot.lane.b32.xlu1 %v1432_v9, %s9536_s9  ;;  %v2324_v9 = vsel %vm2320_vm10, 1, %v9553_v1  ;;  %vm2321_vm4 = vcmp.ge.s32.totalorder %v10692_v44, 1  ;;  %v10698_v61 = vld [vmem:[#allocation3 + $0x10] sm:$0xff]  ;;  %vm2364_vm10 = vcmp.lt.s32.totalorder %v10687_v25, 6 }
 0x702   :  { %v1854_v56 = vmax.f32 %v1820_v53, 0.0  ;;  %vm2322_vm5 = vcmp.ge.s32.totalorder %v10698_v61, 1  ;;  %vm2366_vm13 = vcmp.lt.s32.totalorder %v10698_v61, 6 }
 0x703   :  { %v1824_v10 = vpop.f32.mrb[12].mxu1 }
 0x704   :  { %v1826_v62 = vpop.f32.mrb[13].mxu1  ;;  %1903 = vrot.lane.b32.xlu0 %v1854_v56, %s9557_s11  ;;  %v1825_v59 = vadd.f32 %v6712_v49, %v1824_v10  ;;  %v2325_v56 = vsel %vm2321_vm4, 1, %v9553_v1  ;;  %vm2365_vm4 = vcmp.lt.s32.totalorder %v10692_v44, 6 }
 0x706   :  { %v1855_v23 = vmax.f32 %v1825_v59, 0.0 }
 0x707   :  { %v1829_v46 = vpop.f32.mrb[14].mxu1 }
 0x708   :  { %v1830_v8 = vadd.f32 %v6712_v49, %v1829_v46  ;;  %v1831_v51 = vpop.f32.mrb[15].mxu1  ;;  %v10703_v46 = vld [vmem:[#allocation3 + $0x18] sm:$0xf] }
 0x709   :  { %vm2323_vm7 = vcmp.ge.s32.totalorder %v10703_v46, 1  ;;  %vm2367_vm1 = vcmp.lt.s32.totalorder %v10703_v46, 6 }
 0x70a   :  { %v1856_v60 = vmax.f32 %v1830_v8, 0.0  ;;  %v2326_v8 = vsel %vm2322_vm5, 1, %v9553_v1  ;;  %vm2069_vm5 = vcmask 490496  }
 0x70c   :  { %1907 = vrot.lane.b32.xlu0 %v1856_v60, %s9557_s11  ;;  %v2327_v60 = vsel %vm2323_vm7, 1, %v9553_v1  ;;  %vm12852_vm7 = vcmp.eq.s32.totalorder %v10414_v31, 1 }
 0x717   :  { %v7158_v21 = vpop.f32.mrb[14].mxu0  ;;  %v1834_v32 = vpop.f32.mrb[16].mxu1 }
 0x718   :  { %v1419_v4 = vpop.f32.mrb[15].mxu0  ;;  %v1836_v57 = vpop.f32.mrb[17].mxu1  ;;  %v1425_v24 = vadd.f32 %v7158_v21, %v6703_v40  ;;  %v1835_v14 = vadd.f32 %v6712_v49, %v1834_v32  ;;  %v2368_v21 = vsel %vm2364_vm10, 1, %v9553_v1  ;;  %v1977_v32 = vld [vmem:[#allocation7] sm:$0xff]  ;;  %vm12853_vm10 = vcmp.eq.s32.totalorder %v10463_v22, 1 }
 0x719   :  { %v1420_v18 = vadd.f32 %v6703_v40, %v1419_v4  ;;  %7175 = vmatprep.mubr.msk.f32.mxu0 %vm2069_vm5, %v1977_v32  ;;  %v2370_v4 = vsel %vm2366_vm13, 1, %v9553_v1  ;;  %v2371_v57 = vsel %vm2367_vm1, 1, %v9553_v1  ;;  %vm12845_vm13 = vcmp.eq.s32.totalorder %v10057_v6, 1 }
 0x71a   :  { %v1435_v20 = vmax.f32 %v1425_v24, 0.0  ;;  %v1857_v48 = vmax.f32 %v1835_v14, 0.0  ;;  %vm12851_vm1 = vcmp.eq.s32.totalorder %v10075_v17, 1 }
 0x71b   :  { %v1434_v63 = vmax.f32 %v1420_v18, 0.0  ;;  %v1839_v0 = vpop.f32.mrb[18].mxu1 }
 0x71c   :  { %v1840_v36 = vadd.f32 %v6712_v49, %v1839_v0  ;;  %v1841_v11 = vpop.f32.mrb[19].mxu1 }
 0x71d   :  { %1881 = vrot.lane.b32.xlu1 %v1434_v63, %s9536_s9 }
 0x71e   :  { %v1858_v34 = vmax.f32 %v1840_v36, 0.0 }
 0x71f   :  { %v1844_v47 = vpop.f32.mrb[20].mxu1 }
 0x720   :  { %v1846_v5 = vpop.f32.mrb[21].mxu1  ;;  %1911 = vrot.lane.b32.xlu0 %v1858_v34, %s9557_s11  ;;  %v1845_v53 = vadd.f32 %v6712_v49, %v1844_v47 }
 0x721   :  { %1901 = vrot.lane.b32.xlu1 %v1853_v15, %s9557_s11  ;;  %v10724_v5 = vld [vmem:[#allocation16] ss:$0 sm:$0xff] }
 0x722   :  { %v1859_v10 = vmax.f32 %v1845_v53, 0.0 }
 0x723   :  { %v1849_v37 = vpop.f32.mrb[22].mxu1 }
 0x724   :  { %v1851_v40 = vpop.f32.mrb[23].mxu1  ;;  %1883 = vrot.lane.b32.xlu0 %v1435_v20, %s9536_s9  ;;  %v1850_v62 = vadd.f32 %v6712_v49, %v1849_v37  ;;  %v2369_v49 = vsel %vm2365_vm4, 1, %v9553_v1  ;;  %v1872_v36 = vpop.permute.xlu1 %1871  ;;  %s12854_s9 = sld [smem:[#allocation72_spill]]  ;;  %vm12855_vm4 = vcmask 1042432  }
 0x725   :  { %1905 = vrot.lane.b32.xlu1 %v1855_v23, %s9557_s11  ;;  %v1870_v18 = vpop.permute.xlu0 %1869  ;;  %v1926_v24 = vsel %vm1274_vm0, %v10240_v50, %v1872_v36 }
 0x726   :  { %v1860_v51 = vmax.f32 %v1850_v62, 0.0  ;;  %v1925_v53 = vsel %vm1274_vm0, %v10242_v27, %v1870_v18 }
 0x728   :  { %2329 = vperm.xlu0 %8750, %v2324_v9  }
 0x729   :  { %1909 = vrot.lane.b32.xlu1 %v1857_v48, %s9557_s11 }
 0x72c   :  { %2332 = vperm.xlu0 %8750, %v2325_v56   ;;  %v10736_v56 = vld [vmem:[#allocation17] ss:$0 sm:$0xff] }
 0x72d   :  { %1913 = vrot.lane.b32.xlu1 %v1859_v10, %s9557_s11 }
 0x72e   :  { %v1876_v2 = vpop.permute.xlu0 %1875 }
 0x72f   :  { %v1928_v47 = vsel %vm1274_vm0, %v10248_v39, %v1876_v2 }
 0x730   :  { %2335 = vperm.xlu0 %8750, %v2326_v8  }
 0x731   :  { %1915 = vrot.lane.b32.xlu1 %v1860_v51, %s9557_s11 }
 0x732   :  { %v1874_v63 = vpop.permute.xlu0 %1873 }
 0x734   :  { %2338 = vperm.xlu0 %8750, %v2327_v60  }
 0x735   :  { %2373 = vperm.xlu1 %8751, %v2368_v21  }
 0x739   :  { %2376 = vperm.xlu1 %8751, %v2369_v49   ;;  %v1927_v49 = vsel %vm1274_vm0, %v10254_v41, %v1874_v63 }
 0x73d   :  { %2379 = vperm.xlu1 %8751, %v2370_v4  }
 0x741   :  { %2382 = vperm.xlu1 %8751, %v2371_v57  }
 0x772   :  { %v1880_v0 = vpop.permute.xlu0 %1879 }
 0x773   :  { %v1878_v34 = vpop.permute.xlu1 %1877  ;;  %v1930_v37 = vsel %vm1274_vm0, %v10272_v58, %v1880_v0 }
 0x774   :  { %v1929_v63 = vsel %vm1274_vm0, %v10274_v26, %v1878_v34 }
 0x776   :  { %v1904_v11 = vpop.permute.xlu0 %1903 }
 0x777   :  { %v1934_v15 = vsel %vm1283_vm6, %v1926_v24, %v1904_v11 }
 0x778   :  { %v1942_v20 = vsel %vm1298_vm15, %v1934_v15, %v10240_v50 }
 0x779   :  { %v1956_v40 = vmul.f32 %v10724_v5, %v1942_v20 }
 0x77b   :  { %v1970_v60 = vadd.f32 %v10736_v56, %v1956_v40 }
 0x77d   :  { %v1990_v0 = vrot.slane %v1970_v60, 1  ;;  %v2030_v15 = vrot.slane %v1970_v60, 2 }
 0x77e   :  { %v1908_v59 = vpop.permute.xlu0 %1907 }
 0x77f   :  { %v1936_v23 = vsel %vm1283_vm6, %v1928_v47, %v1908_v59 }
 0x780   :  { %v1944_v9 = vsel %vm1298_vm15, %v1936_v23, %v10248_v39 }
 0x781   :  { %v1958_v8 = vmul.f32 %v10724_v5, %v1944_v9 }
 0x783   :  { %v10752_v18 = vadd.f32 %v10736_v56, %v1958_v8 }
 0x78f   :  { %v1882_v14 = vpop.permute.xlu1 %1881 }
 0x792   :  { %v1912_v48 = vpop.permute.xlu0 %1911 }
 0x793   :  { %v1938_v10 = vsel %vm1283_vm6, %v1930_v37, %v1912_v48  ;;  %v1902_v50 = vpop.permute.xlu1 %1901  ;;  %v1994_v37 = vrot.slane %v10752_v18, 1 }
 0x794   :  { %v1933_v62 = vsel %vm1283_vm6, %v1925_v53, %v1902_v50  ;;  %v1946_v39 = vsel %vm1298_vm15, %v1938_v10, %v10272_v58  ;;  %v2034_v50 = vrot.slane %v10752_v18, 2 }
 0x795   :  { %v1941_v51 = vsel %vm1298_vm15, %v1933_v62, %v10242_v27  ;;  %v1960_v27 = vmul.f32 %v10724_v5, %v1946_v39  ;;  %v1931_v62 = vsel %vm1274_vm0, %v10295_v33, %v1882_v14 }
 0x796   :  { %v1955_v21 = vmul.f32 %v10724_v5, %v1941_v51  ;;  %v1884_v59 = vpop.permute.xlu0 %1883 }
 0x797   :  { %v1906_v32 = vpop.permute.xlu1 %1905  ;;  %v1932_v8 = vsel %vm1274_vm0, %v10293_v29, %v1884_v59  ;;  %vm12846_vm0 = vcmp.eq.s32.totalorder %v10065_v12, 1 }
 0x798   :  { %v1969_v4 = vadd.f32 %v10736_v56, %v1955_v21  ;;  %v1935_v57 = vsel %vm1283_vm6, %v1927_v49, %v1906_v32 }
 0x799   :  { %v1943_v2 = vsel %vm1298_vm15, %v1935_v57, %v10254_v41  ;;  %v10765_v41 = vadd.f32 %v10736_v56, %v1960_v27 }
 0x79a   :  { %v1989_v58 = vrot.slane %v1969_v4, 1  ;;  %v2029_v36 = vrot.slane %v1969_v4, 2  ;;  %v1957_v11 = vmul.f32 %v10724_v5, %v1943_v2 }
 0x79b   :  { %v1910_v24 = vpop.permute.xlu1 %1909  ;;  %v1998_v32 = vrot.slane %v10765_v41, 1 }
 0x79c   :  { %v1971_v47 = vadd.f32 %v10736_v56, %v1957_v11  ;;  %v1937_v20 = vsel %vm1283_vm6, %v1929_v63, %v1910_v24  ;;  %v1991_v23 = vsel %vm876_vm14, %v1989_v58, %v1990_v0  ;;  %v2031_v10 = vsel %vm12767_vm9, %v2029_v36, %v2030_v15 }
 0x79d   :  { %v1945_v40 = vsel %vm1298_vm15, %v1937_v20, %v10274_v26  ;;  %v2013_v34 = vsel %vm12845_vm13, %v1991_v23, -inf  ;;  %v2053_v27 = vsel %vm1630_vm8, %v2031_v10, -inf  ;;  %vm12848_vm8 = vcmp.eq.s32.totalorder %v10370_v43, 1 }
 0x79e   :  { %v1992_v9 = vrot.slane %v1971_v47, 1  ;;  %v2032_v48 = vrot.slane %v1971_v47, 2  ;;  %v1959_v53 = vmul.f32 %v10724_v5, %v1945_v40  ;;  %v2021_v39 = vmax.f32 %v1969_v4, %v2013_v34 }
 0x79f   :  { %v1914_v51 = vpop.permute.xlu1 %1913  ;;  %v2038_v40 = vrot.slane %v10765_v41, 2  ;;  %vm12856_vm13 = vcmp.eq.s32.totalorder %v10114_v45, 1 }
 0x7a0   :  { %v1973_v26 = vadd.f32 %v10736_v56, %v1959_v53  ;;  %v1939_v6 = vsel %vm1283_vm6, %v1931_v62, %v1914_v51  ;;  %v1993_v21 = vsel %vm876_vm14, %v1990_v0, %v1992_v9  ;;  %v2033_v49 = vsel %vm12767_vm9, %v2030_v15, %v2032_v48 }
 0x7a1   :  { %v1947_v57 = vsel %vm1298_vm15, %v1939_v6, %v10295_v33  ;;  %v2014_v14 = vsel %vm943_vm2, %v1993_v21, -inf  ;;  %v2054_v0 = vsel %vm1631_vm3, %v2033_v49, -inf  ;;  %v2061_v63 = vmax.f32 %v2021_v39, %v2053_v27 }
 0x7a2   :  { %v1996_v4 = vrot.slane %v1973_v26, 1  ;;  %v2036_v2 = vrot.slane %v1973_v26, 2  ;;  %v1961_v58 = vmul.f32 %v10724_v5, %v1947_v57  ;;  %v2022_v36 = vmax.f32 %v1970_v60, %v2014_v14 }
 0x7a3   :  { %v1916_v11 = vpop.permute.xlu1 %1915  ;;  %v1995_v24 = vsel %vm876_vm14, %v1992_v9, %v1994_v37  ;;  %v2035_v33 = vsel %vm12767_vm9, %v2032_v48, %v2034_v50  ;;  %vm12847_vm2 = vcmp.eq.s32.totalorder %v10067_v13, 1  ;;  %vm12849_vm3 = vcmp.eq.s32.totalorder %v10386_v28, 1 }
 0x7a4   :  { %v1975_v7 = vadd.f32 %v10736_v56, %v1961_v58  ;;  %v1940_v15 = vsel %vm1283_vm6, %v1932_v8, %v1916_v11  ;;  %v2062_v55 = vmax.f32 %v2022_v36, %v2054_v0  ;;  %v1997_v59 = vsel %vm876_vm14, %v1994_v37, %v1996_v4  ;;  %v2172_v36 = vld [vmem:[%s12854_s9 + $0x8] sm:$0xff]  ;;  %v2174_v11 = vld [vmem:[%s12854_s9 + $0x18] sm:$0xff] }
 0x7a5   :  { %v1948_v20 = vsel %vm1298_vm15, %v1940_v15, %v10293_v29  ;;  %v2015_v60 = vsel %vm12846_vm0, %v1995_v24, -inf  ;;  %v2016_v52 = vsel %vm12847_vm2, %v1997_v59, -inf  ;;  %v2037_v23 = vsel %vm12767_vm9, %v2034_v50, %v2036_v2  ;;  %v2178_v15 = vld [vmem:[%s12854_s9 + $0x38] sm:$0xff] }
 0x7a6   :  { %v2000_v34 = vrot.slane %v1975_v7, 1  ;;  %v1962_v9 = vmul.f32 %v10724_v5, %v1948_v20  ;;  %v7345_v48 = vpack.c.bf16 %v2062_v55, %v2061_v63  ;;  %v2040_v53 = vrot.slane %v1975_v7, 2  ;;  %v1978_v55 = vld [vmem:[#allocation7 + $0x8] sm:$0xff]  ;;  %v1979_v20 = vld [vmem:[#allocation7 + $0x10] sm:$0xff] }
 0x7a7   :  { %v2023_v10 = vmax.f32 %v1971_v47, %v2015_v60  ;;  %v2024_v37 = vmax.f32 %v10752_v18, %v2016_v52  ;;  %v2055_v29 = vsel %vm12848_vm8, %v2035_v33, -inf  ;;  %v2056_v13 = vsel %vm12849_vm3, %v2037_v23, -inf  ;;  %v2173_v33 = vld [vmem:[%s12854_s9 + $0x10] sm:$0xff]  ;;  %v2175_v52 = vld [vmem:[%s12854_s9 + $0x20] sm:$0xff] }
 0x7a8   :  { %v1976_v12 = vadd.f32 %v10736_v56, %v1962_v9  ;;  %7346 = vmatprep.subr.bf16.mxu0 %v7345_v48  ;;  %v1999_v50 = vsel %vm876_vm14, %v1996_v4, %v1998_v32  ;;  %v2001_v62 = vsel %vm876_vm14, %v1998_v32, %v2000_v34  ;;  %vm12850_vm15 = vcmp.eq.s32.totalorder %v10073_v16, 1  ;;  %v2177_v23 = vld [vmem:[%s12854_s9 + $0x30] sm:$0xff]  ;;  %v1980_v9 = vld [vmem:[#allocation7 + $0x18] sm:$0xf] }
 0x7a9   :  { %7348 = vmatpush3.bf16.msra.mxu0 %v7345_v48  ;;  %v2063_v5 = vmax.f32 %v2023_v10, %v2055_v29  ;;  %v2064_v8 = vmax.f32 %v2024_v37, %v2056_v13  ;;  %v2017_v47 = vsel %vm12850_vm15, %v1999_v50, -inf  ;;  %v2018_v43 = vsel %vm12851_vm1, %v2001_v62, -inf  ;;  %v2179_v10 = vld [vmem:[%s12854_s9 + $0x40] sm:$0xff]  ;;  %v2181_v37 = vld [vmem:[%s12854_s9 + $0x50] sm:$0xff]  ;;  %v2184_v29 = vld [vmem:[%s12854_s9 + $0x68] sm:$0xff] }
 0x7aa   :  { %v2002_v18 = vrot.slane %v1976_v12, 1  ;;  %v2042_v51 = vrot.slane %v1976_v12, 2  ;;  %v2025_v56 = vmax.f32 %v1973_v26, %v2017_v47  ;;  %v2026_v39 = vmax.f32 %v10765_v41, %v2018_v43  ;;  %v2183_v62 = vld [vmem:[%s12854_s9 + $0x60] sm:$0xff]  ;;  %v2190_v47 = vld [vmem:[%s12854_s9 + $0x98] sm:$0xff] }
 0x7ab   :  { %v7349_v28 = vpack.c.bf16 %v2064_v8, %v2063_v5  ;;  %v2039_v6 = vsel %vm12767_vm9, %v2036_v2, %v2038_v40  ;;  %v2041_v21 = vsel %vm12767_vm9, %v2038_v40, %v2040_v53  ;;  %vm12857_vm0 = vcmp.eq.s32.totalorder %v10173_v54, 1  ;;  %v2180_v40 = vld [vmem:[%s12854_s9 + $0x48] sm:$0xff]  ;;  %v2185_v5 = vld [vmem:[%s12854_s9 + $0x70] sm:$0xff] }
 0x7ac   :  { %v2057_v49 = vsel %vm12852_vm7, %v2039_v6, -inf  ;;  %v2058_v16 = vsel %vm12853_vm10, %v2041_v21, -inf  ;;  %v2003_v32 = vsel %vm876_vm14, %v2000_v34, %v2002_v18  ;;  %v2012_v41 = vsel %vm12855_vm4, %v2002_v18, -inf  ;;  %v2182_v34 = vld [vmem:[%s12854_s9 + $0x58] sm:$0xff]  ;;  %v2188_v8 = vld [vmem:[%s12854_s9 + $0x88] sm:$0xff] }
 0x7ad   :  { %7350 = vmatprep.subr.bf16.mxu0 %v7349_v28  ;;  %v2065_v17 = vmax.f32 %v2025_v56, %v2057_v49  ;;  %v2066_v26 = vmax.f32 %v2026_v39, %v2058_v16  ;;  %v2019_v57 = vsel %vm12856_vm13, %v2003_v32, -inf  ;;  %v2020_v31 = vsel %vm12857_vm0, %v2012_v41, -inf  ;;  %v2189_v56 = vld [vmem:[%s12854_s9 + $0x90] sm:$0xff]  ;;  %v2192_v39 = vld [vmem:[%s12854_s9 + $0xa8] sm:$0xff]  ;;  %v2191_v49 = vld [vmem:[%s12854_s9 + $0xa0] sm:$0xff] }
 0x7ae   :  { %7352 = vmatpush3.bf16.msra.mxu0 %v7349_v28  ;;  %v2027_v14 = vmax.f32 %v1975_v7, %v2019_v57  ;;  %v2043_v22 = vsel %vm12767_vm9, %v2040_v53, %v2042_v51  ;;  %vm12858_vm2 = vcmask 1041408   ;;  %v2028_v2 = vmax.f32 %v1976_v12, %v2020_v31  ;;  %v2176_v7 = vld [vmem:[%s12854_s9 + $0x28] sm:$0xff]  ;;  %v2186_v12 = vld [vmem:[%s12854_s9 + $0x78] sm:$0xff]  ;;  %v2193_v16 = vld [vmem:[%s12854_s9 + $0xb0] sm:$0xff] }
 0x7af   :  { %v2052_v27 = vsel %vm12858_vm2, %v2042_v51, -inf  ;;  %v7353_v4 = vpack.c.bf16 %v2066_v26, %v2065_v17  ;;  %v2059_v58 = vsel %vm1636_vm11, %v2043_v22, -inf  ;;  %vm12766_vm8 = vcmask 1043456   ;;  %v2187_v51 = vld [vmem:[%s12854_s9 + $0x80] sm:$0xff]  ;;  %v2194_v28 = vld [vmem:[%s12854_s9 + $0xb8] sm:$0xff]  ;;  %v2196_v32 = vld [vmem:[%s12854_s9 + $0xc8] sm:$0xff] }
 0x7b0   :  { %vm12859_vm3 = vcmp.eq.s32.totalorder %v10467_v35, 1  ;;  %v2067_v54 = vmax.f32 %v2027_v14, %v2059_v58  ;;  %vm12860_vm15 = vmmov 1   ;;  %v7363_v24 = vpack.c.bf16 %v2174_v11, %v2172_v36  ;;  %v2171_v35 = vld [vmem:[%s12854_s9] sm:$0xff]  ;;  %v2198_v17 = vld [vmem:[%s12854_s9 + $0xd8] sm:$0xff]  ;;  %v2197_v31 = vld [vmem:[%s12854_s9 + $0xd0] sm:$0xff] }
 0x7b1   :  { %v2060_v45 = vsel %vm12859_vm3, %v2052_v27, -inf  ;;  %7354 = vmatprep.subr.bf16.mxu0 %v7353_v4  ;;  %vm10841_vm1 = vmpackc.low %vm12766_vm8, %vm12860_vm15  ;;  %v7365_v59 = vpack.c.bf16 %v2173_v33, %v2171_v35  ;;  %v7367_v60 = vpack.c.bf16 %v2178_v15, %v2176_v7  ;;  %v7369_v48 = vpack.c.bf16 %v2177_v23, %v2175_v52  ;;  %v2195_v57 = vld [vmem:[%s12854_s9 + $0xc0] sm:$0xff]  ;;  %v2200_v14 = vld [vmem:[%s12854_s9 + $0xe8] sm:$0xff] }
 0x7b2   :  { %v2068_v0 = vmax.f32 %v2028_v2, %v2060_v45  ;;  %7356 = vmatpush3.bf16.msra.mxu0 %v7353_v4  ;;  %v7371_v53 = vpack.c.bf16 %v2182_v34, %v2180_v40  ;;  %v7373_v13 = vpack.c.bf16 %v2181_v37, %v2179_v10  ;;  %v7375_v50 = vpack.c.bf16 %v2186_v12, %v2184_v29  ;;  %v2202_v22 = vld [vmem:[%s12854_s9 + $0xf8] sm:$0xff]  ;;  %v2199_v2 = vld [vmem:[%s12854_s9 + $0xe0] sm:$0xff]  ;;  %v2201_v58 = vld [vmem:[%s12854_s9 + $0xf0] sm:$0xff] }
 0x7b3   :  { %v7377_v43 = vpack.c.bf16 %v2185_v5, %v2183_v62  ;;  %v7379_v18 = vpack.c.bf16 %v2190_v47, %v2188_v8  ;;  %v7381_v6 = vpack.c.bf16 %v2189_v56, %v2187_v51  ;;  %v7383_v21 = vpack.c.bf16 %v2194_v28, %v2192_v39  ;;  %v2204_v45 = vld [vmem:[%s12854_s9 + $0x108] sm:$0xff]  ;;  %v2210_v35 = vld [vmem:[%s12854_s9 + $0x138] sm:$0xff]  ;;  %v2207_v15 = vld [vmem:[%s12854_s9 + $0x120] sm:$0xff] }
 0x7b4   :  { %v7357_v30 = vpack.c.bf16 %v2068_v0, %v2067_v54  ;;  %v7385_v26 = vpack.c.bf16 %v2193_v16, %v2191_v49  ;;  %v7387_v41 = vpack.c.bf16 %v2198_v17, %v2196_v32  ;;  %v7389_v27 = vpack.c.bf16 %v2197_v31, %v2195_v57  ;;  %v2206_v54 = vld [vmem:[%s12854_s9 + $0x118] sm:$0xff]  ;;  %v2203_v0 = vld [vmem:[%s12854_s9 + $0x100] sm:$0xff]  ;;  %v2213_v40 = vld [vmem:[%s12854_s9 + $0x150] sm:$0xff] }
 0x7b5   :  { %v7391_v4 = vpack.c.bf16 %v2202_v22, %v2200_v14  ;;  %v7393_v36 = vpack.c.bf16 %v2201_v58, %v2199_v2  ;;  %v7395_v11 = vpack.c.bf16 %v2206_v54, %v2204_v45  ;;  %v2211_v23 = vld [vmem:[%s12854_s9 + $0x140] sm:$0xff]  ;;  %v2216_v34 = vld [vmem:[%s12854_s9 + $0x168] sm:$0xff]  ;;  %v2217_v37 = vld [vmem:[%s12854_s9 + $0x170] sm:$0xff]  ;;  %v10914_v22 = vpop.permute.xlu0 %2329  ;;  %vm12863_vm10 = vcmask 1040384  }
 0x7b6   :  { %7359 = vmatprep.subr.msk.bf16.mxu0 %vm10841_vm1, %v7357_v30  ;;  %v2215_v10 = vld [vmem:[%s12854_s9 + $0x160] sm:$0xff]  ;;  %v2220_v29 = vld [vmem:[%s12854_s9 + $0x188] sm:$0xff]  ;;  %v2222_v12 = vld [vmem:[%s12854_s9 + $0x198] sm:$0xff]  ;;  %vm2340_vm11 = vcmp.eq.s32.totalorder %v10914_v22, 1  ;;  %vm12871_vm8 = vcmask 1042432   ;;  %vm2684_vm9 = vcmp.ge.s32.totalorder %v10692_v44, 2 }
 0x7b7   :  { %7362 = vmatpush3.bf16.msk.msra.mxu0 %vm10841_vm1, %v7357_v30  ;;  %v2205_v30 = vld [vmem:[%s12854_s9 + $0x110] sm:$0xff]  ;;  %v2219_v62 = vld [vmem:[%s12854_s9 + $0x180] sm:$0xff]  ;;  %v2224_v8 = vld [vmem:[%s12854_s9 + $0x1a8] sm:$0xff] }
 0x7b8   :  { %7364 = vmatprep.subr.bf16.mxu0 %v7363_v24  ;;  %v2208_v24 = vld [vmem:[%s12854_s9 + $0x128] sm:$0xff]  ;;  %v7397_v33 = vpack.c.bf16 %v2205_v30, %v2203_v0  ;;  %v2221_v5 = vld [vmem:[%s12854_s9 + $0x190] sm:$0xff]  ;;  %v2226_v47 = vld [vmem:[%s12854_s9 + $0x1b8] sm:$0xff] }
 0x7b9   :  { %v7399_v7 = vpack.c.bf16 %v2210_v35, %v2208_v24  ;;  %v2223_v51 = vld [vmem:[%s12854_s9 + $0x1a0] sm:$0xff]  ;;  %v2225_v56 = vld [vmem:[%s12854_s9 + $0x1b0] sm:$0xff]  ;;  %v2228_v28 = vld [vmem:[%s12854_s9 + $0x1c8] sm:$0xff] }
 0x7ba   :  { %7176 = vmatmul.mubr.msk.f32.vlgmr.msra.gmra.mrb[16].mxu0 %vm2069_vm5, %v1978_v55  ;;  %v2209_v55 = vld [vmem:[%s12854_s9 + $0x130] sm:$0xff]  ;;  %v7417_v39 = vpack.c.bf16 %v2225_v56, %v2223_v51  ;;  %v2232_v17 = vld [vmem:[%s12854_s9 + $0x1e8] sm:$0xff]  ;;  %vm12864_vm4 = vmmov %vm12863_vm10 }
 0x7bb   :  { %7178 = vmatprep.mubr.msk.f32.mxu0 %vm2069_vm5, %v1979_v20  ;;  %7366 = vmatpush1.bf16.msra.mxu0 %v7365_v59  ;;  %v2212_v59 = vld [vmem:[%s12854_s9 + $0x148] sm:$0xff]  ;;  %v2214_v20 = vld [vmem:[%s12854_s9 + $0x158] sm:$0xff]  ;;  %v2229_v16 = vld [vmem:[%s12854_s9 + $0x1d0] sm:$0xff] }
 0x7bc   :  { %7368 = vmatprep.subr.bf16.mxu0 %v7367_v60  ;;  %v7401_v60 = vpack.c.bf16 %v2209_v55, %v2207_v15  ;;  %v7403_v52 = vpack.c.bf16 %v2214_v20, %v2212_v59  ;;  %v2233_v31 = vld [vmem:[%s12854_s9 + $0x1f0] sm:$0xff]  ;;  %vm12865_vm3 = vmmov %vm12864_vm4 }
 0x7bd   :  { %vm12866_vm15 = vmmov %vm12865_vm3  ;;  %v2295_v44 = vld [vmem:[%s12869_s13 + $0x110] sm:$0xff] }
 0x7be   :  { %7179 = vmatmul.mubr.msk.f32.gmra.mrb[18].mxu0 %vm2069_vm5, %v1980_v9  ;;  %v2218_v9 = vld [vmem:[%s12854_s9 + $0x178] sm:$0xff] }
 0x7bf   :  { %7370 = vmatpush1.bf16.msra.mxu0 %v7369_v48  ;;  %v7405_v48 = vpack.c.bf16 %v2213_v40, %v2211_v23 }
 0x7c0   :  { %7372 = vmatprep.subr.bf16.mxu0 %v7371_v53  ;;  %v7407_v53 = vpack.c.bf16 %v2218_v9, %v2216_v34 }
 0x7c3   :  { %7374 = vmatpush1.bf16.msra.mxu0 %v7373_v13  ;;  %v7409_v13 = vpack.c.bf16 %v2217_v37, %v2215_v10 }
 0x7c4   :  { %7376 = vmatprep.subr.bf16.mxu0 %v7375_v50  ;;  %v7411_v50 = vpack.c.bf16 %v2222_v12, %v2220_v29 }
 0x7c7   :  { %7378 = vmatpush1.bf16.msra.mxu0 %v7377_v43  ;;  %v7413_v43 = vpack.c.bf16 %v2221_v5, %v2219_v62 }
 0x7c8   :  { %7380 = vmatprep.subr.bf16.mxu0 %v7379_v18  ;;  %v7415_v18 = vpack.c.bf16 %v2226_v47, %v2224_v8 }
 0x7cb   :  { %7382 = vmatpush1.bf16.msra.mxu0 %v7381_v6  ;;  %v2230_v6 = vld [vmem:[%s12854_s9 + $0x1d8] sm:$0xff] }
 0x7cc   :  { %7384 = vmatprep.subr.bf16.mxu0 %v7383_v21  ;;  %v2227_v21 = vld [vmem:[%s12854_s9 + $0x1c0] sm:$0xff]  ;;  %v7419_v49 = vpack.c.bf16 %v2230_v6, %v2228_v28 }
 0x7cd   :  { %v7421_v32 = vpack.c.bf16 %v2229_v16, %v2227_v21  ;;  %v2236_v21 = vld [vmem:[%s12868_s23] sm:$0xff]  ;;  %v2238_v16 = vld [vmem:[%s12868_s23 + $0x10] sm:$0xff] }
 0x7cf   :  { %7386 = vmatpush1.bf16.msra.mxu0 %v7385_v26  ;;  %v2234_v26 = vld [vmem:[%s12854_s9 + $0x1f8] sm:$0xff] }
 0x7d0   :  { %7388 = vmatprep.subr.bf16.mxu0 %v7387_v41  ;;  %v2231_v41 = vld [vmem:[%s12854_s9 + $0x1e0] sm:$0xff]  ;;  %v7423_v57 = vpack.c.bf16 %v2234_v26, %v2232_v17  ;;  %v2239_v17 = vld [vmem:[%s12868_s23 + $0x18] sm:$0xff] }
 0x7d1   :  { %v7425_v14 = vpack.c.bf16 %v2233_v31, %v2231_v41  ;;  %v7431_v26 = vpack.c.bf16 %v2239_v17, %v2238_v16  ;;  %v2240_v41 = vld [vmem:[%s12868_s23 + $0x20] sm:$0xff] }
 0x7d3   :  { %7390 = vmatpush1.bf16.msra.mxu0 %v7389_v27  ;;  %v10916_v27 = vpop.permute.xlu1 %2373 }
 0x7d4   :  { %7392 = vmatprep.subr.bf16.mxu0 %v7391_v4  ;;  %v10918_v4 = vpop.permute.xlu0 %2332  ;;  %vm2384_vm13 = vcmp.eq.s32.totalorder %v10916_v27, 1 }
 0x7d5   :  { %vm2341_vm5 = vcmp.eq.s32.totalorder %v10918_v4, 1  ;;  %v2283_v4 = vld [vmem:[%s12869_s13 + $0xb0] sm:$0xff] }
 0x7d7   :  { %7394 = vmatpush1.bf16.msra.mxu0 %v7393_v36  ;;  %v10920_v2 = vpop.permute.xlu1 %2376 }
 0x7d8   :  { %7396 = vmatprep.subr.bf16.mxu0 %v7395_v11  ;;  %v10922_v58 = vpop.permute.xlu0 %2335  ;;  %vm2385_vm2 = vcmp.eq.s32.totalorder %v10920_v2, 1 }
 0x7d9   :  { %vm2342_vm7 = vcmp.eq.s32.totalorder %v10922_v58, 1  ;;  %v2285_v58 = vld [vmem:[%s12869_s13 + $0xc0] sm:$0xff] }
 0x7db   :  { %7398 = vmatpush1.bf16.msra.mxu0 %v7397_v33  ;;  %v10924_v0 = vpop.permute.xlu1 %2379 }
 0x7dc   :  { %7400 = vmatprep.subr.bf16.mxu0 %v7399_v7  ;;  %v10929_v35 = vpop.permute.xlu0 %2338 }
 0x7dd   :  { %vm2343_vm0 = vcmp.eq.s32.totalorder %v10929_v35, 1  ;;  %v2287_v35 = vld [vmem:[%s12869_s13 + $0xd0] sm:$0xff] }
 0x7df   :  { %7402 = vmatpush1.bf16.msra.mxu0 %v7401_v60  ;;  %v10943_v10 = vpop.permute.xlu1 %2382 }
 0x7e0   :  { %7404 = vmatprep.subr.bf16.mxu0 %v7403_v52 }
 0x7e3   :  { %7406 = vmatpush1.bf16.msra.mxu0 %v7405_v48 }
 0x7e4   :  { %7408 = vmatprep.subr.bf16.mxu0 %v7407_v53 }
 0x7e7   :  { %7410 = vmatpush1.bf16.msra.mxu0 %v7409_v13 }
 0x7e8   :  { %7412 = vmatprep.subr.bf16.mxu0 %v7411_v50 }
 0x7eb   :  { %7414 = vmatpush1.bf16.msra.mxu0 %v7413_v43 }
 0x7ec   :  { %7416 = vmatprep.subr.bf16.mxu0 %v7415_v18 }
 0x7ef   :  { %7418 = vmatpush1.bf16.msra.mxu0 %v7417_v39 }
 0x7f0   :  { %7420 = vmatprep.subr.bf16.mxu0 %v7419_v49  ;;  %v2237_v49 = vld [vmem:[%s12868_s23 + $0x8] sm:$0xff] }
 0x7f3   :  { %7422 = vmatpush1.bf16.msra.mxu0 %v7421_v32  ;;  %v7428_v32 = vpack.c.bf16 %v2237_v49, %v2236_v21 }
 0x7f4   :  { %7424 = vmatprep.subr.bf16.mxu0 %v7423_v57  ;;  %v2241_v57 = vld [vmem:[%s12868_s23 + $0x28] sm:$0xff] }
 0x7f5   :  { %7429 = vmatpush1.bf16.msra.mxu1 %v7428_v32  ;;  %v7434_v31 = vpack.c.bf16 %v2241_v57, %v2240_v41 }
 0x7f6   :  { %7430 = vmatprep.subr.bf16.mxu1 %v9559_v19 }
 0x7f7   :  { %7426 = vmatpush1.bf16.msra.mxu0 %v7425_v14  ;;  %v2242_v14 = vld [vmem:[%s12868_s23 + $0x30] sm:$0xff] }
 0x7f9   :  { %7432 = vmatpush1.bf16.msra.mxu1 %v7431_v26 }
 0x7fa   :  { %7433 = vmatprep.subr.bf16.mxu1 %v9559_v19 }
 0x7fd   :  { %7435 = vmatpush1.bf16.msra.mxu1 %v7434_v31 }
 0x7fe   :  { %7436 = vmatprep.subr.bf16.mxu1 %v9559_v19 }
 0x88d   :  { %v7177_v45 = vpop.f32.mrb[16].mxu0 }
 0x88e   :  { %v2309_v54 = vrot.slane %v7177_v45, 7  ;;  %v2353_v36 = vrot.slane %v7177_v45, 1  ;;  %v2152_v11 = vpop.f32.mrb[17].mxu0 }
 0x88f   :  { %v2308_v30 = vrot.slane %v2152_v11, 7  ;;  %v2352_v24 = vrot.slane %v2152_v11, 1 }
 0x891   :  { %v2319_v33 = vsel %vm12863_vm10, -inf, %v2308_v30  ;;  %v7180_v7 = vpop.f32.mrb[18].mxu0  ;;  %v2354_v15 = vsel %vm876_vm14, %v2352_v24, %v2353_v36  ;;  %v2310_v55 = vsel %vm12864_vm4, %v2308_v30, %v2309_v54  ;;  %vm12867_vm10 = vcmask 1042432   ;;  %v2246_v24 = vld [vmem:[%s12868_s23 + $0x50] sm:$0xff] }
 0x892   :  { %v2344_v59 = vsel %vm2340_vm11, %v2319_v33, -inf  ;;  %v2313_v20 = vrot.slane %v7180_v7, 7  ;;  %v2357_v60 = vrot.slane %v7180_v7, 1  ;;  %v2162_v52 = vpop.f32.mrb[19].mxu0  ;;  %v2345_v9 = vsel %vm2341_vm5, %v2310_v55, -inf  ;;  %v2247_v33 = vld [vmem:[%s12868_s23 + $0x58] sm:$0xff] }
 0x893   :  { %v2348_v23 = vmax.f32 %v2344_v59, %v2152_v11  ;;  %v2311_v40 = vrot.slane %v2162_v52, 7  ;;  %v2355_v34 = vrot.slane %v2162_v52, 1  ;;  %v2388_v48 = vsel %vm2384_vm13, %v2354_v15, -inf  ;;  %v2248_v15 = vld [vmem:[%s12868_s23 + $0x60] sm:$0xff]  ;;  %v2249_v55 = vld [vmem:[%s12868_s23 + $0x68] sm:$0xff] }
 0x894   :  { %v2349_v53 = vmax.f32 %v2345_v9, %v7177_v45  ;;  %v2363_v8 = vsel %vm12867_vm10, %v2357_v60, -inf  ;;  %vm2386_vm4 = vcmp.eq.s32.totalorder %v10924_v0, 1  ;;  %v7446_v59 = vpack.c.bf16 %v2249_v55, %v2248_v15  ;;  %v2254_v9 = vld [vmem:[%s12868_s23 + $0x90] sm:$0xff]  ;;  %vm12870_vm10 = vmmov %vm12866_vm15 }
 0x895   :  { %v2312_v37 = vsel %vm12865_vm3, %v2309_v54, %v2311_v40  ;;  %v2392_v29 = vmax.f32 %v2348_v23, %v2388_v48  ;;  %v2356_v12 = vsel %vm876_vm14, %v2353_v36, %v2355_v34  ;;  %v2358_v13 = vsel %vm876_vm14, %v2355_v34, %v2357_v60  ;;  %v2244_v36 = vld [vmem:[%s12868_s23 + $0x40] sm:$0xff]  ;;  %v2251_v60 = vld [vmem:[%s12868_s23 + $0x78] sm:$0xff] }
 0x896   :  { %v2346_v50 = vsel %vm2342_vm7, %v2312_v37, -inf  ;;  %v2389_v62 = vsel %vm2385_vm2, %v2356_v12, -inf  ;;  %v2314_v5 = vsel %vm12866_vm15, %v2311_v40, %v2313_v20  ;;  %vm2387_vm3 = vcmp.eq.s32.totalorder %v10943_v10, 1  ;;  %v2250_v20 = vld [vmem:[%s12868_s23 + $0x70] sm:$0xff]  ;;  %v2252_v23 = vld [vmem:[%s12868_s23 + $0x80] sm:$0xff]  ;;  %v2253_v40 = vld [vmem:[%s12868_s23 + $0x88] sm:$0xff] }
 0x897   :  { %v2350_v47 = vmax.f32 %v2346_v50, %v2162_v52  ;;  %2471 = vmatprep.mubr.f32.mxu0 %v2392_v29  ;;  %v2393_v43 = vmax.f32 %v2349_v53, %v2389_v62  ;;  %v2347_v18 = vsel %vm2343_vm0, %v2314_v5, -inf  ;;  %v2390_v51 = vsel %vm2386_vm4, %v2358_v13, -inf  ;;  %v2255_v48 = vld [vmem:[%s12868_s23 + $0x98] sm:$0xff]  ;;  %v2256_v13 = vld [vmem:[%s12868_s23 + $0xa0] sm:$0xff]  ;;  %v2257_v50 = vld [vmem:[%s12868_s23 + $0xa8] sm:$0xff] }
 0x898   :  { %2472 = vmatmul.mubr.f32.vlgmr.msra.gmra.mrb[20].mxu0 %v2152_v11  ;;  %v2351_v56 = vmax.f32 %v2347_v18, %v7180_v7  ;;  %v2391_v28 = vsel %vm2387_vm3, %v2363_v8, -inf  ;;  %v2245_v11 = vld [vmem:[%s12868_s23 + $0x48] sm:$0xff]  ;;  %v7452_v34 = vpack.c.bf16 %v2253_v40, %v2252_v23  ;;  %v7455_v53 = vpack.c.bf16 %v2255_v48, %v2254_v9  ;;  %v2235_v12 = vld [vmem:[#allocation19] sm:$0x3]  ;;  %v2258_v62 = vld [vmem:[%s12868_s23 + $0xb0] sm:$0xff] }
 0x899   :  { %2477 = vmatprep.mubr.f32.mxu0 %v2393_v43  ;;  %v2394_v39 = vmax.f32 %v2350_v47, %v2390_v51  ;;  %v7440_v30 = vpack.c.bf16 %v2245_v11, %v2244_v36  ;;  %v10993_v37 = vshrl.u32 %v549_v38, 7  ;;  %v7458_v8 = vpack.c.bf16 %v2257_v50, %v2256_v13  ;;  %v2259_v47 = vld [vmem:[%s12868_s23 + $0xb8] sm:$0xff] }
 0x89a   :  { %v2395_v6 = vmax.f32 %v2351_v56, %v2391_v28  ;;  %v7461_v43 = vpack.c.bf16 %v2259_v47, %v2258_v62  ;;  %v2277_v28 = vld [vmem:[%s12869_s13 + $0x80] sm:$0xff] }
 0x89b   :  { %v10996_v29 = vsub.s32 0, %v10993_v37  ;;  %v11010_v17 = vsub.s32 1, %v10993_v37  ;;  %v2293_v47 = vld [vmem:[%s12869_s13 + $0x100] sm:$0xff] }
 0x89c   :  { %2478 = vmatmul.mubr.f32.gmra.mrb[22].mxu0 %v7177_v45  ;;  %v2243_v45 = vld [vmem:[%s12868_s23 + $0x38] sm:$0xff] }
 0x89d   :  { %2483 = vmatprep.mubr.f32.mxu0 %v2394_v39  ;;  %v7437_v54 = vpack.c.bf16 %v2243_v45, %v2242_v14  ;;  %v2400_v5 = vrot.slane %v2235_v12, %v10996_v29 }
 0x89f   :  { %7438 = vmatpush1.bf16.msra.mxu1 %v7437_v54  ;;  %v2404_v54 = vrot.slane %v2235_v12, %v11010_v17 }
 0x8a0   :  { %2484 = vmatmul.mubr.f32.gmra.mrb[24].mxu0 %v2162_v52  ;;  %7439 = vmatprep.subr.bf16.mxu1 %v9559_v19  ;;  %v7449_v52 = vpack.c.bf16 %v2251_v60, %v2250_v20 }
 0x8a1   :  { %2489 = vmatprep.mubr.f32.mxu0 %v2395_v6  ;;  %v2278_v6 = vld [vmem:[%s12869_s13 + $0x88] sm:$0xff] }
 0x8a2   :  { %v7463_v32 = vpack.c.bf16 %v2278_v6, %v2277_v28 }
 0x8a3   :  { %7441 = vmatpush1.bf16.msra.mxu1 %v7440_v30 }
 0x8a4   :  { %2490 = vmatmul.mubr.f32.gmra.mrb[26].mxu0 %v7180_v7  ;;  %v7443_v7 = vpack.c.bf16 %v2247_v33, %v2246_v24  ;;  %7442 = vmatprep.subr.bf16.mxu1 %v9559_v19 }
 0x8a7   :  { %7444 = vmatpush1.bf16.msra.mxu1 %v7443_v7 }
 0x8a8   :  { %7445 = vmatprep.subr.bf16.mxu1 %v9559_v19 }
 0x8ab   :  { %7447 = vmatpush1.bf16.msra.mxu1 %v7446_v59 }
 0x8ac   :  { %7448 = vmatprep.subr.bf16.mxu1 %v9559_v19 }
 0x8af   :  { %7450 = vmatpush1.bf16.msra.mxu1 %v7449_v52 }
 0x8b0   :  { %7451 = vmatprep.subr.bf16.mxu1 %v9559_v19 }
 0x8b3   :  { %7453 = vmatpush1.bf16.msra.mxu1 %v7452_v34 }
 0x8b4   :  { %7454 = vmatprep.subr.bf16.mxu1 %v9559_v19 }
 0x8b7   :  { %7456 = vmatpush1.bf16.msra.mxu1 %v7455_v53 }
 0x8b8   :  { %7457 = vmatprep.subr.bf16.mxu1 %v9559_v19 }
 0x8bb   :  { %7459 = vmatpush1.bf16.msra.mxu1 %v7458_v8 }
 0x8bc   :  { %7460 = vmatprep.subr.bf16.mxu1 %v9559_v19 }
 0x8bf   :  { %7462 = vmatpush1.bf16.msra.mxu1 %v7461_v43  ;;  %v2294_v43 = vld [vmem:[%s12869_s13 + $0x108] sm:$0xff] }
 0x8c0   :  { %7464 = vmatprep.subr.bf16.mxu1 %v7463_v32 }
 0x96b   :  { %v2473_v18 = vpop.f32.mrb[20].mxu0 }
 0x96c   :  { %v2474_v38 = vadd.f32 %v2473_v18, %v2400_v5  ;;  %v2475_v51 = vpop.f32.mrb[21].mxu0 }
 0x96d   :  { %v2476_v60 = vadd.f32 %v2475_v51, %v2404_v54 }
 0x96e   :  { %v11004_v56 = vmax.f32 %v2474_v38, 0.0 }
 0x96f   :  { %v2479_v39 = vpop.f32.mrb[22].mxu0  ;;  %v11041_v12 = vmax.f32 %v2476_v60, 0.0 }
 0x970   :  { %v2480_v21 = vadd.f32 %v2479_v39, %v2400_v5  ;;  %v2481_v49 = vpop.f32.mrb[23].mxu0  ;;  %v2508_v16 = vrot.slane %v11004_v56, 7  ;;  %v2532_v14 = vrot.slane %v11004_v56, 1  ;;  %v7495_v39 = vpack.c.bf16 %v2294_v43, %v2293_v47 }
 0x971   :  { %v2482_v24 = vadd.f32 %v2481_v49, %v2404_v54  ;;  %v2711_v38 = vrot.slane %v11041_v12, 7  ;;  %v2727_v51 = vrot.slane %v11041_v12, 1 }
 0x972   :  { %v11012_v26 = vmax.f32 %v2480_v21, 0.0  ;;  %2515 = vrot.lane.b32.xlu0 %v2508_v16, %s9557_s11  ;;  %7496 = vmatprep.subr.bf16.mxu0 %v7495_v39 }
 0x973   :  { %v2485_v19 = vpop.f32.mrb[24].mxu0  ;;  %v11033_v34 = vmax.f32 %v2482_v24, 0.0  ;;  %7498 = vmatpush3.bf16.msra.mxu0 %v7495_v39 }
 0x974   :  { %v2486_v41 = vadd.f32 %v2485_v19, %v2400_v5  ;;  %v2487_v57 = vpop.f32.mrb[25].mxu0  ;;  %v2509_v31 = vrot.slane %v11012_v26, 7  ;;  %v2533_v45 = vrot.slane %v11012_v26, 1  ;;  %v2296_v19 = vld [vmem:[%s12869_s13 + $0x118] sm:$0xff] }
 0x975   :  { %v2488_v62 = vadd.f32 %v2487_v57, %v2404_v54  ;;  %v2728_v8 = vrot.slane %v11033_v34, 1  ;;  %v8826_v57 = vld [vmem:[#allocation3] sm:$0xff]  ;;  %v2712_v24 = vrot.slane %v11033_v34, 7 }
 0x976   :  { %v11019_v36 = vmax.f32 %v2486_v41, 0.0  ;;  %v2510_v11 = vsel %vm12866_vm15, %v2508_v16, %v2509_v31  ;;  %v2534_v30 = vsel %vm876_vm14, %v2532_v14, %v2533_v45  ;;  %vm2683_vm15 = vcmp.ge.s32.totalorder %v10687_v25, 2 }
 0x977   :  { %2517 = vrot.lane.b32.xlu0 %v2510_v11, %s9557_s11  ;;  %v2491_v33 = vpop.f32.mrb[26].mxu0  ;;  %v2544_v7 = vsel %vm2384_vm13, %v2534_v30, 0.0  ;;  %v2687_v18 = vsel %vm2683_vm15, 1, %v9553_v1  ;;  %v11059_v28 = vmax.f32 %v2488_v62, 0.0  ;;  %v2729_v49 = vsel %vm876_vm14, %v2727_v51, %v2728_v8 }
 0x978   :  { %v2492_v15 = vadd.f32 %v2491_v33, %v2400_v5  ;;  %2552 = vrot.lane.b32.xlu1 %v2544_v7, %s9557_s11  ;;  %v2493_v55 = vpop.f32.mrb[27].mxu0  ;;  %v2511_v59 = vrot.slane %v11019_v36, 7  ;;  %v2535_v20 = vrot.slane %v11019_v36, 1  ;;  %v2688_v16 = vsel %vm2684_vm9, 1, %v9553_v1  ;;  %v2297_v33 = vld [vmem:[%s12869_s13 + $0x120] sm:$0xff]  ;;  %v8827_v7 = vld [vmem:[#allocation3 + $0x8] sm:$0xff] }
 0x979   :  { %v2494_v6 = vadd.f32 %v2493_v55, %v2404_v54  ;;  %v2739_v41 = vsel %vm2384_vm13, %v2729_v49, 0.0  ;;  %vm2755_vm15 = vcmp.lt.s32.totalorder %v8826_v57, 5  ;;  %vm2686_vm9 = vcmp.ge.s32.totalorder %v10703_v46, 2  ;;  %v2262_v57 = vld [vmem:[%s12869_s13 + $0x8] sm:$0xff] }
 0x97a   :  { %v11029_v52 = vmax.f32 %v2492_v15, 0.0  ;;  %v2512_v23 = vsel %vm12870_vm10, %v2509_v31, %v2511_v59  ;;  %v2536_v40 = vsel %vm876_vm14, %v2533_v45, %v2535_v20  ;;  %v7499_v31 = vpack.c.bf16 %v2296_v19, %v2295_v44  ;;  %v2298_v15 = vld [vmem:[%s12869_s13 + $0x128] sm:$0xff] }
 0x97b   :  { %2519 = vrot.lane.b32.xlu0 %v2512_v23, %s9557_s11  ;;  %v2545_v9 = vsel %vm2385_vm2, %v2536_v40, 0.0  ;;  %v11072_v14 = vmax.f32 %v2494_v6, 0.0  ;;  %v2730_v45 = vrot.slane %v11059_v28, 1  ;;  %v2759_v30 = vsel %vm2755_vm15, 1, %v9553_v1 }
 0x97c   :  { %2554 = vrot.lane.b32.xlu1 %v2545_v9, %s9557_s11  ;;  %v2513_v48 = vrot.slane %v11029_v52, 7  ;;  %v2537_v53 = vrot.slane %v11029_v52, 1  ;;  %7500 = vmatprep.subr.bf16.mxu0 %v7499_v31  ;;  %v2690_v60 = vsel %vm2686_vm9, 1, %v9553_v1  ;;  %v2714_v40 = vrot.slane %v11059_v28, 7  ;;  %v2299_v9 = vld [vmem:[%s12869_s13 + $0x130] sm:$0xff] }
 0x97d   :  { %7502 = vmatpush3.bf16.msra.mxu0 %v7499_v31  ;;  %v2731_v55 = vsel %vm876_vm14, %v2728_v8, %v2730_v45  ;;  %v2716_v8 = vrot.slane %v11072_v14, 7  ;;  %v2279_v31 = vld [vmem:[%s12869_s13 + $0x90] sm:$0xff] }
 0x97e   :  { %v2514_v13 = vsel %vm12870_vm10, %v2511_v59, %v2513_v48  ;;  %v2538_v50 = vsel %vm876_vm14, %v2535_v20, %v2537_v53  ;;  %v2543_v25 = vsel %vm12871_vm8, %v2537_v53, 0.0  ;;  %vm2685_vm10 = vcmp.ge.s32.totalorder %v10698_v61, 2  ;;  %v8828_v53 = vld [vmem:[#allocation3 + $0x10] sm:$0xff] }
 0x97f   :  { %2521 = vrot.lane.b32.xlu0 %v2514_v13, %s9557_s11  ;;  %v2546_v5 = vsel %vm2386_vm4, %v2538_v50, 0.0  ;;  %v2547_v21 = vsel %vm2387_vm3, %v2543_v25, 0.0  ;;  %v2689_v61 = vsel %vm2685_vm10, 1, %v9553_v1  ;;  %vm12872_vm8 = vcmask 1040384   ;;  %v2300_v13 = vld [vmem:[%s12869_s13 + $0x138] sm:$0xff] }
 0x980   :  { %2556 = vrot.lane.b32.xlu1 %v2546_v5, %s9557_s11  ;;  %v2722_v32 = vsel %vm12872_vm8, 0.0, %v2711_v38  ;;  %vm2756_vm10 = vcmp.lt.s32.totalorder %v8827_v7, 5  ;;  %v2732_v59 = vrot.slane %v11072_v14, 1  ;;  %v7503_v20 = vpack.c.bf16 %v2298_v15, %v2297_v33  ;;  %vm12873_vm9 = vmmov %vm12872_vm8  ;;  %v2263_v7 = vld [vmem:[%s12869_s13 + $0x10] sm:$0xff]  ;;  %v2264_v15 = vld [vmem:[%s12869_s13 + $0x18] sm:$0xff] }
 0x981   :  { %v2723_v54 = vsel %vm2340_vm11, %v2722_v32, 0.0  ;;  %v2760_v46 = vsel %vm2756_vm10, 1, %v9553_v1  ;;  %v2713_v23 = vsel %vm12872_vm8, %v2711_v38, %v2712_v24  ;;  %v2740_v48 = vsel %vm2385_vm2, %v2731_v55, 0.0  ;;  %v8829_v38 = vld [vmem:[#allocation3 + $0x18] sm:$0xf] }
 0x982   :  { %v8802_v11 = vpack.i.bf16 %v2723_v54, %v2739_v41  ;;  %7504 = vmatprep.subr.bf16.mxu0 %v7503_v20  ;;  %vm2757_vm15 = vcmp.lt.s32.totalorder %v8828_v53, 5  ;;  %v2733_v50 = vsel %vm876_vm14, %v2730_v45, %v2732_v59  ;;  %v7507_v62 = vpack.c.bf16 %v2300_v13, %v2299_v9  ;;  %v2261_v41 = vld [vmem:[%s12869_s13] sm:$0xff]  ;;  %v2280_v45 = vld [vmem:[%s12869_s13 + $0x98] sm:$0xff] }
 0x983   :  { %2692 = vperm.xlu0 %8750, %v2687_v18   ;;  %7506 = vmatpush3.bf16.msra.mxu0 %v7503_v20  ;;  %v2724_v5 = vsel %vm2341_vm5, %v2713_v23, 0.0  ;;  %v2761_v43 = vsel %vm2757_vm15, 1, %v9553_v1  ;;  %v2715_v18 = vsel %vm12873_vm9, %v2712_v24, %v2714_v40  ;;  %v2741_v25 = vsel %vm2386_vm4, %v2733_v50, 0.0  ;;  %vm12875_vm9 = vmmov %vm12872_vm8  ;;  %v2282_v20 = vld [vmem:[%s12869_s13 + $0xa8] sm:$0xff]  ;;  %v2265_v9 = vld [vmem:[%s12869_s13 + $0x20] sm:$0xff] }
 0x984   :  { %2558 = vrot.lane.b32.xlu1 %v2547_v21, %s9557_s11  ;;  %v8807_v47 = vpack.i.bf16 %v2724_v5, %v2740_v48  ;;  %7508 = vmatprep.subr.bf16.mxu0 %v7507_v62  ;;  %vm2758_vm10 = vcmp.lt.s32.totalorder %v8829_v38, 5  ;;  %v2725_v51 = vsel %vm2342_vm7, %v2715_v18, 0.0  ;;  %v2717_v39 = vsel %vm12872_vm8, %v2714_v40, %v2716_v8  ;;  %v2266_v48 = vld [vmem:[%s12869_s13 + $0x28] sm:$0xff]  ;;  %v2284_v13 = vld [vmem:[%s12869_s13 + $0xb8] sm:$0xff] }
 0x985   :  { %vm12874_vm15 = vcmask 1042432   ;;  %v8812_v21 = vpack.i.bf16 %v2725_v51, %v2741_v25  ;;  %v2762_v49 = vsel %vm2758_vm10, 1, %v9553_v1  ;;  %v7467_v33 = vpack.c.bf16 %v2280_v45, %v2279_v31  ;;  %v2268_v18 = vld [vmem:[%s12869_s13 + $0x38] sm:$0xff]  ;;  %v2286_v38 = vld [vmem:[%s12869_s13 + $0xc8] sm:$0xff]  ;;  %v2289_v31 = vld [vmem:[%s12869_s13 + $0xe0] sm:$0xff] }
 0x986   :  { %v2738_v6 = vsel %vm12874_vm15, %v2732_v59, 0.0  ;;  %v2281_v59 = vld [vmem:[%s12869_s13 + $0xa0] sm:$0xff]  ;;  %v7473_v5 = vpack.c.bf16 %v2266_v48, %v2265_v9  ;;  %v2290_v45 = vld [vmem:[%s12869_s13 + $0xe8] sm:$0xff]  ;;  %v2744_v9 = vrot.slane %v11033_v34, 2 }
 0x987   :  { %2698 = vperm.xlu0 %8750, %v2689_v61   ;;  %7510 = vmatpush3.bf16.msra.mxu0 %v7507_v62  ;;  %v2726_v61 = vsel %vm2343_vm0, %v2717_v39, 0.0  ;;  %v7471_v40 = vpack.c.bf16 %v2282_v20, %v2281_v59  ;;  %v2275_v20 = vld [vmem:[%s12869_s13 + $0x70] sm:$0xff] }
 0x988   :  { %2695 = vperm.xlu1 %8751, %v2688_v16   ;;  %v2742_v16 = vsel %vm2387_vm3, %v2738_v6, 0.0 }
 0x989   :  { %v8817_v32 = vpack.i.bf16 %v2726_v61, %v2742_v16  ;;  %v2270_v61 = vld [vmem:[%s12869_s13 + $0x48] sm:$0xff] }
 0x98b   :  { %8803 = vrot.lane.b32.xlu0 %v8802_v11, %s9557_s11 }
 0x98c   :  { %2764 = vperm.xlu1 %8751, %v2759_v30   ;;  %v7465_v30 = vpack.c.bf16 %v2262_v57, %v2261_v41  ;;  %v2271_v41 = vld [vmem:[%s12869_s13 + $0x50] sm:$0xff]  ;;  %v2272_v57 = vld [vmem:[%s12869_s13 + $0x58] sm:$0xff] }
 0x98f   :  { %2701 = vperm.xlu0 %8750, %v2690_v60  }
 0x990   :  { %2767 = vperm.xlu1 %8751, %v2760_v46   ;;  %v7469_v46 = vpack.c.bf16 %v2264_v15, %v2263_v7  ;;  %v2292_v7 = vld [vmem:[%s12869_s13 + $0xf8] sm:$0xff] }
 0x993   :  { %8808 = vrot.lane.b32.xlu0 %v8807_v47, %s9557_s11  ;;  %v7475_v47 = vpack.c.bf16 %v2284_v13, %v2283_v4 }
 0x994   :  { %2770 = vperm.xlu1 %8751, %v2761_v43   ;;  %v2267_v43 = vld [vmem:[%s12869_s13 + $0x30] sm:$0xff] }
 0x995   :  { %v7477_v39 = vpack.c.bf16 %v2268_v18, %v2267_v43 }
 0x997   :  { %8813 = vrot.lane.b32.xlu0 %v8812_v21, %s9557_s11  ;;  %v7479_v21 = vpack.c.bf16 %v2286_v38, %v2285_v58  ;;  %v2672_v38 = vrot.slane %v11033_v34, 6 }
 0x998   :  { %2773 = vperm.xlu1 %8751, %v2762_v49   ;;  %v2269_v49 = vld [vmem:[%s12869_s13 + $0x40] sm:$0xff] }
 0x99c   :  { %8818 = vrot.lane.b32.xlu1 %v8817_v32, %s9557_s11  ;;  %v2288_v32 = vld [vmem:[%s12869_s13 + $0xd8] sm:$0xff] }
 0x9e4   :  { %v2516_v44 = vpop.permute.xlu0 %2515 }
 0x9e5   :  { %v2527_v19 = vsel %vm12875_vm9, 0.0, %v2516_v44  ;;  %v7481_v44 = vpack.c.bf16 %v2270_v61, %v2269_v49  ;;  %v2674_v61 = vrot.slane %v11059_v28, 6 }
 0x9e6   :  { %v2528_v54 = vsel %vm2340_vm11, %v2527_v19, 0.0  ;;  %v7483_v19 = vpack.c.bf16 %v2288_v32, %v2287_v35 }
 0x9e7   :  { %v2560_v55 = vsel %vm1283_vm6, %v2528_v54, %v11004_v56  ;;  %v7485_v54 = vpack.c.bf16 %v2272_v57, %v2271_v41 }
 0x9e9   :  { %v2518_v11 = vpop.permute.xlu0 %2517 }
 0x9ea   :  { %v2553_v24 = vpop.permute.xlu1 %2552  ;;  %v2529_v22 = vsel %vm2341_vm5, %v2518_v11, 0.0  ;;  %v7487_v11 = vpack.c.bf16 %v2290_v45, %v2289_v31  ;;  %vm12876_vm5 = vcmask 1041408  }
 0x9eb   :  { %6729 = vmatprep.mubr.msk.f32.mxu1 %vm1283_vm6, %v2553_v24  ;;  %v2561_v53 = vsel %vm1283_vm6, %v2529_v22, %v11012_v26  ;;  %v2274_v24 = vld [vmem:[%s12869_s13 + $0x68] sm:$0xff]  ;;  %v2276_v22 = vld [vmem:[%s12869_s13 + $0x78] sm:$0xff]  ;;  %vm12879_vm9 = vmmov %vm12876_vm5 }
 0x9ec   :  { %2643 = vmatmul.mubr.f32.vlgmr.msra.gmra.mrb[24].mxu1 %v2560_v55 }
 0x9ed   :  { %v2520_v60 = vpop.permute.xlu0 %2519  ;;  %7466 = vmatpush3.bf16.msra.mxu1 %v7465_v30  ;;  %v2273_v30 = vld [vmem:[%s12869_s13 + $0x60] sm:$0xff] }
 0x9ee   :  { %v2555_v23 = vpop.permute.xlu1 %2554  ;;  %7468 = vmatprep.subr.bf16.mxu1 %v7467_v33  ;;  %v2530_v50 = vsel %vm2342_vm7, %v2520_v60, 0.0  ;;  %v2291_v33 = vld [vmem:[%s12869_s13 + $0xf0] sm:$0xff]  ;;  %v7489_v15 = vpack.c.bf16 %v2274_v24, %v2273_v30  ;;  %v7493_v60 = vpack.c.bf16 %v2276_v22, %v2275_v20  ;;  %vm12877_vm7 = vcmask 1045504  }
 0x9ef   :  { %6730 = vmatprep.mubr.msk.f32.mxu1 %vm1283_vm6, %v2555_v23  ;;  %v2562_v25 = vsel %vm1283_vm6, %v2530_v50, %v11019_v36  ;;  %v7491_v59 = vpack.c.bf16 %v2292_v7, %v2291_v33  ;;  %v2671_v23 = vrot.slane %v11041_v12, 6  ;;  %vm12878_vm10 = vmmov %vm12877_vm7 }
 0x9f0   :  { %2648 = vmatmul.mubr.f32.gmra.mrb[26].mxu1 %v2561_v53  ;;  %v2743_v53 = vrot.slane %v11041_v12, 2 }
 0x9f1   :  { %v2522_v62 = vpop.permute.xlu0 %2521  ;;  %7470 = vmatpush3.bf16.msra.mxu1 %v7469_v46  ;;  %v2682_v4 = vsel %vm12876_vm5, 0.0, %v2671_v23 }
 0x9f2   :  { %v2557_v8 = vpop.permute.xlu1 %2556  ;;  %7472 = vmatprep.subr.bf16.mxu1 %v7471_v40  ;;  %v2531_v51 = vsel %vm2343_vm0, %v2522_v62, 0.0 }
 0x9f3   :  { %6731 = vmatprep.mubr.msk.f32.mxu1 %vm1283_vm6, %v2557_v8  ;;  %v2563_v16 = vsel %vm1283_vm6, %v2531_v51, %v11029_v52  ;;  %v2745_v8 = vsel %vm12877_vm7, %v2743_v53, %v2744_v9 }
 0x9f4   :  { %2653 = vmatmul.mubr.f32.gmra.mrb[28].mxu1 %v2562_v25 }
 0x9f5   :  { %7474 = vmatpush3.bf16.msra.mxu1 %v7473_v5 }
 0x9f6   :  { %v2559_v6 = vpop.permute.xlu1 %2558  ;;  %7476 = vmatprep.subr.bf16.mxu1 %v7475_v47  ;;  %v2746_v47 = vrot.slane %v11059_v28, 2 }
 0x9f7   :  { %6732 = vmatprep.mubr.msk.f32.mxu1 %vm1283_vm6, %v2559_v6  ;;  %v2748_v6 = vrot.slane %v11072_v14, 2 }
 0x9f8   :  { %2658 = vmatmul.mubr.f32.gmra.mrb[30].mxu1 %v2563_v16  ;;  %v2673_v16 = vsel %vm12879_vm9, %v2671_v23, %v2672_v38 }
 0x9f9   :  { %7478 = vmatpush3.bf16.msra.mxu1 %v7477_v39  ;;  %v2747_v39 = vsel %vm12878_vm10, %v2744_v9, %v2746_v47  ;;  %vm12881_vm10 = vmmov %vm12879_vm9 }
 0x9fa   :  { %7480 = vmatprep.subr.bf16.mxu1 %v7479_v21 }
 0x9fd   :  { %7482 = vmatpush3.bf16.msra.mxu1 %v7481_v44 }
 0x9fe   :  { %7484 = vmatprep.subr.bf16.mxu1 %v7483_v19 }
 0xa01   :  { %7486 = vmatpush3.bf16.msra.mxu1 %v7485_v54 }
 0xa02   :  { %v2693_v55 = vpop.permute.xlu0 %2692  ;;  %7488 = vmatprep.subr.bf16.mxu1 %v7487_v11  ;;  %v2675_v11 = vsel %vm12881_vm10, %v2672_v38, %v2674_v61  ;;  %v539_v38 = vld [vmem:[#allocation5] sm:$0xff] }
 0xa03   :  { %vm2703_vm11 = vcmp.eq.s32.totalorder %v2693_v55, 1 }
 0xa04   :  { %v2707_v5 = vsel %vm2703_vm11, %v2682_v4, 0.0  ;;  %vm12880_vm11 = vmmov %vm12877_vm7  ;;  %v6728_v4 = vld [vmem:[#allocation20] ss:$0 sm:$0xff] }
 0xa05   :  { %7490 = vmatpush3.bf16.msra.mxu1 %v7489_v15  ;;  %v2749_v41 = vsel %vm12880_vm11, %v2746_v47, %v2748_v6  ;;  %v2676_v15 = vrot.slane %v11072_v14, 6 }
 0xa06   :  { %v2699_v46 = vpop.permute.xlu0 %2698  ;;  %7492 = vmatprep.subr.bf16.mxu1 %v7491_v59 }
 0xa07   :  { %v2696_v40 = vpop.permute.xlu1 %2695  ;;  %vm2705_vm7 = vcmp.eq.s32.totalorder %v2699_v46, 1 }
 0xa08   :  { %vm2704_vm15 = vcmp.eq.s32.totalorder %v2696_v40, 1  ;;  %v2709_v7 = vsel %vm2705_vm7, %v2675_v11, 0.0  ;;  %vm12883_vm7 = vmmov %vm12881_vm10  ;;  %vm3662_vm10 = vcmp.ge.s32.totalorder %v539_v38, 1 }
 0xa09   :  { %7494 = vmatpush3.bf16.msra.mxu1 %v7493_v60  ;;  %v2708_v19 = vsel %vm2704_vm15, %v2673_v16, 0.0  ;;  %vm12882_vm15 = vmmov %vm12879_vm9  ;;  %v2677_v46 = vsel %vm12883_vm7, %v2674_v61, %v2676_v15  ;;  %v540_v61 = vld [vmem:[#allocation5 + $0x8] sm:$0xf]  ;;  %vm4235_vm7 = vcmp.ge.s32.totalorder %v539_v38, 2 }
 0xa0a   :  { %v8804_v48 = vpop.permute.xlu0 %8803  ;;  %v2754_v55 = vsel %vm12882_vm15, %v2748_v6, 0.0  ;;  %vm3663_vm15 = vcmp.ge.s32.totalorder %v540_v61, 1 }
 0xa0b   :  { %v8806_v13 = vunpack.i.h.bf16 %v8804_v48  ;;  %v8805_v50 = vunpack.i.l.bf16 %v8804_v48  ;;  %v11168_v62 = vpop.permute.xlu1 %2764 }
 0xa0c   :  { %vm2775_vm0 = vcmp.eq.s32.totalorder %v11168_v62, 1 }
 0xa0d   :  { %v2779_v43 = vsel %vm2775_vm0, %v2745_v8, 0.0  ;;  %v2819_v18 = vsel %vm1283_vm6, %v11041_v12, %v8805_v50  ;;  %v2815_v25 = vsel %vm1283_vm6, %v2707_v5, %v8806_v13 }
 0xa0e   :  { %v2702_v58 = vpop.permute.xlu0 %2701  ;;  %2905 = vmatprep.mubr.f32.mxu1 %v2819_v18  ;;  %7197 = vmatprep.mubr.msk.f32.mxu0 %vm1283_vm6, %v2779_v43 }
 0xa0f   :  { %2906 = vmatmul.mubr.f32.vlgmr.msra.gmra.mrb[32].mxu1 %v2815_v25  ;;  %v11180_v51 = vpop.permute.xlu1 %2767  ;;  %vm2706_vm11 = vcmp.eq.s32.totalorder %v2702_v58, 1 }
 0xa10   :  { %vm2776_vm8 = vcmp.eq.s32.totalorder %v11180_v51, 1  ;;  %v2710_v9 = vsel %vm2706_vm11, %v2677_v46, 0.0  ;;  %vm3694_vm11 = vcmp.lt.s32.totalorder %v539_v38, 2  ;;  %v3264_v51 = vld [vmem:[%s12884_s21 + $0x38] sm:$0xff] }
 0xa11   :  { %v2780_v21 = vsel %vm2776_vm8, %v2747_v39, 0.0 }
 0xa12   :  { %v8809_v49 = vpop.permute.xlu0 %8808  ;;  %7198 = vmatmul.mubr.msk.f32.vlgmr.msra.gmra.mrb[28].mxu0 %vm1283_vm6, %v2780_v21 }
 0xa13   :  { %v8811_v35 = vunpack.i.h.bf16 %v8809_v49  ;;  %v8810_v32 = vunpack.i.l.bf16 %v8809_v49  ;;  %v11190_v44 = vpop.permute.xlu1 %2770 }
 0xa14   :  { %vm12769_vm5 = vcmp.eq.s32.totalorder %v11190_v44, 1 }
 0xa15   :  { %v2781_v57 = vsel %vm12769_vm5, %v2749_v41, 0.0  ;;  %v2820_v31 = vsel %vm1283_vm6, %v11033_v34, %v8810_v32  ;;  %v2816_v45 = vsel %vm1283_vm6, %v2708_v19, %v8811_v35  ;;  %v3664_v32 = vsel %vm3662_vm10, 1, %v9553_v1 }
 0xa16   :  { %v8814_v54 = vpop.permute.xlu0 %8813  ;;  %2910 = vmatprep.mubr.f32.mxu1 %v2820_v31  ;;  %7200 = vmatprep.mubr.msk.f32.mxu0 %vm1283_vm6, %v2781_v57  ;;  %v3665_v41 = vsel %vm3663_vm15, 1, %v9553_v1  ;;  %v3696_v57 = vsel %vm3694_vm11, 1, %v9553_v1  ;;  %v4237_v31 = vsel %vm4235_vm7, 1, %v9553_v1  ;;  %vm4271_vm10 = vcmp.lt.s32.totalorder %v539_v38, 1 }
 0xa17   :  { %v8816_v30 = vunpack.i.h.bf16 %v8814_v54  ;;  %v8815_v24 = vunpack.i.l.bf16 %v8814_v54  ;;  %2911 = vmatmul.mubr.f32.gmra.mrb[34].mxu1 %v2816_v45  ;;  %v11201_v33 = vpop.permute.xlu1 %2773  ;;  %vm4236_vm5 = vcmp.ge.s32.totalorder %v540_v61, 2  ;;  %v4273_v54 = vsel %vm4271_vm10, 1, %v9553_v1 }
 0xa18   :  { %vm12768_vm9 = vcmp.eq.s32.totalorder %v11201_v33, 1  ;;  %v4238_v11 = vsel %vm4236_vm5, 1, %v9553_v1  ;;  %vm4272_vm15 = vcmp.lt.s32.totalorder %v540_v61, 1  ;;  %vm12885_vm5 = vcmask 1045504  }
 0xa19   :  { %v2782_v59 = vsel %vm12768_vm9, %v2754_v55, 0.0  ;;  %v2821_v20 = vsel %vm1283_vm6, %v11059_v28, %v8815_v24  ;;  %v2817_v22 = vsel %vm1283_vm6, %v2709_v7, %v8816_v30  ;;  %vm3695_vm9 = vcmp.lt.s32.totalorder %v540_v61, 2  ;;  %v3258_v24 = vld [vmem:[%s12884_s21 + $0x8] sm:$0xff]  ;;  %v3257_v55 = vld [vmem:[%s12884_s21] sm:$0xff]  ;;  %vm12888_vm7 = vmmov %vm12885_vm5 }
 0xa1a   :  { %2915 = vmatprep.mubr.f32.mxu1 %v2821_v20  ;;  %7201 = vmatmul.mubr.msk.f32.gmra.mrb[30].mxu0 %vm1283_vm6, %v2782_v59  ;;  %v3697_v45 = vsel %vm3695_vm9, 1, %v9553_v1  ;;  %v4274_v30 = vsel %vm4272_vm15, 1, %v9553_v1  ;;  %v3262_v7 = vld [vmem:[%s12884_s21 + $0x28] sm:$0xff]  ;;  %v3261_v59 = vld [vmem:[%s12884_s21 + $0x20] sm:$0xff]  ;;  %vm12886_vm9 = vmmov %vm12885_vm5  ;;  %vm12887_vm11 = vcmask 1042432   ;;  %vm12889_vm10 = vcmask 1041408  }
 0xa1b   :  { %2916 = vmatmul.mubr.f32.gmra.mrb[36].mxu1 %v2817_v22  ;;  %v8819_v60 = vpop.permute.xlu1 %8818  ;;  %3244 = vmatprep.mubr.f32.mxu0 %v9554_v42  ;;  %v7521_v15 = vpack.c.bf16 %v3262_v7, %v3258_v24  ;;  %v7523_v22 = vpack.c.bf16 %v3261_v59, %v3257_v55  ;;  %v3270_v1 = vld [vmem:[%s12884_s21 + $0x68] sm:$0xff]  ;;  %v3281_v61 = vld [vmem:[%s12884_s21 + $0xc0] sm:$0xff]  ;;  %vm12890_vm15 = vcmp.eq.s32.totalorder %v11190_v44, 1 }
 0xa1c   :  { %v8821_v23 = vunpack.i.h.bf16 %v8819_v60  ;;  %v8820_v40 = vunpack.i.l.bf16 %v8819_v60  ;;  %v3266_v60 = vld [vmem:[%s12884_s21 + $0x48] sm:$0xff]  ;;  %v3293_v55 = vld [vmem:[%s12884_s21 + $0x120] sm:$0xff] }
 0xa1d   :  { %7522 = vmatprep.subr.bf16.mxu1 %v7521_v15  ;;  %v3289_v15 = vld [vmem:[%s12884_s21 + $0x100] sm:$0xff] }
 0xa1e   :  { %v2822_v48 = vsel %vm1283_vm6, %v11072_v14, %v8820_v40  ;;  %v2818_v53 = vsel %vm1283_vm6, %v2710_v9, %v8821_v23  ;;  %v11234_v23 = vld [vmem:[#allocation22] ss:$0 sm:$0xff]  ;;  %7524 = vmatpush1.bf16.msra.mxu1 %v7523_v22  ;;  %v7525_v9 = vpack.c.bf16 %v3270_v1, %v3266_v60  ;;  %v3298_v60 = vld [vmem:[%s12884_s21 + $0x148] sm:$0xff] }
 0xa1f   :  { %2920 = vmatprep.mubr.f32.mxu1 %v2822_v48  ;;  %v3265_v48 = vld [vmem:[%s12884_s21 + $0x40] sm:$0xff] }
 0xa20   :  { %2921 = vmatmul.mubr.f32.gmra.mrb[38].mxu1 %v2818_v53  ;;  %v3269_v53 = vld [vmem:[%s12884_s21 + $0x60] sm:$0xff]  ;;  %7526 = vmatprep.subr.bf16.mxu1 %v7525_v9 }
 0xabf   :  { %v2644_v13 = vpop.f32.mrb[24].mxu1 }
 0xac0   :  { %v2645_v50 = vadd.f32 %v6728_v4, %v2644_v13  ;;  %v2646_v5 = vpop.f32.mrb[25].mxu1  ;;  %v7527_v13 = vpack.c.bf16 %v3269_v53, %v3265_v48  ;;  %v7539_v53 = vpack.c.bf16 %v3293_v55, %v3289_v15 }
 0xac1   :  { %v3278_v5 = vld [vmem:[%s12884_s21 + $0xa8] sm:$0xff] }
 0xac2   :  { %v2663_v8 = vmax.f32 %v2645_v50, 0.0  ;;  %v3274_v50 = vld [vmem:[%s12884_s21 + $0x88] sm:$0xff]  ;;  %7528 = vmatpush1.bf16.msra.mxu1 %v7527_v13 }
 0xac3   :  { %v2649_v47 = vpop.f32.mrb[26].mxu1 }
 0xac4   :  { %v2650_v43 = vadd.f32 %v6728_v4, %v2649_v47  ;;  %3019 = vrot.lane.b32.xlu0 %v2663_v8, %s9557_s11  ;;  %v2651_v18 = vpop.f32.mrb[27].mxu1 }
 0xac5   :  { %v3273_v18 = vld [vmem:[%s12884_s21 + $0x80] sm:$0xff] }
 0xac6   :  { %v2664_v25 = vmax.f32 %v2650_v43, 0.0  ;;  %v7529_v43 = vpack.c.bf16 %v3278_v5, %v3274_v50  ;;  %v3297_v50 = vld [vmem:[%s12884_s21 + $0x140] sm:$0xff] }
 0xac7   :  { %v2654_v58 = vpop.f32.mrb[28].mxu1  ;;  %v3301_v5 = vld [vmem:[%s12884_s21 + $0x160] sm:$0xff] }
 0xac8   :  { %v2655_v39 = vadd.f32 %v6728_v4, %v2654_v58  ;;  %3021 = vrot.lane.b32.xlu1 %v2664_v25, %s9557_s11  ;;  %v2656_v6 = vpop.f32.mrb[29].mxu1  ;;  %v3277_v25 = vld [vmem:[%s12884_s21 + $0xa0] sm:$0xff]  ;;  %7530 = vmatprep.subr.bf16.mxu1 %v7529_v43  ;;  %v3306_v43 = vld [vmem:[%s12884_s21 + $0x188] sm:$0xff] }
 0xac9   :  { %v11244_v58 = vld [vmem:[#allocation23] sm:$0x3]  ;;  %v3282_v6 = vld [vmem:[%s12884_s21 + $0xc8] sm:$0xff] }
 0xaca   :  { %v2665_v21 = vmax.f32 %v2655_v39, 0.0  ;;  %v7531_v39 = vpack.c.bf16 %v3277_v25, %v3273_v18  ;;  %v3310_v18 = vld [vmem:[%s12884_s21 + $0x1a8] sm:$0xff] }
 0xacb   :  { %v2659_v49 = vpop.f32.mrb[30].mxu1 }
 0xacc   :  { %v2660_v16 = vadd.f32 %v6728_v4, %v2659_v49  ;;  %3023 = vrot.lane.b32.xlu0 %v2665_v21, %s9557_s11  ;;  %v2661_v35 = vpop.f32.mrb[31].mxu1  ;;  %v3286_v21 = vld [vmem:[%s12884_s21 + $0xe8] sm:$0xff]  ;;  %7532 = vmatpush1.bf16.msra.mxu1 %v7531_v39 }
 0xacd   :  { %v7533_v49 = vpack.c.bf16 %v3286_v21, %v3282_v6  ;;  %v7543_v21 = vpack.c.bf16 %v3301_v5, %v3297_v50 }
 0xace   :  { %v2666_v19 = vmax.f32 %v2660_v16, 0.0  ;;  %v3285_v16 = vld [vmem:[%s12884_s21 + $0xe0] sm:$0xff] }
 0xacf   :  { %7534 = vmatprep.subr.bf16.mxu1 %v7533_v49  ;;  %v3305_v49 = vld [vmem:[%s12884_s21 + $0x180] sm:$0xff] }
 0xad0   :  { %3667 = vperm.xlu0 %8750, %v3664_v32   ;;  %3025 = vrot.lane.b32.xlu1 %v2666_v19, %s9557_s11  ;;  %v3290_v19 = vld [vmem:[%s12884_s21 + $0x108] sm:$0xff] }
 0xad4   :  { %3670 = vperm.xlu0 %8750, %v3665_v41   ;;  %3699 = vperm.xlu1 %8751, %v3696_v57   ;;  %v11253_v41 = vrot.slane %v11244_v58, %v11010_v17 }
 0xad8   :  { %4240 = vperm.xlu0 %8750, %v4237_v31   ;;  %3702 = vperm.xlu1 %8751, %v3697_v45   ;;  %v3294_v31 = vld [vmem:[%s12884_s21 + $0x128] sm:$0xff]  ;;  %v11256_v45 = vld [vmem:[#allocation25] sm:$0x3] }
 0xad9   :  { %v7537_v7 = vpack.c.bf16 %v3294_v31, %v3290_v19  ;;  %v11268_v1 = vrot.slane %v11256_v45, %v11010_v17  ;;  %v3314_v19 = vld [vmem:[%s12884_s21 + $0x1c8] sm:$0xff] }
 0xadc   :  { %4276 = vperm.xlu0 %8750, %v4273_v54   ;;  %4243 = vperm.xlu1 %8751, %v4238_v11  }
 0xae0   :  { %4279 = vperm.xlu1 %8751, %v4274_v30   ;;  %v7535_v30 = vpack.c.bf16 %v3285_v16, %v3281_v61 }
 0xae2   :  { %v6872_v20 = vpop.f32.mrb[32].mxu1  ;;  %7536 = vmatpush1.bf16.msra.mxu1 %v7535_v30 }
 0xae3   :  { %v6873_v46 = vpop.f32.mrb[33].mxu1  ;;  %7538 = vmatprep.subr.bf16.mxu1 %v7537_v7 }
 0xae4   :  { %v6874_v40 = vadd.f32 %v6873_v46, %v6872_v20  ;;  %v3302_v46 = vld [vmem:[%s12884_s21 + $0x168] sm:$0xff] }
 0xae5   :  { %v7199_v4 = vpop.f32.mrb[28].mxu0  ;;  %v7541_v13 = vpack.c.bf16 %v3302_v46, %v3298_v60 }
 0xae6   :  { %v2908_v8 = vadd.f32 %v6874_v40, %v11234_v23  ;;  %v2992_v47 = vpop.f32.mrb[29].mxu0  ;;  %7540 = vmatpush1.bf16.msra.mxu1 %v7539_v53 }
 0xae7   :  { %7542 = vmatprep.subr.bf16.mxu1 %v7541_v13 }
 0xae8   :  { %v2993_v38 = vadd.f32 %v2992_v47, %v2908_v8 }
 0xaea   :  { %v3011_v35 = vmax.f32 %v2993_v38, 0.0  ;;  %v6875_v32 = vpop.f32.mrb[34].mxu1  ;;  %7544 = vmatpush1.bf16.msra.mxu1 %v7543_v21  ;;  %v3334_v21 = vld [vmem:[%s12884_s21 + $0x268] sm:$0xff] }
 0xaeb   :  { %v6876_v57 = vpop.f32.mrb[35].mxu1 }
 0xaec   :  { %v3035_v54 = vsel %vm1283_vm6, %v3011_v35, %v11041_v12  ;;  %v6877_v11 = vadd.f32 %v6876_v57, %v6875_v32  ;;  %v7545_v35 = vpack.c.bf16 %v3310_v18, %v3306_v43  ;;  %v3309_v32 = vld [vmem:[%s12884_s21 + $0x1a0] sm:$0xff]  ;;  %v3318_v57 = vld [vmem:[%s12884_s21 + $0x1e8] sm:$0xff] }
 0xaed   :  { %v7202_v24 = vpop.f32.mrb[30].mxu0  ;;  %v3051_v12 = vmul.f32 %v11253_v41, %v3035_v54  ;;  %v7547_v15 = vpack.c.bf16 %v3309_v32, %v3305_v49  ;;  %v7549_v55 = vpack.c.bf16 %v3318_v57, %v3314_v19  ;;  %v3321_v18 = vld [vmem:[%s12884_s21 + $0x200] sm:$0xff] }
 0xaee   :  { %v2913_v59 = vadd.f32 %v6877_v11, %v11234_v23  ;;  %v6878_v20 = vpop.f32.mrb[36].mxu1  ;;  %v3002_v22 = vpop.f32.mrb[31].mxu0  ;;  %7546 = vmatprep.subr.bf16.mxu1 %v7545_v35  ;;  %v3333_v32 = vld [vmem:[%s12884_s21 + $0x260] sm:$0xff] }
 0xaef   :  { %v6879_v40 = vpop.f32.mrb[37].mxu1  ;;  %v3070_v25 = vadd.f32 %v11268_v1, %v3051_v12  ;;  %v3317_v12 = vld [vmem:[%s12884_s21 + $0x1e0] sm:$0xff]  ;;  %7548 = vmatpush1.bf16.msra.mxu1 %v7547_v15 }
 0xaf0   :  { %v2998_v9 = vadd.f32 %v7199_v4, %v2913_v59  ;;  %v6880_v48 = vadd.f32 %v6879_v40, %v6878_v20  ;;  %v3313_v59 = vld [vmem:[%s12884_s21 + $0x1c0] sm:$0xff]  ;;  %v3322_v40 = vld [vmem:[%s12884_s21 + $0x208] sm:$0xff]  ;;  %7550 = vmatprep.subr.bf16.mxu1 %v7549_v55 }
 0xaf1   :  { %v3090_v54 = vrot.slane %v3070_v25, 1  ;;  %v3130_v7 = vrot.slane %v3070_v25, 2  ;;  %v7551_v13 = vpack.c.bf16 %v3317_v12, %v3313_v59 }
 0xaf2   :  { %v3012_v8 = vmax.f32 %v2998_v9, 0.0  ;;  %v2918_v47 = vadd.f32 %v6880_v48, %v11234_v23 }
 0xaf3   :  { %v6881_v38 = vpop.f32.mrb[38].mxu1  ;;  %7552 = vmatpush1.bf16.msra.mxu1 %v7551_v13 }
 0xaf4   :  { %v3036_v4 = vsel %vm1283_vm6, %v3012_v8, %v11033_v34  ;;  %v3003_v39 = vadd.f32 %v3002_v22, %v2918_v47  ;;  %v6882_v6 = vpop.f32.mrb[39].mxu1 }
 0xaf5   :  { %v3053_v61 = vmul.f32 %v11253_v41, %v3036_v4  ;;  %v6883_v16 = vadd.f32 %v6882_v6, %v6881_v38  ;;  %v3325_v38 = vld [vmem:[%s12884_s21 + $0x220] sm:$0xff]  ;;  %v3330_v6 = vld [vmem:[%s12884_s21 + $0x248] sm:$0xff] }
 0xaf6   :  { %v3013_v31 = vmax.f32 %v3003_v39, 0.0  ;;  %v7555_v35 = vpack.c.bf16 %v3325_v38, %v3321_v18  ;;  %v7557_v57 = vpack.c.bf16 %v3334_v21, %v3330_v6  ;;  %v3349_v18 = vld [vmem:[%s12884_s21 + $0x2e0] sm:$0xff] }
 0xaf7   :  { %v2923_v34 = vadd.f32 %v6883_v16, %v11234_v23  ;;  %v3072_v11 = vadd.f32 %v11268_v1, %v3053_v61  ;;  %v3326_v23 = vld [vmem:[%s12884_s21 + $0x228] sm:$0xff] }
 0xaf8   :  { %v3037_v30 = vsel %vm1283_vm6, %v3013_v31, %v11059_v28  ;;  %v7553_v50 = vpack.c.bf16 %v3326_v23, %v3322_v40  ;;  %v3337_v40 = vld [vmem:[%s12884_s21 + $0x280] sm:$0xff] }
 0xaf9   :  { %v3055_v20 = vmul.f32 %v11253_v41, %v3037_v30  ;;  %v3008_v22 = vadd.f32 %v7202_v24, %v2923_v34  ;;  %v3091_v60 = vrot.slane %v3072_v11, 1  ;;  %v3131_v46 = vrot.slane %v3072_v11, 2  ;;  %v3338_v30 = vld [vmem:[%s12884_s21 + $0x288] sm:$0xff]  ;;  %v3341_v23 = vld [vmem:[%s12884_s21 + $0x2a0] sm:$0xff] }
 0xafa   :  { %7554 = vmatprep.subr.bf16.mxu1 %v7553_v50 }
 0xafb   :  { %v3074_v9 = vadd.f32 %v11268_v1, %v3055_v20  ;;  %v3014_v48 = vmax.f32 %v3008_v22, 0.0  ;;  %v3092_v28 = vsel %vm876_vm14, %v3090_v54, %v3091_v60  ;;  %v3132_v53 = vsel %vm12885_vm5, %v3130_v7, %v3131_v46  ;;  %v3342_v7 = vld [vmem:[%s12884_s21 + $0x2a8] sm:$0xff]  ;;  %7556 = vmatpush1.bf16.msra.mxu1 %v7555_v35 }
 0xafc   :  { %v3112_v24 = vsel %vm2384_vm13, %v3092_v28, -inf  ;;  %v3152_v39 = vsel %vm2775_vm0, %v3132_v53, -inf  ;;  %7558 = vmatprep.subr.bf16.mxu1 %v7557_v57  ;;  %v7561_v12 = vpack.c.bf16 %v3342_v7, %v3338_v30  ;;  %v3346_v53 = vld [vmem:[%s12884_s21 + $0x2c8] sm:$0xff]  ;;  %vm12891_vm5 = vcmp.eq.s32.totalorder %v11201_v33, 1  ;;  %v3373_v30 = vld [vmem:[%s12884_s21 + $0x3a0] sm:$0xff]  ;;  %v3259_v33 = vld [vmem:[%s12884_s21 + $0x10] sm:$0xff] }
 0xafd   :  { %v3038_v5 = vsel %vm1283_vm6, %v3014_v48, %v11072_v14  ;;  %v3095_v8 = vrot.slane %v3074_v9, 1  ;;  %v3120_v47 = vmax.f32 %v3070_v25, %v3112_v24  ;;  %v3135_v43 = vrot.slane %v3074_v9, 2  ;;  %v3350_v24 = vld [vmem:[%s12884_s21 + $0x2e8] sm:$0xff] }
 0xafe   :  { %v3057_v4 = vmul.f32 %v11253_v41, %v3038_v5  ;;  %v3329_v41 = vld [vmem:[%s12884_s21 + $0x240] sm:$0xff]  ;;  %v3374_v57 = vld [vmem:[%s12884_s21 + $0x3a8] sm:$0xff] }
 0xaff   :  { %v3096_v49 = vsel %vm876_vm14, %v3091_v60, %v3095_v8  ;;  %v3136_v14 = vsel %vm12886_vm9, %v3131_v46, %v3135_v43  ;;  %v3160_v25 = vmax.f32 %v3120_v47, %v3152_v39  ;;  %v7559_v15 = vpack.c.bf16 %v3333_v32, %v3329_v41  ;;  %v3358_v39 = vld [vmem:[%s12884_s21 + $0x328] sm:$0xff]  ;;  %v3361_v41 = vld [vmem:[%s12884_s21 + $0x340] sm:$0xff]  ;;  %vm12892_vm9 = vmmov %vm12888_vm7 }
 0xb00   :  { %v3076_v61 = vadd.f32 %v11268_v1, %v3057_v4  ;;  %v3114_v16 = vsel %vm2385_vm2, %v3096_v49, -inf  ;;  %v3154_v31 = vsel %vm2776_vm8, %v3136_v14, -inf  ;;  %v7565_v47 = vpack.c.bf16 %v3350_v24, %v3346_v53  ;;  %v3354_v4 = vld [vmem:[%s12884_s21 + $0x308] sm:$0xff]  ;;  %v3353_v49 = vld [vmem:[%s12884_s21 + $0x300] sm:$0xff] }
 0xb01   :  { %v3122_v19 = vmax.f32 %v3072_v11, %v3114_v16  ;;  %7560 = vmatpush1.bf16.msra.mxu1 %v7559_v15  ;;  %v7569_v21 = vpack.c.bf16 %v3358_v39, %v3354_v4  ;;  %v3357_v14 = vld [vmem:[%s12884_s21 + $0x320] sm:$0xff]  ;;  %v3378_v7 = vld [vmem:[%s12884_s21 + $0x3c8] sm:$0xff] }
 0xb02   :  { %v3099_v54 = vrot.slane %v3076_v61, 1  ;;  %v3139_v34 = vrot.slane %v3076_v61, 2  ;;  %7562 = vmatprep.subr.bf16.mxu1 %v7561_v12  ;;  %v7571_v16 = vpack.c.bf16 %v3357_v14, %v3353_v49  ;;  %v3365_v32 = vld [vmem:[%s12884_s21 + $0x360] sm:$0xff] }
 0xb03   :  { %v3162_v1 = vmax.f32 %v3122_v19, %v3154_v31  ;;  %v3370_v19 = vld [vmem:[%s12884_s21 + $0x388] sm:$0xff]  ;;  %v7575_v31 = vpack.c.bf16 %v3365_v32, %v3361_v41 }
 0xb04   :  { %v3100_v55 = vsel %vm876_vm14, %v3095_v8, %v3099_v54  ;;  %v3110_v59 = vsel %vm12887_vm11, %v3099_v54, -inf  ;;  %v3140_v11 = vsel %vm12888_vm7, %v3135_v43, %v3139_v34  ;;  %v3150_v20 = vsel %vm12889_vm10, %v3139_v34, -inf  ;;  %v3345_v43 = vld [vmem:[%s12884_s21 + $0x2c0] sm:$0xff]  ;;  %vm12893_vm11 = vmmov %vm12888_vm7 }
 0xb05   :  { %v7511_v22 = vpack.c.bf16 %v3162_v1, %v3160_v25  ;;  %v3116_v60 = vsel %vm2386_vm4, %v3100_v55, -inf  ;;  %v3118_v46 = vsel %vm2387_vm3, %v3110_v59, -inf  ;;  %v3156_v13 = vsel %vm12890_vm15, %v3140_v11, -inf  ;;  %v3362_v25 = vld [vmem:[%s12884_s21 + $0x348] sm:$0xff]  ;;  %v3369_v34 = vld [vmem:[%s12884_s21 + $0x380] sm:$0xff] }
 0xb06   :  { %v3124_v48 = vmax.f32 %v3074_v9, %v3116_v60  ;;  %v3126_v28 = vmax.f32 %v3076_v61, %v3118_v46  ;;  %v3158_v50 = vsel %vm12891_vm5, %v3150_v20, -inf  ;;  %v7563_v9 = vpack.c.bf16 %v3341_v23, %v3337_v40  ;;  %v3366_v61 = vld [vmem:[%s12884_s21 + $0x368] sm:$0xff]  ;;  %v3377_v59 = vld [vmem:[%s12884_s21 + $0x3c0] sm:$0xff] }
 0xb07   :  { %7512 = vmatprep.subr.bf16.mxu0 %v7511_v22  ;;  %v7567_v6 = vpack.c.bf16 %v3349_v18, %v3345_v43  ;;  %v7573_v35 = vpack.c.bf16 %v3366_v61, %v3362_v25  ;;  %v7577_v54 = vpack.c.bf16 %v3374_v57, %v3370_v19  ;;  %v3382_v1 = vld [vmem:[%s12884_s21 + $0x3e8] sm:$0xff]  ;;  %v7579_v15 = vpack.c.bf16 %v3373_v30, %v3369_v34  ;;  %v3381_v11 = vld [vmem:[%s12884_s21 + $0x3e0] sm:$0xff] }
 0xb08   :  { %v11333_v5 = vmax.f32 %v3124_v48, %v3156_v13  ;;  %v11335_v8 = vmax.f32 %v3126_v28, %v3158_v50  ;;  %7564 = vmatpush1.bf16.msra.mxu1 %v7563_v9  ;;  %v7581_v55 = vpack.c.bf16 %v3382_v1, %v3378_v7  ;;  %v7583_v20 = vpack.c.bf16 %v3381_v11, %v3377_v59 }
 0xb09   :  { %7566 = vmatprep.subr.bf16.mxu1 %v7565_v47  ;;  %v3043_v22 = vrot.slane %v11244_v58, %v10996_v29  ;;  %v3062_v60 = vrot.slane %v11256_v45, %v10996_v29 }
 0xb0a   :  { %v7515_v38 = vpack.c.bf16 %v11335_v8, %v11333_v5  ;;  %v3267_v8 = vld [vmem:[%s12884_s21 + $0x50] sm:$0xff] }
 0xb0c   :  { %7568 = vmatpush1.bf16.msra.mxu1 %v7567_v6 }
 0xb0d   :  { %7570 = vmatprep.subr.bf16.mxu1 %v7569_v21 }
 0xb10   :  { %7572 = vmatpush1.bf16.msra.mxu1 %v7571_v16 }
 0xb11   :  { %7574 = vmatprep.subr.bf16.mxu1 %v7573_v35 }
 0xb14   :  { %7576 = vmatpush1.bf16.msra.mxu1 %v7575_v31 }
 0xb15   :  { %7578 = vmatprep.subr.bf16.mxu1 %v7577_v54 }
 0xb18   :  { %7580 = vmatpush1.bf16.msra.mxu1 %v7579_v15 }
 0xb19   :  { %7582 = vmatprep.subr.bf16.mxu1 %v7581_v55 }
 0xb1c   :  { %7584 = vmatpush1.bf16.msra.mxu1 %v7583_v20  ;;  %v3260_v20 = vld [vmem:[%s12884_s21 + $0x18] sm:$0xff] }
 0xb1d   :  { %v7649_v44 = vpack.c.bf16 %v3264_v51, %v3260_v20 }
 0xb36   :  { %v3020_v46 = vpop.permute.xlu0 %3019 }
 0xb37   :  { %v3031_v12 = vsel %vm1283_vm6, %v11004_v56, %v3020_v46  ;;  %v3268_v46 = vld [vmem:[%s12884_s21 + $0x58] sm:$0xff] }
 0xb38   :  { %v3050_v40 = vmul.f32 %v3043_v22, %v3031_v12  ;;  %v3272_v12 = vld [vmem:[%s12884_s21 + $0x78] sm:$0xff] }
 0xb39   :  { %v7653_v5 = vpack.c.bf16 %v3272_v12, %v3268_v46 }
 0xb3a   :  { %v3069_v23 = vadd.f32 %v3062_v60, %v3050_v40  ;;  %v3022_v48 = vpop.permute.xlu1 %3021  ;;  %v3077_v40 = vld [vmem:[#allocation8] sm:$0xff] }
 0xb3b   :  { %v3032_v28 = vsel %vm1283_vm6, %v11012_v26, %v3022_v48  ;;  %v3271_v48 = vld [vmem:[%s12884_s21 + $0x70] sm:$0xff] }
 0xb3c   :  { %v3052_v53 = vmul.f32 %v3043_v22, %v3032_v28  ;;  %v3087_v50 = vrot.slane %v3069_v23, 1  ;;  %v3127_v9 = vrot.slane %v3069_v23, 2  ;;  %v3280_v28 = vld [vmem:[%s12884_s21 + $0xb8] sm:$0xff] }
 0xb3e   :  { %v3071_v24 = vadd.f32 %v3062_v60, %v3052_v53  ;;  %v3024_v13 = vpop.permute.xlu0 %3023  ;;  %v3078_v53 = vld [vmem:[#allocation8 + $0x8] sm:$0xf] }
 0xb3f   :  { %v3033_v58 = vsel %vm1283_vm6, %v11019_v36, %v3024_v13 }
 0xb40   :  { %v3088_v47 = vrot.slane %v3071_v24, 1  ;;  %v3128_v45 = vrot.slane %v3071_v24, 2  ;;  %v3054_v43 = vmul.f32 %v3043_v22, %v3033_v58  ;;  %v3279_v58 = vld [vmem:[%s12884_s21 + $0xb0] sm:$0xff] }
 0xb42   :  { %v3073_v18 = vadd.f32 %v3062_v60, %v3054_v43  ;;  %v3026_v4 = vpop.permute.xlu1 %3025  ;;  %v3089_v56 = vsel %vm876_vm14, %v3087_v50, %v3088_v47  ;;  %v3129_v39 = vsel %vm12892_vm9, %v3127_v9, %v3128_v45  ;;  %v3275_v50 = vld [vmem:[%s12884_s21 + $0x90] sm:$0xff]  ;;  %v3284_v9 = vld [vmem:[%s12884_s21 + $0xd8] sm:$0xff] }
 0xb43   :  { %v3034_v26 = vsel %vm1283_vm6, %v11029_v52, %v3026_v4  ;;  %v3111_v6 = vsel %vm2384_vm13, %v3089_v56, -inf  ;;  %v3151_v25 = vsel %vm2775_vm0, %v3129_v39, -inf  ;;  %vm12894_vm6 = vcmask 1042432   ;;  %vm12895_vm13 = vmmov %vm12888_vm7  ;;  %v3287_v4 = vld [vmem:[%s12884_s21 + $0xf0] sm:$0xff]  ;;  %v3292_v56 = vld [vmem:[%s12884_s21 + $0x118] sm:$0xff] }
 0xb44   :  { %v3093_v21 = vrot.slane %v3073_v18, 1  ;;  %v3133_v49 = vrot.slane %v3073_v18, 2  ;;  %v3056_v14 = vmul.f32 %v3043_v22, %v3034_v26  ;;  %v3119_v36 = vmax.f32 %v3069_v23, %v3111_v6  ;;  %vm12896_vm0 = vmmov %vm12889_vm10  ;;  %v3296_v39 = vld [vmem:[%s12884_s21 + $0x138] sm:$0xff] }
 0xb45   :  { %vm12898_vm7 = vmmov %vm12891_vm5  ;;  %v7665_v6 = vpack.c.bf16 %v3296_v39, %v3292_v56  ;;  %v3363_v56 = vld [vmem:[%s12884_s21 + $0x350] sm:$0xff] }
 0xb46   :  { %v3075_v61 = vadd.f32 %v3062_v60, %v3056_v14  ;;  %v3094_v16 = vsel %vm876_vm14, %v3088_v47, %v3093_v21  ;;  %v3134_v35 = vsel %vm12893_vm11, %v3128_v45, %v3133_v49  ;;  %v3159_v41 = vmax.f32 %v3119_v36, %v3151_v25  ;;  %v3263_v60 = vld [vmem:[%s12884_s21 + $0x30] sm:$0xff]  ;;  %v3288_v47 = vld [vmem:[%s12884_s21 + $0xf8] sm:$0xff] }
 0xb47   :  { %v3113_v32 = vsel %vm2385_vm2, %v3094_v16, -inf  ;;  %v3153_v30 = vsel %vm2776_vm8, %v3134_v35, -inf  ;;  %vm12897_vm2 = vmmov %vm12890_vm15  ;;  %v7651_v23 = vpack.c.bf16 %v3263_v60, %v3259_v33  ;;  %v7659_v45 = vpack.c.bf16 %v3279_v58, %v3275_v50  ;;  %v3300_v14 = vld [vmem:[%s12884_s21 + $0x158] sm:$0xff]  ;;  %v3299_v16 = vld [vmem:[%s12884_s21 + $0x150] sm:$0xff] }
 0xb48   :  { %v3097_v52 = vrot.slane %v3075_v61, 1  ;;  %v3137_v19 = vrot.slane %v3075_v61, 2  ;;  %v3121_v27 = vmax.f32 %v3071_v24, %v3113_v32  ;;  %v7655_v24 = vpack.c.bf16 %v3271_v48, %v3267_v8  ;;  %v3304_v36 = vld [vmem:[%s12884_s21 + $0x178] sm:$0xff]  ;;  %v3303_v35 = vld [vmem:[%s12884_s21 + $0x170] sm:$0xff] }
 0xb49   :  { %v7661_v43 = vpack.c.bf16 %v3288_v47, %v3284_v9  ;;  %v3312_v32 = vld [vmem:[%s12884_s21 + $0x1b8] sm:$0xff]  ;;  %v3355_v9 = vld [vmem:[%s12884_s21 + $0x310] sm:$0xff]  ;;  %vm12899_vm15 = vcmask 1040384  }
 0xb4a   :  { %v3098_v57 = vsel %vm876_vm14, %v3093_v21, %v3097_v52  ;;  %v3109_v31 = vsel %vm12894_vm6, %v3097_v52, -inf  ;;  %v3138_v62 = vsel %vm12895_vm13, %v3133_v49, %v3137_v19  ;;  %v3149_v54 = vsel %vm12896_vm0, %v3137_v19, -inf  ;;  %v3291_v21 = vld [vmem:[%s12884_s21 + $0x110] sm:$0xff]  ;;  %v3340_v33 = vld [vmem:[%s12884_s21 + $0x298] sm:$0xff]  ;;  %vm12900_vm5 = vmmov %vm12899_vm15 }
 0xb4b   :  { %v3115_v34 = vsel %vm2386_vm4, %v3098_v57, -inf  ;;  %v3117_v2 = vsel %vm2387_vm3, %v3109_v31, -inf  ;;  %v3161_v15 = vmax.f32 %v3121_v27, %v3153_v30  ;;  %v3155_v55 = vsel %vm12897_vm2, %v3138_v62, -inf  ;;  %v3295_v49 = vld [vmem:[%s12884_s21 + $0x130] sm:$0xff]  ;;  %v3316_v31 = vld [vmem:[%s12884_s21 + $0x1d8] sm:$0xff]  ;;  %vm12901_vm11 = vmmov %vm12900_vm5 }
 0xb4c   :  { %v3123_v7 = vmax.f32 %v3073_v18, %v3115_v34  ;;  %v3125_v1 = vmax.f32 %v3075_v61, %v3117_v2  ;;  %v3157_v0 = vsel %vm12898_vm7, %v3149_v54, -inf  ;;  %vm3167_vm4 = vcmask 228352   ;;  %v3283_v18 = vld [vmem:[%s12884_s21 + $0xd0] sm:$0xff]  ;;  %v3320_v62 = vld [vmem:[%s12884_s21 + $0x1f8] sm:$0xff]  ;;  %vm12902_vm6 = vmmov %vm12900_vm5 }
 0xb4d   :  { %v7513_v11 = vpack.c.bf16 %v3161_v15, %v3159_v41  ;;  %v7663_v26 = vpack.c.bf16 %v3287_v4, %v3283_v18  ;;  %v7667_v25 = vpack.c.bf16 %v3295_v49, %v3291_v21  ;;  %v7669_v61 = vpack.c.bf16 %v3304_v36, %v3300_v14  ;;  %v3308_v41 = vld [vmem:[%s12884_s21 + $0x198] sm:$0xff]  ;;  %v3307_v27 = vld [vmem:[%s12884_s21 + $0x190] sm:$0xff]  ;;  %vm12905_vm7 = vmmov %vm12900_vm5 }
 0xb4e   :  { %v3165_v59 = vmax.f32 %v3125_v1, %v3157_v0  ;;  %v3163_v10 = vmax.f32 %v3123_v7, %v3155_v55  ;;  %v7671_v52 = vpack.c.bf16 %v3303_v35, %v3299_v16  ;;  %v7673_v19 = vpack.c.bf16 %v3312_v32, %v3308_v41  ;;  %v3311_v57 = vld [vmem:[%s12884_s21 + $0x1b0] sm:$0xff]  ;;  %v3324_v7 = vld [vmem:[%s12884_s21 + $0x218] sm:$0xff] }
 0xb4f   :  { %7514 = vmatpush1.bf16.msra.mxu0 %v7513_v11  ;;  %v7675_v54 = vpack.c.bf16 %v3311_v57, %v3307_v27  ;;  %v7677_v34 = vpack.c.bf16 %v3320_v62, %v3316_v31  ;;  %v3315_v2 = vld [vmem:[%s12884_s21 + $0x1d0] sm:$0xff]  ;;  %v3328_v1 = vld [vmem:[%s12884_s21 + $0x238] sm:$0xff]  ;;  %v3390_v27 = vld [vmem:[%s12884_s21 + $0x428] sm:$0xff]  ;;  %vm12903_vm13 = vcmask 1042432  }
 0xb50   :  { %v7518_v22 = vpack.c.bf16 %v3165_v59, %v3163_v10  ;;  %7517 = vmatprep.subr.msk.bf16.mxu0 %vm10841_vm1, %v7515_v38  ;;  %v3276_v38 = vld [vmem:[%s12884_s21 + $0x98] sm:$0xff]  ;;  %v3319_v30 = vld [vmem:[%s12884_s21 + $0x1f0] sm:$0xff]  ;;  %v7681_v55 = vpack.c.bf16 %v3328_v1, %v3324_v7  ;;  %vm12904_vm0 = vmmov %vm12903_vm13 }
 0xb51   :  { %v7657_v13 = vpack.c.bf16 %v3280_v28, %v3276_v38  ;;  %v7679_v15 = vpack.c.bf16 %v3319_v30, %v3315_v2  ;;  %v3323_v0 = vld [vmem:[%s12884_s21 + $0x210] sm:$0xff]  ;;  %v3332_v11 = vld [vmem:[%s12884_s21 + $0x258] sm:$0xff]  ;;  %v3385_v2 = vld [vmem:[%s12884_s21 + $0x400] sm:$0xff] }
 0xb52   :  { %v3327_v59 = vld [vmem:[%s12884_s21 + $0x230] sm:$0xff]  ;;  %v3336_v10 = vld [vmem:[%s12884_s21 + $0x278] sm:$0xff]  ;;  %v3389_v30 = vld [vmem:[%s12884_s21 + $0x420] sm:$0xff] }
 0xb53   :  { %7520 = vmatpush1.bf16.msk.msra.mxu0 %vm10841_vm1, %v7518_v22  ;;  %v7683_v20 = vpack.c.bf16 %v3327_v59, %v3323_v0  ;;  %v7685_v51 = vpack.c.bf16 %v3336_v10, %v3332_v11  ;;  %v3331_v22 = vld [vmem:[%s12884_s21 + $0x250] sm:$0xff]  ;;  %v3344_v60 = vld [vmem:[%s12884_s21 + $0x2b8] sm:$0xff]  ;;  %v11482_v11 = vld [vmem:[%s12884_s21 + $0x440] sm:$0xff] }
 0xb54   :  { %7650 = vmatprep.subr.bf16.mxu0 %v7649_v44  ;;  %v3335_v44 = vld [vmem:[%s12884_s21 + $0x270] sm:$0xff]  ;;  %v7689_v12 = vpack.c.bf16 %v3344_v60, %v3340_v33  ;;  %v3352_v8 = vld [vmem:[%s12884_s21 + $0x2f8] sm:$0xff]  ;;  %v11485_v10 = vld [vmem:[%s12884_s21 + $0x460] sm:$0xff] }
 0xb55   :  { %v7687_v46 = vpack.c.bf16 %v3335_v44, %v3331_v22  ;;  %v3347_v28 = vld [vmem:[%s12884_s21 + $0x2d0] sm:$0xff]  ;;  %v3388_v57 = vld [vmem:[%s12884_s21 + $0x418] sm:$0xff]  ;;  %v11496_v33 = vld [vmem:[%s12884_s21 + $0x488] sm:$0xff] }
 0xb56   :  { %6740 = vmatmul.mubr.msk.f32.vlgmr.msra.gmra.mrb[32].mxu0 %vm3167_vm4, %v3077_v40  ;;  %v3339_v40 = vld [vmem:[%s12884_s21 + $0x290] sm:$0xff]  ;;  %v3392_v62 = vld [vmem:[%s12884_s21 + $0x438] sm:$0xff]  ;;  %v11499_v60 = vld [vmem:[%s12884_s21 + $0x4a8] sm:$0xff] }
 0xb57   :  { %3250 = vmatprep.mubr.f32.mxu0 %v9554_v42  ;;  %7652 = vmatpush1.bf16.msra.mxu0 %v7651_v23  ;;  %v3343_v23 = vld [vmem:[%s12884_s21 + $0x2b0] sm:$0xff]  ;;  %v3396_v0 = vld [vmem:[%s12884_s21 + $0x458] sm:$0xff] }
 0xb58   :  { %7654 = vmatprep.subr.bf16.mxu0 %v7653_v5  ;;  %v3348_v5 = vld [vmem:[%s12884_s21 + $0x2d8] sm:$0xff]  ;;  %v7691_v48 = vpack.c.bf16 %v3343_v23, %v3339_v40  ;;  %v3359_v47 = vld [vmem:[%s12884_s21 + $0x330] sm:$0xff]  ;;  %v7587_v23 = vpack.c.bf16 %v3389_v30, %v3385_v2 }
 0xb59   :  { %v7693_v38 = vpack.c.bf16 %v3352_v8, %v3348_v5  ;;  %v7699_v18 = vpack.c.bf16 %v3359_v47, %v3355_v9  ;;  %v3367_v39 = vld [vmem:[%s12884_s21 + $0x370] sm:$0xff]  ;;  %v3400_v59 = vld [vmem:[%s12884_s21 + $0x478] sm:$0xff]  ;;  %v11511_v8 = vld [vmem:[%s12884_s21 + $0x480] sm:$0xff] }
 0xb5a   :  { %6741 = vmatmul.mubr.msk.f32.gmra.mrb[34].mxu0 %vm3167_vm4, %v3078_v53  ;;  %v3351_v53 = vld [vmem:[%s12884_s21 + $0x2f0] sm:$0xff]  ;;  %v7703_v21 = vpack.c.bf16 %v3367_v39, %v3363_v56  ;;  %v11530_v9 = vld [vmem:[%s12884_s21 + $0x4e8] sm:$0xff]  ;;  %vm12906_vm4 = vmmov %vm12900_vm5 }
 0xb5b   :  { %7656 = vmatpush1.bf16.msra.mxu0 %v7655_v24  ;;  %v3356_v24 = vld [vmem:[%s12884_s21 + $0x318] sm:$0xff]  ;;  %v7695_v50 = vpack.c.bf16 %v3351_v53, %v3347_v28  ;;  %v3371_v14 = vld [vmem:[%s12884_s21 + $0x390] sm:$0xff] }
 0xb5c   :  { %7658 = vmatprep.subr.bf16.mxu0 %v7657_v13  ;;  %v3360_v13 = vld [vmem:[%s12884_s21 + $0x338] sm:$0xff]  ;;  %v3375_v36 = vld [vmem:[%s12884_s21 + $0x3b0] sm:$0xff] }
 0xb5d   :  { %v7697_v58 = vpack.c.bf16 %v3360_v13, %v3356_v24  ;;  %v7707_v16 = vpack.c.bf16 %v3375_v36, %v3371_v14  ;;  %v3379_v41 = vld [vmem:[%s12884_s21 + $0x3d0] sm:$0xff]  ;;  %v7717_v13 = vpack.c.bf16 %v3400_v59, %v3396_v0 }
 0xb5e   :  { %v3383_v32 = vld [vmem:[%s12884_s21 + $0x3f0] sm:$0xff] }
 0xb5f   :  { %7660 = vmatpush1.bf16.msra.mxu0 %v7659_v45  ;;  %v3364_v45 = vld [vmem:[%s12884_s21 + $0x358] sm:$0xff]  ;;  %v3387_v7 = vld [vmem:[%s12884_s21 + $0x410] sm:$0xff] }
 0xb60   :  { %7662 = vmatprep.subr.bf16.mxu0 %v7661_v43  ;;  %v3368_v43 = vld [vmem:[%s12884_s21 + $0x378] sm:$0xff]  ;;  %v3391_v1 = vld [vmem:[%s12884_s21 + $0x430] sm:$0xff] }
 0xb61   :  { %v7701_v4 = vpack.c.bf16 %v3368_v43, %v3364_v45  ;;  %v11492_v22 = vld [vmem:[%s12884_s21 + $0x450] sm:$0xff]  ;;  %v7715_v5 = vpack.c.bf16 %v3391_v1, %v3387_v7  ;;  %v7591_v45 = vpack.c.bf16 %v11485_v10, %v11482_v11  ;;  %v3409_v7 = vld [vmem:[%s12884_s21 + $0x4c0] sm:$0xff] }
 0xb62   :  { %v3399_v44 = vld [vmem:[%s12884_s21 + $0x470] sm:$0xff]  ;;  %v3413_v1 = vld [vmem:[%s12884_s21 + $0x4e0] sm:$0xff] }
 0xb63   :  { %7664 = vmatpush1.bf16.msra.mxu0 %v7663_v26  ;;  %v3372_v26 = vld [vmem:[%s12884_s21 + $0x398] sm:$0xff]  ;;  %v7719_v43 = vpack.c.bf16 %v3399_v44, %v11492_v22  ;;  %v3411_v11 = vld [vmem:[%s12884_s21 + $0x4d0] sm:$0xff]  ;;  %v3418_v22 = vld [vmem:[%s12884_s21 + $0x508] sm:$0xff] }
 0xb64   :  { %7666 = vmatprep.subr.bf16.mxu0 %v7665_v6  ;;  %v3376_v6 = vld [vmem:[%s12884_s21 + $0x3b8] sm:$0xff]  ;;  %v3415_v10 = vld [vmem:[%s12884_s21 + $0x4f0] sm:$0xff] }
 0xb65   :  { %v7705_v49 = vpack.c.bf16 %v3376_v6, %v3372_v26 }
 0xb67   :  { %7668 = vmatpush1.bf16.msra.mxu0 %v7667_v25  ;;  %v3380_v25 = vld [vmem:[%s12884_s21 + $0x3d8] sm:$0xff] }
 0xb68   :  { %7670 = vmatprep.subr.bf16.mxu0 %v7669_v61  ;;  %v3384_v61 = vld [vmem:[%s12884_s21 + $0x3f8] sm:$0xff] }
 0xb69   :  { %v7709_v35 = vpack.c.bf16 %v3384_v61, %v3380_v25 }
 0xb6b   :  { %7672 = vmatpush1.bf16.msra.mxu0 %v7671_v52  ;;  %v7711_v52 = vpack.c.bf16 %v3383_v32, %v3379_v41 }
 0xb6c   :  { %7674 = vmatprep.subr.bf16.mxu0 %v7673_v19  ;;  %v3386_v19 = vld [vmem:[%s12884_s21 + $0x408] sm:$0xff] }
 0xb6d   :  { %v7585_v31 = vpack.c.bf16 %v3390_v27, %v3386_v19 }
 0xb6f   :  { %7676 = vmatpush1.bf16.msra.mxu0 %v7675_v54  ;;  %v7713_v54 = vpack.c.bf16 %v3392_v62, %v3388_v57  ;;  %7586 = vmatprep.subr.bf16.mxu1 %v7585_v31  ;;  %v3412_v62 = vld [vmem:[%s12884_s21 + $0x4d8] sm:$0xff] }
 0xb70   :  { %7678 = vmatprep.subr.bf16.mxu0 %v7677_v34  ;;  %v11471_v34 = vpop.permute.xlu0 %3667 }
 0xb71   :  { %vm3672_vm3 = vcmp.eq.s32.totalorder %v11471_v34, 1 }
 0xb73   :  { %7680 = vmatpush1.bf16.msra.mxu0 %v7679_v15  ;;  %v3394_v15 = vld [vmem:[%s12884_s21 + $0x448] sm:$0xff] }
 0xb74   :  { %7682 = vmatprep.subr.bf16.mxu0 %v7681_v55  ;;  %v3398_v55 = vld [vmem:[%s12884_s21 + $0x468] sm:$0xff] }
 0xb75   :  { %v7589_v24 = vpack.c.bf16 %v3398_v55, %v3394_v15 }
 0xb77   :  { %7684 = vmatpush1.bf16.msra.mxu0 %v7683_v20  ;;  %v11487_v20 = vpop.permute.xlu0 %3670 }
 0xb78   :  { %7686 = vmatprep.subr.bf16.mxu0 %v7685_v51  ;;  %v11489_v51 = vpop.permute.xlu1 %3699  ;;  %vm3673_vm8 = vcmp.eq.s32.totalorder %v11487_v20, 1 }
 0xb79   :  { %vm3704_vm10 = vcmp.eq.s32.totalorder %v11489_v51, 1  ;;  %v4825_v51 = vld [vmem:[%s12924_s12 + $0x10] sm:$0xff] }
 0xb7b   :  { %7688 = vmatpush1.bf16.msra.mxu0 %v7687_v46  ;;  %v11502_v46 = vld [vmem:[%s12884_s21 + $0x498] sm:$0xff] }
 0xb7c   :  { %7690 = vmatprep.subr.bf16.mxu0 %v7689_v12  ;;  %v11505_v12 = vld [vmem:[%s12884_s21 + $0x4b8] sm:$0xff]  ;;  %v11548_v26 = vpop.permute.xlu1 %3702 }
 0xb7d   :  { %v7721_v56 = vpack.c.bf16 %v11505_v12, %v11502_v46  ;;  %vm3705_vm9 = vcmp.eq.s32.totalorder %v11548_v26, 1 }
 0xb7f   :  { %7692 = vmatpush1.bf16.msra.mxu0 %v7691_v48  ;;  %v11514_v48 = vld [vmem:[%s12884_s21 + $0x4a0] sm:$0xff] }
 0xb80   :  { %7694 = vmatprep.subr.bf16.mxu0 %v7693_v38  ;;  %v11517_v38 = vld [vmem:[%s12884_s21 + $0x490] sm:$0xff]  ;;  %v7595_v39 = vpack.c.bf16 %v11514_v48, %v11511_v8 }
 0xb83   :  { %7696 = vmatpush1.bf16.msra.mxu0 %v7695_v50  ;;  %v11524_v50 = vld [vmem:[%s12884_s21 + $0x4b0] sm:$0xff] }
 0xb84   :  { %7698 = vmatprep.subr.bf16.mxu0 %v7697_v58  ;;  %v11527_v58 = vld [vmem:[%s12884_s21 + $0x4c8] sm:$0xff] }
 0xb85   :  { %v7597_v36 = vpack.c.bf16 %v11530_v9, %v11527_v58 }
 0xb87   :  { %7700 = vmatpush1.bf16.msra.mxu0 %v7699_v18 }
 0xb88   :  { %7702 = vmatprep.subr.bf16.mxu0 %v7701_v4  ;;  %v7593_v4 = vpack.c.bf16 %v11499_v60, %v11496_v33 }
 0xb8b   :  { %7704 = vmatpush1.bf16.msra.mxu0 %v7703_v21 }
 0xb8c   :  { %7706 = vmatprep.subr.bf16.mxu0 %v7705_v49  ;;  %v7723_v49 = vpack.c.bf16 %v11524_v50, %v11517_v38  ;;  %v3421_v50 = vld [vmem:[%s12884_s21 + $0x520] sm:$0xff] }
 0xb8f   :  { %7708 = vmatpush1.bf16.msra.mxu0 %v7707_v16 }
 0xb90   :  { %7710 = vmatprep.subr.bf16.mxu0 %v7709_v35 }
 0xb93   :  { %7712 = vmatpush1.bf16.msra.mxu0 %v7711_v52 }
 0xb94   :  { %7714 = vmatprep.subr.bf16.mxu0 %v7713_v54  ;;  %v3416_v54 = vld [vmem:[%s12884_s21 + $0x4f8] sm:$0xff] }
 0xb95   :  { %v7725_v12 = vpack.c.bf16 %v3416_v54, %v3412_v62  ;;  %v3433_v62 = vld [vmem:[%s12884_s21 + $0x580] sm:$0xff] }
 0xb96   :  { %v3437_v54 = vld [vmem:[%s12884_s21 + $0x5a0] sm:$0xff] }
 0xc29   :  { %v11508_v40 = vpop.f32.mrb[32].mxu0 }
 0xc2a   :  { %v3650_v28 = vrot.slane %v11508_v40, 7  ;;  %v11521_v53 = vpop.f32.mrb[33].mxu0  ;;  %v3682_v25 = vrot.slane %v11508_v40, 1 }
 0xc2b   :  { %v3651_v47 = vrot.slane %v11521_v53, 7  ;;  %3799 = vmatprep.mubr.f32.mxu1 %v11521_v53  ;;  %3953 = vmatprep.mubr.f32.mxu0 %v11521_v53  ;;  %v3685_v52 = vrot.slane %v11521_v53, 1 }
 0xc2c   :  { %v3660_v18 = vsel %vm12899_vm15, -inf, %v3650_v28  ;;  %3800 = vmatmul.mubr.f32.vlgmr.msra.gmra.mrb[40].mxu1 %v11508_v40  ;;  %3954 = vmatmul.mubr.f32.vlgmr.msra.gmra.mrb[36].mxu0 %v11508_v40 }
 0xc2d   :  { %v3674_v6 = vsel %vm3672_vm3, %v3660_v18, -inf  ;;  %7588 = vmatpush1.bf16.msra.mxu1 %v7587_v23  ;;  %7716 = vmatpush1.bf16.msra.mxu0 %v7715_v5  ;;  %v11552_v21 = vpop.f32.mrb[34].mxu0  ;;  %v3661_v14 = vsel %vm12900_vm5, -inf, %v3651_v47  ;;  %v3420_v23 = vld [vmem:[%s12884_s21 + $0x518] sm:$0xff]  ;;  %vm12907_vm5 = vmmov %vm12904_vm0 }
 0xc2e   :  { %v3652_v61 = vrot.slane %v11552_v21, 7  ;;  %v3683_v16 = vrot.slane %v11552_v21, 1  ;;  %v3254_v35 = vpop.f32.mrb[35].mxu0  ;;  %7590 = vmatprep.subr.bf16.mxu1 %v7589_v24  ;;  %7718 = vmatprep.subr.bf16.mxu0 %v7717_v13  ;;  %v3675_v41 = vsel %vm3672_vm3, %v3661_v14, -inf  ;;  %v3678_v32 = vmax.f32 %v3674_v6, %v11508_v40  ;;  %v3422_v40 = vld [vmem:[%s12884_s21 + $0x528] sm:$0xff]  ;;  %v3424_v5 = vld [vmem:[%s12884_s21 + $0x538] sm:$0xff] }
 0xc2f   :  { %v3654_v19 = vrot.slane %v3254_v35, 7  ;;  %v3686_v27 = vrot.slane %v3254_v35, 1  ;;  %3805 = vmatprep.mubr.f32.mxu1 %v3254_v35  ;;  %3959 = vmatprep.mubr.f32.mxu0 %v3254_v35  ;;  %v3679_v31 = vmax.f32 %v3675_v41, %v11521_v53  ;;  %v7599_v53 = vpack.c.bf16 %v3413_v1, %v3409_v7  ;;  %v3417_v13 = vld [vmem:[%s12884_s21 + $0x500] sm:$0xff]  ;;  %v3432_v14 = vld [vmem:[%s12884_s21 + $0x578] sm:$0xff]  ;;  %v3431_v41 = vld [vmem:[%s12884_s21 + $0x570] sm:$0xff] }
 0xc30   :  { %v3684_v57 = vsel %vm876_vm14, %v3682_v25, %v3683_v16  ;;  %3806 = vmatmul.mubr.f32.gmra.mrb[42].mxu1 %v11552_v21  ;;  %3960 = vmatmul.mubr.f32.gmra.mrb[38].mxu0 %v11552_v21  ;;  %v3653_v2 = vsel %vm12901_vm11, %v3650_v28, %v3652_v61  ;;  %v3692_v60 = vsel %vm12904_vm0, %v3683_v16, -inf  ;;  %v7727_v24 = vpack.c.bf16 %v3415_v10, %v3411_v11  ;;  %v3425_v16 = vld [vmem:[%s12884_s21 + $0x540] sm:$0xff]  ;;  %v3435_v7 = vld [vmem:[%s12884_s21 + $0x590] sm:$0xff]  ;;  %vm12908_vm11 = vmmov %vm12906_vm4 }
 0xc31   :  { %7592 = vmatpush1.bf16.msra.mxu1 %v7591_v45  ;;  %7720 = vmatpush1.bf16.msra.mxu0 %v7719_v43  ;;  %v3687_v30 = vsel %vm876_vm14, %v3685_v52, %v3686_v27  ;;  %v3706_v15 = vsel %vm3704_vm10, %v3684_v57, -inf  ;;  %v3655_v55 = vsel %vm12902_vm6, %v3651_v47, %v3654_v19  ;;  %v3693_v0 = vsel %vm12903_vm13, %v3686_v27, -inf  ;;  %v3438_v52 = vld [vmem:[%s12884_s21 + $0x5a8] sm:$0xff]  ;;  %v3436_v19 = vld [vmem:[%s12884_s21 + $0x598] sm:$0xff]  ;;  %v3439_v1 = vld [vmem:[%s12884_s21 + $0x5b0] sm:$0xff] }
 0xc32   :  { %7594 = vmatprep.subr.bf16.mxu1 %v7593_v4  ;;  %7722 = vmatprep.subr.bf16.mxu0 %v7721_v56  ;;  %v3707_v59 = vsel %vm3704_vm10, %v3687_v30, -inf  ;;  %v11586_v44 = vmax.f32 %v3678_v32, %v3706_v15  ;;  %v3677_v33 = vsel %vm3673_vm8, %v3655_v55, -inf  ;;  %v3676_v48 = vsel %vm3673_vm8, %v3653_v2, -inf  ;;  %v3419_v4 = vld [vmem:[%s12884_s21 + $0x510] sm:$0xff]  ;;  %v3434_v32 = vld [vmem:[%s12884_s21 + $0x588] sm:$0xff]  ;;  %v3440_v27 = vld [vmem:[%s12884_s21 + $0x5b8] sm:$0xff] }
 0xc33   :  { %v3711_v46 = vmax.f32 %v3679_v31, %v3707_v59  ;;  %v3681_v8 = vmax.f32 %v3677_v33, %v3254_v35  ;;  %v3709_v38 = vsel %vm3705_vm9, %v3693_v0, -inf  ;;  %v3680_v28 = vmax.f32 %v3676_v48, %v11552_v21  ;;  %v3423_v56 = vld [vmem:[%s12884_s21 + $0x530] sm:$0xff]  ;;  %v3430_v21 = vld [vmem:[%s12884_s21 + $0x568] sm:$0xff]  ;;  %v3429_v35 = vld [vmem:[%s12884_s21 + $0x560] sm:$0xff] }
 0xc34   :  { %v3708_v45 = vsel %vm3705_vm9, %v3692_v60, -inf  ;;  %v7601_v43 = vpack.c.bf16 %v3422_v40, %v3418_v22  ;;  %v7729_v18 = vpack.c.bf16 %v3424_v5, %v3420_v23  ;;  %v7603_v25 = vpack.c.bf16 %v3421_v50, %v3417_v13  ;;  %v3442_v15 = vld [vmem:[%s12884_s21 + $0x5c8] sm:$0xff]  ;;  %v3444_v0 = vld [vmem:[%s12884_s21 + $0x5d8] sm:$0xff]  ;;  %v3441_v22 = vld [vmem:[%s12884_s21 + $0x5c0] sm:$0xff] }
 0xc35   :  { %7596 = vmatpush1.bf16.msra.mxu1 %v7595_v39  ;;  %7724 = vmatpush1.bf16.msra.mxu0 %v7723_v49  ;;  %v11601_v47 = vmax.f32 %v3681_v8, %v3709_v38  ;;  %v3426_v39 = vld [vmem:[%s12884_s21 + $0x548] sm:$0xff]  ;;  %v11608_v6 = vmax.f32 %v3680_v28, %v3708_v45  ;;  %v3428_v49 = vld [vmem:[%s12884_s21 + $0x558] sm:$0xff]  ;;  %v7731_v61 = vpack.c.bf16 %v3423_v56, %v3419_v4  ;;  %v3445_v33 = vld [vmem:[%s12884_s21 + $0x5e0] sm:$0xff]  ;;  %vm12910_vm13 = vcmask 1041408  }
 0xc36   :  { %3876 = vmatprep.mubr.f32.mxu1 %v3711_v46  ;;  %4030 = vmatprep.mubr.f32.mxu0 %v3711_v46  ;;  %v7605_v58 = vpack.c.bf16 %v3430_v21, %v3426_v39  ;;  %v7733_v9 = vpack.c.bf16 %v3432_v14, %v3428_v49  ;;  %v7607_v57 = vpack.c.bf16 %v3429_v35, %v3425_v16  ;;  %v3446_v55 = vld [vmem:[%s12884_s21 + $0x5e8] sm:$0xff]  ;;  %v3448_v59 = vld [vmem:[%s12884_s21 + $0x5f8] sm:$0xff]  ;;  %v3447_v40 = vld [vmem:[%s12884_s21 + $0x5f0] sm:$0xff] }
 0xc37   :  { %7598 = vmatprep.subr.bf16.mxu1 %v7597_v36  ;;  %7726 = vmatprep.subr.bf16.mxu0 %v7725_v12  ;;  %v3427_v36 = vld [vmem:[%s12884_s21 + $0x550] sm:$0xff]  ;;  %v7609_v2 = vpack.c.bf16 %v3438_v52, %v3434_v32  ;;  %v7737_v30 = vpack.c.bf16 %v3440_v27, %v3436_v19  ;;  %v7611_v11 = vpack.c.bf16 %v3437_v54, %v3433_v62  ;;  %v3450_v23 = vld [vmem:[%s12884_s21 + $0x608] sm:$0xff]  ;;  %v3452_v8 = vld [vmem:[%s12884_s21 + $0x618] sm:$0xff] }
 0xc38   :  { %v7735_v31 = vpack.c.bf16 %v3431_v41, %v3427_v36  ;;  %v7739_v10 = vpack.c.bf16 %v3439_v1, %v3435_v7  ;;  %v7613_v60 = vpack.c.bf16 %v3446_v55, %v3442_v15  ;;  %v7741_v46 = vpack.c.bf16 %v3448_v59, %v3444_v0  ;;  %v3443_v12 = vld [vmem:[%s12884_s21 + $0x5d0] sm:$0xff]  ;;  %v3454_v5 = vld [vmem:[%s12884_s21 + $0x628] sm:$0xff]  ;;  %v3456_v48 = vld [vmem:[%s12884_s21 + $0x638] sm:$0xff] }
 0xc39   :  { %7600 = vmatpush1.bf16.msra.mxu1 %v7599_v53  ;;  %7728 = vmatpush1.bf16.msra.mxu0 %v7727_v24  ;;  %v7615_v38 = vpack.c.bf16 %v3445_v33, %v3441_v22  ;;  %v7743_v28 = vpack.c.bf16 %v3447_v40, %v3443_v12  ;;  %v3449_v53 = vld [vmem:[%s12884_s21 + $0x600] sm:$0xff]  ;;  %v7617_v13 = vpack.c.bf16 %v3454_v5, %v3450_v23  ;;  %v3451_v45 = vld [vmem:[%s12884_s21 + $0x610] sm:$0xff]  ;;  %v3462_v4 = vld [vmem:[%s12884_s21 + $0x668] sm:$0xff] }
 0xc3a   :  { %7602 = vmatprep.subr.bf16.mxu1 %v7601_v43  ;;  %7730 = vmatprep.subr.bf16.mxu0 %v7729_v18  ;;  %v3453_v24 = vld [vmem:[%s12884_s21 + $0x620] sm:$0xff]  ;;  %v7745_v50 = vpack.c.bf16 %v3456_v48, %v3452_v8  ;;  %v3455_v43 = vld [vmem:[%s12884_s21 + $0x630] sm:$0xff]  ;;  %v3458_v18 = vld [vmem:[%s12884_s21 + $0x648] sm:$0xff] }
 0xc3b   :  { %v3460_v56 = vld [vmem:[%s12884_s21 + $0x658] sm:$0xff]  ;;  %v7619_v21 = vpack.c.bf16 %v3453_v24, %v3449_v53  ;;  %v7747_v49 = vpack.c.bf16 %v3455_v43, %v3451_v45  ;;  %v3457_v14 = vld [vmem:[%s12884_s21 + $0x640] sm:$0xff]  ;;  %v3459_v35 = vld [vmem:[%s12884_s21 + $0x650] sm:$0xff] }
 0xc3c   :  { %v3464_v39 = vld [vmem:[%s12884_s21 + $0x678] sm:$0xff]  ;;  %v3470_v36 = vld [vmem:[%s12884_s21 + $0x6a8] sm:$0xff]  ;;  %v3465_v27 = vld [vmem:[%s12884_s21 + $0x680] sm:$0xff] }
 0xc3d   :  { %7604 = vmatpush1.bf16.msra.mxu1 %v7603_v25  ;;  %7732 = vmatpush1.bf16.msra.mxu0 %v7731_v61  ;;  %v3461_v25 = vld [vmem:[%s12884_s21 + $0x660] sm:$0xff]  ;;  %v7621_v61 = vpack.c.bf16 %v3462_v4, %v3458_v18  ;;  %v7749_v16 = vpack.c.bf16 %v3464_v39, %v3460_v56  ;;  %v3468_v41 = vld [vmem:[%s12884_s21 + $0x698] sm:$0xff]  ;;  %v3467_v54 = vld [vmem:[%s12884_s21 + $0x690] sm:$0xff] }
 0xc3e   :  { %7606 = vmatprep.subr.bf16.mxu1 %v7605_v58  ;;  %7734 = vmatprep.subr.bf16.mxu0 %v7733_v9  ;;  %v3463_v58 = vld [vmem:[%s12884_s21 + $0x670] sm:$0xff]  ;;  %v3466_v9 = vld [vmem:[%s12884_s21 + $0x688] sm:$0xff]  ;;  %v3472_v32 = vld [vmem:[%s12884_s21 + $0x6b8] sm:$0xff]  ;;  %v7623_v52 = vpack.c.bf16 %v3461_v25, %v3457_v14 }
 0xc3f   :  { %v7751_v19 = vpack.c.bf16 %v3463_v58, %v3459_v35  ;;  %v7753_v62 = vpack.c.bf16 %v3472_v32, %v3468_v41  ;;  %v3478_v7 = vld [vmem:[%s12884_s21 + $0x6e8] sm:$0xff]  ;;  %v3476_v1 = vld [vmem:[%s12884_s21 + $0x6d8] sm:$0xff]  ;;  %v3473_v59 = vld [vmem:[%s12884_s21 + $0x6c0] sm:$0xff] }
 0xc40   :  { %v3480_v15 = vld [vmem:[%s12884_s21 + $0x6f8] sm:$0xff]  ;;  %v3475_v33 = vld [vmem:[%s12884_s21 + $0x6d0] sm:$0xff]  ;;  %v3486_v12 = vld [vmem:[%s12884_s21 + $0x728] sm:$0xff] }
 0xc41   :  { %7608 = vmatpush1.bf16.msra.mxu1 %v7607_v57  ;;  %7736 = vmatpush1.bf16.msra.mxu0 %v7735_v31  ;;  %v3469_v57 = vld [vmem:[%s12884_s21 + $0x6a0] sm:$0xff]  ;;  %v7625_v31 = vpack.c.bf16 %v3470_v36, %v3466_v9  ;;  %v7757_v22 = vpack.c.bf16 %v3480_v15, %v3476_v1  ;;  %v3484_v40 = vld [vmem:[%s12884_s21 + $0x718] sm:$0xff]  ;;  %v3483_v24 = vld [vmem:[%s12884_s21 + $0x710] sm:$0xff] }
 0xc42   :  { %7610 = vmatprep.subr.bf16.mxu1 %v7609_v2  ;;  %7738 = vmatprep.subr.bf16.mxu0 %v7737_v30  ;;  %v3471_v2 = vld [vmem:[%s12884_s21 + $0x6b0] sm:$0xff]  ;;  %v3474_v30 = vld [vmem:[%s12884_s21 + $0x6c8] sm:$0xff]  ;;  %v7627_v55 = vpack.c.bf16 %v3469_v57, %v3465_v27  ;;  %v3488_v23 = vld [vmem:[%s12884_s21 + $0x738] sm:$0xff] }
 0xc43   :  { %v7755_v0 = vpack.c.bf16 %v3471_v2, %v3467_v54  ;;  %v3481_v48 = vld [vmem:[%s12884_s21 + $0x700] sm:$0xff]  ;;  %v7761_v53 = vpack.c.bf16 %v3488_v23, %v3484_v40  ;;  %v3494_v45 = vld [vmem:[%s12884_s21 + $0x768] sm:$0xff]  ;;  %v3492_v43 = vld [vmem:[%s12884_s21 + $0x758] sm:$0xff] }
 0xc44   :  { %v3496_v18 = vld [vmem:[%s12884_s21 + $0x778] sm:$0xff]  ;;  %v3489_v39 = vld [vmem:[%s12884_s21 + $0x740] sm:$0xff]  ;;  %v3491_v25 = vld [vmem:[%s12884_s21 + $0x750] sm:$0xff] }
 0xc45   :  { %7612 = vmatpush1.bf16.msra.mxu1 %v7611_v11  ;;  %7740 = vmatpush1.bf16.msra.mxu0 %v7739_v10  ;;  %v3477_v11 = vld [vmem:[%s12884_s21 + $0x6e0] sm:$0xff]  ;;  %v7629_v10 = vpack.c.bf16 %v3478_v7, %v3474_v30  ;;  %v7765_v14 = vpack.c.bf16 %v3496_v18, %v3492_v43  ;;  %v3502_v35 = vld [vmem:[%s12884_s21 + $0x7a8] sm:$0xff]  ;;  %v3500_v58 = vld [vmem:[%s12884_s21 + $0x798] sm:$0xff] }
 0xc46   :  { %7614 = vmatprep.subr.bf16.mxu1 %v7613_v60  ;;  %7742 = vmatprep.subr.bf16.mxu0 %v7741_v46  ;;  %v3479_v60 = vld [vmem:[%s12884_s21 + $0x6f0] sm:$0xff]  ;;  %v3482_v46 = vld [vmem:[%s12884_s21 + $0x708] sm:$0xff]  ;;  %v7631_v5 = vpack.c.bf16 %v3477_v11, %v3473_v59  ;;  %v3504_v9 = vld [vmem:[%s12884_s21 + $0x7b8] sm:$0xff] }
 0xc47   :  { %v7759_v8 = vpack.c.bf16 %v3479_v60, %v3475_v33  ;;  %v3497_v32 = vld [vmem:[%s12884_s21 + $0x780] sm:$0xff]  ;;  %v7769_v27 = vpack.c.bf16 %v3504_v9, %v3500_v58  ;;  %v3499_v57 = vld [vmem:[%s12884_s21 + $0x790] sm:$0xff]  ;;  %v3510_v54 = vld [vmem:[%s12884_s21 + $0x7e8] sm:$0xff] }
 0xc48   :  { %v3508_v2 = vld [vmem:[%s12884_s21 + $0x7d8] sm:$0xff]  ;;  %v3505_v15 = vld [vmem:[%s12884_s21 + $0x7c0] sm:$0xff]  ;;  %v3507_v11 = vld [vmem:[%s12884_s21 + $0x7d0] sm:$0xff] }
 0xc49   :  { %7616 = vmatpush1.bf16.msra.mxu1 %v7615_v38  ;;  %7744 = vmatpush1.bf16.msra.mxu0 %v7743_v28  ;;  %v3485_v38 = vld [vmem:[%s12884_s21 + $0x720] sm:$0xff]  ;;  %v7633_v28 = vpack.c.bf16 %v3486_v12, %v3482_v46  ;;  %v3512_v30 = vld [vmem:[%s12884_s21 + $0x7f8] sm:$0xff]  ;;  %v3546_v60 = vld [vmem:[#allocation28 + $0x100] sm:$0xff] }
 0xc4a   :  { %7618 = vmatprep.subr.bf16.mxu1 %v7617_v13  ;;  %7746 = vmatprep.subr.bf16.mxu0 %v7745_v50  ;;  %v3487_v13 = vld [vmem:[%s12884_s21 + $0x730] sm:$0xff]  ;;  %v3490_v50 = vld [vmem:[%s12884_s21 + $0x748] sm:$0xff]  ;;  %v7635_v4 = vpack.c.bf16 %v3485_v38, %v3481_v48  ;;  %v7773_v59 = vpack.c.bf16 %v3512_v30, %v3508_v2  ;;  %v3532_v38 = vld [vmem:[#allocation28 + $0x90] sm:$0xff] }
 0xc4b   :  { %v7763_v56 = vpack.c.bf16 %v3487_v13, %v3483_v24  ;;  %v3531_v33 = vld [vmem:[#allocation28 + $0x88] sm:$0xff]  ;;  %v3549_v24 = vld [vmem:[#allocation28 + $0x118] sm:$0xff]  ;;  %v3534_v18 = vld [vmem:[#allocation28 + $0xa0] sm:$0xff] }
 0xc4c   :  { %v3547_v46 = vld [vmem:[#allocation28 + $0x108] sm:$0xff]  ;;  %v3517_v43 = vld [vmem:[#allocation28 + $0x18] sm:$0xff]  ;;  %v3552_v58 = vld [vmem:[#allocation28 + $0x130] sm:$0xff] }
 0xc4d   :  { %7620 = vmatpush1.bf16.msra.mxu1 %v7619_v21  ;;  %7748 = vmatpush1.bf16.msra.mxu0 %v7747_v49  ;;  %v3493_v21 = vld [vmem:[%s12884_s21 + $0x760] sm:$0xff]  ;;  %v7637_v49 = vpack.c.bf16 %v3494_v45, %v3490_v50  ;;  %v3515_v48 = vld [vmem:[#allocation28 + $0x8] sm:$0xff]  ;;  %vm12909_vm6 = vmmov %vm12906_vm4 }
 0xc4e   :  { %7622 = vmatprep.subr.bf16.mxu1 %v7621_v61  ;;  %7750 = vmatprep.subr.bf16.mxu0 %v7749_v16  ;;  %v3495_v61 = vld [vmem:[%s12884_s21 + $0x770] sm:$0xff]  ;;  %v3498_v16 = vld [vmem:[%s12884_s21 + $0x788] sm:$0xff]  ;;  %v7639_v36 = vpack.c.bf16 %v3493_v21, %v3489_v39  ;;  %v3516_v45 = vld [vmem:[#allocation28 + $0x10] sm:$0xff] }
 0xc4f   :  { %v7767_v41 = vpack.c.bf16 %v3495_v61, %v3491_v25  ;;  %v3550_v39 = vld [vmem:[#allocation28 + $0x120] sm:$0xff]  ;;  %v3551_v21 = vld [vmem:[#allocation28 + $0x128] sm:$0xff]  ;;  %v3553_v9 = vld [vmem:[#allocation28 + $0x138] sm:$0xff] }
 0xc50   :  { %v3518_v25 = vld [vmem:[#allocation28 + $0x20] sm:$0xff]  ;;  %v3519_v61 = vld [vmem:[#allocation28 + $0x28] sm:$0xff] }
 0xc51   :  { %7624 = vmatpush1.bf16.msra.mxu1 %v7623_v52  ;;  %7752 = vmatpush1.bf16.msra.mxu0 %v7751_v19  ;;  %v3501_v52 = vld [vmem:[%s12884_s21 + $0x7a0] sm:$0xff]  ;;  %v7641_v19 = vpack.c.bf16 %v3502_v35, %v3498_v16  ;;  %v7817_v35 = vpack.c.bf16 %v3551_v21, %v3550_v39  ;;  %v3523_v2 = vld [vmem:[#allocation28 + $0x48] sm:$0xff] }
 0xc52   :  { %7626 = vmatprep.subr.bf16.mxu1 %v7625_v31  ;;  %7754 = vmatprep.subr.bf16.mxu0 %v7753_v62  ;;  %v3503_v31 = vld [vmem:[%s12884_s21 + $0x7b0] sm:$0xff]  ;;  %v3506_v62 = vld [vmem:[%s12884_s21 + $0x7c8] sm:$0xff]  ;;  %v7643_v7 = vpack.c.bf16 %v3501_v52, %v3497_v32  ;;  %v3536_v16 = vld [vmem:[#allocation28 + $0xb0] sm:$0xff] }
 0xc53   :  { %v7771_v1 = vpack.c.bf16 %v3503_v31, %v3499_v57  ;;  %v3521_v32 = vld [vmem:[#allocation28 + $0x38] sm:$0xff]  ;;  %v3538_v52 = vld [vmem:[#allocation28 + $0xc0] sm:$0xff]  ;;  %v3555_v31 = vld [vmem:[#allocation28 + $0x148] sm:$0xff] }
 0xc54   :  { %v3554_v57 = vld [vmem:[#allocation28 + $0x140] sm:$0xff]  ;;  %v3561_v39 = vld [vmem:[#allocation28 + $0x178] sm:$0xff] }
 0xc55   :  { %7628 = vmatpush1.bf16.msra.mxu1 %v7627_v55  ;;  %7756 = vmatpush1.bf16.msra.mxu0 %v7755_v0  ;;  %v3509_v55 = vld [vmem:[%s12884_s21 + $0x7e0] sm:$0xff]  ;;  %v7645_v0 = vpack.c.bf16 %v3510_v54, %v3506_v62  ;;  %v3522_v54 = vld [vmem:[#allocation28 + $0x40] sm:$0xff]  ;;  %v7825_v30 = vpack.c.bf16 %v3555_v31, %v3554_v57 }
 0xc56   :  { %7630 = vmatprep.subr.bf16.mxu1 %v7629_v10  ;;  %7758 = vmatprep.subr.bf16.mxu0 %v7757_v22  ;;  %v3511_v10 = vld [vmem:[%s12884_s21 + $0x7f0] sm:$0xff]  ;;  %v7647_v12 = vpack.c.bf16 %v3509_v55, %v3505_v15  ;;  %v7795_v15 = vpack.c.bf16 %v3523_v2, %v3522_v54 }
 0xc57   :  { %v3530_v22 = vld [vmem:[#allocation28 + $0x80] sm:$0xff]  ;;  %v7775_v40 = vpack.c.bf16 %v3511_v10, %v3507_v11  ;;  %v11744_v2 = vld [vmem:[#allocation31 + $0xa8] sm:$0xff] }
 0xc58   :  { %v7777_v23 = vpack.c.bf16 %v3531_v33, %v3530_v22  ;;  %v3542_v10 = vld [vmem:[#allocation28 + $0xe0] sm:$0xff]  ;;  %v3543_v22 = vld [vmem:[#allocation28 + $0xe8] sm:$0xff] }
 0xc59   :  { %7632 = vmatpush1.bf16.msra.mxu1 %v7631_v5  ;;  %7760 = vmatpush1.bf16.msra.mxu0 %v7759_v8  ;;  %v7809_v5 = vpack.c.bf16 %v3547_v46, %v3546_v60  ;;  %v3514_v8 = vld [vmem:[#allocation28] sm:$0xff]  ;;  %v7801_v33 = vpack.c.bf16 %v3543_v22, %v3542_v10  ;;  %v3527_v46 = vld [vmem:[#allocation28 + $0x68] sm:$0xff]  ;;  %v11756_v10 = vld [vmem:[#allocation31 + $0xb0] sm:$0xff] }
 0xc5a   :  { %7634 = vmatprep.subr.bf16.mxu1 %v7633_v28  ;;  %7762 = vmatprep.subr.bf16.mxu0 %v7761_v53  ;;  %v3533_v28 = vld [vmem:[#allocation28 + $0x98] sm:$0xff]  ;;  %v3548_v53 = vld [vmem:[#allocation28 + $0x110] sm:$0xff]  ;;  %v7779_v13 = vpack.c.bf16 %v3515_v48, %v3514_v8  ;;  %v3526_v60 = vld [vmem:[#allocation28 + $0x60] sm:$0xff] }
 0xc5b   :  { %v7781_v50 = vpack.c.bf16 %v3533_v28, %v3532_v38  ;;  %v3544_v8 = vld [vmem:[#allocation28 + $0xf0] sm:$0xff]  ;;  %v3545_v48 = vld [vmem:[#allocation28 + $0xf8] sm:$0xff]  ;;  %v11742_v54 = vld [vmem:[#allocation31 + $0xa0] sm:$0xff] }
 0xc5c   :  { %v7805_v38 = vpack.c.bf16 %v3545_v48, %v3544_v8  ;;  %v3528_v28 = vld [vmem:[#allocation28 + $0x70] sm:$0xff]  ;;  %v11758_v22 = vld [vmem:[#allocation31 + $0xb8] sm:$0xff]  ;;  %v7849_v48 = vpack.c.bf16 %v11744_v2, %v11742_v54 }
 0xc5d   :  { %7636 = vmatpush1.bf16.msra.mxu1 %v7635_v4  ;;  %7764 = vmatpush1.bf16.msra.mxu0 %v7763_v56  ;;  %v7813_v4 = vpack.c.bf16 %v3549_v24, %v3548_v53  ;;  %v3535_v56 = vld [vmem:[#allocation28 + $0xa8] sm:$0xff]  ;;  %v3529_v53 = vld [vmem:[#allocation28 + $0x78] sm:$0xff] }
 0xc5e   :  { %7638 = vmatprep.subr.bf16.mxu1 %v7637_v49  ;;  %7766 = vmatprep.subr.bf16.mxu0 %v7765_v14  ;;  %v7783_v49 = vpack.c.bf16 %v3517_v43, %v3516_v45  ;;  %v7785_v14 = vpack.c.bf16 %v3535_v56, %v3534_v18  ;;  %v7807_v24 = vpack.c.bf16 %v3529_v53, %v3528_v28  ;;  %v3579_v43 = vld [vmem:[#allocation31 + $0x80] sm:$0xff]  ;;  %v3580_v18 = vld [vmem:[#allocation31 + $0x88] sm:$0xff]  ;;  %v11774_v28 = vld [vmem:[#allocation31 + $0x38] sm:$0xff] }
 0xc5f   :  { %v3560_v56 = vld [vmem:[#allocation28 + $0x170] sm:$0xff] }
 0xc60   :  { %v7837_v21 = vpack.c.bf16 %v3561_v39, %v3560_v56 }
 0xc61   :  { %7640 = vmatpush1.bf16.msra.mxu1 %v7639_v36  ;;  %7768 = vmatpush1.bf16.msra.mxu0 %v7767_v41  ;;  %v7787_v36 = vpack.c.bf16 %v3519_v61, %v3518_v25  ;;  %v3520_v41 = vld [vmem:[#allocation28 + $0x30] sm:$0xff]  ;;  %v11710_v25 = vsub.s32 3, %v10993_v37  ;;  %v11712_v61 = vpop.permute.xlu1 %4243 }
 0xc62   :  { %7642 = vmatprep.subr.bf16.mxu1 %v7641_v19  ;;  %7770 = vmatprep.subr.bf16.mxu0 %v7769_v27  ;;  %v7821_v19 = vpack.c.bf16 %v3553_v9, %v3552_v58  ;;  %v3539_v27 = vld [vmem:[#allocation28 + $0xc8] sm:$0xff]  ;;  %v7791_v62 = vpack.c.bf16 %v3521_v32, %v3520_v41  ;;  %v11728_v32 = vpop.permute.xlu0 %4240 }
 0xc63   :  { %v11724_v41 = vld [vmem:[#allocation31 + $0x8] sm:$0xff] }
 0xc65   :  { %7644 = vmatpush1.bf16.msra.mxu1 %v7643_v7  ;;  %7772 = vmatpush1.bf16.msra.mxu0 %v7771_v1  ;;  %v3540_v7 = vld [vmem:[#allocation28 + $0xd0] sm:$0xff]  ;;  %v3541_v1 = vld [vmem:[#allocation28 + $0xd8] sm:$0xff] }
 0xc66   :  { %7646 = vmatprep.subr.bf16.mxu1 %v7645_v0  ;;  %7774 = vmatprep.subr.bf16.mxu0 %v7773_v59  ;;  %v7797_v55 = vpack.c.bf16 %v3541_v1, %v3540_v7  ;;  %v3524_v0 = vld [vmem:[#allocation28 + $0x50] sm:$0xff]  ;;  %v3525_v59 = vld [vmem:[#allocation28 + $0x58] sm:$0xff] }
 0xc67   :  { %v7799_v11 = vpack.c.bf16 %v3525_v59, %v3524_v0 }
 0xc69   :  { %7648 = vmatpush1.bf16.msra.mxu1 %v7647_v12  ;;  %7776 = vmatpush1.bf16.msra.mxu0 %v7775_v40  ;;  %v3556_v12 = vld [vmem:[#allocation28 + $0x150] sm:$0xff]  ;;  %v3557_v40 = vld [vmem:[#allocation28 + $0x158] sm:$0xff] }
 0xc6a   :  { %7778 = vmatprep.subr.bf16.mxu1 %v7777_v23  ;;  %7810 = vmatprep.subr.bf16.mxu0 %v7809_v5  ;;  %v7803_v23 = vpack.c.bf16 %v3527_v46, %v3526_v60 }
 0xc6c   :  { %3877 = vmatmul.mubr.f32.vlgmr.msra.gmra.mrb[40].mxu1 %v11586_v44  ;;  %4031 = vmatmul.mubr.f32.vlgmr.msra.gmra.mrb[36].mxu0 %v11586_v44  ;;  %v3537_v44 = vld [vmem:[#allocation28 + $0xb8] sm:$0xff] }
 0xc6d   :  { %3882 = vmatprep.mubr.f32.mxu1 %v11601_v47  ;;  %4036 = vmatprep.mubr.f32.mxu0 %v11601_v47  ;;  %v7789_v47 = vpack.c.bf16 %v3537_v44, %v3536_v16  ;;  %v11714_v16 = vld [vmem:[#allocation34] sm:$0xf] }
 0xc6e   :  { %7780 = vmatpush3.bf16.msra.mxu1 %v7779_v13  ;;  %7812 = vmatpush3.bf16.msra.mxu0 %v7809_v5  ;;  %v7829_v5 = vpack.c.bf16 %v3557_v40, %v3556_v12  ;;  %v3558_v13 = vld [vmem:[#allocation28 + $0x160] sm:$0xff]  ;;  %v4522_v31 = vrot.slane %v11714_v16, %v10996_v29  ;;  %v4534_v0 = vrot.slane %v11714_v16, %v11710_v25  ;;  %v11764_v40 = vpop.permute.xlu1 %4279 }
 0xc6f   :  { %7782 = vmatprep.subr.bf16.mxu1 %v7781_v50  ;;  %7814 = vmatprep.subr.bf16.mxu0 %v7813_v4  ;;  %v3559_v50 = vld [vmem:[#allocation28 + $0x168] sm:$0xff]  ;;  %vm4282_vm2 = vcmp.eq.s32.totalorder %v11764_v40, 1 }
 0xc70   :  { %3883 = vmatmul.mubr.f32.gmra.mrb[42].mxu1 %v11608_v6  ;;  %4037 = vmatmul.mubr.f32.gmra.mrb[38].mxu0 %v11608_v6  ;;  %v7793_v6 = vpack.c.bf16 %v3539_v27, %v3538_v52  ;;  %v7833_v45 = vpack.c.bf16 %v3559_v50, %v3558_v13  ;;  %v11730_v52 = vld [vmem:[#allocation31 + $0x98] sm:$0xff]  ;;  %v4830_v40 = vld [vmem:[%s12924_s12 + $0x38] sm:$0xff] }
 0xc71   :  { %v11734_v27 = vld [vmem:[#allocation31 + $0x18] sm:$0xff] }
 0xc72   :  { %7784 = vmatpush3.bf16.msra.mxu1 %v7783_v49  ;;  %7816 = vmatpush3.bf16.msra.mxu0 %v7813_v4  ;;  %v7841_v4 = vpack.c.bf16 %v3580_v18, %v3579_v43  ;;  %v11707_v49 = vsub.s32 2, %v10993_v37  ;;  %v11726_v37 = vld [vmem:[#allocation31 + $0x90] sm:$0xff]  ;;  %v7853_v43 = vpack.c.bf16 %v11758_v22, %v11756_v10 }
 0xc73   :  { %7786 = vmatprep.subr.bf16.mxu1 %v7785_v14  ;;  %7818 = vmatprep.subr.bf16.mxu0 %v7817_v35  ;;  %v3513_v14 = vld [vmem:[#allocation26] sm:$0xf]  ;;  %v7845_v12 = vpack.c.bf16 %v11730_v52, %v11726_v37 }
 0xc74   :  { %v3718_v44 = vrot.slane %v3513_v14, %v10996_v29  ;;  %v3726_v58 = vrot.slane %v3513_v14, %v11707_v49  ;;  %v3722_v9 = vrot.slane %v3513_v14, %v11010_v17 }
 0xc76   :  { %7788 = vmatpush3.bf16.msra.mxu1 %v7787_v36  ;;  %7820 = vmatpush3.bf16.msra.mxu0 %v7817_v35  ;;  %v11716_v35 = vld [vmem:[#allocation35] sm:$0xf]  ;;  %v3730_v36 = vrot.slane %v3513_v14, %v11710_v25 }
 0xc77   :  { %7790 = vmatprep.subr.bf16.mxu1 %v7789_v47  ;;  %7822 = vmatprep.subr.bf16.mxu0 %v7821_v19  ;;  %v11722_v47 = vld [vmem:[#allocation31] sm:$0xff]  ;;  %v11752_v59 = vrot.slane %v11716_v35, %v11710_v25 }
 0xc78   :  { %v7843_v46 = vpack.c.bf16 %v11724_v41, %v11722_v47  ;;  %v11781_v47 = vld [vmem:[#allocation31 + $0xc0] sm:$0xff]  ;;  %v11783_v41 = vld [vmem:[#allocation31 + $0xc8] sm:$0xff] }
 0xc7a   :  { %7792 = vmatpush3.bf16.msra.mxu1 %v7791_v62  ;;  %7824 = vmatpush3.bf16.msra.mxu0 %v7821_v19  ;;  %v11732_v19 = vld [vmem:[#allocation31 + $0x10] sm:$0xff]  ;;  %v11740_v62 = vrot.slane %v11716_v35, %v10996_v29 }
 0xc7b   :  { %7794 = vmatprep.subr.bf16.mxu1 %v7793_v6  ;;  %7826 = vmatprep.subr.bf16.mxu0 %v7825_v30  ;;  %v7847_v8 = vpack.c.bf16 %v11734_v27, %v11732_v19 }
 0xc7e   :  { %7796 = vmatpush3.bf16.msra.mxu1 %v7795_v15  ;;  %7828 = vmatpush3.bf16.msra.mxu0 %v7825_v30  ;;  %v11746_v30 = vld [vmem:[#allocation31 + $0x20] sm:$0xff] }
 0xc7f   :  { %7798 = vmatprep.subr.bf16.mxu1 %v7797_v55  ;;  %7830 = vmatprep.subr.bf16.mxu0 %v7829_v5 }
 0xc82   :  { %7800 = vmatpush3.bf16.msra.mxu1 %v7799_v11  ;;  %7832 = vmatpush3.bf16.msra.mxu0 %v7829_v5  ;;  %v11754_v11 = vld [vmem:[#allocation31 + $0x28] sm:$0xff] }
 0xc83   :  { %7802 = vmatprep.subr.bf16.mxu1 %v7801_v33  ;;  %7834 = vmatprep.subr.bf16.mxu0 %v7833_v45 }
 0xc86   :  { %7804 = vmatpush3.bf16.msra.mxu1 %v7803_v23  ;;  %7836 = vmatpush3.bf16.msra.mxu0 %v7833_v45  ;;  %v7851_v45 = vpack.c.bf16 %v11754_v11, %v11746_v30 }
 0xc87   :  { %7806 = vmatprep.subr.bf16.mxu1 %v7805_v38  ;;  %7838 = vmatprep.subr.bf16.mxu0 %v7837_v21  ;;  %v11772_v38 = vld [vmem:[#allocation31 + $0x30] sm:$0xff] }
 0xc88   :  { %v7855_v27 = vpack.c.bf16 %v11774_v28, %v11772_v38 }
 0xc8a   :  { %7808 = vmatpush3.bf16.msra.mxu1 %v7807_v24  ;;  %7840 = vmatpush3.bf16.msra.mxu0 %v7837_v21 }
 0xc8b   :  { %7842 = vmatprep.subr.bf16.mxu1 %v7841_v4 }
 0xd3f   :  { %v3878_v57 = vpop.f32.mrb[40].mxu1  ;;  %v4032_v6 = vpop.f32.mrb[36].mxu0 }
 0xd40   :  { %v8630_v7 = vadd.f32 %v3878_v57, %v3718_v44  ;;  %v8634_v1 = vadd.f32 %v4032_v6, %v3726_v58  ;;  %v3880_v15 = vpop.f32.mrb[41].mxu1  ;;  %v4034_v55 = vpop.f32.mrb[37].mxu0 }
 0xd41   :  { %v8631_v33 = vadd.f32 %v3880_v15, %v3722_v9  ;;  %v8635_v60 = vadd.f32 %v4034_v55, %v3730_v36  ;;  %v11787_v57 = vpop.permute.xlu0 %4276 }
 0xd42   :  { %v4043_v23 = vmax.f32 %v8630_v7, 0.0  ;;  %v11766_v5 = vmax.f32 %v8634_v1, 0.0  ;;  %vm4281_vm15 = vcmp.eq.s32.totalorder %v11787_v57, 1 }
 0xd43   :  { %v4044_v53 = vmax.f32 %v8631_v33, 0.0  ;;  %v4046_v24 = vmax.f32 %v8635_v60, 0.0  ;;  %v3884_v13 = vpop.f32.mrb[42].mxu1  ;;  %v4038_v50 = vpop.f32.mrb[38].mxu0 }
 0xd44   :  { %v4539_v18 = vmul.f32 %v4522_v31, %v4043_v23  ;;  %v8632_v4 = vadd.f32 %v3884_v13, %v3718_v44  ;;  %v8636_v56 = vadd.f32 %v4038_v50, %v3726_v58  ;;  %v3886_v39 = vpop.f32.mrb[43].mxu1  ;;  %v4040_v21 = vpop.f32.mrb[39].mxu0  ;;  %v4249_v14 = vrot.slane %v11766_v5, 7 }
 0xd45   :  { %v4053_v37 = vrot.slane %v4044_v53, 7  ;;  %v4542_v52 = vmul.f32 %v4534_v0, %v4046_v24  ;;  %v8633_v19 = vadd.f32 %v3886_v39, %v3722_v9  ;;  %4139 = vmatprep.mubr.f32.mxu1 %v4044_v53  ;;  %v8637_v7 = vadd.f32 %v4040_v21, %v3730_v36 }
 0xd46   :  { %v11790_v44 = vadd.f32 %v11740_v62, %v4539_v18  ;;  %v4047_v58 = vmax.f32 %v8632_v4, 0.0  ;;  %v11792_v6 = vmax.f32 %v8636_v56, 0.0  ;;  %v4061_v15 = vrot.slane %v4044_v53, 1 }
 0xd47   :  { %v4058_v1 = vsel %vm12905_vm7, 0.0, %v4053_v37  ;;  %v4048_v55 = vmax.f32 %v8633_v19, 0.0  ;;  %v7857_v9 = vpack.c.bf16 %v11783_v41, %v11781_v47  ;;  %v11799_v33 = vadd.f32 %v11752_v59, %v4542_v52  ;;  %v3575_v41 = vld [vmem:[#allocation31 + $0x60] sm:$0xff] }
 0xd48   :  { %v4543_v60 = vmul.f32 %v4522_v31, %v4047_v58  ;;  %v4050_v23 = vmax.f32 %v8637_v7, 0.0  ;;  %6743 = vmatmul.mubr.msk.f32.vlgmr.msra.gmra.mrb[44].mxu1 %vm3672_vm3, %v4058_v1  ;;  %v4254_v24 = vsel %vm12906_vm4, 0.0, %v4249_v14  ;;  %v4585_v36 = vrot.slane %v11790_v44, 1  ;;  %vm12912_vm4 = vmmov %vm12910_vm13 }
 0xd49   :  { %v4625_v53 = vrot.slane %v11790_v44, 2  ;;  %v4054_v13 = vrot.slane %v4048_v55, 7  ;;  %v4062_v50 = vrot.slane %v4048_v55, 1  ;;  %7844 = vmatpush3.bf16.msra.mxu1 %v7843_v46  ;;  %4144 = vmatprep.mubr.f32.mxu1 %v4048_v55  ;;  %v4229_v31 = vrot.slane %v11766_v5, 6 }
 0xd4a   :  { %v4572_v18 = vadd.f32 %v11740_v62, %v4543_v60  ;;  %v4546_v4 = vmul.f32 %v4534_v0, %v4050_v23  ;;  %7846 = vmatprep.subr.bf16.mxu1 %v7845_v12  ;;  %v4250_v56 = vrot.slane %v11792_v6, 7  ;;  %v4230_v19 = vrot.slane %v11792_v6, 6 }
 0xd4b   :  { %v4066_v39 = vsel %vm12907_vm5, %v4062_v50, 0.0  ;;  %v4055_v21 = vsel %vm12908_vm11, %v4053_v37, %v4054_v13  ;;  %v4063_v52 = vsel %vm876_vm14, %v4061_v15, %v4062_v50  ;;  %v4594_v58 = vrot.slane %v11799_v33, 1 }
 0xd4c   :  { %v4586_v46 = vrot.slane %v4572_v18, 1  ;;  %v4626_v7 = vrot.slane %v4572_v18, 2  ;;  %v4575_v62 = vadd.f32 %v11752_v59, %v4546_v4  ;;  %6744 = vmatmul.mubr.msk.f32.gmra.mrb[46].mxu1 %vm3673_vm8, %v4055_v21  ;;  %7235 = vmatprep.mubr.msk.f32.mxu0 %vm3704_vm10, %v4063_v52  ;;  %v11823_v0 = vsel %vm12909_vm6, %v4249_v14, %v4250_v56  ;;  %v3571_v56 = vld [vmem:[#allocation31 + $0x40] sm:$0xff]  ;;  %v3589_v21 = vld [vmem:[#allocation31 + $0xd0] sm:$0xff]  ;;  %v3590_v52 = vld [vmem:[#allocation31 + $0xd8] sm:$0xff] }
 0xd4d   :  { %7848 = vmatpush3.bf16.msra.mxu1 %v7847_v8  ;;  %7236 = vmatmul.mubr.msk.f32.vlgmr.msra.gmra.mrb[40].mxu0 %vm3705_vm9, %v4066_v39  ;;  %v11828_v12 = vsel %vm12910_vm13, %v4229_v31, %v4230_v19  ;;  %v4257_v59 = vrot.slane %v11766_v5, 1  ;;  %v4258_v37 = vrot.slane %v11792_v6, 1  ;;  %vm12911_vm7 = vcmask 1045504   ;;  %v3572_v39 = vld [vmem:[#allocation31 + $0x48] sm:$0xff]  ;;  %vm12916_vm6 = vmmov %vm12912_vm4 }
 0xd4e   :  { %v4587_v1 = vsel %vm876_vm14, %v4585_v36, %v4586_v46  ;;  %v4605_v15 = vsel %vm12904_vm0, %v4586_v46, -inf  ;;  %v4627_v8 = vsel %vm12911_vm7, %v4625_v53, %v4626_v7  ;;  %v4645_v55 = vsel %vm12912_vm4, %v4626_v7, -inf  ;;  %6748 = vmatprep.mubr.msk.f32.mxu1 %vm3672_vm3, %v4254_v24  ;;  %7850 = vmatprep.subr.bf16.mxu1 %v7849_v48  ;;  %vm12913_vm3 = vmmov %vm12904_vm0 }
 0xd4f   :  { %v4634_v14 = vrot.slane %v11799_v33, 2  ;;  %v4609_v60 = vsel %vm3704_vm10, %v4587_v1, -inf  ;;  %v4613_v23 = vsel %vm3705_vm9, %v4605_v15, -inf  ;;  %v4595_v36 = vrot.slane %v4575_v62, 1  ;;  %4745 = vmatprep.mubr.f32.mxu0 %v9554_v42  ;;  %vm12914_vm5 = vmmov %vm12911_vm7  ;;  %v3573_v1 = vld [vmem:[#allocation31 + $0x50] sm:$0xff]  ;;  %v3574_v15 = vld [vmem:[#allocation31 + $0x58] sm:$0xff] }
 0xd50   :  { %v4621_v53 = vmax.f32 %v4572_v18, %v4613_v23  ;;  %v4653_v34 = vsel %vm4282_vm2, %v4645_v55, -inf  ;;  %v4635_v24 = vrot.slane %v4575_v62, 2  ;;  %v11852_v54 = vsel %vm876_vm14, %v4257_v59, %v4258_v37  ;;  %vm12915_vm11 = vmmov %vm12914_vm5  ;;  %v3594_v23 = vld [vmem:[#allocation31 + $0xf8] sm:$0xff] }
 0xd51   :  { %v4608_v2 = vsel %vm12913_vm3, %v4595_v36, -inf  ;;  %7852 = vmatpush3.bf16.msra.mxu1 %v7851_v45  ;;  %v4265_v48 = vrot.slane %v11766_v5, 2  ;;  %v4266_v13 = vrot.slane %v11792_v6, 2  ;;  %v4617_v50 = vmax.f32 %v11790_v44, %v4609_v60  ;;  %v3593_v60 = vld [vmem:[#allocation31 + $0xf0] sm:$0xff]  ;;  %vm12917_vm0 = vmmov %vm12912_vm4 }
 0xd52   :  { %v11861_v18 = vmax.f32 %v4621_v53, %v4653_v34  ;;  %v4616_v4 = vsel %vm3705_vm9, %v4608_v2, -inf  ;;  %7854 = vmatprep.subr.bf16.mxu1 %v7853_v43  ;;  %v4649_v30 = vsel %vm4281_vm15, %v4627_v8, -inf  ;;  %v4596_v11 = vsel %vm876_vm14, %v4594_v58, %v4595_v36  ;;  %v3592_v8 = vld [vmem:[#allocation31 + $0xe8] sm:$0xff]  ;;  %v3577_v34 = vld [vmem:[#allocation31 + $0x70] sm:$0xff]  ;;  %v3611_v2 = vld [vmem:[#allocation31 + $0x180] sm:$0xff] }
 0xd53   :  { %v4624_v45 = vmax.f32 %v4575_v62, %v4616_v4  ;;  %v11874_v44 = vsel %vm12914_vm5, %v4265_v48, %v4266_v13  ;;  %v11876_v19 = vmax.f32 %v4617_v50, %v4649_v30  ;;  %v4612_v10 = vsel %vm3704_vm10, %v4596_v11, -inf  ;;  %v3612_v48 = vld [vmem:[#allocation31 + $0x188] sm:$0xff]  ;;  %v3613_v30 = vld [vmem:[#allocation31 + $0x190] sm:$0xff]  ;;  %v3614_v11 = vld [vmem:[#allocation31 + $0x198] sm:$0xff] }
 0xd54   :  { %v4636_v22 = vsel %vm12915_vm11, %v4634_v14, %v4635_v24  ;;  %v4648_v43 = vsel %vm12916_vm6, %v4635_v24, -inf  ;;  %v7859_v58 = vpack.c.bf16 %v3572_v39, %v3571_v56  ;;  %v4620_v7 = vmax.f32 %v11799_v33, %v4612_v10  ;;  %v3578_v24 = vld [vmem:[#allocation31 + $0x78] sm:$0xff]  ;;  %v3595_v56 = vld [vmem:[#allocation31 + $0x100] sm:$0xff]  ;;  %v3596_v39 = vld [vmem:[#allocation31 + $0x108] sm:$0xff] }
 0xd55   :  { %7856 = vmatpush3.bf16.msra.mxu1 %v7855_v27  ;;  %v7940_v46 = vpack.c.bf16 %v11861_v18, %v11876_v19  ;;  %v4656_v62 = vsel %vm4282_vm2, %v4648_v43, -inf  ;;  %v7861_v59 = vpack.c.bf16 %v3590_v52, %v3589_v21  ;;  %v4652_v38 = vsel %vm4281_vm15, %v4636_v22, -inf  ;;  %v3591_v27 = vld [vmem:[#allocation31 + $0xe0] sm:$0xff]  ;;  %v3597_v52 = vld [vmem:[#allocation31 + $0x110] sm:$0xff]  ;;  %v3598_v10 = vld [vmem:[#allocation31 + $0x118] sm:$0xff] }
 0xd56   :  { %7858 = vmatprep.subr.bf16.mxu1 %v7857_v9  ;;  %v11895_v28 = vmax.f32 %v4624_v45, %v4656_v62  ;;  %v11897_v55 = vmax.f32 %v4620_v7, %v4652_v38  ;;  %v7863_v33 = vpack.c.bf16 %v3574_v15, %v3573_v1  ;;  %v7865_v47 = vpack.c.bf16 %v3592_v8, %v3591_v27  ;;  %v3576_v9 = vld [vmem:[#allocation31 + $0x68] sm:$0xff]  ;;  %v3615_v43 = vld [vmem:[#allocation31 + $0x1a0] sm:$0xff]  ;;  %v3618_v15 = vld [vmem:[#allocation31 + $0x1b8] sm:$0xff] }
 0xd57   :  { %v7867_v36 = vpack.c.bf16 %v3576_v9, %v3575_v41  ;;  %v7869_v53 = vpack.c.bf16 %v3594_v23, %v3593_v60  ;;  %v7871_v50 = vpack.c.bf16 %v3578_v24, %v3577_v34  ;;  %v7873_v4 = vpack.c.bf16 %v3612_v48, %v3611_v2  ;;  %v3600_v1 = vld [vmem:[#allocation31 + $0x128] sm:$0xff]  ;;  %v3602_v38 = vld [vmem:[#allocation31 + $0x138] sm:$0xff]  ;;  %v3619_v27 = vld [vmem:[#allocation31 + $0x1c0] sm:$0xff] }
 0xd58   :  { %v7943_v14 = vpack.c.bf16 %v11895_v28, %v11897_v55  ;;  %v7875_v45 = vpack.c.bf16 %v3596_v39, %v3595_v56  ;;  %v7877_v21 = vpack.c.bf16 %v3614_v11, %v3613_v30  ;;  %vm4245_vm13 = vcmp.eq.s32.totalorder %v11728_v32, 1  ;;  %v3617_v32 = vld [vmem:[#allocation31 + $0x1b0] sm:$0xff]  ;;  %v3620_v8 = vld [vmem:[#allocation31 + $0x1c8] sm:$0xff]  ;;  %v3607_v48 = vld [vmem:[#allocation31 + $0x160] sm:$0xff] }
 0xd59   :  { %7860 = vmatpush3.bf16.msra.mxu1 %v7859_v58  ;;  %v4234_v22 = vsel %vm12917_vm0, 0.0, %v4229_v31  ;;  %v3616_v58 = vld [vmem:[#allocation31 + $0x1a8] sm:$0xff]  ;;  %v7879_v7 = vpack.c.bf16 %v3598_v10, %v3597_v52  ;;  %vm4246_vm7 = vcmp.eq.s32.totalorder %v11712_v61, 1  ;;  %v7885_v20 = vpack.c.bf16 %v3618_v15, %v3617_v32  ;;  %v3621_v9 = vld [vmem:[#allocation31 + $0x1d0] sm:$0xff]  ;;  %v3626_v56 = vld [vmem:[#allocation31 + $0x1f8] sm:$0xff] }
 0xd5a   :  { %7862 = vmatprep.subr.bf16.mxu1 %v7861_v59  ;;  %v7881_v62 = vpack.c.bf16 %v3616_v58, %v3615_v43  ;;  %v3599_v59 = vld [vmem:[#allocation31 + $0x120] sm:$0xff]  ;;  %v7889_v61 = vpack.c.bf16 %v3620_v8, %v3619_v27  ;;  %v3604_v41 = vld [vmem:[#allocation31 + $0x148] sm:$0xff]  ;;  %v3609_v11 = vld [vmem:[#allocation31 + $0x170] sm:$0xff] }
 0xd5b   :  { %v7883_v31 = vpack.c.bf16 %v3600_v1, %v3599_v59  ;;  %v3624_v34 = vld [vmem:[#allocation31 + $0x1e8] sm:$0xff]  ;;  %v3629_v43 = vld [vmem:[#allocation31 + $0x210] sm:$0xff]  ;;  %v3630_v58 = vld [vmem:[#allocation31 + $0x218] sm:$0xff] }
 0xd5c   :  { %v3628_v52 = vld [vmem:[#allocation31 + $0x208] sm:$0xff]  ;;  %v3633_v15 = vld [vmem:[#allocation31 + $0x230] sm:$0xff]  ;;  %v3638_v27 = vld [vmem:[#allocation31 + $0x258] sm:$0xff] }
 0xd5d   :  { %7864 = vmatpush3.bf16.msra.mxu1 %v7863_v33  ;;  %v3632_v59 = vld [vmem:[#allocation31 + $0x228] sm:$0xff]  ;;  %vm12920_vm4 = vmmov %vm12917_vm0  ;;  %v5353_v18 = vld [vmem:[%s12921_s18 + $0x168] sm:$0xff] }
 0xd5e   :  { %7866 = vmatprep.subr.bf16.mxu1 %v7865_v47  ;;  %v3603_v47 = vld [vmem:[#allocation31 + $0x140] sm:$0xff]  ;;  %vm12923_vm6 = vmmov %vm12917_vm0  ;;  %v5355_v19 = vld [vmem:[%s12921_s18 + $0x178] sm:$0xff] }
 0xd5f   :  { %v7891_v60 = vpack.c.bf16 %v3604_v41, %v3603_v47  ;;  %v3641_v41 = vld [vmem:[#allocation31 + $0x270] sm:$0xff]  ;;  %v8133_v28 = vpack.c.bf16 %v5355_v19, %v5353_v18  ;;  %v5354_v55 = vld [vmem:[%s12921_s18 + $0x170] sm:$0xff]  ;;  %v4559_v19 = vrot.slane %v11716_v35, %v11707_v49 }
 0xd61   :  { %7868 = vmatpush3.bf16.msra.mxu1 %v7867_v36  ;;  %v3606_v36 = vld [vmem:[#allocation31 + $0x158] sm:$0xff] }
 0xd62   :  { %7870 = vmatprep.subr.bf16.mxu1 %v7869_v53  ;;  %v3623_v53 = vld [vmem:[#allocation31 + $0x1e0] sm:$0xff] }
 0xd63   :  { %v7897_v2 = vpack.c.bf16 %v3624_v34, %v3623_v53  ;;  %v5112_v53 = vld [vmem:[#allocation38 + $0x20] sm:$0x3] }
 0xd65   :  { %7872 = vmatpush3.bf16.msra.mxu1 %v7871_v50  ;;  %v3608_v50 = vld [vmem:[#allocation31 + $0x168] sm:$0xff] }
 0xd66   :  { %7874 = vmatprep.subr.bf16.mxu1 %v7873_v4  ;;  %v3625_v4 = vld [vmem:[#allocation31 + $0x1f0] sm:$0xff]  ;;  %v7899_v39 = vpack.c.bf16 %v3608_v50, %v3607_v48  ;;  %v5114_v50 = vld [vmem:[#allocation38 + $0x30] sm:$0x3] }
 0xd67   :  { %v7901_v30 = vpack.c.bf16 %v3626_v56, %v3625_v4  ;;  %v5309_v56 = vld [vmem:[%s12921_s18 + $0x8] sm:$0xff] }
 0xd68   :  { %6749 = vmatmul.mubr.msk.f32.vlgmr.msra.gmra.mrb[48].mxu1 %vm4245_vm13, %v4234_v22  ;;  %vm4665_vm13 = vcmask 97280  }
 0xd69   :  { %6750 = vmatprep.mubr.msk.f32.mxu1 %vm3673_vm8, %v11823_v0  ;;  %7876 = vmatpush3.bf16.msra.mxu1 %v7875_v45  ;;  %v3601_v0 = vld [vmem:[#allocation31 + $0x130] sm:$0xff]  ;;  %v3610_v45 = vld [vmem:[#allocation31 + $0x178] sm:$0xff]  ;;  %vm12918_vm8 = vmmov %vm12913_vm3  ;;  %vm5138_vm3 = vcmask 80896  }
 0xd6a   :  { %7878 = vmatprep.subr.bf16.mxu1 %v7877_v21  ;;  %v7887_v33 = vpack.c.bf16 %v3602_v38, %v3601_v0  ;;  %v3627_v21 = vld [vmem:[#allocation31 + $0x200] sm:$0xff]  ;;  %v7903_v10 = vpack.c.bf16 %v3610_v45, %v3609_v11  ;;  %v4262_v1 = vsel %vm12918_vm8, %v4258_v37, 0.0  ;;  %v3636_v0 = vld [vmem:[#allocation31 + $0x248] sm:$0xff]  ;;  %v3637_v38 = vld [vmem:[#allocation31 + $0x250] sm:$0xff] }
 0xd6b   :  { %v7905_v22 = vpack.c.bf16 %v3628_v52, %v3627_v21  ;;  %v7925_v8 = vpack.c.bf16 %v3638_v27, %v3637_v38  ;;  %v5310_v45 = vld [vmem:[%s12921_s18 + $0x10] sm:$0xff]  ;;  %v5313_v52 = vld [vmem:[%s12921_s18 + $0x28] sm:$0xff]  ;;  %vm12922_vm5 = vmmov %vm12918_vm8 }
 0xd6c   :  { %6751 = vmatmul.mubr.msk.f32.gmra.mrb[50].mxu1 %vm4246_vm7, %v11828_v12  ;;  %v3622_v12 = vld [vmem:[#allocation31 + $0x1d8] sm:$0xff]  ;;  %vm12925_vm0 = vmmov %vm12922_vm5 }
 0xd6d   :  { %7880 = vmatpush3.bf16.msra.mxu1 %v7879_v7  ;;  %6752 = vmatprep.mubr.msk.f32.mxu1 %vm3704_vm10, %v11852_v54  ;;  %v7893_v23 = vpack.c.bf16 %v3622_v12, %v3621_v9  ;;  %v3605_v54 = vld [vmem:[#allocation31 + $0x150] sm:$0xff]  ;;  %v7909_v7 = vpack.c.bf16 %v3630_v58, %v3629_v43  ;;  %v3642_v9 = vld [vmem:[#allocation31 + $0x278] sm:$0xff]  ;;  %v4270_v12 = vsel %vm12920_vm4, %v4266_v13, 0.0  ;;  %v5111_v13 = vld [vmem:[#allocation38 + $0x18] sm:$0xff] }
 0xd6e   :  { %7882 = vmatprep.subr.bf16.mxu1 %v7881_v62  ;;  %v7895_v24 = vpack.c.bf16 %v3606_v36, %v3605_v54  ;;  %v3631_v62 = vld [vmem:[#allocation31 + $0x220] sm:$0xff]  ;;  %v5108_v54 = vld [vmem:[#allocation38] sm:$0xff]  ;;  %v6742_v27 = vld [vmem:[#allocation29] ss:$0 sm:$0xff] }
 0xd6f   :  { %v7913_v32 = vpack.c.bf16 %v3632_v59, %v3631_v62  ;;  %v8080_v34 = vpack.c.bf16 %v5112_v53, %v5108_v54  ;;  %v5314_v43 = vld [vmem:[%s12921_s18 + $0x30] sm:$0xff]  ;;  %v5317_v62 = vld [vmem:[%s12921_s18 + $0x48] sm:$0xff]  ;;  %v5319_v59 = vld [vmem:[%s12921_s18 + $0x58] sm:$0xff] }
 0xd70   :  { %v5326_v53 = vld [vmem:[%s12921_s18 + $0x90] sm:$0xff]  ;;  %vm12926_vm7 = vmmov %vm12920_vm4  ;;  %vm5446_vm4 = vcmask 949248  }
 0xd71   :  { %7884 = vmatpush3.bf16.msra.mxu1 %v7883_v31  ;;  %v3634_v31 = vld [vmem:[#allocation31 + $0x238] sm:$0xff]  ;;  %vm12927_vm8 = vmmov %vm12915_vm11 }
 0xd72   :  { %7886 = vmatprep.subr.bf16.mxu1 %v7885_v20  ;;  %v3635_v20 = vld [vmem:[#allocation31 + $0x240] sm:$0xff] }
 0xd73   :  { %v7921_v37 = vpack.c.bf16 %v3636_v0, %v3635_v20  ;;  %v5321_v20 = vld [vmem:[%s12921_s18 + $0x68] sm:$0xff]  ;;  %v5323_v0 = vld [vmem:[%s12921_s18 + $0x78] sm:$0xff] }
 0xd75   :  { %7888 = vmatpush3.bf16.msra.mxu1 %v7887_v33  ;;  %v3639_v33 = vld [vmem:[#allocation31 + $0x260] sm:$0xff] }
 0xd76   :  { %7890 = vmatprep.subr.bf16.mxu1 %v7889_v61  ;;  %v3640_v61 = vld [vmem:[#allocation31 + $0x268] sm:$0xff] }
 0xd77   :  { %v7929_v47 = vpack.c.bf16 %v3640_v61, %v3639_v33  ;;  %v5322_v33 = vld [vmem:[%s12921_s18 + $0x70] sm:$0xff] }
 0xd79   :  { %7892 = vmatpush3.bf16.msra.mxu1 %v7891_v60  ;;  %v5109_v60 = vld [vmem:[#allocation38 + $0x8] sm:$0xff] }
 0xd7a   :  { %7894 = vmatprep.subr.bf16.mxu1 %v7893_v23  ;;  %v5113_v23 = vld [vmem:[#allocation38 + $0x28] sm:$0x3] }
 0xd7b   :  { %v8077_v36 = vpack.c.bf16 %v5113_v23, %v5109_v60  ;;  %v5324_v60 = vld [vmem:[%s12921_s18 + $0x80] sm:$0xff] }
 0xd7d   :  { %7896 = vmatpush3.bf16.msra.mxu1 %v7895_v24  ;;  %v5115_v24 = vld [vmem:[#allocation38 + $0x38] sm:$0x3] }
 0xd7e   :  { %7898 = vmatprep.subr.bf16.mxu1 %v7897_v2  ;;  %v5110_v2 = vld [vmem:[#allocation38 + $0x10] sm:$0xff]  ;;  %v8083_v48 = vpack.c.bf16 %v5115_v24, %v5111_v13  ;;  %v4526_v13 = vrot.slane %v11714_v16, %v11010_v17 }
 0xd7f   :  { %v8086_v4 = vpack.c.bf16 %v5114_v50, %v5110_v2  ;;  %v8107_v2 = vpack.c.bf16 %v5326_v53, %v5324_v60  ;;  %v5329_v50 = vld [vmem:[%s12921_s18 + $0xa8] sm:$0xff] }
 0xd80   :  { %v5341_v60 = vld [vmem:[%s12921_s18 + $0x108] sm:$0xff] }
 0xd81   :  { %7900 = vmatpush3.bf16.msra.mxu1 %v7899_v39  ;;  %v5311_v39 = vld [vmem:[%s12921_s18 + $0x18] sm:$0xff] }
 0xd82   :  { %7902 = vmatprep.subr.bf16.mxu1 %v7901_v30  ;;  %v5308_v30 = vld [vmem:[%s12921_s18] sm:$0xff]  ;;  %v8089_v11 = vpack.c.bf16 %v5311_v39, %v5309_v56 }
 0xd83   :  { %v8091_v21 = vpack.c.bf16 %v5310_v45, %v5308_v30  ;;  %v5328_v56 = vld [vmem:[%s12921_s18 + $0xa0] sm:$0xff] }
 0xd85   :  { %7904 = vmatpush3.bf16.msra.mxu1 %v7903_v10  ;;  %v5315_v10 = vld [vmem:[%s12921_s18 + $0x38] sm:$0xff] }
 0xd86   :  { %7906 = vmatprep.subr.bf16.mxu1 %v7905_v22  ;;  %v8093_v58 = vpack.c.bf16 %v5315_v10, %v5313_v52 }
 0xd88   :  { %4431 = vmatmul.mubr.f32.vlgmr.msra.gmra.mrb[52].mxu1 %v11766_v5  ;;  %v7917_v5 = vpack.c.bf16 %v3634_v31, %v3633_v15  ;;  %v5318_v15 = vld [vmem:[%s12921_s18 + $0x50] sm:$0xff] }
 0xd89   :  { %6753 = vmatprep.mubr.msk.f32.mxu1 %vm3705_vm9, %v4262_v1  ;;  %7908 = vmatpush3.bf16.msra.mxu1 %v7905_v22  ;;  %v5312_v22 = vld [vmem:[%s12921_s18 + $0x20] sm:$0xff]  ;;  %v8097_v1 = vpack.c.bf16 %v5319_v59, %v5317_v62  ;;  %v5334_v59 = vld [vmem:[%s12921_s18 + $0xd0] sm:$0xff] }
 0xd8a   :  { %7910 = vmatprep.subr.bf16.mxu1 %v7909_v7 }
 0xd8c   :  { %4436 = vmatmul.mubr.f32.gmra.mrb[54].mxu1 %v11792_v6  ;;  %v5107_v6 = vld [vmem:[%s12919_s16] sm:$0xf] }
 0xd8d   :  { %7912 = vmatpush3.bf16.msra.mxu1 %v7909_v7  ;;  %7270 = vmatprep.mubr.msk.f32.mxu1 %vm4281_vm15, %v11874_v44  ;;  %v7933_v44 = vpack.c.bf16 %v3642_v9, %v3641_v41  ;;  %v8095_v7 = vpack.c.bf16 %v5314_v43, %v5312_v22  ;;  %v5333_v43 = vld [vmem:[%s12921_s18 + $0xc8] sm:$0xff] }
 0xd8e   :  { %7914 = vmatprep.subr.bf16.mxu1 %v7913_v32 }
 0xd91   :  { %7916 = vmatpush3.bf16.msra.mxu1 %v7913_v32  ;;  %v5316_v32 = vld [vmem:[%s12921_s18 + $0x40] sm:$0xff] }
 0xd92   :  { %7918 = vmatprep.subr.bf16.mxu1 %v7917_v5  ;;  %v8099_v31 = vpack.c.bf16 %v5318_v15, %v5316_v32 }
 0xd95   :  { %7920 = vmatpush3.bf16.msra.mxu1 %v7917_v5 }
 0xd96   :  { %7922 = vmatprep.subr.bf16.mxu1 %v7921_v37 }
 0xd99   :  { %7924 = vmatpush3.bf16.msra.mxu1 %v7921_v37  ;;  %v5320_v37 = vld [vmem:[%s12921_s18 + $0x60] sm:$0xff] }
 0xd9a   :  { %7926 = vmatprep.subr.bf16.mxu1 %v7925_v8 }
 0xd9d   :  { %7928 = vmatpush3.bf16.msra.mxu1 %v7925_v8  ;;  %v8101_v8 = vpack.c.bf16 %v5323_v0, %v5321_v20  ;;  %v5339_v20 = vld [vmem:[%s12921_s18 + $0xf8] sm:$0xff]  ;;  %v5336_v0 = vld [vmem:[%s12921_s18 + $0xe0] sm:$0xff] }
 0xd9e   :  { %7930 = vmatprep.subr.bf16.mxu1 %v7929_v47 }
 0xda1   :  { %7932 = vmatpush3.bf16.msra.mxu1 %v7929_v47  ;;  %v8103_v47 = vpack.c.bf16 %v5322_v33, %v5320_v37 }
 0xda2   :  { %7934 = vmatprep.subr.bf16.mxu1 %v7933_v44 }
 0xda5   :  { %7936 = vmatpush3.bf16.msra.mxu1 %v7933_v44  ;;  %v5325_v44 = vld [vmem:[%s12921_s18 + $0x88] sm:$0xff] }
 0xda6   :  { %8079 = vmatprep.subr.msk.bf16.mxu1 %vm10045_vm12, %v8077_v36 }
 0xda8   :  { %7271 = vmatmul.mubr.msk.f32.vlgmr.msra.gmra.mrb[56].mxu1 %vm4282_vm2, %v4270_v12  ;;  %v5327_v12 = vld [vmem:[%s12921_s18 + $0x98] sm:$0xff] }
 0xda9   :  { %5218 = vmatprep.mubr.f32.mxu1 %v9554_v42  ;;  %8082 = vmatpush1.bf16.msk.msra.mxu1 %vm10045_vm12, %v8080_v34  ;;  %v8105_v36 = vpack.c.bf16 %v5327_v12, %v5325_v44 }
 0xdaa   :  { %8085 = vmatprep.subr.msk.bf16.mxu1 %vm10045_vm12, %v8083_v48 }
 0xdac   :  { %6764 = vmatmul.mubr.msk.f32.vlgmr.msra.gmra.mrb[58].mxu1 %vm5138_vm3, %v5107_v6 }
 0xdad   :  { %5289 = vmatprep.mubr.f32.mxu1 %v9554_v42  ;;  %8088 = vmatpush1.bf16.msk.msra.mxu1 %vm10045_vm12, %v8086_v4  ;;  %v5331_v4 = vld [vmem:[%s12921_s18 + $0xb8] sm:$0xff] }
 0xdae   :  { %8090 = vmatprep.subr.bf16.mxu1 %v8089_v11  ;;  %v8109_v30 = vpack.c.bf16 %v5331_v4, %v5329_v50  ;;  %v5330_v11 = vld [vmem:[%s12921_s18 + $0xb0] sm:$0xff] }
 0xdaf   :  { %v8111_v10 = vpack.c.bf16 %v5330_v11, %v5328_v56  ;;  %v5344_v11 = vld [vmem:[%s12921_s18 + $0x120] sm:$0xff] }
 0xdb0   :  { %6767 = vmatmul.mubr.msk.f32.vlgmr.msra.gmra.mrb[60].mxu1 %vm5138_vm3, %v5107_v6 }
 0xdb1   :  { %8092 = vmatpush1.bf16.msra.mxu1 %v8091_v21  ;;  %v4555_v21 = vrot.slane %v11716_v35, %v11010_v17 }
 0xdb2   :  { %8094 = vmatprep.subr.bf16.mxu1 %v8093_v58  ;;  %v5335_v58 = vld [vmem:[%s12921_s18 + $0xd8] sm:$0xff] }
 0xdb3   :  { %v8113_v62 = vpack.c.bf16 %v5335_v58, %v5333_v43  ;;  %v5351_v43 = vld [vmem:[%s12921_s18 + $0x158] sm:$0xff]  ;;  %v5348_v58 = vld [vmem:[%s12921_s18 + $0x140] sm:$0xff] }
 0xdb5   :  { %8096 = vmatpush1.bf16.msra.mxu1 %v8095_v7  ;;  %v5332_v7 = vld [vmem:[%s12921_s18 + $0xc0] sm:$0xff] }
 0xdb6   :  { %8098 = vmatprep.subr.bf16.mxu1 %v8097_v1  ;;  %v8115_v15 = vpack.c.bf16 %v5334_v59, %v5332_v7  ;;  %v12005_v7 = vld [vmem:[#allocation10] sm:$0xf]  ;;  %v5350_v59 = vld [vmem:[%s12921_s18 + $0x150] sm:$0xff] }
 0xdb9   :  { %8100 = vmatpush1.bf16.msra.mxu1 %v8099_v31 }
 0xdba   :  { %8102 = vmatprep.subr.bf16.mxu1 %v8101_v8 }
 0xdbd   :  { %8104 = vmatpush1.bf16.msra.mxu1 %v8103_v47 }
 0xdbe   :  { %8106 = vmatprep.subr.bf16.mxu1 %v8105_v36 }
 0xdc1   :  { %8108 = vmatpush1.bf16.msra.mxu1 %v8107_v2 }
 0xdc2   :  { %8110 = vmatprep.subr.bf16.mxu1 %v8109_v30  ;;  %v5347_v30 = vld [vmem:[%s12921_s18 + $0x138] sm:$0xff] }
 0xdc5   :  { %8112 = vmatpush1.bf16.msra.mxu1 %v8111_v10 }
 0xdc6   :  { %8114 = vmatprep.subr.bf16.mxu1 %v8113_v62 }
 0xdc9   :  { %8116 = vmatpush1.bf16.msra.mxu1 %v8115_v15 }
 0xe1b   :  { %v6928_v5 = vpop.f32.mrb[44].mxu1 }
 0xe1c   :  { %v6929_v38 = vpop.f32.mrb[45].mxu1 }
 0xe1d   :  { %v6930_v61 = vadd.f32 %v6929_v38, %v6928_v5  ;;  %v5337_v5 = vld [vmem:[%s12921_s18 + $0xe8] sm:$0xff]  ;;  %v5338_v38 = vld [vmem:[%s12921_s18 + $0xf0] sm:$0xff] }
 0xe1e   :  { %v8117_v37 = vpack.c.bf16 %v5339_v20, %v5337_v5  ;;  %v8119_v47 = vpack.c.bf16 %v5338_v38, %v5336_v0  ;;  %v5357_v20 = vld [vmem:[%s12921_s18 + $0x188] sm:$0xff]  ;;  %v5359_v0 = vld [vmem:[%s12921_s18 + $0x198] sm:$0xff] }
 0xe1f   :  { %v6931_v41 = vpop.f32.mrb[46].mxu1  ;;  %v4142_v9 = vadd.f32 %v6930_v61, %v6742_v27 }
 0xe20   :  { %v6932_v23 = vpop.f32.mrb[47].mxu1  ;;  %v7237_v54 = vpop.f32.mrb[40].mxu0  ;;  %8118 = vmatprep.subr.bf16.mxu1 %v8117_v37  ;;  %v5356_v37 = vld [vmem:[%s12921_s18 + $0x180] sm:$0xff] }
 0xe21   :  { %v6933_v34 = vadd.f32 %v6932_v23, %v6931_v41  ;;  %v4216_v6 = vpop.f32.mrb[41].mxu0  ;;  %v5343_v23 = vld [vmem:[%s12921_s18 + $0x118] sm:$0xff]  ;;  %8120 = vmatpush1.bf16.msra.mxu1 %v8119_v47 }
 0xe22   :  { %v4217_v24 = vadd.f32 %v4216_v6, %v4142_v9  ;;  %v5363_v47 = vld [vmem:[%s12921_s18 + $0x1b8] sm:$0xff] }
 0xe23   :  { %v4147_v48 = vadd.f32 %v6933_v34, %v6742_v27  ;;  %v5342_v34 = vld [vmem:[%s12921_s18 + $0x110] sm:$0xff] }
 0xe24   :  { %v4225_v39 = vmax.f32 %v4217_v24, 0.0  ;;  %v8121_v24 = vpack.c.bf16 %v5343_v23, %v5341_v60  ;;  %v5365_v60 = vld [vmem:[%s12921_s18 + $0x1c8] sm:$0xff]  ;;  %v5367_v23 = vld [vmem:[%s12921_s18 + $0x1d8] sm:$0xff] }
 0xe25   :  { %v4222_v45 = vadd.f32 %v7237_v54, %v4147_v48  ;;  %v5340_v54 = vld [vmem:[%s12921_s18 + $0x100] sm:$0xff] }
 0xe26   :  { %v4540_v52 = vmul.f32 %v4526_v13, %v4225_v39  ;;  %v8123_v50 = vpack.c.bf16 %v5342_v34, %v5340_v54  ;;  %8122 = vmatprep.subr.bf16.mxu1 %v8121_v24  ;;  %v5345_v39 = vld [vmem:[%s12921_s18 + $0x128] sm:$0xff]  ;;  %v8145_v54 = vpack.c.bf16 %v5367_v23, %v5365_v60  ;;  %v5368_v24 = vld [vmem:[%s12921_s18 + $0x1e0] sm:$0xff] }
 0xe27   :  { %v4226_v22 = vmax.f32 %v4222_v45, 0.0  ;;  %v8125_v45 = vpack.c.bf16 %v5347_v30, %v5345_v39  ;;  %v4823_v60 = vld [vmem:[%s12924_s12] sm:$0xff] }
 0xe28   :  { %v4569_v32 = vadd.f32 %v4555_v21, %v4540_v52  ;;  %8124 = vmatpush1.bf16.msra.mxu1 %v8123_v50 }
 0xe29   :  { %v4544_v1 = vmul.f32 %v4526_v13, %v4226_v22  ;;  %8126 = vmatprep.subr.bf16.mxu1 %v8125_v45  ;;  %v5349_v22 = vld [vmem:[%s12921_s18 + $0x148] sm:$0xff] }
 0xe2a   :  { %v4588_v33 = vrot.slane %v4569_v32, 1  ;;  %v4628_v61 = vrot.slane %v4569_v32, 2  ;;  %v8129_v62 = vpack.c.bf16 %v5351_v43, %v5349_v22 }
 0xe2b   :  { %v4573_v31 = vadd.f32 %v4555_v21, %v4544_v1  ;;  %v5346_v21 = vld [vmem:[%s12921_s18 + $0x130] sm:$0xff]  ;;  %v8131_v1 = vpack.c.bf16 %v5350_v59, %v5348_v58  ;;  %v4530_v59 = vrot.slane %v11714_v16, %v11707_v49 }
 0xe2c   :  { %v8127_v10 = vpack.c.bf16 %v5346_v21, %v5344_v11 }
 0xe2d   :  { %v4589_v27 = vrot.slane %v4573_v31, 1  ;;  %v4629_v8 = vrot.slane %v4573_v31, 2 }
 0xe2e   :  { %8128 = vmatpush1.bf16.msra.mxu1 %v8127_v10 }
 0xe2f   :  { %v4606_v41 = vsel %vm12922_vm5, %v4589_v27, -inf  ;;  %v4590_v9 = vsel %vm876_vm14, %v4588_v33, %v4589_v27  ;;  %v4630_v44 = vsel %vm12915_vm11, %v4628_v61, %v4629_v8  ;;  %v4646_v12 = vsel %vm12923_vm6, %v4629_v8, -inf  ;;  %8130 = vmatprep.subr.bf16.mxu1 %v8129_v62  ;;  %v5358_v8 = vld [vmem:[%s12921_s18 + $0x190] sm:$0xff]  ;;  %v5361_v61 = vld [vmem:[%s12921_s18 + $0x1a8] sm:$0xff] }
 0xe30   :  { %v4614_v36 = vsel %vm3705_vm9, %v4606_v41, -inf  ;;  %v4610_v53 = vsel %vm3704_vm10, %v4590_v9, -inf  ;;  %v4650_v2 = vsel %vm4281_vm15, %v4630_v44, -inf  ;;  %v4654_v48 = vsel %vm4282_vm2, %v4646_v12, -inf  ;;  %v5360_v41 = vld [vmem:[%s12921_s18 + $0x1a0] sm:$0xff]  ;;  %v5362_v44 = vld [vmem:[%s12921_s18 + $0x1b0] sm:$0xff] }
 0xe31   :  { %v4622_v6 = vmax.f32 %v4573_v31, %v4614_v36  ;;  %v4618_v13 = vmax.f32 %v4569_v32, %v4610_v53  ;;  %v8137_v27 = vpack.c.bf16 %v5359_v0, %v5357_v20  ;;  %v8139_v33 = vpack.c.bf16 %v5358_v8, %v5356_v37  ;;  %v5364_v36 = vld [vmem:[%s12921_s18 + $0x1c0] sm:$0xff]  ;;  %v5366_v53 = vld [vmem:[%s12921_s18 + $0x1d0] sm:$0xff] }
 0xe32   :  { %8132 = vmatpush1.bf16.msra.mxu1 %v8131_v1  ;;  %v8141_v9 = vpack.c.bf16 %v5363_v47, %v5361_v61  ;;  %v8143_v12 = vpack.c.bf16 %v5362_v44, %v5360_v41  ;;  %v8147_v34 = vpack.c.bf16 %v5366_v53, %v5364_v36  ;;  %v4824_v47 = vld [vmem:[%s12924_s12 + $0x8] sm:$0xff]  ;;  %v4826_v41 = vld [vmem:[%s12924_s12 + $0x18] sm:$0xff]  ;;  %v7951_v53 = vpack.c.bf16 %v4825_v51, %v4823_v60  ;;  %v4849_v51 = vld [vmem:[%s12924_s12 + $0xd0] sm:$0xff] }
 0xe33   :  { %v4658_v4 = vmax.f32 %v4618_v13, %v4650_v2  ;;  %v4662_v56 = vmax.f32 %v4622_v6, %v4654_v48  ;;  %8134 = vmatprep.subr.bf16.mxu1 %v8133_v28  ;;  %v5369_v6 = vld [vmem:[%s12921_s18 + $0x1e8] sm:$0xff]  ;;  %v5371_v13 = vld [vmem:[%s12921_s18 + $0x1f8] sm:$0xff]  ;;  %v5370_v48 = vld [vmem:[%s12921_s18 + $0x1f0] sm:$0xff]  ;;  %vm5882_vm5 = vcmask 998400  }
 0xe34   :  { %v8149_v2 = vpack.c.bf16 %v5371_v13, %v5369_v6  ;;  %v8151_v50 = vpack.c.bf16 %v5370_v48, %v5368_v24  ;;  %v5373_v36 = vld [vmem:[%s12921_s18 + $0x208] sm:$0xff]  ;;  %v4827_v6 = vld [vmem:[%s12924_s12 + $0x20] sm:$0xff]  ;;  %v4829_v13 = vld [vmem:[%s12924_s12 + $0x30] sm:$0xff] }
 0xe35   :  { %v7937_v52 = vpack.c.bf16 %v4662_v56, %v4658_v4  ;;  %v6747_v4 = vld [vmem:[#allocation32] ss:$0 sm:$0xff]  ;;  %v4834_v48 = vld [vmem:[%s12924_s12 + $0x58] sm:$0xff]  ;;  %v7955_v63 = vpack.c.bf16 %v4829_v13, %v4827_v6  ;;  %v5380_v13 = vld [vmem:[%s12921_s18 + $0x240] sm:$0xff] }
 0xe37   :  { %7939 = vmatprep.subr.msk.bf16.mxu0 %vm10841_vm1, %v7937_v52 }
 0xe38   :  { %7942 = vmatpush1.bf16.msk.msra.mxu0 %vm10841_vm1, %v7940_v46  ;;  %v5352_v46 = vld [vmem:[%s12921_s18 + $0x160] sm:$0xff] }
 0xe39   :  { %7945 = vmatprep.subr.msk.bf16.mxu0 %vm10841_vm1, %v7943_v14  ;;  %v8135_v31 = vpack.c.bf16 %v5354_v55, %v5352_v46 }
 0xe3b   :  { %v6984_v32 = vpop.f32.mrb[48].mxu1  ;;  %6758 = vmatmul.mubr.msk.f32.vlgmr.msra.gmra.mrb[42].mxu0 %vm4665_vm13, %v12005_v7  ;;  %8136 = vmatpush1.bf16.msra.mxu1 %v8135_v31 }
 0xe3c   :  { %v6985_v15 = vpop.f32.mrb[49].mxu1  ;;  %4816 = vmatprep.mubr.f32.mxu0 %v9554_v42  ;;  %8138 = vmatprep.subr.bf16.mxu1 %v8137_v27 }
 0xe3d   :  { %v6986_v14 = vadd.f32 %v6985_v15, %v6984_v32 }
 0xe3f   :  { %v6987_v5 = vpop.f32.mrb[50].mxu1  ;;  %8140 = vmatpush1.bf16.msra.mxu1 %v8139_v33  ;;  %v4358_v30 = vadd.f32 %v6986_v14, %v6747_v4 }
 0xe40   :  { %v6988_v38 = vpop.f32.mrb[51].mxu1  ;;  %8142 = vmatprep.subr.bf16.mxu1 %v8141_v9 }
 0xe41   :  { %v6989_v42 = vadd.f32 %v6988_v38, %v6987_v5 }
 0xe43   :  { %8144 = vmatpush1.bf16.msra.mxu1 %v8143_v12  ;;  %v4363_v10 = vadd.f32 %v6989_v42, %v6747_v4  ;;  %v7949_v12 = vpack.c.bf16 %v4826_v41, %v4824_v47  ;;  %v4831_v4 = vld [vmem:[%s12924_s12 + $0x40] sm:$0xff] }
 0xe44   :  { %8146 = vmatprep.subr.bf16.mxu1 %v8145_v54  ;;  %v4828_v54 = vld [vmem:[%s12924_s12 + $0x28] sm:$0xff]  ;;  %v4847_v41 = vld [vmem:[%s12924_s12 + $0xc0] sm:$0xff] }
 0xe45   :  { %v7953_v57 = vpack.c.bf16 %v4830_v40, %v4828_v54  ;;  %v5383_v54 = vld [vmem:[%s12921_s18 + $0x258] sm:$0xff]  ;;  %v4852_v40 = vld [vmem:[%s12924_s12 + $0xe8] sm:$0xff] }
 0xe47   :  { %8148 = vmatpush1.bf16.msra.mxu1 %v8147_v34  ;;  %v5375_v34 = vld [vmem:[%s12921_s18 + $0x218] sm:$0xff] }
 0xe48   :  { %8150 = vmatprep.subr.bf16.mxu1 %v8149_v2  ;;  %v8153_v24 = vpack.c.bf16 %v5375_v34, %v5373_v36  ;;  %v4832_v2 = vld [vmem:[%s12924_s12 + $0x48] sm:$0xff]  ;;  %v4854_v36 = vld [vmem:[%s12924_s12 + $0xf8] sm:$0xff]  ;;  %v7975_v34 = vpack.c.bf16 %v4849_v51, %v4847_v41  ;;  %v5398_v51 = vld [vmem:[%s12921_s18 + $0x2d0] sm:$0xff] }
 0xe49   :  { %v4870_v41 = vld [vmem:[%s12924_s12 + $0x178] sm:$0xff] }
 0xe4b   :  { %8152 = vmatpush1.bf16.msra.mxu1 %v8151_v50  ;;  %v7957_v50 = vpack.c.bf16 %v4834_v48, %v4832_v2  ;;  %v7977_v2 = vpack.c.bf16 %v4854_v36, %v4852_v40  ;;  %v4853_v48 = vld [vmem:[%s12924_s12 + $0xf0] sm:$0xff]  ;;  %v5401_v40 = vld [vmem:[%s12921_s18 + $0x2e8] sm:$0xff]  ;;  %v5403_v36 = vld [vmem:[%s12921_s18 + $0x2f8] sm:$0xff] }
 0xe4c   :  { %8154 = vmatprep.subr.bf16.mxu1 %v8153_v24  ;;  %v5382_v24 = vld [vmem:[%s12921_s18 + $0x250] sm:$0xff] }
 0xe5b   :  { %v7022_v56 = vpop.f32.mrb[52].mxu1 }
 0xe5c   :  { %v7023_v39 = vpop.f32.mrb[53].mxu1 }
 0xe5d   :  { %v7024_v11 = vadd.f32 %v7023_v39, %v7022_v56  ;;  %v4833_v56 = vld [vmem:[%s12924_s12 + $0x50] sm:$0xff]  ;;  %v4836_v39 = vld [vmem:[%s12924_s12 + $0x68] sm:$0xff] }
 0xe5f   :  { %v7025_v45 = vpop.f32.mrb[54].mxu1  ;;  %v4433_v21 = vadd.f32 %v7024_v11, %v4358_v30  ;;  %v4838_v30 = vld [vmem:[%s12924_s12 + $0x78] sm:$0xff]  ;;  %v7959_v11 = vpack.c.bf16 %v4833_v56, %v4831_v4  ;;  %v4856_v4 = vld [vmem:[%s12924_s12 + $0x108] sm:$0xff] }
 0xe60   :  { %v7026_v52 = vpop.f32.mrb[55].mxu1  ;;  %v4858_v56 = vld [vmem:[%s12924_s12 + $0x118] sm:$0xff] }
 0xe61   :  { %v7027_v22 = vadd.f32 %v7026_v52, %v7025_v45  ;;  %v12072_v45 = vld [vmem:[#allocation40] sm:$0xf]  ;;  %v4837_v52 = vld [vmem:[%s12924_s12 + $0x70] sm:$0xff] }
 0xe63   :  { %v4438_v43 = vadd.f32 %v7027_v22, %v4363_v10  ;;  %v4840_v10 = vld [vmem:[%s12924_s12 + $0x88] sm:$0xff]  ;;  %v4842_v22 = vld [vmem:[%s12924_s12 + $0x98] sm:$0xff] }
 0xe7b   :  { %v7272_v58 = vpop.f32.mrb[56].mxu1 }
 0xe7c   :  { %v4513_v62 = vadd.f32 %v7272_v58, %v4438_v43  ;;  %v4507_v1 = vpop.f32.mrb[57].mxu1  ;;  %v5121_v43 = vrot.slane %v12072_v45, %v10996_v29 }
 0xe7d   :  { %v4508_v32 = vadd.f32 %v4507_v1, %v4433_v21  ;;  %v4835_v21 = vld [vmem:[%s12924_s12 + $0x60] sm:$0xff] }
 0xe7e   :  { %v4517_v18 = vmax.f32 %v4513_v62, 0.0  ;;  %v7963_v58 = vpack.c.bf16 %v4837_v52, %v4835_v21  ;;  %v5125_v62 = vrot.slane %v12072_v45, %v11010_v17  ;;  %v4839_v1 = vld [vmem:[%s12924_s12 + $0x80] sm:$0xff]  ;;  %v5386_v52 = vld [vmem:[%s12921_s18 + $0x270] sm:$0xff] }
 0xe7f   :  { %v4516_v46 = vmax.f32 %v4508_v32, 0.0  ;;  %v4841_v32 = vld [vmem:[%s12924_s12 + $0x90] sm:$0xff]  ;;  %v5384_v21 = vld [vmem:[%s12921_s18 + $0x260] sm:$0xff] }
 0xe80   :  { %v4545_v15 = vmul.f32 %v4530_v59, %v4517_v18  ;;  %v4844_v18 = vld [vmem:[%s12924_s12 + $0xa8] sm:$0xff] }
 0xe81   :  { %v4541_v28 = vmul.f32 %v4530_v59, %v4516_v46  ;;  %v7965_v59 = vpack.c.bf16 %v4842_v22, %v4840_v10  ;;  %v5220_v46 = vpop.f32.mrb[58].mxu1  ;;  %v7981_v10 = vpack.c.bf16 %v4858_v56, %v4856_v4  ;;  %v4857_v22 = vld [vmem:[%s12924_s12 + $0x110] sm:$0xff]  ;;  %v5405_v4 = vld [vmem:[%s12921_s18 + $0x308] sm:$0xff]  ;;  %v5407_v56 = vld [vmem:[%s12921_s18 + $0x318] sm:$0xff] }
 0xe82   :  { %v4574_v55 = vadd.f32 %v4559_v19, %v4545_v15  ;;  %v5221_v15 = vadd.f32 %v5220_v46, %v5121_v43  ;;  %v5389_v43 = vld [vmem:[%s12921_s18 + $0x288] sm:$0xff]  ;;  %v5388_v46 = vld [vmem:[%s12921_s18 + $0x280] sm:$0xff] }
 0xe83   :  { %v4570_v14 = vadd.f32 %v4559_v19, %v4541_v28  ;;  %v4846_v19 = vld [vmem:[%s12924_s12 + $0xb8] sm:$0xff]  ;;  %v5222_v28 = vpop.f32.mrb[59].mxu1 }
 0xe84   :  { %v4592_v31 = vrot.slane %v4574_v55, 1  ;;  %v4632_v5 = vrot.slane %v4574_v55, 2 }
 0xe85   :  { %v4591_v20 = vrot.slane %v4570_v14, 1  ;;  %v4631_v0 = vrot.slane %v4570_v14, 2 }
 0xe86   :  { %v4607_v16 = vsel %vm12925_vm0, %v4592_v31, -inf  ;;  %v4647_v37 = vsel %vm12926_vm7, %v4632_v5, -inf }
 0xe87   :  { %v4615_v35 = vsel %vm3705_vm9, %v4607_v16, -inf  ;;  %v4593_v38 = vsel %vm876_vm14, %v4591_v20, %v4592_v31  ;;  %v4633_v27 = vsel %vm12927_vm8, %v4631_v0, %v4632_v5  ;;  %v4655_v33 = vsel %vm4282_vm2, %v4647_v37, -inf  ;;  %v5372_v5 = vld [vmem:[%s12921_s18 + $0x200] sm:$0xff]  ;;  %v5374_v20 = vld [vmem:[%s12921_s18 + $0x210] sm:$0xff] }
 0xe88   :  { %v4623_v8 = vmax.f32 %v4574_v55, %v4615_v35  ;;  %v4611_v42 = vsel %vm3704_vm10, %v4593_v38, -inf  ;;  %v4651_v9 = vsel %vm4281_vm15, %v4633_v27, -inf  ;;  %v7967_v55 = vpack.c.bf16 %v4841_v32, %v4839_v1  ;;  %v4845_v16 = vld [vmem:[%s12924_s12 + $0xb0] sm:$0xff]  ;;  %v5377_v35 = vld [vmem:[%s12921_s18 + $0x228] sm:$0xff]  ;;  %v5379_v38 = vld [vmem:[%s12921_s18 + $0x238] sm:$0xff] }
 0xe89   :  { %v4619_v61 = vmax.f32 %v4570_v14, %v4611_v42  ;;  %v4843_v14 = vld [vmem:[%s12924_s12 + $0xa0] sm:$0xff]  ;;  %v5223_v31 = vadd.f32 %v5222_v28, %v5125_v62  ;;  %v7969_v0 = vpack.c.bf16 %v4846_v19, %v4844_v18  ;;  %vm5296_vm14 = vcmp.gt.f32.partialorder %v5221_v15, 0.0  ;;  %v4848_v27 = vld [vmem:[%s12924_s12 + $0xc8] sm:$0xff] }
 0xe8a   :  { %v4663_v26 = vmax.f32 %v4623_v8, %v4655_v33  ;;  %v5300_v37 = vmul.f32 0.01, %v5221_v15  ;;  %v4850_v8 = vld [vmem:[%s12924_s12 + $0xd8] sm:$0xff]  ;;  %v7971_v47 = vpack.c.bf16 %v4845_v16, %v4843_v14  ;;  %v4860_v62 = vld [vmem:[%s12924_s12 + $0x128] sm:$0xff]  ;;  %v8167_v1 = vpack.c.bf16 %v5386_v52, %v5384_v21  ;;  %v4859_v18 = vld [vmem:[%s12924_s12 + $0x120] sm:$0xff] }
 0xe8b   :  { %v4659_v44 = vmax.f32 %v4619_v61, %v4651_v9  ;;  %v5301_v42 = vmul.f32 0.01, %v5223_v31  ;;  %v8155_v61 = vpack.c.bf16 %v5374_v20, %v5372_v5  ;;  %v8157_v9 = vpack.c.bf16 %v5379_v38, %v5377_v35  ;;  %v5393_v14 = vld [vmem:[%s12921_s18 + $0x2a8] sm:$0xff]  ;;  %v4866_v20 = vld [vmem:[%s12924_s12 + $0x158] sm:$0xff]  ;;  %v5392_v38 = vld [vmem:[%s12921_s18 + $0x2a0] sm:$0xff] }
 0xe8c   :  { %v5304_v33 = vsel %vm5296_vm14, %v5221_v15, %v5300_v37  ;;  %v7973_v60 = vpack.c.bf16 %v4850_v8, %v4848_v27  ;;  %v5390_v15 = vld [vmem:[%s12921_s18 + $0x290] sm:$0xff]  ;;  %v4864_v5 = vld [vmem:[%s12924_s12 + $0x148] sm:$0xff]  ;;  %v4863_v37 = vld [vmem:[%s12924_s12 + $0x140] sm:$0xff]  ;;  %v8185_v52 = vpack.c.bf16 %v5407_v56, %v5405_v4  ;;  %vm12929_vm10 = vcmask 1043456  }
 0xe8d   :  { %v7946_v23 = vpack.c.bf16 %v4663_v26, %v4659_v44  ;;  %v5376_v44 = vld [vmem:[%s12921_s18 + $0x220] sm:$0xff]  ;;  %v5394_v27 = vld [vmem:[%s12921_s18 + $0x2b0] sm:$0xff]  ;;  %v7989_v8 = vpack.c.bf16 %v4866_v20, %v4864_v5  ;;  %v5413_v5 = vld [vmem:[%s12921_s18 + $0x348] sm:$0xff] }
 0xe8e   :  { %v4875_v21 = vld [vmem:[%s12924_s12 + $0x1a0] sm:$0xff]  ;;  %v5415_v20 = vld [vmem:[%s12921_s18 + $0x358] sm:$0xff]  ;;  %v5429_v4 = vld [vmem:[%s12921_s18 + $0x3c8] sm:$0xff] }
 0xe8f   :  { %7948 = vmatpush1.bf16.msk.msra.mxu0 %vm10841_vm1, %v7946_v23  ;;  %vm5297_vm1 = vcmp.gt.f32.partialorder %v5223_v31, 0.0  ;;  %v5381_v23 = vld [vmem:[%s12921_s18 + $0x248] sm:$0xff]  ;;  %v5431_v56 = vld [vmem:[%s12921_s18 + $0x3d8] sm:$0xff]  ;;  %vm12930_vm9 = vmmov %vm12929_vm10 }
 0xe90   :  { %7950 = vmatprep.subr.bf16.mxu0 %v7949_v12  ;;  %v5305_v26 = vsel %vm5297_vm1, %v5223_v31, %v5301_v42  ;;  %v5378_v12 = vld [vmem:[%s12921_s18 + $0x230] sm:$0xff]  ;;  %v8161_v6 = vpack.c.bf16 %v5383_v54, %v5381_v23  ;;  %v5395_v31 = vld [vmem:[%s12921_s18 + $0x2b8] sm:$0xff]  ;;  %vm12932_vm8 = vmmov %vm12930_vm9 }
 0xe91   :  { %5520 = vmatprep.mubr.f32.mxu1 %v5305_v26  ;;  %v8173_v35 = vpack.c.bf16 %v5395_v31, %v5393_v14  ;;  %v4865_v42 = vld [vmem:[%s12924_s12 + $0x150] sm:$0xff]  ;;  %v8175_v26 = vpack.c.bf16 %v5394_v27, %v5392_v38  ;;  %v4883_v38 = vld [vmem:[%s12924_s12 + $0x1e0] sm:$0xff]  ;;  %v8193_v27 = vpack.c.bf16 %v5415_v20, %v5413_v5  ;;  %v5615_v5 = vld [vmem:[%s12928_s17 + $0x58] sm:$0xff] }
 0xe92   :  { %6761 = vmatmul.mubr.msk.f32.vlgmr.msra.gmra.mrb[44].mxu0 %vm4665_vm13, %v12005_v7  ;;  %v7961_v7 = vpack.c.bf16 %v4838_v30, %v4836_v39  ;;  %5521 = vmatmul.mubr.f32.vlgmr.msra.gmra.mrb[62].mxu1 %v5304_v33  ;;  %v8163_v39 = vpack.c.bf16 %v5382_v24, %v5380_v13  ;;  %v5397_v33 = vld [vmem:[%s12921_s18 + $0x2c8] sm:$0xff]  ;;  %v4869_v54 = vld [vmem:[%s12924_s12 + $0x170] sm:$0xff]  ;;  %v4871_v13 = vld [vmem:[%s12924_s12 + $0x180] sm:$0xff]  ;;  %v8181_v24 = vpack.c.bf16 %v5403_v36, %v5401_v40 }
 0xe93   :  { %7952 = vmatpush1.bf16.msra.mxu0 %v7951_v53  ;;  %8156 = vmatpush1.bf16.msra.mxu1 %v8155_v61  ;;  %v8159_v53 = vpack.c.bf16 %v5378_v12, %v5376_v44  ;;  %v5399_v61 = vld [vmem:[%s12921_s18 + $0x2d8] sm:$0xff]  ;;  %v4867_v44 = vld [vmem:[%s12924_s12 + $0x160] sm:$0xff]  ;;  %v4881_v31 = vld [vmem:[%s12924_s12 + $0x1d0] sm:$0xff] }
 0xe94   :  { %7954 = vmatprep.subr.bf16.mxu0 %v7953_v57  ;;  %v4851_v57 = vld [vmem:[%s12924_s12 + $0xe0] sm:$0xff]  ;;  %8158 = vmatprep.subr.bf16.mxu1 %v8157_v9  ;;  %v7991_v9 = vpack.c.bf16 %v4865_v42, %v4863_v37  ;;  %v8177_v12 = vpack.c.bf16 %v5399_v61, %v5397_v33  ;;  %v5414_v42 = vld [vmem:[%s12921_s18 + $0x350] sm:$0xff]  ;;  %v5421_v40 = vld [vmem:[%s12921_s18 + $0x388] sm:$0xff] }
 0xe95   :  { %v7979_v30 = vpack.c.bf16 %v4853_v48, %v4851_v57  ;;  %v5402_v48 = vld [vmem:[%s12921_s18 + $0x2f0] sm:$0xff]  ;;  %v5423_v36 = vld [vmem:[%s12921_s18 + $0x398] sm:$0xff]  ;;  %vm12933_vm14 = vmmov %vm12932_vm8 }
 0xe96   :  { %v4885_v61 = vld [vmem:[%s12924_s12 + $0x1f0] sm:$0xff]  ;;  %v5619_v20 = vld [vmem:[%s12928_s17 + $0x78] sm:$0xff] }
 0xe97   :  { %7956 = vmatpush1.bf16.msra.mxu0 %v7955_v63  ;;  %v5385_v63 = vld [vmem:[%s12921_s18 + $0x268] sm:$0xff]  ;;  %8160 = vmatpush1.bf16.msra.mxu1 %v8159_v53 }
 0xe98   :  { %7958 = vmatprep.subr.bf16.mxu0 %v7957_v50  ;;  %v5387_v50 = vld [vmem:[%s12921_s18 + $0x278] sm:$0xff]  ;;  %8162 = vmatprep.subr.bf16.mxu1 %v8161_v6  ;;  %v4872_v53 = vld [vmem:[%s12924_s12 + $0x188] sm:$0xff]  ;;  %v7995_v6 = vpack.c.bf16 %v4869_v54, %v4867_v44 }
 0xe9b   :  { %7960 = vmatpush1.bf16.msra.mxu0 %v7959_v11  ;;  %v4855_v11 = vld [vmem:[%s12924_s12 + $0x100] sm:$0xff]  ;;  %8164 = vmatpush1.bf16.msra.mxu1 %v8163_v39  ;;  %v4876_v39 = vld [vmem:[%s12924_s12 + $0x1a8] sm:$0xff] }
 0xe9c   :  { %7962 = vmatprep.subr.bf16.mxu0 %v7961_v7  ;;  %v8165_v7 = vpack.c.bf16 %v5387_v50, %v5385_v63  ;;  %v7983_v32 = vpack.c.bf16 %v4857_v22, %v4855_v11  ;;  %v4873_v50 = vld [vmem:[%s12924_s12 + $0x190] sm:$0xff] }
 0xe9d   :  { %v5406_v22 = vld [vmem:[%s12921_s18 + $0x310] sm:$0xff] }
 0xe9e   :  { %8166 = vmatprep.subr.bf16.mxu1 %v8165_v7  ;;  %v7999_v7 = vpack.c.bf16 %v4873_v50, %v4871_v13  ;;  %v5425_v13 = vld [vmem:[%s12921_s18 + $0x3a8] sm:$0xff]  ;;  %v5426_v50 = vld [vmem:[%s12921_s18 + $0x3b0] sm:$0xff] }
 0xe9f   :  { %7964 = vmatpush1.bf16.msra.mxu0 %v7963_v58  ;;  %v5391_v58 = vld [vmem:[%s12921_s18 + $0x298] sm:$0xff]  ;;  %8168 = vmatpush1.bf16.msra.mxu1 %v8167_v1  ;;  %v4880_v1 = vld [vmem:[%s12924_s12 + $0x1c8] sm:$0xff] }
 0xea0   :  { %7966 = vmatprep.subr.bf16.mxu0 %v7965_v59  ;;  %v4862_v59 = vld [vmem:[%s12924_s12 + $0x138] sm:$0xff]  ;;  %v8169_v19 = vpack.c.bf16 %v5391_v58, %v5389_v43  ;;  %v4877_v58 = vld [vmem:[%s12924_s12 + $0x1b0] sm:$0xff] }
 0xea1   :  { %v7985_v28 = vpack.c.bf16 %v4862_v59, %v4860_v62  ;;  %v5409_v62 = vld [vmem:[%s12921_s18 + $0x328] sm:$0xff]  ;;  %v5411_v59 = vld [vmem:[%s12921_s18 + $0x338] sm:$0xff] }
 0xea2   :  { %8170 = vmatprep.subr.bf16.mxu1 %v8169_v19  ;;  %v8003_v19 = vpack.c.bf16 %v4877_v58, %v4875_v21  ;;  %v5291_v58 = vpop.f32.mrb[60].mxu1 }
 0xea3   :  { %7968 = vmatpush1.bf16.msra.mxu0 %v7967_v55  ;;  %v4861_v55 = vld [vmem:[%s12924_s12 + $0x130] sm:$0xff] }
 0xea4   :  { %7970 = vmatprep.subr.bf16.mxu0 %v7969_v0  ;;  %v8171_v0 = vpack.c.bf16 %v5390_v15, %v5388_v46  ;;  %v7987_v16 = vpack.c.bf16 %v4861_v55, %v4859_v18  ;;  %v4879_v46 = vld [vmem:[%s12924_s12 + $0x1c0] sm:$0xff]  ;;  %v8189_v15 = vpack.c.bf16 %v5411_v59, %v5409_v62  ;;  %v5410_v55 = vld [vmem:[%s12921_s18 + $0x330] sm:$0xff]  ;;  %v5293_v59 = vpop.f32.mrb[61].mxu1 }
 0xea6   :  { %8172 = vmatpush1.bf16.msra.mxu1 %v8171_v0  ;;  %v4884_v0 = vld [vmem:[%s12924_s12 + $0x1e8] sm:$0xff] }
 0xea7   :  { %7972 = vmatpush1.bf16.msra.mxu0 %v7971_v47  ;;  %v4868_v47 = vld [vmem:[%s12924_s12 + $0x168] sm:$0xff]  ;;  %8174 = vmatprep.subr.bf16.mxu1 %v8173_v35  ;;  %v8007_v35 = vpack.c.bf16 %v4881_v31, %v4879_v46  ;;  %v5611_v46 = vld [vmem:[%s12928_s17 + $0x38] sm:$0xff] }
 0xea8   :  { %7974 = vmatprep.subr.bf16.mxu0 %v7973_v60  ;;  %v5396_v60 = vld [vmem:[%s12921_s18 + $0x2c0] sm:$0xff]  ;;  %v7993_v23 = vpack.c.bf16 %v4870_v41, %v4868_v47  ;;  %v5417_v47 = vld [vmem:[%s12921_s18 + $0x368] sm:$0xff]  ;;  %v5419_v41 = vld [vmem:[%s12921_s18 + $0x378] sm:$0xff] }
 0xea9   :  { %v8179_v57 = vpack.c.bf16 %v5398_v51, %v5396_v60  ;;  %v8197_v60 = vpack.c.bf16 %v5419_v41, %v5417_v47  ;;  %v5416_v51 = vld [vmem:[%s12921_s18 + $0x360] sm:$0xff]  ;;  %v5631_v47 = vld [vmem:[%s12928_s17 + $0xd8] sm:$0xff] }
 0xeaa   :  { %8176 = vmatpush1.bf16.msra.mxu1 %v8175_v26  ;;  %v4888_v26 = vld [vmem:[%s12924_s12 + $0x208] sm:$0xff]  ;;  %v5635_v41 = vld [vmem:[%s12928_s17 + $0xf8] sm:$0xff] }
 0xeab   :  { %7976 = vmatpush1.bf16.msra.mxu0 %v7975_v34  ;;  %v4874_v34 = vld [vmem:[%s12924_s12 + $0x198] sm:$0xff]  ;;  %8178 = vmatprep.subr.bf16.mxu1 %v8177_v12  ;;  %v8011_v12 = vpack.c.bf16 %v4885_v61, %v4883_v38 }
 0xeac   :  { %7978 = vmatprep.subr.bf16.mxu0 %v7977_v2  ;;  %v5400_v2 = vld [vmem:[%s12921_s18 + $0x2e0] sm:$0xff]  ;;  %v7997_v63 = vpack.c.bf16 %v4874_v34, %v4872_v53  ;;  %v8201_v34 = vpack.c.bf16 %v5423_v36, %v5421_v40  ;;  %v5623_v38 = vld [vmem:[%s12928_s17 + $0x98] sm:$0xff]  ;;  %v5642_v40 = vld [vmem:[%s12928_s17 + $0x130] sm:$0xff] }
 0xead   :  { %v8183_v11 = vpack.c.bf16 %v5402_v48, %v5400_v2 }
 0xeae   :  { %8180 = vmatpush1.bf16.msra.mxu1 %v8179_v57  ;;  %v5420_v57 = vld [vmem:[%s12921_s18 + $0x380] sm:$0xff] }
 0xeaf   :  { %7980 = vmatpush1.bf16.msra.mxu0 %v7979_v30  ;;  %v4878_v30 = vld [vmem:[%s12924_s12 + $0x1b8] sm:$0xff]  ;;  %8182 = vmatprep.subr.bf16.mxu1 %v8181_v24 }
 0xeb0   :  { %7982 = vmatprep.subr.bf16.mxu0 %v7981_v10  ;;  %v5404_v10 = vld [vmem:[%s12921_s18 + $0x300] sm:$0xff]  ;;  %v8001_v43 = vpack.c.bf16 %v4878_v30, %v4876_v39  ;;  %v5427_v24 = vld [vmem:[%s12921_s18 + $0x3b8] sm:$0xff]  ;;  %v8209_v30 = vpack.c.bf16 %v5431_v56, %v5429_v4  ;;  %v5658_v4 = vld [vmem:[%s12928_s17 + $0x1b0] sm:$0xff] }
 0xeb1   :  { %v8187_v18 = vpack.c.bf16 %v5406_v22, %v5404_v10  ;;  %v8205_v48 = vpack.c.bf16 %v5427_v24, %v5425_v13  ;;  %v5432_v10 = vld [vmem:[%s12921_s18 + $0x3e0] sm:$0xf]  ;;  %v5129_v22 = vrot.slane %v12072_v45, %v11707_v49  ;;  %v5650_v13 = vld [vmem:[%s12928_s17 + $0x170] sm:$0xff] }
 0xeb2   :  { %8184 = vmatpush1.bf16.msra.mxu1 %v8183_v11  ;;  %v5428_v11 = vld [vmem:[%s12921_s18 + $0x3c0] sm:$0xff] }
 0xeb3   :  { %7984 = vmatpush1.bf16.msra.mxu0 %v7983_v32  ;;  %v4882_v32 = vld [vmem:[%s12924_s12 + $0x1d8] sm:$0xff]  ;;  %8186 = vmatprep.subr.bf16.mxu1 %v8185_v52  ;;  %v5433_v52 = vld [vmem:[%s12921_s18 + $0x3e8] sm:$0xf]  ;;  %v5292_v62 = vadd.f32 %v5291_v58, %v5129_v22  ;;  %v5670_v58 = vld [vmem:[%s12928_s17 + $0x210] sm:$0xff] }
 0xeb4   :  { %7986 = vmatprep.subr.bf16.mxu0 %v7985_v28  ;;  %v5408_v28 = vld [vmem:[%s12921_s18 + $0x320] sm:$0xff]  ;;  %v8005_v14 = vpack.c.bf16 %v4882_v32, %v4880_v1  ;;  %v5675_v22 = vld [vmem:[%s12928_s17 + $0x238] sm:$0xff] }
 0xeb5   :  { %v8191_v37 = vpack.c.bf16 %v5410_v55, %v5408_v28  ;;  %vm5298_vm2 = vcmp.gt.f32.partialorder %v5292_v62, 0.0  ;;  %v5302_v32 = vmul.f32 0.01, %v5292_v62  ;;  %v5610_v55 = vld [vmem:[%s12928_s17 + $0x30] sm:$0xff] }
 0xeb6   :  { %8188 = vmatpush1.bf16.msra.mxu1 %v8187_v18  ;;  %v5607_v18 = vld [vmem:[%s12928_s17 + $0x18] sm:$0xff] }
 0xeb7   :  { %7988 = vmatpush1.bf16.msra.mxu0 %v7987_v16  ;;  %v4886_v16 = vld [vmem:[%s12924_s12 + $0x1f8] sm:$0xff]  ;;  %8190 = vmatprep.subr.bf16.mxu1 %v8189_v15  ;;  %v5306_v15 = vsel %vm5298_vm2, %v5292_v62, %v5302_v32  ;;  %v8343_v28 = vpack.c.bf16 %v5611_v46, %v5607_v18  ;;  %v5674_v62 = vld [vmem:[%s12928_s17 + $0x230] sm:$0xff]  ;;  %v4887_v18 = vld [vmem:[%s12924_s12 + $0x200] sm:$0xff] }
 0xeb8   :  { %7990 = vmatprep.subr.bf16.mxu0 %v7989_v8  ;;  %v5412_v8 = vld [vmem:[%s12921_s18 + $0x340] sm:$0xff]  ;;  %v8009_v33 = vpack.c.bf16 %v4886_v16, %v4884_v0  ;;  %v8347_v0 = vpack.c.bf16 %v5619_v20, %v5615_v5  ;;  %v5614_v16 = vld [vmem:[%s12928_s17 + $0x50] sm:$0xff]  ;;  %v5683_v32 = vld [vmem:[%s12928_s17 + $0x278] sm:$0xff] }
 0xeb9   :  { %v8195_v44 = vpack.c.bf16 %v5414_v42, %v5412_v8  ;;  %v5622_v42 = vld [vmem:[%s12928_s17 + $0x90] sm:$0xff]  ;;  %v5687_v20 = vld [vmem:[%s12928_s17 + $0x298] sm:$0xff] }
 0xeba   :  { %8192 = vmatpush1.bf16.msra.mxu1 %v8191_v37  ;;  %v5618_v37 = vld [vmem:[%s12928_s17 + $0x70] sm:$0xff] }
 0xebb   :  { %7992 = vmatpush1.bf16.msra.mxu0 %v7991_v9  ;;  %v4890_v9 = vld [vmem:[%s12924_s12 + $0x218] sm:$0xff]  ;;  %8194 = vmatprep.subr.bf16.mxu1 %v8193_v27 }
 0xebc   :  { %7994 = vmatprep.subr.bf16.mxu0 %v7993_v23  ;;  %v5418_v23 = vld [vmem:[%s12921_s18 + $0x370] sm:$0xff]  ;;  %v8013_v54 = vpack.c.bf16 %v4890_v9, %v4888_v26  ;;  %v5627_v27 = vld [vmem:[%s12928_s17 + $0xb8] sm:$0xff]  ;;  %v8355_v26 = vpack.c.bf16 %v5635_v41, %v5631_v47 }
 0xebd   :  { %v8199_v53 = vpack.c.bf16 %v5418_v23, %v5416_v51  ;;  %v8351_v8 = vpack.c.bf16 %v5627_v27, %v5623_v38  ;;  %v5630_v9 = vld [vmem:[%s12928_s17 + $0xd0] sm:$0xff]  ;;  %v5643_v51 = vld [vmem:[%s12928_s17 + $0x138] sm:$0xff] }
 0xebe   :  { %8196 = vmatpush1.bf16.msra.mxu1 %v8195_v44  ;;  %v5634_v44 = vld [vmem:[%s12928_s17 + $0xf0] sm:$0xff] }
 0xebf   :  { %7996 = vmatpush1.bf16.msra.mxu0 %v7995_v6  ;;  %8198 = vmatprep.subr.bf16.mxu1 %v8197_v60  ;;  %v5422_v6 = vld [vmem:[%s12921_s18 + $0x390] sm:$0xff]  ;;  %v5639_v60 = vld [vmem:[%s12928_s17 + $0x118] sm:$0xff] }
 0xec0   :  { %7998 = vmatprep.subr.bf16.mxu0 %v7997_v63  ;;  %v8203_v2 = vpack.c.bf16 %v5422_v6, %v5420_v57  ;;  %v5424_v63 = vld [vmem:[%s12921_s18 + $0x3a0] sm:$0xff]  ;;  %v8359_v23 = vpack.c.bf16 %v5643_v51, %v5639_v60  ;;  %v5646_v6 = vld [vmem:[%s12928_s17 + $0x150] sm:$0xff] }
 0xec1   :  { %v8207_v39 = vpack.c.bf16 %v5426_v50, %v5424_v63  ;;  %v8365_v24 = vpack.c.bf16 %v5650_v13, %v5646_v6  ;;  %v5654_v50 = vld [vmem:[%s12928_s17 + $0x190] sm:$0xff]  ;;  %v5707_v6 = vld [vmem:[%s12928_s17 + $0x338] sm:$0xff] }
 0xec2   :  { %8200 = vmatpush1.bf16.msra.mxu1 %v8199_v53  ;;  %v5647_v53 = vld [vmem:[%s12928_s17 + $0x158] sm:$0xff]  ;;  %v8369_v56 = vpack.c.bf16 %v5658_v4, %v5654_v50  ;;  %v4893_v38 = vld [vmem:[%s12924_s12 + $0x230] sm:$0xff] }
 0xec3   :  { %8000 = vmatpush1.bf16.msra.mxu0 %v7999_v7  ;;  %8202 = vmatprep.subr.bf16.mxu1 %v8201_v34  ;;  %v5430_v7 = vld [vmem:[%s12921_s18 + $0x3d0] sm:$0xff]  ;;  %v5651_v34 = vld [vmem:[%s12928_s17 + $0x178] sm:$0xff] }
 0xec4   :  { %8002 = vmatprep.subr.bf16.mxu0 %v8001_v43  ;;  %v8211_v21 = vpack.c.bf16 %v5430_v7, %v5428_v11  ;;  %v5133_v43 = vrot.slane %v12072_v45, %v11710_v25  ;;  %v5606_v45 = vld [vmem:[%s12928_s17 + $0x10] sm:$0xff]  ;;  %v8363_v57 = vpack.c.bf16 %v5651_v34, %v5647_v53  ;;  %v4906_v50 = vld [vmem:[%s12924_s12 + $0x298] sm:$0xff] }
 0xec5   :  { %v8345_v31 = vpack.c.bf16 %v5610_v55, %v5606_v45  ;;  %v5662_v7 = vld [vmem:[%s12928_s17 + $0x1d0] sm:$0xff] }
 0xec6   :  { %8204 = vmatpush1.bf16.msra.mxu1 %v8203_v2  ;;  %v5294_v1 = vadd.f32 %v5293_v59, %v5133_v43  ;;  %v5655_v2 = vld [vmem:[%s12928_s17 + $0x198] sm:$0xff]  ;;  %v8377_v59 = vpack.c.bf16 %v5674_v62, %v5670_v58  ;;  %v5678_v45 = vld [vmem:[%s12928_s17 + $0x250] sm:$0xff] }
 0xec7   :  { %8004 = vmatpush1.bf16.msra.mxu0 %v8003_v19  ;;  %8206 = vmatprep.subr.bf16.mxu1 %v8205_v48  ;;  %v5659_v48 = vld [vmem:[%s12928_s17 + $0x1b8] sm:$0xff]  ;;  %v5682_v55 = vld [vmem:[%s12928_s17 + $0x270] sm:$0xff] }
 0xec8   :  { %8006 = vmatprep.subr.bf16.mxu0 %v8005_v14  ;;  %vm5299_vm15 = vcmp.gt.f32.partialorder %v5294_v1, 0.0  ;;  %v5303_v19 = vmul.f32 0.01, %v5294_v1  ;;  %v8367_v63 = vpack.c.bf16 %v5659_v48, %v5655_v2  ;;  %v8381_v5 = vpack.c.bf16 %v5682_v55, %v5678_v45  ;;  %v4897_v60 = vld [vmem:[%s12924_s12 + $0x250] sm:$0xff]  ;;  %v4910_v58 = vld [vmem:[%s12924_s12 + $0x2b8] sm:$0xff]  ;;  %v4916_v55 = vld [vmem:[%s12924_s12 + $0x2e8] sm:$0xff] }
 0xec9   :  { %v4901_v2 = vld [vmem:[%s12924_s12 + $0x270] sm:$0xff] }
 0xeca   :  { %8208 = vmatpush1.bf16.msra.mxu1 %v8207_v39  ;;  %v5307_v14 = vsel %vm5299_vm15, %v5294_v1, %v5303_v19  ;;  %v5663_v39 = vld [vmem:[%s12928_s17 + $0x1d8] sm:$0xff]  ;;  %v4889_v19 = vld [vmem:[%s12924_s12 + $0x210] sm:$0xff] }
 0xecb   :  { %8008 = vmatpush1.bf16.msra.mxu0 %v8007_v35  ;;  %8210 = vmatprep.subr.bf16.mxu1 %v8209_v30  ;;  %v8349_v35 = vpack.c.bf16 %v5618_v37, %v5614_v16  ;;  %v5667_v30 = vld [vmem:[%s12928_s17 + $0x1f8] sm:$0xff]  ;;  %v5702_v4 = vld [vmem:[%s12928_s17 + $0x310] sm:$0xff] }
 0xecc   :  { %8010 = vmatprep.subr.bf16.mxu0 %v8009_v33  ;;  %6770 = vmatprep.mubr.msk.f32.mxu1 %vm5446_vm4, %v5307_v14  ;;  %v5626_v33 = vld [vmem:[%s12928_s17 + $0xb0] sm:$0xff]  ;;  %v8371_v11 = vpack.c.bf16 %v5667_v30, %v5663_v39  ;;  %v5679_v1 = vld [vmem:[%s12928_s17 + $0x258] sm:$0xff] }
 0xecd   :  { %v8353_v61 = vpack.c.bf16 %v5626_v33, %v5622_v42  ;;  %v8379_v46 = vpack.c.bf16 %v5683_v32, %v5679_v1  ;;  %v4898_v42 = vld [vmem:[%s12924_s12 + $0x258] sm:$0xff]  ;;  %v5686_v33 = vld [vmem:[%s12928_s17 + $0x290] sm:$0xff]  ;;  %v4907_v1 = vld [vmem:[%s12924_s12 + $0x2a0] sm:$0xff] }
 0xece   :  { %8212 = vmatpush1.bf16.msra.mxu1 %v8211_v21  ;;  %v5666_v21 = vld [vmem:[%s12928_s17 + $0x1f0] sm:$0xff] }
 0xecf   :  { %8012 = vmatpush1.bf16.msra.mxu0 %v8011_v12  ;;  %6768 = vmatprep.subr.msk.mxu1 %vm12929_vm10, %v5433_v52  ;;  %v8357_v12 = vpack.c.bf16 %v5634_v44, %v5630_v9  ;;  %v8373_v52 = vpack.c.bf16 %v5666_v21, %v5662_v7  ;;  %v5699_v9 = vld [vmem:[%s12928_s17 + $0x2f8] sm:$0xff]  ;;  %v4909_v32 = vld [vmem:[%s12924_s12 + $0x2b0] sm:$0xff] }
 0xed0   :  { %8014 = vmatprep.subr.bf16.mxu0 %v8013_v54  ;;  %v5638_v54 = vld [vmem:[%s12928_s17 + $0x110] sm:$0xff]  ;;  %v5715_v7 = vld [vmem:[%s12928_s17 + $0x378] sm:$0xff] }
 0xed1   :  { %v8361_v36 = vpack.c.bf16 %v5642_v40, %v5638_v54  ;;  %v4902_v54 = vld [vmem:[%s12924_s12 + $0x278] sm:$0xff]  ;;  %v5694_v40 = vld [vmem:[%s12928_s17 + $0x2d0] sm:$0xff] }
 0xed2   :  { %6769 = vmatpush1.msk.msra.mxu1 %vm12930_vm9, %v5432_v10  ;;  %v5671_v10 = vld [vmem:[%s12928_s17 + $0x218] sm:$0xff]  ;;  %v4913_v45 = vld [vmem:[%s12924_s12 + $0x2d0] sm:$0xff] }
 0xed3   :  { %8344 = vmatprep.subr.bf16.mxu1 %v8343_v28  ;;  %5592 = vmatmul.mubr.f32.vlgmr.msra.gmra.mrb[62].mxu1 %v5306_v15  ;;  %v8375_v43 = vpack.c.bf16 %v5675_v22, %v5671_v10  ;;  %v4892_v15 = vld [vmem:[%s12924_s12 + $0x228] sm:$0xff]  ;;  %v4894_v28 = vld [vmem:[%s12924_s12 + $0x238] sm:$0xff]  ;;  %v4905_v10 = vld [vmem:[%s12924_s12 + $0x290] sm:$0xff] }
 0xed4   :  { %8346 = vmatpush1.bf16.msra.mxu1 %v8345_v31  ;;  %v8015_v31 = vpack.c.bf16 %v4889_v19, %v4887_v18  ;;  %v8017_v37 = vpack.c.bf16 %v4894_v28, %v4892_v15  ;;  %v4912_v18 = vld [vmem:[%s12924_s12 + $0x2c8] sm:$0xff]  ;;  %v4914_v19 = vld [vmem:[%s12924_s12 + $0x2d8] sm:$0xff]  ;;  %v4911_v28 = vld [vmem:[%s12924_s12 + $0x2c0] sm:$0xff] }
 0xed5   :  { %8348 = vmatprep.subr.bf16.mxu1 %v8347_v0  ;;  %v5691_v0 = vld [vmem:[%s12928_s17 + $0x2b8] sm:$0xff]  ;;  %v8037_v15 = vpack.c.bf16 %v4914_v19, %v4912_v18 }
 0xed6   :  { %v8383_v27 = vpack.c.bf16 %v5691_v0, %v5687_v20  ;;  %v4915_v20 = vld [vmem:[%s12924_s12 + $0x2e0] sm:$0xff]  ;;  %v4917_v0 = vld [vmem:[%s12924_s12 + $0x2f0] sm:$0xff]  ;;  %v5719_v18 = vld [vmem:[%s12928_s17 + $0x398] sm:$0xff] }
 0xed7   :  { %v5723_v19 = vld [vmem:[%s12928_s17 + $0x3b8] sm:$0xff] }
 0xed8   :  { %8350 = vmatpush1.bf16.msra.mxu1 %v8349_v35  ;;  %v4891_v35 = vld [vmem:[%s12924_s12 + $0x220] sm:$0xff] }
 0xed9   :  { %8352 = vmatprep.subr.bf16.mxu1 %v8351_v8  ;;  %v4896_v8 = vld [vmem:[%s12924_s12 + $0x248] sm:$0xff]  ;;  %v8019_v47 = vpack.c.bf16 %v4893_v38, %v4891_v35  ;;  %v8043_v35 = vpack.c.bf16 %v4917_v0, %v4915_v20 }
 0xeda   :  { %v8021_v44 = vpack.c.bf16 %v4898_v42, %v4896_v8  ;;  %v4921_v8 = vld [vmem:[%s12924_s12 + $0x310] sm:$0xff]  ;;  %v4924_v42 = vld [vmem:[%s12924_s12 + $0x328] sm:$0xff] }
 0xedb   :  { %v5605_v20 = vld [vmem:[%s12928_s17 + $0x8] sm:$0xff] }
 0xedc   :  { %8354 = vmatpush1.bf16.msra.mxu1 %v8353_v61  ;;  %v5690_v61 = vld [vmem:[%s12928_s17 + $0x2b0] sm:$0xff]  ;;  %v5609_v0 = vld [vmem:[%s12928_s17 + $0x28] sm:$0xff] }
 0xedd   :  { %8356 = vmatprep.subr.bf16.mxu1 %v8355_v26  ;;  %v8385_v41 = vpack.c.bf16 %v5690_v61, %v5686_v33  ;;  %v5695_v26 = vld [vmem:[%s12928_s17 + $0x2d8] sm:$0xff] }
 0xede   :  { %v8387_v51 = vpack.c.bf16 %v5699_v9, %v5695_v26  ;;  %v4926_v33 = vld [vmem:[%s12924_s12 + $0x338] sm:$0xff]  ;;  %v4925_v26 = vld [vmem:[%s12924_s12 + $0x330] sm:$0xff]  ;;  %v4928_v9 = vld [vmem:[%s12924_s12 + $0x348] sm:$0xff] }
 0xee0   :  { %8358 = vmatpush1.bf16.msra.mxu1 %v8357_v12  ;;  %v4895_v12 = vld [vmem:[%s12924_s12 + $0x240] sm:$0xff] }
 0xee1   :  { %8360 = vmatprep.subr.bf16.mxu1 %v8359_v23  ;;  %v4900_v23 = vld [vmem:[%s12924_s12 + $0x268] sm:$0xff]  ;;  %v8023_v53 = vpack.c.bf16 %v4897_v60, %v4895_v12 }
 0xee2   :  { %v8025_v13 = vpack.c.bf16 %v4902_v54, %v4900_v23  ;;  %v4929_v23 = vld [vmem:[%s12924_s12 + $0x350] sm:$0xff]  ;;  %v4932_v54 = vld [vmem:[%s12924_s12 + $0x368] sm:$0xff] }
 0xee4   :  { %8362 = vmatpush1.bf16.msra.mxu1 %v8361_v36  ;;  %v5698_v36 = vld [vmem:[%s12928_s17 + $0x2f0] sm:$0xff] }
 0xee5   :  { %8364 = vmatprep.subr.bf16.mxu1 %v8363_v57  ;;  %v8389_v34 = vpack.c.bf16 %v5698_v36, %v5694_v40  ;;  %v5703_v57 = vld [vmem:[%s12928_s17 + $0x318] sm:$0xff] }
 0xee6   :  { %v8391_v48 = vpack.c.bf16 %v5707_v6, %v5703_v57  ;;  %v4934_v40 = vld [vmem:[%s12924_s12 + $0x378] sm:$0xff]  ;;  %v4933_v57 = vld [vmem:[%s12924_s12 + $0x370] sm:$0xff]  ;;  %v4936_v6 = vld [vmem:[%s12924_s12 + $0x388] sm:$0xff] }
 0xee8   :  { %8366 = vmatpush1.bf16.msra.mxu1 %v8365_v24  ;;  %v4899_v24 = vld [vmem:[%s12924_s12 + $0x260] sm:$0xff] }
 0xee9   :  { %8368 = vmatprep.subr.bf16.mxu1 %v8367_v63  ;;  %v4904_v63 = vld [vmem:[%s12924_s12 + $0x288] sm:$0xff]  ;;  %v8027_v39 = vpack.c.bf16 %v4901_v2, %v4899_v24 }
 0xeea   :  { %v8029_v21 = vpack.c.bf16 %v4906_v50, %v4904_v63  ;;  %v4937_v63 = vld [vmem:[%s12924_s12 + $0x390] sm:$0xff]  ;;  %v4940_v50 = vld [vmem:[%s12924_s12 + $0x3a8] sm:$0xff] }
 0xeec   :  { %8370 = vmatpush1.bf16.msra.mxu1 %v8369_v56  ;;  %v5706_v56 = vld [vmem:[%s12928_s17 + $0x330] sm:$0xff] }
 0xeed   :  { %8372 = vmatprep.subr.bf16.mxu1 %v8371_v11  ;;  %v8393_v30 = vpack.c.bf16 %v5706_v56, %v5702_v4  ;;  %v5711_v11 = vld [vmem:[%s12928_s17 + $0x358] sm:$0xff] }
 0xeee   :  { %v8395_v22 = vpack.c.bf16 %v5715_v7, %v5711_v11  ;;  %v4942_v4 = vld [vmem:[%s12924_s12 + $0x3b8] sm:$0xff]  ;;  %v4941_v11 = vld [vmem:[%s12924_s12 + $0x3b0] sm:$0xff]  ;;  %v4944_v7 = vld [vmem:[%s12924_s12 + $0x3c8] sm:$0xff] }
 0xef0   :  { %8374 = vmatpush1.bf16.msra.mxu1 %v8373_v52  ;;  %v4903_v52 = vld [vmem:[%s12924_s12 + $0x280] sm:$0xff] }
 0xef1   :  { %8376 = vmatprep.subr.bf16.mxu1 %v8375_v43  ;;  %v4908_v43 = vld [vmem:[%s12924_s12 + $0x2a8] sm:$0xff]  ;;  %v8031_v62 = vpack.c.bf16 %v4905_v10, %v4903_v52 }
 0xef4   :  { %8378 = vmatpush1.bf16.msra.mxu1 %v8377_v59  ;;  %v8033_v59 = vpack.c.bf16 %v4910_v58, %v4908_v43  ;;  %v4945_v43 = vld [vmem:[%s12924_s12 + $0x3d0] sm:$0xff] }
 0xef5   :  { %8380 = vmatprep.subr.bf16.mxu1 %v8379_v46  ;;  %v8035_v46 = vpack.c.bf16 %v4909_v32, %v4907_v1  ;;  %v5710_v58 = vld [vmem:[%s12928_s17 + $0x350] sm:$0xff] }
 0xef6   :  { %v5714_v1 = vld [vmem:[%s12928_s17 + $0x370] sm:$0xff] }
 0xef7   :  { %v8397_v32 = vpack.c.bf16 %v5714_v1, %v5710_v58  ;;  %v5661_v58 = vld [vmem:[%s12928_s17 + $0x1c8] sm:$0xff] }
 0xef8   :  { %8382 = vmatpush1.bf16.msra.mxu1 %v8381_v5 }
 0xef9   :  { %8384 = vmatprep.subr.bf16.mxu1 %v8383_v27  ;;  %v4919_v27 = vld [vmem:[%s12924_s12 + $0x300] sm:$0xff] }
 0xefa   :  { %v8047_v61 = vpack.c.bf16 %v4921_v8, %v4919_v27  ;;  %v5613_v27 = vld [vmem:[%s12928_s17 + $0x48] sm:$0xff] }
 0xefb   :  { %v5617_v8 = vld [vmem:[%s12928_s17 + $0x68] sm:$0xff] }
 0xefc   :  { %8386 = vmatpush1.bf16.msra.mxu1 %v8385_v41  ;;  %v4923_v41 = vld [vmem:[%s12924_s12 + $0x320] sm:$0xff] }
 0xefd   :  { %8388 = vmatprep.subr.bf16.mxu1 %v8387_v51  ;;  %v8051_v12 = vpack.c.bf16 %v4925_v26, %v4923_v41  ;;  %v4927_v51 = vld [vmem:[%s12924_s12 + $0x340] sm:$0xff] }
 0xefe   :  { %v8055_v36 = vpack.c.bf16 %v4929_v23, %v4927_v51  ;;  %v5612_v41 = vld [vmem:[%s12928_s17 + $0x40] sm:$0xff] }
 0xeff   :  { %v5616_v26 = vld [vmem:[%s12928_s17 + $0x60] sm:$0xff] }
 0xf00   :  { %8390 = vmatpush1.bf16.msra.mxu1 %v8389_v34  ;;  %v4931_v34 = vld [vmem:[%s12924_s12 + $0x360] sm:$0xff] }
 0xf01   :  { %8392 = vmatprep.subr.bf16.mxu1 %v8391_v48  ;;  %v8059_v24 = vpack.c.bf16 %v4933_v57, %v4931_v34  ;;  %v4935_v48 = vld [vmem:[%s12924_s12 + $0x380] sm:$0xff] }
 0xf02   :  { %v8063_v56 = vpack.c.bf16 %v4937_v63, %v4935_v48  ;;  %v5620_v51 = vld [vmem:[%s12928_s17 + $0x80] sm:$0xff] }
 0xf03   :  { %v5624_v23 = vld [vmem:[%s12928_s17 + $0xa0] sm:$0xff] }
 0xf04   :  { %8394 = vmatpush1.bf16.msra.mxu1 %v8393_v30  ;;  %v4939_v30 = vld [vmem:[%s12924_s12 + $0x3a0] sm:$0xff] }
 0xf05   :  { %8396 = vmatprep.subr.bf16.mxu1 %v8395_v22  ;;  %v8067_v52 = vpack.c.bf16 %v4941_v11, %v4939_v30  ;;  %v4943_v22 = vld [vmem:[%s12924_s12 + $0x3c0] sm:$0xff] }
 0xf06   :  { %v5628_v34 = vld [vmem:[%s12928_s17 + $0xc0] sm:$0xff] }
 0xf07   :  { %v5632_v57 = vld [vmem:[%s12928_s17 + $0xe0] sm:$0xff] }
 0xf08   :  { %8398 = vmatpush1.bf16.msra.mxu1 %v8397_v32  ;;  %v5636_v48 = vld [vmem:[%s12928_s17 + $0x100] sm:$0xff] }
 0xf09   :  { %v5640_v63 = vld [vmem:[%s12928_s17 + $0x120] sm:$0xff] }
 0xf0a   :  { %v5644_v30 = vld [vmem:[%s12928_s17 + $0x140] sm:$0xff] }
 0xf0b   :  { %v5648_v11 = vld [vmem:[%s12928_s17 + $0x160] sm:$0xff] }
 0xf0c   :  { %v5660_v32 = vld [vmem:[%s12928_s17 + $0x1c0] sm:$0xff] }
 0xf0e   :  { %v4747_v14 = vpop.f32.mrb[42].mxu0 }
 0xf0f   :  { %v4749_v16 = vpop.f32.mrb[43].mxu0 }
 0xf10   :  { %5027 = vmatprep.mubr.f32.mxu0 %v4749_v16  ;;  %v4920_v16 = vld [vmem:[%s12924_s12 + $0x308] sm:$0xff] }
 0xf11   :  { %5028 = vmatmul.mubr.f32.vlgmr.msra.gmra.mrb[46].mxu0 %v4747_v14  ;;  %v4918_v14 = vld [vmem:[%s12924_s12 + $0x2f8] sm:$0xff] }
 0xf12   :  { %8016 = vmatpush1.bf16.msra.mxu0 %v8015_v31  ;;  %v8039_v31 = vpack.c.bf16 %v4913_v45, %v4911_v28  ;;  %v8041_v5 = vpack.c.bf16 %v4918_v14, %v4916_v55  ;;  %v5718_v28 = vld [vmem:[%s12928_s17 + $0x390] sm:$0xff]  ;;  %v4947_v14 = vld [vmem:[%s12924_s12 + $0x3e0] sm:$0xff] }
 0xf13   :  { %8018 = vmatprep.subr.bf16.mxu0 %v8017_v37  ;;  %v4922_v37 = vld [vmem:[%s12924_s12 + $0x318] sm:$0xff]  ;;  %v5722_v45 = vld [vmem:[%s12928_s17 + $0x3b0] sm:$0xff] }
 0xf14   :  { %v8045_v38 = vpack.c.bf16 %v4922_v37, %v4920_v16  ;;  %v8213_v37 = vpack.c.bf16 %v5609_v0, %v5605_v20  ;;  %v5676_v0 = vld [vmem:[%s12928_s17 + $0x240] sm:$0xff] }
 0xf16   :  { %8020 = vmatpush1.bf16.msra.mxu0 %v8019_v47  ;;  %v8049_v47 = vpack.c.bf16 %v4926_v33, %v4924_v42 }
 0xf17   :  { %8022 = vmatprep.subr.bf16.mxu0 %v8021_v44  ;;  %v4930_v44 = vld [vmem:[%s12924_s12 + $0x358] sm:$0xff] }
 0xf18   :  { %v8053_v60 = vpack.c.bf16 %v4930_v44, %v4928_v9  ;;  %v5621_v9 = vld [vmem:[%s12928_s17 + $0x88] sm:$0xff] }
 0xf19   :  { %v5625_v44 = vld [vmem:[%s12928_s17 + $0xa8] sm:$0xff] }
 0xf1a   :  { %8024 = vmatpush1.bf16.msra.mxu0 %v8023_v53  ;;  %v8057_v53 = vpack.c.bf16 %v4934_v40, %v4932_v54  ;;  %v5629_v54 = vld [vmem:[%s12928_s17 + $0xc8] sm:$0xff] }
 0xf1b   :  { %8026 = vmatprep.subr.bf16.mxu0 %v8025_v13  ;;  %v4938_v13 = vld [vmem:[%s12924_s12 + $0x398] sm:$0xff]  ;;  %v5633_v40 = vld [vmem:[%s12928_s17 + $0xe8] sm:$0xff] }
 0xf1c   :  { %v8061_v2 = vpack.c.bf16 %v4938_v13, %v4936_v6  ;;  %v5637_v6 = vld [vmem:[%s12928_s17 + $0x108] sm:$0xff] }
 0xf1d   :  { %v5641_v13 = vld [vmem:[%s12928_s17 + $0x128] sm:$0xff] }
 0xf1e   :  { %8028 = vmatpush1.bf16.msra.mxu0 %v8027_v39  ;;  %v8065_v39 = vpack.c.bf16 %v4942_v4, %v4940_v50  ;;  %v5645_v50 = vld [vmem:[%s12928_s17 + $0x148] sm:$0xff] }
 0xf1f   :  { %8030 = vmatprep.subr.bf16.mxu0 %v8029_v21  ;;  %v4946_v21 = vld [vmem:[%s12924_s12 + $0x3d8] sm:$0xff]  ;;  %v5649_v4 = vld [vmem:[%s12928_s17 + $0x168] sm:$0xff] }
 0xf20   :  { %v8069_v10 = vpack.c.bf16 %v4946_v21, %v4944_v7  ;;  %v5653_v7 = vld [vmem:[%s12928_s17 + $0x188] sm:$0xff] }
 0xf21   :  { %v5657_v21 = vld [vmem:[%s12928_s17 + $0x1a8] sm:$0xff] }
 0xf22   :  { %8032 = vmatpush1.bf16.msra.mxu0 %v8031_v62  ;;  %v4948_v62 = vld [vmem:[%s12924_s12 + $0x3e8] sm:$0xff] }
 0xf23   :  { %8034 = vmatprep.subr.bf16.mxu0 %v8033_v59  ;;  %v4950_v59 = vld [vmem:[%s12924_s12 + $0x3f8] sm:$0xff] }
 0xf24   :  { %v8073_v55 = vpack.c.bf16 %v4950_v59, %v4948_v62  ;;  %v5665_v62 = vld [vmem:[%s12928_s17 + $0x1e8] sm:$0xff] }
 0xf25   :  { %v8241_v1 = vpack.c.bf16 %v5665_v62, %v5661_v58  ;;  %v5726_v62 = vld [vmem:[%s12928_s17 + $0x3d0] sm:$0xff] }
 0xf26   :  { %8036 = vmatpush1.bf16.msra.mxu0 %v8035_v46  ;;  %v8071_v46 = vpack.c.bf16 %v4945_v43, %v4943_v22  ;;  %v5652_v22 = vld [vmem:[%s12928_s17 + $0x180] sm:$0xff] }
 0xf27   :  { %8038 = vmatprep.subr.bf16.mxu0 %v8037_v15  ;;  %v8399_v15 = vpack.c.bf16 %v5723_v19, %v5719_v18  ;;  %v5656_v43 = vld [vmem:[%s12928_s17 + $0x1a0] sm:$0xff]  ;;  %v5669_v19 = vld [vmem:[%s12928_s17 + $0x208] sm:$0xff] }
 0xf28   :  { %v8239_v59 = vpack.c.bf16 %v5656_v43, %v5652_v22  ;;  %v5664_v18 = vld [vmem:[%s12928_s17 + $0x1e0] sm:$0xff] }
 0xf29   :  { %8400 = vmatprep.subr.bf16.mxu1 %v8399_v15  ;;  %v8243_v15 = vpack.c.bf16 %v5664_v18, %v5660_v32  ;;  %v5737_v18 = vld [vmem:[%s12928_s17 + $0x428] sm:$0xff] }
 0xf2a   :  { %8040 = vmatpush1.bf16.msra.mxu0 %v8039_v31  ;;  %v4949_v31 = vld [vmem:[%s12924_s12 + $0x3f0] sm:$0xff] }
 0xf2b   :  { %8042 = vmatprep.subr.bf16.mxu0 %v8041_v5  ;;  %v8401_v5 = vpack.c.bf16 %v5722_v45, %v5718_v28  ;;  %v8075_v16 = vpack.c.bf16 %v4949_v31, %v4947_v14  ;;  %v5668_v45 = vld [vmem:[%s12928_s17 + $0x200] sm:$0xff]  ;;  %v5677_v14 = vld [vmem:[%s12928_s17 + $0x248] sm:$0xff] }
 0xf2c   :  { %v5681_v31 = vld [vmem:[%s12928_s17 + $0x268] sm:$0xff] }
 0xf2d   :  { %8402 = vmatpush1.bf16.msra.mxu1 %v8401_v5  ;;  %v8249_v20 = vpack.c.bf16 %v5681_v31, %v5677_v14 }
 0xf2e   :  { %8044 = vmatpush1.bf16.msra.mxu0 %v8043_v35  ;;  %v5604_v35 = vld [vmem:[%s12928_s17] sm:$0xff] }
 0xf2f   :  { %8046 = vmatprep.subr.bf16.mxu0 %v8045_v38  ;;  %v5608_v38 = vld [vmem:[%s12928_s17 + $0x20] sm:$0xff] }
 0xf30   :  { %v8215_v33 = vpack.c.bf16 %v5608_v38, %v5604_v35  ;;  %v5689_v35 = vld [vmem:[%s12928_s17 + $0x2a8] sm:$0xff] }
 0xf32   :  { %8048 = vmatpush1.bf16.msra.mxu0 %v8047_v61 }
 0xf33   :  { %8050 = vmatprep.subr.bf16.mxu0 %v8049_v47  ;;  %v8217_v47 = vpack.c.bf16 %v5617_v8, %v5613_v27  ;;  %v5684_v8 = vld [vmem:[%s12928_s17 + $0x280] sm:$0xff] }
 0xf36   :  { %8052 = vmatpush1.bf16.msra.mxu0 %v8051_v12  ;;  %v8219_v12 = vpack.c.bf16 %v5616_v26, %v5612_v41  ;;  %v5692_v26 = vld [vmem:[%s12928_s17 + $0x2c0] sm:$0xff] }
 0xf37   :  { %8054 = vmatprep.subr.bf16.mxu0 %v8053_v60  ;;  %v8221_v60 = vpack.c.bf16 %v5625_v44, %v5621_v9  ;;  %v5696_v9 = vld [vmem:[%s12928_s17 + $0x2e0] sm:$0xff]  ;;  %v5701_v44 = vld [vmem:[%s12928_s17 + $0x308] sm:$0xff] }
 0xf3a   :  { %8056 = vmatpush1.bf16.msra.mxu0 %v8055_v36  ;;  %v8223_v36 = vpack.c.bf16 %v5624_v23, %v5620_v51  ;;  %v5700_v23 = vld [vmem:[%s12928_s17 + $0x300] sm:$0xff] }
 0xf3b   :  { %8058 = vmatprep.subr.bf16.mxu0 %v8057_v53  ;;  %v8225_v53 = vpack.c.bf16 %v5633_v40, %v5629_v54  ;;  %v5704_v54 = vld [vmem:[%s12928_s17 + $0x320] sm:$0xff]  ;;  %v5709_v40 = vld [vmem:[%s12928_s17 + $0x348] sm:$0xff] }
 0xf3e   :  { %8060 = vmatpush1.bf16.msra.mxu0 %v8059_v24  ;;  %v8227_v24 = vpack.c.bf16 %v5632_v57, %v5628_v34  ;;  %v5708_v57 = vld [vmem:[%s12928_s17 + $0x340] sm:$0xff] }
 0xf3f   :  { %8062 = vmatprep.subr.bf16.mxu0 %v8061_v2  ;;  %v8229_v2 = vpack.c.bf16 %v5641_v13, %v5637_v6  ;;  %v5712_v6 = vld [vmem:[%s12928_s17 + $0x360] sm:$0xff]  ;;  %v5717_v13 = vld [vmem:[%s12928_s17 + $0x388] sm:$0xff] }
 0xf42   :  { %8064 = vmatpush1.bf16.msra.mxu0 %v8063_v56  ;;  %v8231_v56 = vpack.c.bf16 %v5640_v63, %v5636_v48  ;;  %v5716_v63 = vld [vmem:[%s12928_s17 + $0x380] sm:$0xff] }
 0xf43   :  { %8066 = vmatprep.subr.bf16.mxu0 %v8065_v39  ;;  %v8233_v39 = vpack.c.bf16 %v5649_v4, %v5645_v50  ;;  %v5720_v50 = vld [vmem:[%s12928_s17 + $0x3a0] sm:$0xff] }
 0xf44   :  { %v8271_v4 = vpack.c.bf16 %v5720_v50, %v5716_v63  ;;  %v5748_v63 = vld [vmem:[%s12928_s17 + $0x480] sm:$0xff] }
 0xf45   :  { %v5752_v50 = vld [vmem:[%s12928_s17 + $0x4a0] sm:$0xff] }
 0xf46   :  { %8068 = vmatpush1.bf16.msra.mxu0 %v8067_v52  ;;  %v8235_v52 = vpack.c.bf16 %v5648_v11, %v5644_v30  ;;  %v5727_v30 = vld [vmem:[%s12928_s17 + $0x3d8] sm:$0xff] }
 0xf47   :  { %8070 = vmatprep.subr.bf16.mxu0 %v8069_v10  ;;  %v8237_v10 = vpack.c.bf16 %v5657_v21, %v5653_v7  ;;  %v5731_v21 = vld [vmem:[%s12928_s17 + $0x3f8] sm:$0xff] }
 0xf48   :  { %v8403_v43 = vpack.c.bf16 %v5731_v21, %v5727_v30  ;;  %v5754_v30 = vld [vmem:[%s12928_s17 + $0x4b0] sm:$0xff]  ;;  %v5761_v21 = vld [vmem:[%s12928_s17 + $0x4e8] sm:$0xff] }
 0xf4a   :  { %8072 = vmatpush1.bf16.msra.mxu0 %v8071_v46  ;;  %v5673_v46 = vld [vmem:[%s12928_s17 + $0x228] sm:$0xff]  ;;  %8404 = vmatprep.subr.bf16.mxu1 %v8403_v43 }
 0xf4b   :  { %8074 = vmatprep.subr.bf16.mxu0 %v8073_v55  ;;  %v8245_v28 = vpack.c.bf16 %v5673_v46, %v5669_v19  ;;  %v5672_v55 = vld [vmem:[%s12928_s17 + $0x220] sm:$0xff]  ;;  %v5735_v19 = vld [vmem:[%s12928_s17 + $0x418] sm:$0xff] }
 0xf4c   :  { %v8247_v5 = vpack.c.bf16 %v5672_v55, %v5668_v45  ;;  %v5739_v46 = vld [vmem:[%s12928_s17 + $0x438] sm:$0xff] }
 0xf4d   :  { %v12393_v45 = vld [vmem:[#allocation41] sm:$0x3]  ;;  %v4951_v55 = vld [vmem:[#allocation37] sm:$0x3] }
 0xf4e   :  { %8076 = vmatpush1.bf16.msra.mxu0 %v8075_v16  ;;  %v5680_v16 = vld [vmem:[%s12928_s17 + $0x260] sm:$0xff]  ;;  %v5443_v14 = vrot.slane %v12393_v45, %v11010_v17  ;;  %v4956_v31 = vrot.slane %v4951_v55, %v10996_v29 }
 0xf4f   :  { %8214 = vmatprep.subr.bf16.mxu0 %v8213_v37  ;;  %v5685_v37 = vld [vmem:[%s12928_s17 + $0x288] sm:$0xff]  ;;  %v8251_v38 = vpack.c.bf16 %v5680_v16, %v5676_v0  ;;  %v5732_v16 = vld [vmem:[%s12928_s17 + $0x400] sm:$0xff] }
 0xf50   :  { %v8253_v27 = vpack.c.bf16 %v5689_v35, %v5685_v37 }
 0xf65   :  { %v4818_v42 = vpop.f32.mrb[44].mxu0 }
 0xf66   :  { %v4820_v61 = vpop.f32.mrb[45].mxu0 }
 0xf67   :  { %5098 = vmatprep.mubr.f32.mxu0 %v4820_v61  ;;  %v5697_v61 = vld [vmem:[%s12928_s17 + $0x2e8] sm:$0xff] }
 0xf68   :  { %5099 = vmatmul.mubr.f32.vlgmr.msra.gmra.mrb[46].mxu0 %v4818_v42  ;;  %v5688_v42 = vld [vmem:[%s12928_s17 + $0x2a0] sm:$0xff] }
 0xf69   :  { %8216 = vmatpush1.bf16.msra.mxu0 %v8215_v33  ;;  %v5693_v33 = vld [vmem:[%s12928_s17 + $0x2c8] sm:$0xff] }
 0xf6a   :  { %8218 = vmatprep.subr.bf16.mxu0 %v8217_v47  ;;  %v8255_v47 = vpack.c.bf16 %v5688_v42, %v5684_v8  ;;  %v8257_v41 = vpack.c.bf16 %v5697_v61, %v5693_v33  ;;  %v5738_v8 = vld [vmem:[%s12928_s17 + $0x430] sm:$0xff]  ;;  %v5741_v33 = vld [vmem:[%s12928_s17 + $0x448] sm:$0xff] }
 0xf6b   :  { %v5745_v61 = vld [vmem:[%s12928_s17 + $0x468] sm:$0xff] }
 0xf6d   :  { %8220 = vmatpush1.bf16.msra.mxu0 %v8219_v12  ;;  %v5705_v12 = vld [vmem:[%s12928_s17 + $0x328] sm:$0xff] }
 0xf6e   :  { %8222 = vmatprep.subr.bf16.mxu0 %v8221_v60  ;;  %v8259_v60 = vpack.c.bf16 %v5696_v9, %v5692_v26  ;;  %v8261_v51 = vpack.c.bf16 %v5705_v12, %v5701_v44 }
 0xf71   :  { %8224 = vmatpush1.bf16.msra.mxu0 %v8223_v36  ;;  %v5713_v36 = vld [vmem:[%s12928_s17 + $0x368] sm:$0xff] }
 0xf72   :  { %8226 = vmatprep.subr.bf16.mxu0 %v8225_v53  ;;  %v8263_v53 = vpack.c.bf16 %v5704_v54, %v5700_v23  ;;  %v8265_v34 = vpack.c.bf16 %v5713_v36, %v5709_v40  ;;  %v5742_v54 = vld [vmem:[%s12928_s17 + $0x450] sm:$0xff]  ;;  %v5749_v36 = vld [vmem:[%s12928_s17 + $0x488] sm:$0xff] }
 0xf73   :  { %v5746_v40 = vld [vmem:[%s12928_s17 + $0x470] sm:$0xff] }
 0xf75   :  { %8228 = vmatpush1.bf16.msra.mxu0 %v8227_v24  ;;  %v5721_v24 = vld [vmem:[%s12928_s17 + $0x3a8] sm:$0xff] }
 0xf76   :  { %8230 = vmatprep.subr.bf16.mxu0 %v8229_v2  ;;  %v8267_v2 = vpack.c.bf16 %v5712_v6, %v5708_v57  ;;  %v8269_v48 = vpack.c.bf16 %v5721_v24, %v5717_v13  ;;  %v5753_v57 = vld [vmem:[%s12928_s17 + $0x4a8] sm:$0xff]  ;;  %v5751_v6 = vld [vmem:[%s12928_s17 + $0x498] sm:$0xff] }
 0xf77   :  { %v5755_v13 = vld [vmem:[%s12928_s17 + $0x4b8] sm:$0xff] }
 0xf79   :  { %8232 = vmatpush1.bf16.msra.mxu0 %v8231_v56  ;;  %v5725_v56 = vld [vmem:[%s12928_s17 + $0x3c8] sm:$0xff] }
 0xf7a   :  { %8234 = vmatprep.subr.bf16.mxu0 %v8233_v39  ;;  %v5729_v39 = vld [vmem:[%s12928_s17 + $0x3e8] sm:$0xff] }
 0xf7b   :  { %v8273_v7 = vpack.c.bf16 %v5729_v39, %v5725_v56  ;;  %v8415_v56 = vpack.c.bf16 %v5755_v13, %v5751_v6  ;;  %v5750_v39 = vld [vmem:[%s12928_s17 + $0x490] sm:$0xff] }
 0xf7c   :  { %v8417_v43 = vpack.c.bf16 %v5754_v30, %v5750_v39  ;;  %v5782_v6 = vld [vmem:[%s12928_s17 + $0x590] sm:$0xff]  ;;  %v5792_v39 = vld [vmem:[%s12928_s17 + $0x5e0] sm:$0xff] }
 0xf7d   :  { %8236 = vmatpush1.bf16.msra.mxu0 %v8235_v52  ;;  %v5724_v52 = vld [vmem:[%s12928_s17 + $0x3c0] sm:$0xff]  ;;  %v5786_v13 = vld [vmem:[%s12928_s17 + $0x5b0] sm:$0xff] }
 0xf7e   :  { %8238 = vmatprep.subr.bf16.mxu0 %v8237_v10  ;;  %v5728_v10 = vld [vmem:[%s12928_s17 + $0x3e0] sm:$0xff] }
 0xf7f   :  { %v8275_v58 = vpack.c.bf16 %v5728_v10, %v5724_v52  ;;  %v5759_v52 = vld [vmem:[%s12928_s17 + $0x4d8] sm:$0xff] }
 0xf80   :  { %v5763_v10 = vld [vmem:[%s12928_s17 + $0x4f8] sm:$0xff] }
 0xf81   :  { %8240 = vmatpush1.bf16.msra.mxu0 %v8239_v59  ;;  %v5730_v59 = vld [vmem:[%s12928_s17 + $0x3f0] sm:$0xff] }
 0xf82   :  { %8242 = vmatprep.subr.bf16.mxu0 %v8241_v1  ;;  %v5733_v1 = vld [vmem:[%s12928_s17 + $0x408] sm:$0xff]  ;;  %v8405_v32 = vpack.c.bf16 %v5730_v59, %v5726_v62  ;;  %v5760_v62 = vld [vmem:[%s12928_s17 + $0x4e0] sm:$0xff] }
 0xf84   :  { %8406 = vmatpush1.bf16.msra.mxu1 %v8405_v32  ;;  %v5758_v32 = vld [vmem:[%s12928_s17 + $0x4d0] sm:$0xff] }
 0xf85   :  { %8244 = vmatpush1.bf16.msra.mxu0 %v8243_v15  ;;  %v8277_v15 = vpack.c.bf16 %v5737_v18, %v5733_v1  ;;  %v8419_v1 = vpack.c.bf16 %v5763_v10, %v5759_v52  ;;  %v5762_v18 = vld [vmem:[%s12928_s17 + $0x4f0] sm:$0xff]  ;;  %v5797_v10 = vld [vmem:[%s12928_s17 + $0x608] sm:$0xff] }
 0xf86   :  { %8246 = vmatprep.subr.bf16.mxu0 %v8245_v28  ;;  %v8407_v28 = vpack.c.bf16 %v5739_v46, %v5735_v19  ;;  %v5765_v19 = vld [vmem:[%s12928_s17 + $0x508] sm:$0xff]  ;;  %v5794_v52 = vld [vmem:[%s12928_s17 + $0x5f0] sm:$0xff] }
 0xf87   :  { %v5769_v46 = vld [vmem:[%s12928_s17 + $0x528] sm:$0xff] }
 0xf88   :  { %8408 = vmatprep.subr.bf16.mxu1 %v8407_v28  ;;  %v5771_v28 = vld [vmem:[%s12928_s17 + $0x538] sm:$0xff] }
 0xf89   :  { %8248 = vmatpush1.bf16.msra.mxu0 %v8247_v5  ;;  %v4960_v5 = vrot.slane %v4951_v55, %v11010_v17 }
 0xf8a   :  { %8250 = vmatprep.subr.bf16.mxu0 %v8249_v20 }
 0xf8d   :  { %8252 = vmatpush1.bf16.msra.mxu0 %v8251_v38  ;;  %v5736_v38 = vld [vmem:[%s12928_s17 + $0x420] sm:$0xff] }
 0xf8e   :  { %8254 = vmatprep.subr.bf16.mxu0 %v8253_v27  ;;  %v5734_v27 = vld [vmem:[%s12928_s17 + $0x410] sm:$0xff]  ;;  %v8279_v44 = vpack.c.bf16 %v5736_v38, %v5732_v16  ;;  %v5777_v38 = vld [vmem:[%s12928_s17 + $0x568] sm:$0xff] }
 0xf8f   :  { %v8409_v12 = vpack.c.bf16 %v5738_v8, %v5734_v27  ;;  %v5766_v16 = vld [vmem:[%s12928_s17 + $0x510] sm:$0xff]  ;;  %v5775_v27 = vld [vmem:[%s12928_s17 + $0x558] sm:$0xff] }
 0xf90   :  { %v5779_v8 = vld [vmem:[%s12928_s17 + $0x578] sm:$0xff] }
 0xf91   :  { %8256 = vmatpush1.bf16.msra.mxu0 %v8255_v47  ;;  %v5743_v47 = vld [vmem:[%s12928_s17 + $0x458] sm:$0xff] }
 0xf92   :  { %8258 = vmatprep.subr.bf16.mxu0 %v8257_v41  ;;  %v5747_v41 = vld [vmem:[%s12928_s17 + $0x478] sm:$0xff] }
 0xf95   :  { %8260 = vmatpush1.bf16.msra.mxu0 %v8259_v60  ;;  %v5740_v60 = vld [vmem:[%s12928_s17 + $0x440] sm:$0xff] }
 0xf96   :  { %8262 = vmatprep.subr.bf16.mxu0 %v8261_v51  ;;  %v5744_v51 = vld [vmem:[%s12928_s17 + $0x460] sm:$0xff] }
 0xf99   :  { %8264 = vmatpush1.bf16.msra.mxu0 %v8263_v53  ;;  %v8281_v53 = vpack.c.bf16 %v5745_v61, %v5741_v33  ;;  %v5772_v61 = vld [vmem:[%s12928_s17 + $0x540] sm:$0xff] }
 0xf9a   :  { %8266 = vmatprep.subr.bf16.mxu0 %v8265_v34  ;;  %v8411_v34 = vpack.c.bf16 %v5747_v41, %v5743_v47  ;;  %v5776_v47 = vld [vmem:[%s12928_s17 + $0x560] sm:$0xff] }
 0xf9d   :  { %8268 = vmatpush1.bf16.msra.mxu0 %v8267_v2  ;;  %v8283_v2 = vpack.c.bf16 %v5744_v51, %v5740_v60  ;;  %v5785_v60 = vld [vmem:[%s12928_s17 + $0x5a8] sm:$0xff]  ;;  %v5783_v51 = vld [vmem:[%s12928_s17 + $0x598] sm:$0xff] }
 0xf9e   :  { %8270 = vmatprep.subr.bf16.mxu0 %v8269_v48  ;;  %v8413_v48 = vpack.c.bf16 %v5746_v40, %v5742_v54  ;;  %v8299_v54 = vpack.c.bf16 %v5776_v47, %v5772_v61  ;;  %v5819_v61 = vld [vmem:[%s12928_s17 + $0x6b8] sm:$0xff] }
 0xfa1   :  { %8272 = vmatpush1.bf16.msra.mxu0 %v8271_v4  ;;  %v8285_v4 = vpack.c.bf16 %v5753_v57, %v5749_v36  ;;  %v5780_v36 = vld [vmem:[%s12928_s17 + $0x580] sm:$0xff] }
 0xfa2   :  { %8274 = vmatprep.subr.bf16.mxu0 %v8273_v7  ;;  %v5757_v7 = vld [vmem:[%s12928_s17 + $0x4c8] sm:$0xff] }
 0xfa3   :  { %v8289_v59 = vpack.c.bf16 %v5761_v21, %v5757_v7  ;;  %v5790_v21 = vld [vmem:[%s12928_s17 + $0x5d0] sm:$0xff] }
 0xfa5   :  { %8276 = vmatpush1.bf16.msra.mxu0 %v8275_v58  ;;  %v5756_v58 = vld [vmem:[%s12928_s17 + $0x4c0] sm:$0xff] }
 0xfa6   :  { %v12382_v11 = vpop.f32.mrb[62].mxu1  ;;  %8278 = vmatprep.subr.bf16.mxu0 %v8277_v15  ;;  %v5767_v15 = vld [vmem:[%s12928_s17 + $0x518] sm:$0xff]  ;;  %v8291_v55 = vpack.c.bf16 %v5760_v62, %v5756_v58 }
 0xfa7   :  { %v5595_v22 = vpop.f32.mrb[63].mxu1  ;;  %v5803_v58 = vld [vmem:[%s12928_s17 + $0x638] sm:$0xff] }
 0xfa8   :  { %v8641_v20 = vadd.f32 %v5595_v22, %v5443_v14  ;;  %v8287_v22 = vpack.c.bf16 %v5752_v50, %v5748_v63  ;;  %v8421_v14 = vpack.c.bf16 %v5762_v18, %v5758_v32  ;;  %v5795_v63 = vld [vmem:[%s12928_s17 + $0x5f8] sm:$0xff]  ;;  %v5800_v32 = vld [vmem:[%s12928_s17 + $0x620] sm:$0xff] }
 0xfaa   :  { %v5601_v26 = vmul.f32 0.01, %v8641_v20  ;;  %vm5599_vm3 = vcmp.gt.f32.partialorder %v8641_v20, 0.0 }
 0xfac   :  { %v5603_v24 = vsel %vm5599_vm3, %v8641_v20, %v5601_v26  ;;  %v8293_v20 = vpack.c.bf16 %v5769_v46, %v5765_v19  ;;  %v8427_v26 = vpack.c.bf16 %v5779_v8, %v5775_v27  ;;  %v5798_v46 = vld [vmem:[%s12928_s17 + $0x610] sm:$0xff]  ;;  %v5813_v8 = vld [vmem:[%s12928_s17 + $0x688] sm:$0xff] }
 0xfad   :  { %v5810_v27 = vld [vmem:[%s12928_s17 + $0x670] sm:$0xff] }
0x103b   :  { %v5100_v0 = vpop.f32.mrb[46].mxu0 }
0x103c   :  { %v8638_v37 = vadd.f32 %v5100_v0, %v4956_v31  ;;  %v5102_v35 = vpop.f32.mrb[47].mxu0  ;;  %v5764_v31 = vld [vmem:[%s12928_s17 + $0x500] sm:$0xff]  ;;  %v8423_v0 = vpack.c.bf16 %v5771_v28, %v5767_v15  ;;  %v5802_v15 = vld [vmem:[%s12928_s17 + $0x630] sm:$0xff]  ;;  %v5805_v28 = vld [vmem:[%s12928_s17 + $0x648] sm:$0xff] }
0x103d   :  { %v8639_v42 = vadd.f32 %v5102_v35, %v4960_v5  ;;  %v5768_v5 = vld [vmem:[%s12928_s17 + $0x520] sm:$0xff]  ;;  %v5773_v35 = vld [vmem:[%s12928_s17 + $0x548] sm:$0xff] }
0x103e   :  { %v5105_v23 = vmax.f32 %v8638_v37, 0.0  ;;  %v5770_v37 = vld [vmem:[%s12928_s17 + $0x530] sm:$0xff]  ;;  %v8297_v41 = vpack.c.bf16 %v5777_v38, %v5773_v35 }
0x103f   :  { %v5106_v9 = vmax.f32 %v8639_v42, 0.0  ;;  %v8295_v42 = vpack.c.bf16 %v5768_v5, %v5764_v31  ;;  %v8425_v33 = vpack.c.bf16 %v5770_v37, %v5766_v16  ;;  %v5811_v31 = vld [vmem:[%s12928_s17 + $0x678] sm:$0xff]  ;;  %v5808_v16 = vld [vmem:[%s12928_s17 + $0x660] sm:$0xff]  ;;  %v5806_v38 = vld [vmem:[%s12928_s17 + $0x650] sm:$0xff] }
0x1041   :  { %5962 = vmatprep.mubr.f32.mxu0 %v5106_v9  ;;  %6104 = vmatprep.mubr.f32.mxu1 %v5106_v9  ;;  %v5774_v9 = vld [vmem:[%s12928_s17 + $0x550] sm:$0xff] }
0x1042   :  { %5963 = vmatmul.mubr.f32.vlgmr.msra.gmra.mrb[48].mxu0 %v5105_v23  ;;  %6105 = vmatmul.mubr.f32.vlgmr.msra.gmra.mrb[64].mxu1 %v5105_v23  ;;  %v5787_v23 = vld [vmem:[%s12928_s17 + $0x5b8] sm:$0xff] }
0x1043   :  { %8280 = vmatpush1.bf16.msra.mxu0 %v8279_v44  ;;  %8410 = vmatpush1.bf16.msra.mxu1 %v8409_v12  ;;  %v5778_v44 = vld [vmem:[%s12928_s17 + $0x570] sm:$0xff]  ;;  %v5781_v12 = vld [vmem:[%s12928_s17 + $0x588] sm:$0xff]  ;;  %v8431_v57 = vpack.c.bf16 %v5787_v23, %v5783_v51 }
0x1044   :  { %6773 = vmatprep.mubr.msk.f32.mxu0 %vm5882_vm5, %v5603_v24  ;;  %6776 = vmatprep.mubr.msk.f32.mxu1 %vm5882_vm5, %v5603_v24  ;;  %v8429_v40 = vpack.c.bf16 %v5778_v44, %v5774_v9  ;;  %v5789_v24 = vld [vmem:[%s12928_s17 + $0x5c8] sm:$0xff]  ;;  %v5816_v9 = vld [vmem:[%s12928_s17 + $0x6a0] sm:$0xff]  ;;  %v5818_v51 = vld [vmem:[%s12928_s17 + $0x6b0] sm:$0xff] }
0x1045   :  { %8282 = vmatprep.subr.bf16.mxu0 %v8281_v53  ;;  %8412 = vmatprep.subr.bf16.mxu1 %v8411_v34  ;;  %v5784_v53 = vld [vmem:[%s12928_s17 + $0x5a0] sm:$0xff]  ;;  %v8301_v34 = vpack.c.bf16 %v5785_v60, %v5781_v12  ;;  %v5814_v60 = vld [vmem:[%s12928_s17 + $0x690] sm:$0xff]  ;;  %v5821_v23 = vld [vmem:[%s12928_s17 + $0x6c8] sm:$0xff] }
0x1046   :  { %v8303_v50 = vpack.c.bf16 %v5784_v53, %v5780_v36  ;;  %v5827_v36 = vld [vmem:[%s12928_s17 + $0x6f8] sm:$0xff] }
0x1047   :  { %8284 = vmatpush1.bf16.msra.mxu0 %v8283_v2  ;;  %8414 = vmatpush1.bf16.msra.mxu1 %v8413_v48  ;;  %v5793_v2 = vld [vmem:[%s12928_s17 + $0x5e8] sm:$0xff]  ;;  %v5791_v48 = vld [vmem:[%s12928_s17 + $0x5d8] sm:$0xff] }
0x1048   :  { %8286 = vmatprep.subr.bf16.mxu0 %v8285_v4  ;;  %8416 = vmatprep.subr.bf16.mxu1 %v8415_v56  ;;  %v8433_v4 = vpack.c.bf16 %v5786_v13, %v5782_v6  ;;  %v5788_v56 = vld [vmem:[%s12928_s17 + $0x5c0] sm:$0xff]  ;;  %v8305_v30 = vpack.c.bf16 %v5793_v2, %v5789_v24  ;;  %v8435_v7 = vpack.c.bf16 %v5795_v63, %v5791_v48  ;;  %v5822_v2 = vld [vmem:[%s12928_s17 + $0x6d0] sm:$0xff]  ;;  %v5829_v63 = vld [vmem:[%s12928_s17 + $0x708] sm:$0xff] }
0x1049   :  { %v8307_v62 = vpack.c.bf16 %v5792_v39, %v5788_v56  ;;  %v5824_v6 = vld [vmem:[%s12928_s17 + $0x6e0] sm:$0xff]  ;;  %v5826_v48 = vld [vmem:[%s12928_s17 + $0x6f0] sm:$0xff]  ;;  %v5835_v56 = vld [vmem:[%s12928_s17 + $0x738] sm:$0xff] }
0x104b   :  { %8288 = vmatpush1.bf16.msra.mxu0 %v8287_v22  ;;  %8418 = vmatpush1.bf16.msra.mxu1 %v8417_v43  ;;  %v5801_v22 = vld [vmem:[%s12928_s17 + $0x628] sm:$0xff]  ;;  %v5799_v43 = vld [vmem:[%s12928_s17 + $0x618] sm:$0xff] }
0x104c   :  { %8290 = vmatprep.subr.bf16.mxu0 %v8289_v59  ;;  %8420 = vmatprep.subr.bf16.mxu1 %v8419_v1  ;;  %v8437_v59 = vpack.c.bf16 %v5794_v52, %v5790_v21  ;;  %v5796_v1 = vld [vmem:[%s12928_s17 + $0x600] sm:$0xff]  ;;  %v8309_v18 = vpack.c.bf16 %v5801_v22, %v5797_v10  ;;  %v8439_v19 = vpack.c.bf16 %v5803_v58, %v5799_v43  ;;  %v5830_v22 = vld [vmem:[%s12928_s17 + $0x710] sm:$0xff]  ;;  %v5837_v58 = vld [vmem:[%s12928_s17 + $0x748] sm:$0xff] }
0x104d   :  { %v8311_v5 = vpack.c.bf16 %v5800_v32, %v5796_v1  ;;  %v5832_v21 = vld [vmem:[%s12928_s17 + $0x720] sm:$0xff]  ;;  %v5834_v43 = vld [vmem:[%s12928_s17 + $0x730] sm:$0xff]  ;;  %v5843_v1 = vld [vmem:[%s12928_s17 + $0x778] sm:$0xff] }
0x104f   :  { %8292 = vmatpush1.bf16.msra.mxu0 %v8291_v55  ;;  %8422 = vmatpush1.bf16.msra.mxu1 %v8421_v14  ;;  %v5809_v55 = vld [vmem:[%s12928_s17 + $0x668] sm:$0xff]  ;;  %v5807_v14 = vld [vmem:[%s12928_s17 + $0x658] sm:$0xff] }
0x1050   :  { %8294 = vmatprep.subr.bf16.mxu0 %v8293_v20  ;;  %8424 = vmatprep.subr.bf16.mxu1 %v8423_v0  ;;  %v8441_v20 = vpack.c.bf16 %v5802_v15, %v5798_v46  ;;  %v5804_v0 = vld [vmem:[%s12928_s17 + $0x640] sm:$0xff]  ;;  %v8313_v37 = vpack.c.bf16 %v5809_v55, %v5805_v28  ;;  %v8443_v35 = vpack.c.bf16 %v5811_v31, %v5807_v14  ;;  %v5838_v55 = vld [vmem:[%s12928_s17 + $0x750] sm:$0xff]  ;;  %v5845_v31 = vld [vmem:[%s12928_s17 + $0x788] sm:$0xff] }
0x1051   :  { %v8315_v47 = vpack.c.bf16 %v5808_v16, %v5804_v0  ;;  %v5840_v46 = vld [vmem:[%s12928_s17 + $0x760] sm:$0xff]  ;;  %v5842_v14 = vld [vmem:[%s12928_s17 + $0x770] sm:$0xff]  ;;  %v5851_v0 = vld [vmem:[%s12928_s17 + $0x7b8] sm:$0xff] }
0x1053   :  { %8296 = vmatpush1.bf16.msra.mxu0 %v8295_v42  ;;  %8426 = vmatpush1.bf16.msra.mxu1 %v8425_v33  ;;  %v5817_v42 = vld [vmem:[%s12928_s17 + $0x6a8] sm:$0xff]  ;;  %v5815_v33 = vld [vmem:[%s12928_s17 + $0x698] sm:$0xff] }
0x1054   :  { %8298 = vmatprep.subr.bf16.mxu0 %v8297_v41  ;;  %8428 = vmatprep.subr.bf16.mxu1 %v8427_v26  ;;  %v8445_v41 = vpack.c.bf16 %v5810_v27, %v5806_v38  ;;  %v5812_v26 = vld [vmem:[%s12928_s17 + $0x680] sm:$0xff]  ;;  %v8317_v44 = vpack.c.bf16 %v5817_v42, %v5813_v8  ;;  %v8447_v12 = vpack.c.bf16 %v5819_v61, %v5815_v33  ;;  %v5846_v42 = vld [vmem:[%s12928_s17 + $0x790] sm:$0xff]  ;;  %v5853_v61 = vld [vmem:[%s12928_s17 + $0x7c8] sm:$0xff] }
0x1055   :  { %v8319_v53 = vpack.c.bf16 %v5816_v9, %v5812_v26  ;;  %v5848_v38 = vld [vmem:[%s12928_s17 + $0x7a0] sm:$0xff]  ;;  %v5850_v33 = vld [vmem:[%s12928_s17 + $0x7b0] sm:$0xff]  ;;  %v5855_v26 = vld [vmem:[%s12928_s17 + $0x7d8] sm:$0xff] }
0x1056   :  { %v5859_v9 = vld [vmem:[%s12928_s17 + $0x7f8] sm:$0x3] }
0x1057   :  { %8300 = vmatpush1.bf16.msra.mxu0 %v8299_v54  ;;  %8430 = vmatpush1.bf16.msra.mxu1 %v8429_v40  ;;  %v5825_v54 = vld [vmem:[%s12928_s17 + $0x6e8] sm:$0xff]  ;;  %v5823_v40 = vld [vmem:[%s12928_s17 + $0x6d8] sm:$0xff] }
0x1058   :  { %8302 = vmatprep.subr.bf16.mxu0 %v8301_v34  ;;  %8432 = vmatprep.subr.bf16.mxu1 %v8431_v57  ;;  %v8449_v34 = vpack.c.bf16 %v5818_v51, %v5814_v60  ;;  %v5820_v57 = vld [vmem:[%s12928_s17 + $0x6c0] sm:$0xff]  ;;  %v8321_v13 = vpack.c.bf16 %v5825_v54, %v5821_v23  ;;  %v8451_v24 = vpack.c.bf16 %v5827_v36, %v5823_v40  ;;  %v5854_v40 = vld [vmem:[%s12928_s17 + $0x7d0] sm:$0xff] }
0x1059   :  { %v8323_v39 = vpack.c.bf16 %v5824_v6, %v5820_v57  ;;  %v5852_v60 = vld [vmem:[%s12928_s17 + $0x7c0] sm:$0xff]  ;;  %v8467_v23 = vpack.c.bf16 %v5859_v9, %v5855_v26 }
0x105a   :  { %v5856_v54 = vld [vmem:[%s12928_s17 + $0x7e0] sm:$0x3] }
0x105b   :  { %8304 = vmatpush1.bf16.msra.mxu0 %v8303_v50  ;;  %8434 = vmatpush1.bf16.msra.mxu1 %v8433_v4  ;;  %v5833_v50 = vld [vmem:[%s12928_s17 + $0x728] sm:$0xff]  ;;  %v5831_v4 = vld [vmem:[%s12928_s17 + $0x718] sm:$0xff]  ;;  %v8340_v57 = vpack.c.bf16 %v5856_v54, %v5852_v60  ;;  %v6222_v9 = vld [vmem:[%s12931_s26 + $0xe0] sm:$0xff] }
0x105c   :  { %8306 = vmatprep.subr.bf16.mxu0 %v8305_v30  ;;  %8436 = vmatprep.subr.bf16.mxu1 %v8435_v7  ;;  %v8453_v30 = vpack.c.bf16 %v5826_v48, %v5822_v2  ;;  %v5828_v7 = vld [vmem:[%s12928_s17 + $0x700] sm:$0xff]  ;;  %v8325_v52 = vpack.c.bf16 %v5833_v50, %v5829_v63  ;;  %v8455_v10 = vpack.c.bf16 %v5835_v56, %v5831_v4  ;;  %v6196_v2 = vld [vmem:[%s12931_s26 + $0x10] sm:$0xff]  ;;  %v6199_v48 = vld [vmem:[%s12931_s26 + $0x28] sm:$0xff] }
0x105d   :  { %v8327_v32 = vpack.c.bf16 %v5832_v21, %v5828_v7  ;;  %v6201_v63 = vld [vmem:[%s12931_s26 + $0x38] sm:$0xff]  ;;  %v6198_v56 = vld [vmem:[%s12931_s26 + $0x20] sm:$0xff]  ;;  %v6203_v7 = vld [vmem:[%s12931_s26 + $0x48] sm:$0xff] }
0x105e   :  { %v8477_v4 = vpack.c.bf16 %v6201_v63, %v6199_v48  ;;  %v6205_v21 = vld [vmem:[%s12931_s26 + $0x58] sm:$0xff]  ;;  %v6226_v54 = vld [vmem:[%s12931_s26 + $0x100] sm:$0xff]  ;;  %v6236_v63 = vld [vmem:[%s12931_s26 + $0x150] sm:$0xff] }
0x105f   :  { %8308 = vmatpush1.bf16.msra.mxu0 %v8307_v62  ;;  %8438 = vmatpush1.bf16.msra.mxu1 %v8437_v59  ;;  %v5841_v62 = vld [vmem:[%s12928_s17 + $0x768] sm:$0xff]  ;;  %v5839_v59 = vld [vmem:[%s12928_s17 + $0x758] sm:$0xff]  ;;  %v6234_v48 = vld [vmem:[%s12931_s26 + $0x140] sm:$0xff] }
0x1060   :  { %8310 = vmatprep.subr.bf16.mxu0 %v8309_v18  ;;  %8440 = vmatprep.subr.bf16.mxu1 %v8439_v19  ;;  %v8457_v18 = vpack.c.bf16 %v5834_v43, %v5830_v22  ;;  %v5836_v19 = vld [vmem:[%s12928_s17 + $0x740] sm:$0xff]  ;;  %v8329_v15 = vpack.c.bf16 %v5841_v62, %v5837_v58  ;;  %v8459_v28 = vpack.c.bf16 %v5843_v1, %v5839_v59  ;;  %v6204_v43 = vld [vmem:[%s12931_s26 + $0x50] sm:$0xff]  ;;  %v6207_v58 = vld [vmem:[%s12931_s26 + $0x68] sm:$0xff] }
0x1061   :  { %v8331_v16 = vpack.c.bf16 %v5840_v46, %v5836_v19  ;;  %v6202_v22 = vld [vmem:[%s12931_s26 + $0x40] sm:$0xff]  ;;  %v6209_v62 = vld [vmem:[%s12931_s26 + $0x78] sm:$0xff]  ;;  %v6211_v19 = vld [vmem:[%s12931_s26 + $0x88] sm:$0xff] }
0x1062   :  { %v8483_v59 = vpack.c.bf16 %v6204_v43, %v6202_v22  ;;  %v8485_v1 = vpack.c.bf16 %v6209_v62, %v6207_v58  ;;  %v6213_v46 = vld [vmem:[%s12931_s26 + $0x98] sm:$0xff]  ;;  %v6242_v43 = vld [vmem:[%s12931_s26 + $0x180] sm:$0xff]  ;;  %v6244_v58 = vld [vmem:[%s12931_s26 + $0x190] sm:$0xff] }
0x1063   :  { %8312 = vmatpush1.bf16.msra.mxu0 %v8311_v5  ;;  %8442 = vmatpush1.bf16.msra.mxu1 %v8441_v20  ;;  %v5849_v5 = vld [vmem:[%s12928_s17 + $0x7a8] sm:$0xff]  ;;  %v5847_v20 = vld [vmem:[%s12928_s17 + $0x798] sm:$0xff] }
0x1064   :  { %8314 = vmatprep.subr.bf16.mxu0 %v8313_v37  ;;  %8444 = vmatprep.subr.bf16.mxu1 %v8443_v35  ;;  %v8461_v37 = vpack.c.bf16 %v5842_v14, %v5838_v55  ;;  %v5844_v35 = vld [vmem:[%s12928_s17 + $0x780] sm:$0xff]  ;;  %v8333_v27 = vpack.c.bf16 %v5849_v5, %v5845_v31  ;;  %v8463_v8 = vpack.c.bf16 %v5851_v0, %v5847_v20  ;;  %v6212_v14 = vld [vmem:[%s12931_s26 + $0x90] sm:$0xff]  ;;  %v6215_v31 = vld [vmem:[%s12931_s26 + $0xa8] sm:$0xff] }
0x1065   :  { %v6210_v55 = vld [vmem:[%s12931_s26 + $0x80] sm:$0xff]  ;;  %v6217_v5 = vld [vmem:[%s12931_s26 + $0xb8] sm:$0xff]  ;;  %v6247_v62 = vld [vmem:[%s12931_s26 + $0x1a8] sm:$0xff] }
0x1066   :  { %v8491_v20 = vpack.c.bf16 %v6212_v14, %v6210_v55  ;;  %v8493_v0 = vpack.c.bf16 %v6217_v5, %v6215_v31  ;;  %v6229_v60 = vld [vmem:[%s12931_s26 + $0x118] sm:$0xff]  ;;  %v6250_v14 = vld [vmem:[%s12931_s26 + $0x1c0] sm:$0xff]  ;;  %v6252_v31 = vld [vmem:[%s12931_s26 + $0x1d0] sm:$0xff] }
0x1067   :  { %8316 = vmatpush1.bf16.msra.mxu0 %v8315_v47  ;;  %8446 = vmatpush1.bf16.msra.mxu1 %v8445_v41  ;;  %v5439_v47 = vrot.slane %v12393_v45, %v10996_v29  ;;  %v5857_v41 = vld [vmem:[%s12928_s17 + $0x7e8] sm:$0x3]  ;;  %v5858_v45 = vld [vmem:[%s12928_s17 + $0x7f0] sm:$0x3]  ;;  %v8531_v5 = vpack.c.bf16 %v6252_v31, %v6250_v14  ;;  %v6258_v14 = vld [vmem:[%s12931_s26 + $0x200] sm:$0xff] }
0x1068   :  { %8318 = vmatprep.subr.bf16.mxu0 %v8317_v44  ;;  %8448 = vmatprep.subr.bf16.mxu1 %v8447_v12  ;;  %v8335_v44 = vpack.c.bf16 %v5848_v38, %v5844_v35  ;;  %v8465_v12 = vpack.c.bf16 %v5850_v33, %v5846_v42  ;;  %v8337_v51 = vpack.c.bf16 %v5857_v41, %v5853_v61  ;;  %v6219_v35 = vld [vmem:[%s12931_s26 + $0xc8] sm:$0xff]  ;;  %v6221_v38 = vld [vmem:[%s12931_s26 + $0xd8] sm:$0xff]  ;;  %v6218_v42 = vld [vmem:[%s12931_s26 + $0xc0] sm:$0xff] }
0x1069   :  { %v8640_v36 = vadd.f32 %v12382_v11, %v5439_v47  ;;  %v8470_v6 = vpack.c.bf16 %v5858_v45, %v5854_v40  ;;  %v6220_v33 = vld [vmem:[%s12931_s26 + $0xd0] sm:$0xff]  ;;  %v6223_v61 = vld [vmem:[%s12931_s26 + $0xe8] sm:$0xff]  ;;  %v6225_v47 = vld [vmem:[%s12931_s26 + $0xf8] sm:$0xff] }
0x106a   :  { %v8499_v41 = vpack.c.bf16 %v6220_v33, %v6218_v42  ;;  %v8501_v26 = vpack.c.bf16 %v6225_v47, %v6223_v61  ;;  %v6228_v40 = vld [vmem:[%s12931_s26 + $0x110] sm:$0xff]  ;;  %v6231_v45 = vld [vmem:[%s12931_s26 + $0x128] sm:$0xff]  ;;  %v6505_v33 = vld [vmem:[%s9783_s3 + $0x80] sm:$0xff] }
0x106b   :  { %8320 = vmatpush1.bf16.msra.mxu0 %v8319_v53  ;;  %8450 = vmatpush1.bf16.msra.mxu1 %v8449_v34  ;;  %v6195_v53 = vld [vmem:[%s12931_s26 + $0x8] sm:$0xff]  ;;  %v6197_v34 = vld [vmem:[%s12931_s26 + $0x18] sm:$0xff]  ;;  %v5600_v11 = vmul.f32 0.01, %v8640_v36  ;;  %vm5598_vm11 = vcmp.gt.f32.partialorder %v8640_v36, 0.0  ;;  %v6489_v47 = vld [vmem:[%s9783_s3] sm:$0xff] }
0x106c   :  { %8322 = vmatprep.subr.bf16.mxu0 %v8321_v13  ;;  %8452 = vmatprep.subr.bf16.mxu1 %v8451_v24  ;;  %v8473_v13 = vpack.c.bf16 %v6197_v34, %v6195_v53  ;;  %v6194_v24 = vld [vmem:[%s12931_s26] sm:$0xff]  ;;  %v8507_v53 = vpack.c.bf16 %v6228_v40, %v6226_v54  ;;  %v6506_v61 = vld [vmem:[%s9783_s3 + $0x88] sm:$0xff]  ;;  %v6260_v31 = vld [vmem:[%s12931_s26 + $0x210] sm:$0xff] }
0x106d   :  { %v8475_v50 = vpack.c.bf16 %v6196_v2, %v6194_v24  ;;  %v6237_v24 = vld [vmem:[%s12931_s26 + $0x158] sm:$0xff]  ;;  %v6509_v54 = vld [vmem:[%s9783_s3 + $0xa0] sm:$0xff]  ;;  %v6510_v40 = vld [vmem:[%s9783_s3 + $0xa8] sm:$0xff] }
0x106f   :  { %8324 = vmatpush1.bf16.msra.mxu0 %v8323_v39  ;;  %8454 = vmatpush1.bf16.msra.mxu1 %v8453_v30  ;;  %v6200_v39 = vld [vmem:[%s12931_s26 + $0x30] sm:$0xff]  ;;  %v5602_v30 = vsel %vm5598_vm11, %v8640_v36, %v5600_v11  ;;  %v6233_v36 = vld [vmem:[%s12931_s26 + $0x138] sm:$0xff] }
0x1070   :  { %8326 = vmatprep.subr.bf16.mxu0 %v8325_v52  ;;  %8456 = vmatprep.subr.bf16.mxu1 %v8455_v10  ;;  %v8479_v52 = vpack.c.bf16 %v6200_v39, %v6198_v56  ;;  %v8481_v10 = vpack.c.bf16 %v6205_v21, %v6203_v7  ;;  %v8509_v34 = vpack.c.bf16 %v6233_v36, %v6231_v45  ;;  %v6240_v7 = vld [vmem:[%s12931_s26 + $0x170] sm:$0xff]  ;;  %v6243_v21 = vld [vmem:[%s12931_s26 + $0x188] sm:$0xff] }
0x1071   :  { %v8515_v56 = vpack.c.bf16 %v6236_v63, %v6234_v48  ;;  %v8605_v36 = vpack.c.bf16 %v6510_v40, %v6509_v54  ;;  %v6513_v48 = vld [vmem:[%s9783_s3 + $0xc0] sm:$0xff]  ;;  %v6514_v63 = vld [vmem:[%s9783_s3 + $0xc8] sm:$0xff]  ;;  %v6272_v40 = vld [vmem:[%s12931_s26 + $0x270] sm:$0xff] }
0x1072   :  { %v6270_v54 = vld [vmem:[%s12931_s26 + $0x260] sm:$0xff] }
0x1073   :  { %8328 = vmatpush1.bf16.msra.mxu0 %v8327_v32  ;;  %8458 = vmatpush1.bf16.msra.mxu1 %v8457_v18  ;;  %v6206_v32 = vld [vmem:[%s12931_s26 + $0x60] sm:$0xff]  ;;  %v6208_v18 = vld [vmem:[%s12931_s26 + $0x70] sm:$0xff] }
0x1074   :  { %8330 = vmatprep.subr.bf16.mxu0 %v8329_v15  ;;  %8460 = vmatprep.subr.bf16.mxu1 %v8459_v28  ;;  %v8487_v15 = vpack.c.bf16 %v6208_v18, %v6206_v32  ;;  %v8489_v28 = vpack.c.bf16 %v6213_v46, %v6211_v19  ;;  %v6246_v18 = vld [vmem:[%s12931_s26 + $0x1a0] sm:$0xff]  ;;  %v6248_v19 = vld [vmem:[%s12931_s26 + $0x1b0] sm:$0xff]  ;;  %v6251_v46 = vld [vmem:[%s12931_s26 + $0x1c8] sm:$0xff] }
0x1077   :  { %8332 = vmatpush1.bf16.msra.mxu0 %v8331_v16  ;;  %8462 = vmatpush1.bf16.msra.mxu1 %v8461_v37  ;;  %v6214_v16 = vld [vmem:[%s12931_s26 + $0xa0] sm:$0xff]  ;;  %v6216_v37 = vld [vmem:[%s12931_s26 + $0xb0] sm:$0xff] }
0x1078   :  { %8334 = vmatprep.subr.bf16.mxu0 %v8333_v27  ;;  %8464 = vmatprep.subr.bf16.mxu1 %v8463_v8  ;;  %v8495_v27 = vpack.c.bf16 %v6216_v37, %v6214_v16  ;;  %v8497_v8 = vpack.c.bf16 %v6221_v38, %v6219_v35  ;;  %v6254_v16 = vld [vmem:[%s12931_s26 + $0x1e0] sm:$0xff]  ;;  %v6256_v35 = vld [vmem:[%s12931_s26 + $0x1f0] sm:$0xff] }
0x1079   :  { %v8535_v38 = vpack.c.bf16 %v6256_v35, %v6254_v16 }
0x107b   :  { %8336 = vmatpush1.bf16.msra.mxu0 %v8335_v44  ;;  %8466 = vmatpush1.bf16.msra.mxu1 %v8465_v12  ;;  %v6224_v44 = vld [vmem:[%s12931_s26 + $0xf0] sm:$0xff]  ;;  %v6227_v12 = vld [vmem:[%s12931_s26 + $0x108] sm:$0xff] }
0x107c   :  { %8339 = vmatprep.subr.msk.bf16.mxu0 %vm10045_vm12, %v8337_v51  ;;  %8469 = vmatprep.subr.msk.bf16.mxu1 %vm10045_vm12, %v8467_v23  ;;  %v8503_v51 = vpack.c.bf16 %v6224_v44, %v6222_v9  ;;  %v8505_v23 = vpack.c.bf16 %v6229_v60, %v6227_v12  ;;  %v6507_v9 = vld [vmem:[%s9783_s3 + $0x90] sm:$0xff]  ;;  %v6508_v44 = vld [vmem:[%s9783_s3 + $0x98] sm:$0xff] }
0x107d   :  { %v8601_v60 = vpack.c.bf16 %v6508_v44, %v6507_v9  ;;  %v6266_v9 = vld [vmem:[%s12931_s26 + $0x240] sm:$0xff]  ;;  %v6268_v44 = vld [vmem:[%s12931_s26 + $0x250] sm:$0xff] }
0x107f   :  { %8342 = vmatpush1.bf16.msk.msra.mxu0 %vm10045_vm12, %v8340_v57  ;;  %8472 = vmatpush1.bf16.msk.msra.mxu1 %vm10045_vm12, %v8470_v6  ;;  %v6230_v57 = vld [vmem:[%s12931_s26 + $0x120] sm:$0xff]  ;;  %v6232_v6 = vld [vmem:[%s12931_s26 + $0x130] sm:$0xff] }
0x1080   :  { %8474 = vmatprep.subr.bf16.mxu0 %v8473_v13  ;;  %v6235_v13 = vld [vmem:[%s12931_s26 + $0x148] sm:$0xff]  ;;  %v8511_v2 = vpack.c.bf16 %v6232_v6, %v6230_v57  ;;  %v6511_v57 = vld [vmem:[%s9783_s3 + $0xb0] sm:$0xff]  ;;  %v6512_v6 = vld [vmem:[%s9783_s3 + $0xb8] sm:$0xff] }
0x1081   :  { %v8513_v11 = vpack.c.bf16 %v6237_v24, %v6235_v13  ;;  %v8609_v24 = vpack.c.bf16 %v6512_v6, %v6511_v57  ;;  %v6274_v57 = vld [vmem:[%s12931_s26 + $0x280] sm:$0xff]  ;;  %v6276_v6 = vld [vmem:[%s12931_s26 + $0x290] sm:$0xff] }
0x1082   :  { %6034 = vmatmul.mubr.f32.vlgmr.msra.gmra.mrb[48].mxu0 %v5602_v30  ;;  %6176 = vmatmul.mubr.f32.vlgmr.msra.gmra.mrb[64].mxu1 %v5602_v30  ;;  %v6238_v30 = vld [vmem:[%s12931_s26 + $0x160] sm:$0xff] }
0x1083   :  { %8476 = vmatpush1.bf16.msra.mxu0 %v8475_v50  ;;  %v6239_v50 = vld [vmem:[%s12931_s26 + $0x168] sm:$0xff] }
0x1084   :  { %8478 = vmatprep.subr.bf16.mxu0 %v8477_v4  ;;  %v6241_v4 = vld [vmem:[%s12931_s26 + $0x178] sm:$0xff] }
0x1085   :  { %v8517_v39 = vpack.c.bf16 %v6241_v4, %v6239_v50  ;;  %v8613_v4 = vpack.c.bf16 %v6514_v63, %v6513_v48  ;;  %v6278_v48 = vld [vmem:[%s12931_s26 + $0x2a0] sm:$0xff]  ;;  %v6280_v63 = vld [vmem:[%s12931_s26 + $0x2b0] sm:$0xff] }
0x1087   :  { %8480 = vmatpush1.bf16.msra.mxu0 %v8479_v52  ;;  %v6245_v52 = vld [vmem:[%s12931_s26 + $0x198] sm:$0xff] }
0x1088   :  { %8482 = vmatprep.subr.bf16.mxu0 %v8481_v10  ;;  %v8519_v10 = vpack.c.bf16 %v6240_v7, %v6238_v30  ;;  %v8521_v22 = vpack.c.bf16 %v6245_v52, %v6243_v21  ;;  %v6515_v30 = vld [vmem:[%s9783_s3 + $0xd0] sm:$0xff]  ;;  %v6516_v7 = vld [vmem:[%s9783_s3 + $0xd8] sm:$0xff] }
0x1089   :  { %v8617_v52 = vpack.c.bf16 %v6516_v7, %v6515_v30  ;;  %v6282_v30 = vld [vmem:[%s12931_s26 + $0x2c0] sm:$0xff]  ;;  %v6284_v7 = vld [vmem:[%s12931_s26 + $0x2d0] sm:$0xff] }
0x108b   :  { %8484 = vmatpush1.bf16.msra.mxu0 %v8483_v59  ;;  %v6249_v59 = vld [vmem:[%s12931_s26 + $0x1b8] sm:$0xff] }
0x108c   :  { %8486 = vmatprep.subr.bf16.mxu0 %v8485_v1  ;;  %v8523_v1 = vpack.c.bf16 %v6244_v58, %v6242_v43  ;;  %v8525_v32 = vpack.c.bf16 %v6249_v59, %v6247_v62  ;;  %v12627_v58 = vld [vmem:[#allocation43] sm:$0xf] }
0x108d   :  { %v5865_v62 = vrot.slane %v12627_v58, %v10996_v29  ;;  %v5869_v59 = vrot.slane %v12627_v58, %v11010_v17 }
0x108f   :  { %8488 = vmatpush1.bf16.msra.mxu0 %v8487_v15  ;;  %v6253_v15 = vld [vmem:[%s12931_s26 + $0x1d8] sm:$0xff] }
0x1090   :  { %8490 = vmatprep.subr.bf16.mxu0 %v8489_v28  ;;  %v8527_v28 = vpack.c.bf16 %v6248_v19, %v6246_v18  ;;  %v8529_v55 = vpack.c.bf16 %v6253_v15, %v6251_v46 }
0x1093   :  { %8492 = vmatpush1.bf16.msra.mxu0 %v8491_v20  ;;  %v6255_v20 = vld [vmem:[%s12931_s26 + $0x1e8] sm:$0xff] }
0x1094   :  { %8494 = vmatprep.subr.bf16.mxu0 %v8493_v0  ;;  %v6257_v0 = vld [vmem:[%s12931_s26 + $0x1f8] sm:$0xff] }
0x1095   :  { %v8533_v37 = vpack.c.bf16 %v6257_v0, %v6255_v20  ;;  %v6263_v20 = vld [vmem:[%s12931_s26 + $0x228] sm:$0xff]  ;;  %v6265_v0 = vld [vmem:[%s12931_s26 + $0x238] sm:$0xff] }
0x1097   :  { %8496 = vmatpush1.bf16.msra.mxu0 %v8495_v27  ;;  %v6259_v27 = vld [vmem:[%s12931_s26 + $0x208] sm:$0xff] }
0x1098   :  { %8498 = vmatprep.subr.bf16.mxu0 %v8497_v8  ;;  %v6261_v8 = vld [vmem:[%s12931_s26 + $0x218] sm:$0xff] }
0x1099   :  { %v8537_v42 = vpack.c.bf16 %v6261_v8, %v6259_v27  ;;  %v6262_v27 = vld [vmem:[%s12931_s26 + $0x220] sm:$0xff]  ;;  %v6264_v8 = vld [vmem:[%s12931_s26 + $0x230] sm:$0xff] }
0x109b   :  { %8500 = vmatpush1.bf16.msra.mxu0 %v8499_v41  ;;  %v8597_v41 = vpack.c.bf16 %v6506_v61, %v6505_v33  ;;  %v6267_v33 = vld [vmem:[%s12931_s26 + $0x248] sm:$0xff]  ;;  %v6269_v61 = vld [vmem:[%s12931_s26 + $0x258] sm:$0xff] }
0x109c   :  { %8502 = vmatprep.subr.bf16.mxu0 %v8501_v26  ;;  %v6490_v26 = vld [vmem:[%s9783_s3 + $0x8] sm:$0xff] }
0x109d   :  { %v8599_v12 = vpack.c.bf16 %v6490_v26, %v6489_v47  ;;  %8598 = vmatprep.subr.bf16.mxu1 %v8597_v41  ;;  %v8543_v41 = vpack.c.bf16 %v6264_v8, %v6262_v27  ;;  %v8545_v26 = vpack.c.bf16 %v6269_v61, %v6267_v33  ;;  %v6303_v27 = vld [vmem:[%s12931_s26 + $0x368] sm:$0xff]  ;;  %v6305_v8 = vld [vmem:[%s12931_s26 + $0x378] sm:$0xff]  ;;  %v6302_v61 = vld [vmem:[%s12931_s26 + $0x360] sm:$0xff] }
0x109e   :  { %v8581_v33 = vpack.c.bf16 %v6305_v8, %v6303_v27 }
0x109f   :  { %8504 = vmatpush1.bf16.msra.mxu0 %v8503_v51  ;;  %v6491_v51 = vld [vmem:[%s9783_s3 + $0x10] sm:$0xff]  ;;  %8600 = vmatpush3.bf16.msra.mxu1 %v8599_v12  ;;  %v6271_v12 = vld [vmem:[%s12931_s26 + $0x268] sm:$0xff] }
0x10a0   :  { %8506 = vmatprep.subr.bf16.mxu0 %v8505_v23  ;;  %v6492_v23 = vld [vmem:[%s9783_s3 + $0x18] sm:$0xff]  ;;  %8602 = vmatprep.subr.bf16.mxu1 %v8601_v60 }
0x10a1   :  { %v8603_v45 = vpack.c.bf16 %v6492_v23, %v6491_v51  ;;  %v6273_v60 = vld [vmem:[%s12931_s26 + $0x278] sm:$0xff]  ;;  %v8547_v51 = vpack.c.bf16 %v6268_v44, %v6266_v9 }
0x10a2   :  { %v8549_v23 = vpack.c.bf16 %v6273_v60, %v6271_v12  ;;  %v6306_v12 = vld [vmem:[%s12931_s26 + $0x380] sm:$0xff]  ;;  %v6308_v60 = vld [vmem:[%s12931_s26 + $0x390] sm:$0xff] }
0x10a3   :  { %8508 = vmatpush1.bf16.msra.mxu0 %v8507_v53  ;;  %v6493_v53 = vld [vmem:[%s9783_s3 + $0x20] sm:$0xff]  ;;  %8604 = vmatpush3.bf16.msra.mxu1 %v8603_v45  ;;  %v6275_v45 = vld [vmem:[%s12931_s26 + $0x288] sm:$0xff] }
0x10a4   :  { %8510 = vmatprep.subr.bf16.mxu0 %v8509_v34  ;;  %v6494_v34 = vld [vmem:[%s9783_s3 + $0x28] sm:$0xff]  ;;  %8606 = vmatprep.subr.bf16.mxu1 %v8605_v36  ;;  %v6277_v36 = vld [vmem:[%s12931_s26 + $0x298] sm:$0xff] }
0x10a5   :  { %v8607_v13 = vpack.c.bf16 %v6494_v34, %v6493_v53  ;;  %v8551_v53 = vpack.c.bf16 %v6272_v40, %v6270_v54  ;;  %v8553_v34 = vpack.c.bf16 %v6277_v36, %v6275_v45  ;;  %v8587_v54 = vpack.c.bf16 %v6308_v60, %v6306_v12  ;;  %v6310_v45 = vld [vmem:[%s12931_s26 + $0x3a0] sm:$0xff]  ;;  %v6312_v36 = vld [vmem:[%s12931_s26 + $0x3b0] sm:$0xff] }
0x10a7   :  { %8512 = vmatpush1.bf16.msra.mxu0 %v8511_v2  ;;  %v6495_v2 = vld [vmem:[%s9783_s3 + $0x30] sm:$0xff]  ;;  %8608 = vmatpush3.bf16.msra.mxu1 %v8607_v13  ;;  %v6279_v13 = vld [vmem:[%s12931_s26 + $0x2a8] sm:$0xff] }
0x10a8   :  { %8514 = vmatprep.subr.bf16.mxu0 %v8513_v11  ;;  %v6496_v11 = vld [vmem:[%s9783_s3 + $0x38] sm:$0xff]  ;;  %8610 = vmatprep.subr.bf16.mxu1 %v8609_v24 }
0x10a9   :  { %v8611_v50 = vpack.c.bf16 %v6496_v11, %v6495_v2  ;;  %v6281_v24 = vld [vmem:[%s12931_s26 + $0x2b8] sm:$0xff]  ;;  %v8555_v2 = vpack.c.bf16 %v6276_v6, %v6274_v57  ;;  %v5873_v57 = vrot.slane %v12627_v58, %v11707_v49  ;;  %v8591_v6 = vpack.c.bf16 %v6312_v36, %v6310_v45 }
0x10aa   :  { %v8557_v11 = vpack.c.bf16 %v6281_v24, %v6279_v13  ;;  %v6314_v24 = vld [vmem:[%s12931_s26 + $0x3c0] sm:$0xff] }
0x10ab   :  { %8516 = vmatpush1.bf16.msra.mxu0 %v8515_v56  ;;  %v6497_v56 = vld [vmem:[%s9783_s3 + $0x40] sm:$0xff]  ;;  %8612 = vmatpush3.bf16.msra.mxu1 %v8611_v50  ;;  %v6283_v50 = vld [vmem:[%s12931_s26 + $0x2c8] sm:$0xff] }
0x10ac   :  { %8518 = vmatprep.subr.bf16.mxu0 %v8517_v39  ;;  %v6498_v39 = vld [vmem:[%s9783_s3 + $0x48] sm:$0xff]  ;;  %8614 = vmatprep.subr.bf16.mxu1 %v8613_v4  ;;  %v6285_v4 = vld [vmem:[%s12931_s26 + $0x2d8] sm:$0xff] }
0x10ad   :  { %v8615_v21 = vpack.c.bf16 %v6498_v39, %v6497_v56  ;;  %v8559_v56 = vpack.c.bf16 %v6280_v63, %v6278_v48  ;;  %v8561_v39 = vpack.c.bf16 %v6285_v4, %v6283_v50  ;;  %v6319_v63 = vld [vmem:[%s12931_s26 + $0x3e8] sm:$0xf] }
0x10ae   :  { %v6518_v4 = vld [vmem:[%s9783_s3 + $0xe8] sm:$0xff] }
0x10af   :  { %8520 = vmatpush1.bf16.msra.mxu0 %v8519_v10  ;;  %v6499_v10 = vld [vmem:[%s9783_s3 + $0x50] sm:$0xff]  ;;  %8616 = vmatpush3.bf16.msra.mxu1 %v8615_v21  ;;  %v6287_v21 = vld [vmem:[%s12931_s26 + $0x2e8] sm:$0xff] }
0x10b0   :  { %8522 = vmatprep.subr.bf16.mxu0 %v8521_v22  ;;  %v6500_v22 = vld [vmem:[%s9783_s3 + $0x58] sm:$0xff]  ;;  %8618 = vmatprep.subr.bf16.mxu1 %v8617_v52 }
0x10b1   :  { %v8619_v43 = vpack.c.bf16 %v6500_v22, %v6499_v10  ;;  %v6289_v52 = vld [vmem:[%s12931_s26 + $0x2f8] sm:$0xff]  ;;  %v8563_v10 = vpack.c.bf16 %v6284_v7, %v6282_v30  ;;  %v6502_v30 = vld [vmem:[%s9783_s3 + $0x68] sm:$0xff]  ;;  %v6519_v7 = vld [vmem:[%s9783_s3 + $0xf0] sm:$0xff] }
0x10b2   :  { %v8565_v22 = vpack.c.bf16 %v6289_v52, %v6287_v21  ;;  %v6520_v52 = vld [vmem:[%s9783_s3 + $0xf8] sm:$0x3] }
0x10b3   :  { %8524 = vmatpush1.bf16.msra.mxu0 %v8523_v1  ;;  %8620 = vmatpush3.bf16.msra.mxu1 %v8619_v43  ;;  %v5877_v1 = vrot.slane %v12627_v58, %v11710_v25  ;;  %v6286_v43 = vld [vmem:[%s12931_s26 + $0x2e0] sm:$0xff] }
0x10b4   :  { %8526 = vmatprep.subr.bf16.mxu0 %v8525_v32  ;;  %v6318_v58 = vld [vmem:[%s12931_s26 + $0x3e0] sm:$0xf] }
0x10b7   :  { %8528 = vmatpush1.bf16.msra.mxu0 %v8527_v28 }
0x10b8   :  { %8530 = vmatprep.subr.bf16.mxu0 %v8529_v55 }
0x10bb   :  { %8532 = vmatpush1.bf16.msra.mxu0 %v8531_v5 }
0x10bc   :  { %8534 = vmatprep.subr.bf16.mxu0 %v8533_v37  ;;  %v8539_v37 = vpack.c.bf16 %v6260_v31, %v6258_v14 }
0x10bf   :  { %8536 = vmatpush1.bf16.msra.mxu0 %v8535_v38  ;;  %v8541_v38 = vpack.c.bf16 %v6265_v0, %v6263_v20  ;;  %v6296_v20 = vld [vmem:[%s12931_s26 + $0x330] sm:$0xff]  ;;  %v6299_v0 = vld [vmem:[%s12931_s26 + $0x348] sm:$0xff] }
0x10c0   :  { %8538 = vmatprep.subr.bf16.mxu0 %v8537_v42 }
0x1155   :  { %v6035_v32 = vpop.f32.mrb[48].mxu0  ;;  %v12635_v18 = vpop.f32.mrb[64].mxu1 }
0x1156   :  { %v8642_v19 = vadd.f32 %v6035_v32, %v5865_v62  ;;  %v6037_v46 = vpop.f32.mrb[49].mxu0  ;;  %v6179_v15 = vpop.f32.mrb[65].mxu1  ;;  %v6288_v62 = vld [vmem:[%s12931_s26 + $0x2f0] sm:$0xff] }
0x1157   :  { %v8643_v28 = vadd.f32 %v6037_v46, %v5869_v59  ;;  %v8645_v55 = vadd.f32 %v6179_v15, %v5877_v1  ;;  %v6291_v59 = vld [vmem:[%s12931_s26 + $0x308] sm:$0xff]  ;;  %v6293_v1 = vld [vmem:[%s12931_s26 + $0x318] sm:$0xff]  ;;  %v8567_v32 = vpack.c.bf16 %v6288_v62, %v6286_v43  ;;  %v6290_v46 = vld [vmem:[%s12931_s26 + $0x300] sm:$0xff]  ;;  %v8625_v43 = vpack.c.bf16 %v6520_v52, %v6519_v7 }
0x1158   :  { %v6186_v5 = vmul.f32 0.01, %v8642_v19  ;;  %vm6182_vm6 = vcmp.gt.f32.partialorder %v8642_v19, 0.0  ;;  %v6292_v15 = vld [vmem:[%s12931_s26 + $0x310] sm:$0xff] }
0x1159   :  { %v6187_v16 = vmul.f32 0.01, %v8643_v28  ;;  %v6189_v25 = vmul.f32 0.01, %v8645_v55  ;;  %vm6183_vm13 = vcmp.gt.f32.partialorder %v8643_v28, 0.0  ;;  %vm6185_vm0 = vcmp.gt.f32.partialorder %v8645_v55, 0.0 }
0x115a   :  { %v6190_v42 = vsel %vm6182_vm6, %v8642_v19, %v6186_v5  ;;  %v8569_v19 = vpack.c.bf16 %v6293_v1, %v6291_v59  ;;  %v8571_v14 = vpack.c.bf16 %v6292_v15, %v6290_v46  ;;  %v6294_v5 = vld [vmem:[%s12931_s26 + $0x320] sm:$0xff] }
0x115b   :  { %v6191_v35 = vsel %vm6183_vm13, %v8643_v28, %v6187_v16  ;;  %v6193_v47 = vsel %vm6185_vm0, %v8645_v55, %v6189_v25  ;;  %v6295_v28 = vld [vmem:[%s12931_s26 + $0x328] sm:$0xff]  ;;  %v6297_v55 = vld [vmem:[%s12931_s26 + $0x338] sm:$0xff]  ;;  %v8575_v25 = vpack.c.bf16 %v6296_v20, %v6294_v5  ;;  %v6320_v59 = vld [vmem:[#allocation44] sm:$0x3] }
0x115c   :  { %6405 = vmatprep.mubr.f32.mxu0 %v6191_v35  ;;  %v8573_v31 = vpack.c.bf16 %v6297_v55, %v6295_v28  ;;  %v6301_v16 = vld [vmem:[%s12931_s26 + $0x358] sm:$0xff]  ;;  %v6298_v35 = vld [vmem:[%s12931_s26 + $0x340] sm:$0xff]  ;;  %v6325_v1 = vrot.slane %v6320_v59, %v10996_v29 }
0x115d   :  { %6406 = vmatmul.mubr.f32.vlgmr.msra.gmra.mrb[50].mxu0 %v6190_v42  ;;  %v6780_v20 = vld [vmem:[#allocation2] ss:$0 sm:$0xff] }
0x115e   :  { %8540 = vmatpush1.bf16.msra.mxu0 %v8539_v37  ;;  %6779 = vmatprep.mubr.msk.f32.mxu0 %vm5446_vm4, %v6193_v47  ;;  %v8577_v37 = vpack.c.bf16 %v6301_v16, %v6299_v0  ;;  %v6304_v47 = vld [vmem:[%s12931_s26 + $0x370] sm:$0xff] }
0x115f   :  { %8542 = vmatprep.subr.bf16.mxu0 %v8541_v38  ;;  %v6300_v38 = vld [vmem:[%s12931_s26 + $0x350] sm:$0xff]  ;;  %v8583_v9 = vpack.c.bf16 %v6304_v47, %v6302_v61 }
0x1160   :  { %v8579_v42 = vpack.c.bf16 %v6300_v38, %v6298_v35 }
0x1162   :  { %8544 = vmatpush1.bf16.msra.mxu0 %v8543_v41  ;;  %v6307_v41 = vld [vmem:[%s12931_s26 + $0x388] sm:$0xff] }
0x1163   :  { %8546 = vmatprep.subr.bf16.mxu0 %v8545_v26  ;;  %v6309_v26 = vld [vmem:[%s12931_s26 + $0x398] sm:$0xff] }
0x1164   :  { %v8585_v44 = vpack.c.bf16 %v6309_v26, %v6307_v41 }
0x1166   :  { %8548 = vmatpush1.bf16.msra.mxu0 %v8547_v51  ;;  %v6311_v51 = vld [vmem:[%s12931_s26 + $0x3a8] sm:$0xff] }
0x1167   :  { %8550 = vmatprep.subr.bf16.mxu0 %v8549_v23  ;;  %v6313_v23 = vld [vmem:[%s12931_s26 + $0x3b8] sm:$0xff] }
0x1168   :  { %v8589_v40 = vpack.c.bf16 %v6313_v23, %v6311_v51 }
0x116a   :  { %8552 = vmatpush1.bf16.msra.mxu0 %v8551_v53  ;;  %v6315_v53 = vld [vmem:[%s12931_s26 + $0x3c8] sm:$0xff] }
0x116b   :  { %8554 = vmatprep.subr.bf16.mxu0 %v8553_v34  ;;  %v6317_v34 = vld [vmem:[%s12931_s26 + $0x3d8] sm:$0xff] }
0x116c   :  { %v8593_v13 = vpack.c.bf16 %v6317_v34, %v6315_v53 }
0x116e   :  { %8556 = vmatpush1.bf16.msra.mxu0 %v8555_v2  ;;  %v6316_v2 = vld [vmem:[%s12931_s26 + $0x3d0] sm:$0xff] }
0x116f   :  { %8558 = vmatprep.subr.bf16.mxu0 %v8557_v11  ;;  %v8644_v11 = vadd.f32 %v12635_v18, %v5873_v57  ;;  %v8595_v48 = vpack.c.bf16 %v6316_v2, %v6314_v24  ;;  %v6517_v18 = vld [vmem:[%s9783_s3 + $0xe0] sm:$0xff] }
0x1171   :  { %v6188_v49 = vmul.f32 0.01, %v8644_v11  ;;  %vm6184_vm7 = vcmp.gt.f32.partialorder %v8644_v11, 0.0 }
0x1172   :  { %8560 = vmatpush1.bf16.msra.mxu0 %v8559_v56  ;;  %v8621_v56 = vpack.c.bf16 %v6518_v4, %v6517_v18 }
0x1173   :  { %8562 = vmatprep.subr.bf16.mxu0 %v8561_v39  ;;  %v6192_v50 = vsel %vm6184_vm7, %v8644_v11, %v6188_v49  ;;  %v6501_v39 = vld [vmem:[%s9783_s3 + $0x60] sm:$0xff] }
0x1174   :  { %v8623_v21 = vpack.c.bf16 %v6502_v30, %v6501_v39  ;;  %8622 = vmatprep.subr.bf16.mxu1 %v8621_v56 }
0x1176   :  { %8564 = vmatpush1.bf16.msra.mxu0 %v8563_v10  ;;  %v6503_v10 = vld [vmem:[%s9783_s3 + $0x70] sm:$0xff]  ;;  %8624 = vmatpush3.bf16.msra.mxu1 %v8623_v21 }
0x1177   :  { %8566 = vmatprep.subr.bf16.mxu0 %v8565_v22  ;;  %v6504_v22 = vld [vmem:[%s9783_s3 + $0x78] sm:$0xff]  ;;  %8627 = vmatprep.subr.msk.bf16.mxu1 %vm10045_vm12, %v8625_v43  ;;  %vm6610_vm12 = vcmask 3072  }
0x1178   :  { %v8628_v62 = vpack.c.bf16 %v6504_v22, %v6503_v10 }
0x117a   :  { %8568 = vmatpush1.bf16.msra.mxu0 %v8567_v32  ;;  %8629 = vmatpush3.bf16.msra.mxu1 %v8628_v62  ;;  %v6329_v32 = vrot.slane %v6320_v59, %v11010_v17 }
0x117b   :  { %8570 = vmatprep.subr.bf16.mxu0 %v8569_v19 }
0x117e   :  { %8572 = vmatpush1.bf16.msra.mxu0 %v8571_v14 }
0x117f   :  { %8574 = vmatprep.subr.bf16.mxu0 %v8573_v31 }
0x1182   :  { %8576 = vmatpush1.bf16.msra.mxu0 %v8575_v25 }
0x1183   :  { %8578 = vmatprep.subr.bf16.mxu0 %v8577_v37 }
0x1186   :  { %8580 = vmatpush1.bf16.msra.mxu0 %v8579_v42 }
0x1187   :  { %8582 = vmatprep.subr.bf16.mxu0 %v8581_v33 }
0x118a   :  { %8584 = vmatpush1.bf16.msra.mxu0 %v8583_v9 }
0x118b   :  { %8586 = vmatprep.subr.bf16.mxu0 %v8585_v44 }
0x118e   :  { %8588 = vmatpush1.bf16.msra.mxu0 %v8587_v54 }
0x118f   :  { %8590 = vmatprep.subr.bf16.mxu0 %v8589_v40 }
0x1192   :  { %8592 = vmatpush1.bf16.msra.mxu0 %v8591_v6 }
0x1193   :  { %8594 = vmatprep.subr.bf16.mxu0 %v8593_v13 }
0x1196   :  { %8596 = vmatpush1.bf16.msra.mxu0 %v8595_v48 }
0x1197   :  { %6777 = vmatprep.subr.msk.mxu0 %vm12932_vm8, %v6319_v63 }
0x119a   :  { %6778 = vmatpush1.msk.msra.mxu0 %vm12933_vm14, %v6318_v58 }
0x119b   :  { %6477 = vmatmul.mubr.f32.vlgmr.msra.gmra.mrb[50].mxu0 %v6192_v50 }
0x126e   :  { %v6478_v19 = vpop.f32.mrb[50].mxu0 }
0x126f   :  { %v8646_v46 = vadd.f32 %v6478_v19, %v6325_v1  ;;  %v6480_v15 = vpop.f32.mrb[51].mxu0 }
0x1270   :  { %v8647_v28 = vadd.f32 %v6480_v15, %v6329_v32 }
0x1271   :  { %v6485_v55 = vmul.f32 0.01, %v8646_v46  ;;  %vm6483_vm1 = vcmp.gt.f32.partialorder %v8646_v46, 0.0 }
0x1272   :  { %vm6484_vm10 = vcmp.gt.f32.partialorder %v8647_v28, 0.0  ;;  %v6486_v14 = vmul.f32 0.01, %v8647_v28 }
0x1273   :  { %v6487_v3 = vsel %vm6483_vm1, %v8646_v46, %v6485_v55 }
0x1274   :  { %v6488_v31 = vsel %vm6484_vm10, %v8647_v28, %v6486_v14 }
0x1275   :  { %6782 = vmatprep.mubr.msk.f32.mxu1 %vm5882_vm5, %v6488_v31 }
0x1276   :  { %6599 = vmatmul.mubr.f32.vlgmr.msra.gmra.mrb[66].mxu1 %v6487_v3 }
0x1349   :  { %v7078_v5 = vpop.f32.mrb[66].mxu1 }
0x134a   :  { %v7079_v0 = vpop.f32.mrb[67].mxu1 }
0x134b   :  { %v7080_v29 = vadd.f32 %v7079_v0, %v7078_v5 }
0x134d   :  { %v6601_v16 = vadd.f32 %v7080_v29, %v6780_v20 }
0x134f   :  { %v6604_v17 = vsub.f32 0.0, %v6601_v16 }
0x1351   :  { %v6605_v25 = vmul.f32 1.442695, %v6604_v17 }
0x1353   :  { %8822 = vpow2.f32 %v6605_v25 }
0x135d   :  { %v8823_v37 = vpop.eup %8822 }
0x135e   :  { %v6607_v35 = vadd.f32 1.0, %v8823_v37 }
0x1360   :  { %8824 = vrcp.f32 %v6607_v35 }
0x136a   :  { %v8825_v38 = vpop.eup %8824 }
0x136b   :  { %6611 = vst.msk [vmem:[%s9791_s4] sm:$0xf] %vm6610_vm12, %v8825_v38 }
0x136c   :  { %6616 = vsyncpa [#allocation4], 1 }
0x136d   :  { %6617 = vsyncpa [#allocation6], 1 }
0x136e   :  { %6618 = vsyncpa [#allocation9], 1 }
0x136f   :  { %6619 = vsyncpa [#allocation12], 1 }
0x1370   :  { %6620 = vsyncpa [#allocation15], 1 }
0x1371   :  { %6621 = vsyncpa [#allocation18], 1 }
0x1372   :  { %6622 = vsyncpa [#allocation21], 1 }
0x1373   :  { %6623 = vsyncpa [#allocation24], 1 }
0x1374   :  { %6624 = vsyncpa [#allocation27], 1 }
0x1375   :  { %6625 = vsyncpa [#allocation30], 1 }
0x1376   :  { %6626 = vsyncpa [#allocation33], 1 }
0x1377   :  { %6627 = vsyncpa [#allocation36], 1 }
0x1378   :  { %6628 = vsyncpa [#allocation39], 1 }
0x1379   :  { %6629 = vsyncpa [#allocation42], 1 }
0x137a   :  { %6630 = vsyncpa [#allocation45], 1 }

</bundles_post_ra>
